<compile_context>
chip_gen: v7x
topology: tpu7x:2x2x1
jax: 0.10.0
libtpu: 0.0.40
codegen_flags: <defaults>
</compile_context>

<pallas_src>
import math

import numpy as np

import jax
import jax.numpy as jnp
from jax.experimental import pallas as pl
from jax.experimental.pallas import tpu as pltpu


# --------------------------------------------------------------------------- kernel body
def _make_ffb_kernel(Bt, H, W, C, has_skip):
    """Fused FeatureFusionBlock kernel for Bt (H, W, C) images per grid step."""
    HW = H * W
    M = Bt * HW
    H2, W2 = 2 * H, 2 * W

    def _zero_halo(pad_ref):
        # Zero only the 1-wide halo; the interior is fully overwritten by every conv.
        zrow = jnp.zeros((Bt, 1, W, 3 * C), pad_ref.dtype)
        pad_ref[:, 0:1] = zrow                                     # top halo row
        pad_ref[:, H + 1:H + 2] = zrow                             # bottom halo row
        zcol = jnp.zeros((Bt, H, 1, C), pad_ref.dtype)
        pad_ref[:, 1:H + 1, 0:1, 0:C] = zcol                       # left halo (dw=0 slot)
        pad_ref[:, 1:H + 1, W - 1:W, 2 * C:3 * C] = zcol           # right halo (dw=2 slot)

    def _conv3x3(pad_ref, src, w_ref, b_ref):
        # src: (M, C) f32 pre-activation.  ReLU + bf16 cast once, three W-shifted copies
        # into the halo scratch, then 3 accumulated (M, 3C) @ (3C, C) MXU matmuls.
        a = jnp.maximum(src, 0.0).astype(jnp.bfloat16).reshape(Bt, H, W, C)
        pad_ref[:, 1:H + 1, :, C:2 * C] = a                        # dw = 1 (center)
        pad_ref[:, 1:H + 1, 1:W, 0:C] = a[:, :, :W - 1, :]         # dw = 0 (left tap)
        pad_ref[:, 1:H + 1, :W - 1, 2 * C:3 * C] = a[:, :, 1:, :]  # dw = 2 (right tap)
        acc = jnp.dot(pad_ref[:, 0:H].reshape(M, 3 * C), w_ref[0],
                      preferred_element_type=jnp.float32)
        for dh in (1, 2):
            patch = pad_ref[:, dh:dh + H].reshape(M, 3 * C)
            acc = acc + jnp.dot(patch, w_ref[dh],
                                preferred_element_type=jnp.float32)
        return acc + b_ref[...]

    def _rcu(x, wa_ref, ba_ref, wb_ref, bb_ref, pad_ref):
        # ResidualConvUnit: conv2(relu(conv1(relu(x)))) + x, on (M, C) f32.
        h = _conv3x3(pad_ref, x, wa_ref, ba_ref)
        h = _conv3x3(pad_ref, h, wb_ref, bb_ref)
        return h + x

    def _upsample2x(flat, up_ref, o_ref):
        # flat: (M, C) f32.  One (4HW, HW) @ (HW, C) bf16 matmul per image, then a single
        # contiguous lane-dense store of the whole (2H, 2W, C) output image.
        t = flat.astype(jnp.bfloat16).reshape(Bt, HW, C)
        up = up_ref[...]                                           # (4HW, HW) bf16
        for b in range(Bt):
            img = jnp.dot(up, t[b], preferred_element_type=jnp.float32)
            o_ref[b] = img.reshape(H2, W2, C).astype(o_ref.dtype)

    if has_skip:
        def kernel(x0_ref, x1_ref,
                   w1a_ref, b1a_ref, w1b_ref, b1b_ref,
                   w2a_ref, b2a_ref, w2b_ref, b2b_ref,
                   up_ref, o_ref, pad_ref):
            _zero_halo(pad_ref)
            out = x0_ref[...].reshape(M, C).astype(jnp.float32)
            skip = x1_ref[...].reshape(M, C).astype(jnp.float32)
            out = out + _rcu(skip, w1a_ref, b1a_ref, w1b_ref, b1b_ref, pad_ref)
            out = _rcu(out, w2a_ref, b2a_ref, w2b_ref, b2b_ref, pad_ref)
            _upsample2x(out, up_ref, o_ref)
    else:
        def kernel(x0_ref,
                   w2a_ref, b2a_ref, w2b_ref, b2b_ref,
                   up_ref, o_ref, pad_ref):
            _zero_halo(pad_ref)
            out = x0_ref[...].reshape(M, C).astype(jnp.float32)
            out = _rcu(out, w2a_ref, b2a_ref, w2b_ref, b2b_ref, pad_ref)
            _upsample2x(out, up_ref, o_ref)

    return kernel


# ----------------------------------------------------------------------------- wrapper
def _up_matrix(H, W):
    """kron(Ah, Aw): (4HW, HW) bilinear align_corners=True x2 interp matrix, bf16."""
    def interp(n_in, n_out):
        src = np.arange(n_out) * (n_in - 1) / (n_out - 1)
        i0 = np.minimum(np.floor(src).astype(np.int64), n_in - 2)
        f = src - i0
        m = np.zeros((n_out, n_in), np.float64)
        m[np.arange(n_out), i0] += 1.0 - f
        m[np.arange(n_out), i0 + 1] += f
        return m
    a = np.kron(interp(H, 2 * H), interp(W, 2 * W))   # built in f64, rounded once to bf16
    return jnp.asarray(a, dtype=jnp.bfloat16)


def prepare_params(params):
    """One-time conversion of PyTorch Conv2d params to the kernel layout.

    params = {"rcu1": ((w, b), (w, b)), "rcu2": ((w, b), (w, b))}, w: (C, C, 3, 3), b: (C,)
    -> weights packed tap-row-major (3, 3C, C) bf16 (contraction axis = concat over dw of
       the input channels), biases as (1, C) f32.
    """
    def conv(w, b):
        C = b.shape[0]
        wk = jnp.transpose(w, (2, 3, 1, 0)).reshape(3, 3 * C, C).astype(jnp.bfloat16)
        return wk, b.reshape(1, C).astype(jnp.float32)

    return {name: tuple(conv(w, b) for (w, b) in convs) for name, convs in params.items()}


def feature_fusion_block(prepared, x0, x1=None):
    """FeatureFusionBlock forward. Inputs in NHWC; returns (B, 2H, 2W, C)."""
    B, H, W, C = x0.shape
    H2, W2 = 2 * H, 2 * W
    HW = H * W
    has_skip = x1 is not None

    # Batch tile: grow the MXU M dim (M = Bt*H*W) while keeping the f32 accumulator
    # register-resident (M capped at ~256 rows).
    Bt = 1
    for cand in range(min(B, max(1, 256 // HW)), 0, -1):
        if B % cand == 0:
            Bt = cand
            break

    convs = (list(prepared["rcu1"]) if has_skip else []) + list(prepared["rcu2"])
    up = _up_matrix(H, W)   # TODO(synk): factored (Ah, Aw) path for large H*W.

    img_spec = pl.BlockSpec((Bt, H, W, C), lambda b: (b, 0, 0, 0))
    w_spec = pl.BlockSpec((3, 3 * C, C), lambda b: (0, 0, 0))      # constant -> DMA'd once
    b_spec = pl.BlockSpec((1, C), lambda b: (0, 0))
    up_spec = pl.BlockSpec((4 * HW, HW), lambda b: (0, 0))
    # TODO(synk): pipeline_mode=pl.Buffered(1) on the constant specs would halve their VMEM.

    inputs = [x0] + ([x1] if has_skip else [])
    in_specs = [img_spec] * len(inputs)
    for wk, bk in convs:
        inputs += [wk, bk]
        in_specs += [w_spec, b_spec]
    inputs.append(up)
    in_specs.append(up_spec)

    n_conv = len(convs)
    n_img = 2 if has_skip else 1
    flops = B * (n_conv * 3 * 2 * HW * (3 * C) * C     # conv MXU matmuls (K = 3C)
                 + 2 * (4 * HW) * HW * C)              # upsample matmul
    bytes_accessed = (n_img * B * HW * C * x0.dtype.itemsize
                      + B * H2 * W2 * C * x0.dtype.itemsize
                      + n_conv * (3 * 3 * C * C * 2 + C * 4)
                      + 4 * HW * HW * 2)

    # VMEM budget: double-buffered images/outputs + constants + halo scratch, with headroom.
    footprint = (n_img * 2 * Bt * HW * C * 4
                 + 2 * Bt * H2 * W2 * C * 4
                 + 2 * n_conv * (3 * 3 * C * C * 2 + C * 4)
                 + 2 * 4 * HW * HW * 2
                 + Bt * (H + 2) * W * 3 * C * 2)
    vmem_limit = int(min(max(4 * footprint, 16 * 1024 * 1024), 64 * 1024 * 1024))

    return pl.pallas_call(
        _make_ffb_kernel(Bt, H, W, C, has_skip),
        out_shape=jax.ShapeDtypeStruct((B, H2, W2, C), x0.dtype),
        grid=(B // Bt,),
        in_specs=in_specs,
        out_specs=pl.BlockSpec((Bt, H2, W2, C), lambda b: (b, 0, 0, 0)),
        scratch_shapes=[pltpu.VMEM((Bt, H + 2, W, 3 * C), jnp.bfloat16)],  # halo scratch
        compiler_params=pltpu.CompilerParams(
            dimension_semantics=("parallel",),
            vmem_limit_bytes=vmem_limit,
        ),
        cost_estimate=pl.CostEstimate(
            flops=int(flops), transcendentals=0, bytes_accessed=int(bytes_accessed)),
    )(*inputs)


# ---------------------------------------------------------------------------- reference
def _conv3x3_ref(x, w, b):
    k = jnp.transpose(w, (2, 3, 1, 0))  # OIHW -> HWIO
    y = jax.lax.conv_general_dilated(
        x, k, window_strides=(1, 1), padding=((1, 1), (1, 1)),
        dimension_numbers=("NHWC", "HWIO", "NHWC"),
        precision=jax.lax.Precision.HIGHEST)
    return y + b


def _rcu_ref(x, convs):
    (w1, b1), (w2, b2) = convs
    out = jax.nn.relu(x)
    out = _conv3x3_ref(out, w1, b1)
    out = jax.nn.relu(out)
    out = _conv3x3_ref(out, w2, b2)
    return out + x


def _upsample2x_ref(x):
    B, H, W, C = x.shape
    H2, W2 = 2 * H, 2 * W
    hs = (jnp.arange(H2) * (H - 1)).astype(jnp.float32) / (H2 - 1)
    h0 = jnp.minimum(jnp.floor(hs).astype(jnp.int32), H - 2)
    fh = (hs - h0.astype(jnp.float32))[None, :, None, None]
    ws = (jnp.arange(W2) * (W - 1)).astype(jnp.float32) / (W2 - 1)
    w0 = jnp.minimum(jnp.floor(ws).astype(jnp.int32), W - 2)
    fw = (ws - w0.astype(jnp.float32))[None, None, :, None]
    xh = (1.0 - fh) * x[:, h0, :, :] + fh * x[:, h0 + 1, :, :]
    return (1.0 - fw) * xh[:, :, w0, :] + fw * xh[:, :, w0 + 1, :]


def feature_fusion_block_ref(params, x0, x1=None):
    out = x0
    if x1 is not None:
        out = out + _rcu_ref(x1, params["rcu1"])
    out = _rcu_ref(out, params["rcu2"])
    return _upsample2x_ref(out)


# --------------------------------------------------------------------------------- demo
def _init_params(key, C):
    keys = jax.random.split(key, 8)
    bound = 1.0 / math.sqrt(9 * C)

    def conv(kw, kb):
        w = jax.random.uniform(kw, (C, C, 3, 3), jnp.float32, -bound, bound)
        b = jax.random.uniform(kb, (C,), jnp.float32, -bound, bound)
        return w, b

    return {"rcu1": (conv(keys[0], keys[1]), conv(keys[2], keys[3])),
            "rcu2": (conv(keys[4], keys[5]), conv(keys[6], keys[7]))}


if __name__ == "__main__":
    # NHWC; C = 128 keeps every matmul operand and store lane-dense (128-lane axis).
    B, H, W, C = 2, 8, 8, 128
    key = jax.random.PRNGKey(0)
    k0, k1, kp = jax.random.split(key, 3)
    x0 = jax.random.normal(k0, (B, H, W, C), dtype=jnp.float32)
    x1 = jax.random.normal(k1, (B, H, W, C), dtype=jnp.float32)

    params = _init_params(kp, C)          # PyTorch Conv2d layout (OIHW weights)
    prepared = prepare_params(params)     # one-time weight relayout (not per call)

    # Two-input path: out = interp2x(rcu2(xs[0] + rcu1(xs[1])))
    out2 = jax.block_until_ready(feature_fusion_block(prepared, x0, x1))
    ref2 = feature_fusion_block_ref(params, x0, x1)
    assert out2.shape == (B, 2 * H, 2 * W, C)
    assert jnp.allclose(out2, ref2, atol=5e-2, rtol=5e-2), \
        float(jnp.max(jnp.abs(out2 - ref2)))

    # One-input path: out = interp2x(rcu2(xs[0]))
    out1 = jax.block_until_ready(feature_fusion_block(prepared, x0))
    ref1 = feature_fusion_block_ref(params, x0)
    assert out1.shape == (B, 2 * H, 2 * W, C)
    assert jnp.allclose(out1, ref1, atol=5e-2, rtol=5e-2), \
        float(jnp.max(jnp.abs(out1 - ref1)))

    print("KERNEL_OK")
</pallas_src>

<mosaic_0001>
module attributes {stable_mosaic.version = 11 : i64} {
  func.func @kernel(%arg0: i32, %arg1: memref<2x8x8x128xf32, #tpu.memory_space<vmem>>, %arg2: memref<2x8x8x128xf32, #tpu.memory_space<vmem>>, %arg3: memref<3x384x128xbf16, #tpu.memory_space<vmem>>, %arg4: memref<1x128xf32, #tpu.memory_space<vmem>>, %arg5: memref<3x384x128xbf16, #tpu.memory_space<vmem>>, %arg6: memref<1x128xf32, #tpu.memory_space<vmem>>, %arg7: memref<3x384x128xbf16, #tpu.memory_space<vmem>>, %arg8: memref<1x128xf32, #tpu.memory_space<vmem>>, %arg9: memref<3x384x128xbf16, #tpu.memory_space<vmem>>, %arg10: memref<1x128xf32, #tpu.memory_space<vmem>>, %arg11: memref<256x64xbf16, #tpu.memory_space<vmem>>, %arg12: memref<2x16x16x128xf32, #tpu.memory_space<vmem>>, %arg13: memref<2x10x8x384xbf16, #tpu.memory_space<vmem>>) attributes {dimension_semantics = [#tpu.dimension_semantics<parallel>], iteration_bounds = array<i64: 1>, scalar_prefetch = 0 : i64, scratch_operands = 1 : i64, tpu.core_type = #tpu.core_type<tc>, window_params = [{transform_indices = @transform_0, window_bounds = array<i64: 2, 8, 8, 128>}, {transform_indices = @transform_1, window_bounds = array<i64: 2, 8, 8, 128>}, {pipeline_mode = #tpu.pipeline_mode<synchronous>, transform_indices = @transform_2, window_bounds = array<i64: 3, 384, 128>}, {pipeline_mode = #tpu.pipeline_mode<synchronous>, transform_indices = @transform_3, window_bounds = array<i64: 1, 128>}, {pipeline_mode = #tpu.pipeline_mode<synchronous>, transform_indices = @transform_4, window_bounds = array<i64: 3, 384, 128>}, {pipeline_mode = #tpu.pipeline_mode<synchronous>, transform_indices = @transform_5, window_bounds = array<i64: 1, 128>}, {pipeline_mode = #tpu.pipeline_mode<synchronous>, transform_indices = @transform_6, window_bounds = array<i64: 3, 384, 128>}, {pipeline_mode = #tpu.pipeline_mode<synchronous>, transform_indices = @transform_7, window_bounds = array<i64: 1, 128>}, {pipeline_mode = #tpu.pipeline_mode<synchronous>, transform_indices = @transform_8, window_bounds = array<i64: 3, 384, 128>}, {pipeline_mode = #tpu.pipeline_mode<synchronous>, transform_indices = @transform_9, window_bounds = array<i64: 1, 128>}, {pipeline_mode = #tpu.pipeline_mode<synchronous>, transform_indices = @transform_10, window_bounds = array<i64: 256, 64>}, {transform_indices = @transform_11, window_bounds = array<i64: 2, 16, 16, 128>}]} {
    %cst = arith.constant 0.000000e+00 : bf16
    %0 = vector.broadcast %cst : bf16 to vector<2x1x8x384xbf16>
    %c0 = arith.constant 0 : index
    %c0_0 = arith.constant 0 : index
    %c0_1 = arith.constant 0 : index
    %c0_2 = arith.constant 0 : index
    %1 = vector.load %arg13[%c0, %c0_0, %c0_1, %c0_2] : memref<2x10x8x384xbf16, #tpu.memory_space<vmem>>, vector<2x1x8x384xbf16>
    tpu.vector_store %arg13[%c0, %c0_0, %c0_1, %c0_2], %0 {strides = array<i32>} : memref<2x10x8x384xbf16, #tpu.memory_space<vmem>>, vector<2x1x8x384xbf16>,
    %c0_3 = arith.constant 0 : index
    %c9 = arith.constant 9 : index
    %c0_4 = arith.constant 0 : index
    %c0_5 = arith.constant 0 : index
    %2 = vector.load %arg13[%c0_3, %c9, %c0_4, %c0_5] : memref<2x10x8x384xbf16, #tpu.memory_space<vmem>>, vector<2x1x8x384xbf16>
    tpu.vector_store %arg13[%c0_3, %c9, %c0_4, %c0_5], %0 {strides = array<i32>} : memref<2x10x8x384xbf16, #tpu.memory_space<vmem>>, vector<2x1x8x384xbf16>,
    %cst_6 = arith.constant 0.000000e+00 : bf16
    %3 = vector.broadcast %cst_6 : bf16 to vector<2x8x1x128xbf16>
    %c0_7 = arith.constant 0 : index
    %c1 = arith.constant 1 : index
    %c0_8 = arith.constant 0 : index
    %c0_9 = arith.constant 0 : index
    %4 = vector.load %arg13[%c0_7, %c1, %c0_8, %c0_9] : memref<2x10x8x384xbf16, #tpu.memory_space<vmem>>, vector<2x8x1x128xbf16>
    tpu.vector_store %arg13[%c0_7, %c1, %c0_8, %c0_9], %3 {strides = array<i32>} : memref<2x10x8x384xbf16, #tpu.memory_space<vmem>>, vector<2x8x1x128xbf16>,
    %c0_10 = arith.constant 0 : index
    %c1_11 = arith.constant 1 : index
    %c7 = arith.constant 7 : index
    %c256 = arith.constant 256 : index
    %5 = vector.load %arg13[%c0_10, %c1_11, %c7, %c256] : memref<2x10x8x384xbf16, #tpu.memory_space<vmem>>, vector<2x8x1x128xbf16>
    tpu.vector_store %arg13[%c0_10, %c1_11, %c7, %c256], %3 {strides = array<i32>} : memref<2x10x8x384xbf16, #tpu.memory_space<vmem>>, vector<2x8x1x128xbf16>,
    %c0_12 = arith.constant 0 : index
    %c0_13 = arith.constant 0 : index
    %c0_14 = arith.constant 0 : index
    %c0_15 = arith.constant 0 : index
    %6 = vector.load %arg1[%c0_12, %c0_13, %c0_14, %c0_15] : memref<2x8x8x128xf32, #tpu.memory_space<vmem>>, vector<2x8x8x128xf32>
    %7 = vector.shape_cast %6 : vector<2x8x8x128xf32> to vector<128x128xf32>
    %c0_16 = arith.constant 0 : index
    %c0_17 = arith.constant 0 : index
    %c0_18 = arith.constant 0 : index
    %c0_19 = arith.constant 0 : index
    %8 = vector.load %arg2[%c0_16, %c0_17, %c0_18, %c0_19] : memref<2x8x8x128xf32, #tpu.memory_space<vmem>>, vector<2x8x8x128xf32>
    %9 = vector.shape_cast %8 : vector<2x8x8x128xf32> to vector<128x128xf32>
    %cst_20 = arith.constant 0.000000e+00 : f32
    %10 = vector.broadcast %cst_20 : f32 to vector<128x128xf32>
    %11 = arith.maximumf %9, %10 : vector<128x128xf32>
    %12 = arith.truncf %11 : vector<128x128xf32> to vector<128x128xbf16>
    %13 = vector.shape_cast %12 : vector<128x128xbf16> to vector<2x8x8x128xbf16>
    %c0_21 = arith.constant 0 : index
    %c1_22 = arith.constant 1 : index
    %c0_23 = arith.constant 0 : index
    %c128 = arith.constant 128 : index
    %14 = vector.load %arg13[%c0_21, %c1_22, %c0_23, %c128] : memref<2x10x8x384xbf16, #tpu.memory_space<vmem>>, vector<2x8x8x128xbf16>
    tpu.vector_store %arg13[%c0_21, %c1_22, %c0_23, %c128], %13 {strides = array<i32>} : memref<2x10x8x384xbf16, #tpu.memory_space<vmem>>, vector<2x8x8x128xbf16>,
    %15 = vector.extract_strided_slice %13 {offsets = [0, 0, 0, 0], sizes = [2, 8, 7, 128], strides = [1, 1, 1, 1]} : vector<2x8x8x128xbf16> to vector<2x8x7x128xbf16>
    %c0_24 = arith.constant 0 : index
    %c1_25 = arith.constant 1 : index
    %c1_26 = arith.constant 1 : index
    %c0_27 = arith.constant 0 : index
    %16 = vector.load %arg13[%c0_24, %c1_25, %c1_26, %c0_27] : memref<2x10x8x384xbf16, #tpu.memory_space<vmem>>, vector<2x8x7x128xbf16>
    tpu.vector_store %arg13[%c0_24, %c1_25, %c1_26, %c0_27], %15 {strides = array<i32>} : memref<2x10x8x384xbf16, #tpu.memory_space<vmem>>, vector<2x8x7x128xbf16>,
    %17 = vector.extract_strided_slice %13 {offsets = [0, 0, 1, 0], sizes = [2, 8, 7, 128], strides = [1, 1, 1, 1]} : vector<2x8x8x128xbf16> to vector<2x8x7x128xbf16>
    %c0_28 = arith.constant 0 : index
    %c1_29 = arith.constant 1 : index
    %c0_30 = arith.constant 0 : index
    %c256_31 = arith.constant 256 : index
    %18 = vector.load %arg13[%c0_28, %c1_29, %c0_30, %c256_31] : memref<2x10x8x384xbf16, #tpu.memory_space<vmem>>, vector<2x8x7x128xbf16>
    tpu.vector_store %arg13[%c0_28, %c1_29, %c0_30, %c256_31], %17 {strides = array<i32>} : memref<2x10x8x384xbf16, #tpu.memory_space<vmem>>, vector<2x8x7x128xbf16>,
    %c0_32 = arith.constant 0 : index
    %c0_33 = arith.constant 0 : index
    %c0_34 = arith.constant 0 : index
    %c0_35 = arith.constant 0 : index
    %19 = vector.load %arg13[%c0_32, %c0_33, %c0_34, %c0_35] : memref<2x10x8x384xbf16, #tpu.memory_space<vmem>>, vector<2x8x8x384xbf16>
    %20 = vector.shape_cast %19 : vector<2x8x8x384xbf16> to vector<128x384xbf16>
    %c0_36 = arith.constant 0 : index
    %c0_37 = arith.constant 0 : index
    %c0_38 = arith.constant 0 : index
    %21 = vector.load %arg3[%c0_36, %c0_37, %c0_38] : memref<3x384x128xbf16, #tpu.memory_space<vmem>>, vector<1x384x128xbf16>
    %22 = vector.shape_cast %21 : vector<1x384x128xbf16> to vector<384x128xbf16>
    %cst_39 = arith.constant dense<0.000000e+00> : vector<128x128xf32>
    %23 = tpu.matmul %20, %22, %cst_39 {dimension_numbers = #tpu.dot_dimension_numbers<[1], [0], [0], [1], [0, 0, 1, 1], [], []>} : vector<128x384xbf16>, vector<384x128xbf16>, vector<128x128xf32> -> vector<128x128xf32>
    %c0_40 = arith.constant 0 : index
    %c1_41 = arith.constant 1 : index
    %c0_42 = arith.constant 0 : index
    %c0_43 = arith.constant 0 : index
    %24 = vector.load %arg13[%c0_40, %c1_41, %c0_42, %c0_43] : memref<2x10x8x384xbf16, #tpu.memory_space<vmem>>, vector<2x8x8x384xbf16>
    %25 = vector.shape_cast %24 : vector<2x8x8x384xbf16> to vector<128x384xbf16>
    %c1_44 = arith.constant 1 : index
    %c0_45 = arith.constant 0 : index
    %c0_46 = arith.constant 0 : index
    %26 = vector.load %arg3[%c1_44, %c0_45, %c0_46] : memref<3x384x128xbf16, #tpu.memory_space<vmem>>, vector<1x384x128xbf16>
    %27 = vector.shape_cast %26 : vector<1x384x128xbf16> to vector<384x128xbf16>
    %cst_47 = arith.constant dense<0.000000e+00> : vector<128x128xf32>
    %28 = tpu.matmul %25, %27, %cst_47 {dimension_numbers = #tpu.dot_dimension_numbers<[1], [0], [0], [1], [0, 0, 1, 1], [], []>} : vector<128x384xbf16>, vector<384x128xbf16>, vector<128x128xf32> -> vector<128x128xf32>
    %29 = arith.addf %23, %28 : vector<128x128xf32>
    %c0_48 = arith.constant 0 : index
    %c2 = arith.constant 2 : index
    %c0_49 = arith.constant 0 : index
    %c0_50 = arith.constant 0 : index
    %30 = vector.load %arg13[%c0_48, %c2, %c0_49, %c0_50] : memref<2x10x8x384xbf16, #tpu.memory_space<vmem>>, vector<2x8x8x384xbf16>
    %31 = vector.shape_cast %30 : vector<2x8x8x384xbf16> to vector<128x384xbf16>
    %c2_51 = arith.constant 2 : index
    %c0_52 = arith.constant 0 : index
    %c0_53 = arith.constant 0 : index
    %32 = vector.load %arg3[%c2_51, %c0_52, %c0_53] : memref<3x384x128xbf16, #tpu.memory_space<vmem>>, vector<1x384x128xbf16>
    %33 = vector.shape_cast %32 : vector<1x384x128xbf16> to vector<384x128xbf16>
    %cst_54 = arith.constant dense<0.000000e+00> : vector<128x128xf32>
    %34 = tpu.matmul %31, %33, %cst_54 {dimension_numbers = #tpu.dot_dimension_numbers<[1], [0], [0], [1], [0, 0, 1, 1], [], []>} : vector<128x384xbf16>, vector<384x128xbf16>, vector<128x128xf32> -> vector<128x128xf32>
    %35 = arith.addf %29, %34 : vector<128x128xf32>
    %c0_55 = arith.constant 0 : index
    %c0_56 = arith.constant 0 : index
    %36 = vector.load %arg4[%c0_55, %c0_56] : memref<1x128xf32, #tpu.memory_space<vmem>>, vector<1x128xf32>
    %37 = vector.broadcast %36 : vector<1x128xf32> to vector<128x128xf32>
    %38 = arith.addf %35, %37 : vector<128x128xf32>
    %cst_57 = arith.constant 0.000000e+00 : f32
    %39 = vector.broadcast %cst_57 : f32 to vector<128x128xf32>
    %40 = arith.maximumf %38, %39 : vector<128x128xf32>
    %41 = arith.truncf %40 : vector<128x128xf32> to vector<128x128xbf16>
    %42 = vector.shape_cast %41 : vector<128x128xbf16> to vector<2x8x8x128xbf16>
    %c0_58 = arith.constant 0 : index
    %c1_59 = arith.constant 1 : index
    %c0_60 = arith.constant 0 : index
    %c128_61 = arith.constant 128 : index
    %43 = vector.load %arg13[%c0_58, %c1_59, %c0_60, %c128_61] : memref<2x10x8x384xbf16, #tpu.memory_space<vmem>>, vector<2x8x8x128xbf16>
    tpu.vector_store %arg13[%c0_58, %c1_59, %c0_60, %c128_61], %42 {strides = array<i32>} : memref<2x10x8x384xbf16, #tpu.memory_space<vmem>>, vector<2x8x8x128xbf16>,
    %44 = vector.extract_strided_slice %42 {offsets = [0, 0, 0, 0], sizes = [2, 8, 7, 128], strides = [1, 1, 1, 1]} : vector<2x8x8x128xbf16> to vector<2x8x7x128xbf16>
    %c0_62 = arith.constant 0 : index
    %c1_63 = arith.constant 1 : index
    %c1_64 = arith.constant 1 : index
    %c0_65 = arith.constant 0 : index
    %45 = vector.load %arg13[%c0_62, %c1_63, %c1_64, %c0_65] : memref<2x10x8x384xbf16, #tpu.memory_space<vmem>>, vector<2x8x7x128xbf16>
    tpu.vector_store %arg13[%c0_62, %c1_63, %c1_64, %c0_65], %44 {strides = array<i32>} : memref<2x10x8x384xbf16, #tpu.memory_space<vmem>>, vector<2x8x7x128xbf16>,
    %46 = vector.extract_strided_slice %42 {offsets = [0, 0, 1, 0], sizes = [2, 8, 7, 128], strides = [1, 1, 1, 1]} : vector<2x8x8x128xbf16> to vector<2x8x7x128xbf16>
    %c0_66 = arith.constant 0 : index
    %c1_67 = arith.constant 1 : index
    %c0_68 = arith.constant 0 : index
    %c256_69 = arith.constant 256 : index
    %47 = vector.load %arg13[%c0_66, %c1_67, %c0_68, %c256_69] : memref<2x10x8x384xbf16, #tpu.memory_space<vmem>>, vector<2x8x7x128xbf16>
    tpu.vector_store %arg13[%c0_66, %c1_67, %c0_68, %c256_69], %46 {strides = array<i32>} : memref<2x10x8x384xbf16, #tpu.memory_space<vmem>>, vector<2x8x7x128xbf16>,
    %c0_70 = arith.constant 0 : index
    %c0_71 = arith.constant 0 : index
    %c0_72 = arith.constant 0 : index
    %c0_73 = arith.constant 0 : index
    %48 = vector.load %arg13[%c0_70, %c0_71, %c0_72, %c0_73] : memref<2x10x8x384xbf16, #tpu.memory_space<vmem>>, vector<2x8x8x384xbf16>
    %49 = vector.shape_cast %48 : vector<2x8x8x384xbf16> to vector<128x384xbf16>
    %c0_74 = arith.constant 0 : index
    %c0_75 = arith.constant 0 : index
    %c0_76 = arith.constant 0 : index
    %50 = vector.load %arg5[%c0_74, %c0_75, %c0_76] : memref<3x384x128xbf16, #tpu.memory_space<vmem>>, vector<1x384x128xbf16>
    %51 = vector.shape_cast %50 : vector<1x384x128xbf16> to vector<384x128xbf16>
    %cst_77 = arith.constant dense<0.000000e+00> : vector<128x128xf32>
    %52 = tpu.matmul %49, %51, %cst_77 {dimension_numbers = #tpu.dot_dimension_numbers<[1], [0], [0], [1], [0, 0, 1, 1], [], []>} : vector<128x384xbf16>, vector<384x128xbf16>, vector<128x128xf32> -> vector<128x128xf32>
    %c0_78 = arith.constant 0 : index
    %c1_79 = arith.constant 1 : index
    %c0_80 = arith.constant 0 : index
    %c0_81 = arith.constant 0 : index
    %53 = vector.load %arg13[%c0_78, %c1_79, %c0_80, %c0_81] : memref<2x10x8x384xbf16, #tpu.memory_space<vmem>>, vector<2x8x8x384xbf16>
    %54 = vector.shape_cast %53 : vector<2x8x8x384xbf16> to vector<128x384xbf16>
    %c1_82 = arith.constant 1 : index
    %c0_83 = arith.constant 0 : index
    %c0_84 = arith.constant 0 : index
    %55 = vector.load %arg5[%c1_82, %c0_83, %c0_84] : memref<3x384x128xbf16, #tpu.memory_space<vmem>>, vector<1x384x128xbf16>
    %56 = vector.shape_cast %55 : vector<1x384x128xbf16> to vector<384x128xbf16>
    %cst_85 = arith.constant dense<0.000000e+00> : vector<128x128xf32>
    %57 = tpu.matmul %54, %56, %cst_85 {dimension_numbers = #tpu.dot_dimension_numbers<[1], [0], [0], [1], [0, 0, 1, 1], [], []>} : vector<128x384xbf16>, vector<384x128xbf16>, vector<128x128xf32> -> vector<128x128xf32>
    %58 = arith.addf %52, %57 : vector<128x128xf32>
    %c0_86 = arith.constant 0 : index
    %c2_87 = arith.constant 2 : index
    %c0_88 = arith.constant 0 : index
    %c0_89 = arith.constant 0 : index
    %59 = vector.load %arg13[%c0_86, %c2_87, %c0_88, %c0_89] : memref<2x10x8x384xbf16, #tpu.memory_space<vmem>>, vector<2x8x8x384xbf16>
    %60 = vector.shape_cast %59 : vector<2x8x8x384xbf16> to vector<128x384xbf16>
    %c2_90 = arith.constant 2 : index
    %c0_91 = arith.constant 0 : index
    %c0_92 = arith.constant 0 : index
    %61 = vector.load %arg5[%c2_90, %c0_91, %c0_92] : memref<3x384x128xbf16, #tpu.memory_space<vmem>>, vector<1x384x128xbf16>
    %62 = vector.shape_cast %61 : vector<1x384x128xbf16> to vector<384x128xbf16>
    %cst_93 = arith.constant dense<0.000000e+00> : vector<128x128xf32>
    %63 = tpu.matmul %60, %62, %cst_93 {dimension_numbers = #tpu.dot_dimension_numbers<[1], [0], [0], [1], [0, 0, 1, 1], [], []>} : vector<128x384xbf16>, vector<384x128xbf16>, vector<128x128xf32> -> vector<128x128xf32>
    %64 = arith.addf %58, %63 : vector<128x128xf32>
    %c0_94 = arith.constant 0 : index
    %c0_95 = arith.constant 0 : index
    %65 = vector.load %arg6[%c0_94, %c0_95] : memref<1x128xf32, #tpu.memory_space<vmem>>, vector<1x128xf32>
    %66 = vector.broadcast %65 : vector<1x128xf32> to vector<128x128xf32>
    %67 = arith.addf %64, %66 : vector<128x128xf32>
    %68 = arith.addf %67, %9 : vector<128x128xf32>
    %69 = arith.addf %7, %68 : vector<128x128xf32>
    %cst_96 = arith.constant 0.000000e+00 : f32
    %70 = vector.broadcast %cst_96 : f32 to vector<128x128xf32>
    %71 = arith.maximumf %69, %70 : vector<128x128xf32>
    %72 = arith.truncf %71 : vector<128x128xf32> to vector<128x128xbf16>
    %73 = vector.shape_cast %72 : vector<128x128xbf16> to vector<2x8x8x128xbf16>
    %c0_97 = arith.constant 0 : index
    %c1_98 = arith.constant 1 : index
    %c0_99 = arith.constant 0 : index
    %c128_100 = arith.constant 128 : index
    %74 = vector.load %arg13[%c0_97, %c1_98, %c0_99, %c128_100] : memref<2x10x8x384xbf16, #tpu.memory_space<vmem>>, vector<2x8x8x128xbf16>
    tpu.vector_store %arg13[%c0_97, %c1_98, %c0_99, %c128_100], %73 {strides = array<i32>} : memref<2x10x8x384xbf16, #tpu.memory_space<vmem>>, vector<2x8x8x128xbf16>,
    %75 = vector.extract_strided_slice %73 {offsets = [0, 0, 0, 0], sizes = [2, 8, 7, 128], strides = [1, 1, 1, 1]} : vector<2x8x8x128xbf16> to vector<2x8x7x128xbf16>
    %c0_101 = arith.constant 0 : index
    %c1_102 = arith.constant 1 : index
    %c1_103 = arith.constant 1 : index
    %c0_104 = arith.constant 0 : index
    %76 = vector.load %arg13[%c0_101, %c1_102, %c1_103, %c0_104] : memref<2x10x8x384xbf16, #tpu.memory_space<vmem>>, vector<2x8x7x128xbf16>
    tpu.vector_store %arg13[%c0_101, %c1_102, %c1_103, %c0_104], %75 {strides = array<i32>} : memref<2x10x8x384xbf16, #tpu.memory_space<vmem>>, vector<2x8x7x128xbf16>,
    %77 = vector.extract_strided_slice %73 {offsets = [0, 0, 1, 0], sizes = [2, 8, 7, 128], strides = [1, 1, 1, 1]} : vector<2x8x8x128xbf16> to vector<2x8x7x128xbf16>
    %c0_105 = arith.constant 0 : index
    %c1_106 = arith.constant 1 : index
    %c0_107 = arith.constant 0 : index
    %c256_108 = arith.constant 256 : index
    %78 = vector.load %arg13[%c0_105, %c1_106, %c0_107, %c256_108] : memref<2x10x8x384xbf16, #tpu.memory_space<vmem>>, vector<2x8x7x128xbf16>
    tpu.vector_store %arg13[%c0_105, %c1_106, %c0_107, %c256_108], %77 {strides = array<i32>} : memref<2x10x8x384xbf16, #tpu.memory_space<vmem>>, vector<2x8x7x128xbf16>,
    %c0_109 = arith.constant 0 : index
    %c0_110 = arith.constant 0 : index
    %c0_111 = arith.constant 0 : index
    %c0_112 = arith.constant 0 : index
    %79 = vector.load %arg13[%c0_109, %c0_110, %c0_111, %c0_112] : memref<2x10x8x384xbf16, #tpu.memory_space<vmem>>, vector<2x8x8x384xbf16>
    %80 = vector.shape_cast %79 : vector<2x8x8x384xbf16> to vector<128x384xbf16>
    %c0_113 = arith.constant 0 : index
    %c0_114 = arith.constant 0 : index
    %c0_115 = arith.constant 0 : index
    %81 = vector.load %arg7[%c0_113, %c0_114, %c0_115] : memref<3x384x128xbf16, #tpu.memory_space<vmem>>, vector<1x384x128xbf16>
    %82 = vector.shape_cast %81 : vector<1x384x128xbf16> to vector<384x128xbf16>
    %cst_116 = arith.constant dense<0.000000e+00> : vector<128x128xf32>
    %83 = tpu.matmul %80, %82, %cst_116 {dimension_numbers = #tpu.dot_dimension_numbers<[1], [0], [0], [1], [0, 0, 1, 1], [], []>} : vector<128x384xbf16>, vector<384x128xbf16>, vector<128x128xf32> -> vector<128x128xf32>
    %c0_117 = arith.constant 0 : index
    %c1_118 = arith.constant 1 : index
    %c0_119 = arith.constant 0 : index
    %c0_120 = arith.constant 0 : index
    %84 = vector.load %arg13[%c0_117, %c1_118, %c0_119, %c0_120] : memref<2x10x8x384xbf16, #tpu.memory_space<vmem>>, vector<2x8x8x384xbf16>
    %85 = vector.shape_cast %84 : vector<2x8x8x384xbf16> to vector<128x384xbf16>
    %c1_121 = arith.constant 1 : index
    %c0_122 = arith.constant 0 : index
    %c0_123 = arith.constant 0 : index
    %86 = vector.load %arg7[%c1_121, %c0_122, %c0_123] : memref<3x384x128xbf16, #tpu.memory_space<vmem>>, vector<1x384x128xbf16>
    %87 = vector.shape_cast %86 : vector<1x384x128xbf16> to vector<384x128xbf16>
    %cst_124 = arith.constant dense<0.000000e+00> : vector<128x128xf32>
    %88 = tpu.matmul %85, %87, %cst_124 {dimension_numbers = #tpu.dot_dimension_numbers<[1], [0], [0], [1], [0, 0, 1, 1], [], []>} : vector<128x384xbf16>, vector<384x128xbf16>, vector<128x128xf32> -> vector<128x128xf32>
    %89 = arith.addf %83, %88 : vector<128x128xf32>
    %c0_125 = arith.constant 0 : index
    %c2_126 = arith.constant 2 : index
    %c0_127 = arith.constant 0 : index
    %c0_128 = arith.constant 0 : index
    %90 = vector.load %arg13[%c0_125, %c2_126, %c0_127, %c0_128] : memref<2x10x8x384xbf16, #tpu.memory_space<vmem>>, vector<2x8x8x384xbf16>
    %91 = vector.shape_cast %90 : vector<2x8x8x384xbf16> to vector<128x384xbf16>
    %c2_129 = arith.constant 2 : index
    %c0_130 = arith.constant 0 : index
    %c0_131 = arith.constant 0 : index
    %92 = vector.load %arg7[%c2_129, %c0_130, %c0_131] : memref<3x384x128xbf16, #tpu.memory_space<vmem>>, vector<1x384x128xbf16>
    %93 = vector.shape_cast %92 : vector<1x384x128xbf16> to vector<384x128xbf16>
    %cst_132 = arith.constant dense<0.000000e+00> : vector<128x128xf32>
    %94 = tpu.matmul %91, %93, %cst_132 {dimension_numbers = #tpu.dot_dimension_numbers<[1], [0], [0], [1], [0, 0, 1, 1], [], []>} : vector<128x384xbf16>, vector<384x128xbf16>, vector<128x128xf32> -> vector<128x128xf32>
    %95 = arith.addf %89, %94 : vector<128x128xf32>
    %c0_133 = arith.constant 0 : index
    %c0_134 = arith.constant 0 : index
    %96 = vector.load %arg8[%c0_133, %c0_134] : memref<1x128xf32, #tpu.memory_space<vmem>>, vector<1x128xf32>
    %97 = vector.broadcast %96 : vector<1x128xf32> to vector<128x128xf32>
    %98 = arith.addf %95, %97 : vector<128x128xf32>
    %cst_135 = arith.constant 0.000000e+00 : f32
    %99 = vector.broadcast %cst_135 : f32 to vector<128x128xf32>
    %100 = arith.maximumf %98, %99 : vector<128x128xf32>
    %101 = arith.truncf %100 : vector<128x128xf32> to vector<128x128xbf16>
    %102 = vector.shape_cast %101 : vector<128x128xbf16> to vector<2x8x8x128xbf16>
    %c0_136 = arith.constant 0 : index
    %c1_137 = arith.constant 1 : index
    %c0_138 = arith.constant 0 : index
    %c128_139 = arith.constant 128 : index
    %103 = vector.load %arg13[%c0_136, %c1_137, %c0_138, %c128_139] : memref<2x10x8x384xbf16, #tpu.memory_space<vmem>>, vector<2x8x8x128xbf16>
    tpu.vector_store %arg13[%c0_136, %c1_137, %c0_138, %c128_139], %102 {strides = array<i32>} : memref<2x10x8x384xbf16, #tpu.memory_space<vmem>>, vector<2x8x8x128xbf16>,
    %104 = vector.extract_strided_slice %102 {offsets = [0, 0, 0, 0], sizes = [2, 8, 7, 128], strides = [1, 1, 1, 1]} : vector<2x8x8x128xbf16> to vector<2x8x7x128xbf16>
    %c0_140 = arith.constant 0 : index
    %c1_141 = arith.constant 1 : index
    %c1_142 = arith.constant 1 : index
    %c0_143 = arith.constant 0 : index
    %105 = vector.load %arg13[%c0_140, %c1_141, %c1_142, %c0_143] : memref<2x10x8x384xbf16, #tpu.memory_space<vmem>>, vector<2x8x7x128xbf16>
    tpu.vector_store %arg13[%c0_140, %c1_141, %c1_142, %c0_143], %104 {strides = array<i32>} : memref<2x10x8x384xbf16, #tpu.memory_space<vmem>>, vector<2x8x7x128xbf16>,
    %106 = vector.extract_strided_slice %102 {offsets = [0, 0, 1, 0], sizes = [2, 8, 7, 128], strides = [1, 1, 1, 1]} : vector<2x8x8x128xbf16> to vector<2x8x7x128xbf16>
    %c0_144 = arith.constant 0 : index
    %c1_145 = arith.constant 1 : index
    %c0_146 = arith.constant 0 : index
    %c256_147 = arith.constant 256 : index
    %107 = vector.load %arg13[%c0_144, %c1_145, %c0_146, %c256_147] : memref<2x10x8x384xbf16, #tpu.memory_space<vmem>>, vector<2x8x7x128xbf16>
    tpu.vector_store %arg13[%c0_144, %c1_145, %c0_146, %c256_147], %106 {strides = array<i32>} : memref<2x10x8x384xbf16, #tpu.memory_space<vmem>>, vector<2x8x7x128xbf16>,
    %c0_148 = arith.constant 0 : index
    %c0_149 = arith.constant 0 : index
    %c0_150 = arith.constant 0 : index
    %c0_151 = arith.constant 0 : index
    %108 = vector.load %arg13[%c0_148, %c0_149, %c0_150, %c0_151] : memref<2x10x8x384xbf16, #tpu.memory_space<vmem>>, vector<2x8x8x384xbf16>
    %109 = vector.shape_cast %108 : vector<2x8x8x384xbf16> to vector<128x384xbf16>
    %c0_152 = arith.constant 0 : index
    %c0_153 = arith.constant 0 : index
    %c0_154 = arith.constant 0 : index
    %110 = vector.load %arg9[%c0_152, %c0_153, %c0_154] : memref<3x384x128xbf16, #tpu.memory_space<vmem>>, vector<1x384x128xbf16>
    %111 = vector.shape_cast %110 : vector<1x384x128xbf16> to vector<384x128xbf16>
    %cst_155 = arith.constant dense<0.000000e+00> : vector<128x128xf32>
    %112 = tpu.matmul %109, %111, %cst_155 {dimension_numbers = #tpu.dot_dimension_numbers<[1], [0], [0], [1], [0, 0, 1, 1], [], []>} : vector<128x384xbf16>, vector<384x128xbf16>, vector<128x128xf32> -> vector<128x128xf32>
    %c0_156 = arith.constant 0 : index
    %c1_157 = arith.constant 1 : index
    %c0_158 = arith.constant 0 : index
    %c0_159 = arith.constant 0 : index
    %113 = vector.load %arg13[%c0_156, %c1_157, %c0_158, %c0_159] : memref<2x10x8x384xbf16, #tpu.memory_space<vmem>>, vector<2x8x8x384xbf16>
    %114 = vector.shape_cast %113 : vector<2x8x8x384xbf16> to vector<128x384xbf16>
    %c1_160 = arith.constant 1 : index
    %c0_161 = arith.constant 0 : index
    %c0_162 = arith.constant 0 : index
    %115 = vector.load %arg9[%c1_160, %c0_161, %c0_162] : memref<3x384x128xbf16, #tpu.memory_space<vmem>>, vector<1x384x128xbf16>
    %116 = vector.shape_cast %115 : vector<1x384x128xbf16> to vector<384x128xbf16>
    %cst_163 = arith.constant dense<0.000000e+00> : vector<128x128xf32>
    %117 = tpu.matmul %114, %116, %cst_163 {dimension_numbers = #tpu.dot_dimension_numbers<[1], [0], [0], [1], [0, 0, 1, 1], [], []>} : vector<128x384xbf16>, vector<384x128xbf16>, vector<128x128xf32> -> vector<128x128xf32>
    %118 = arith.addf %112, %117 : vector<128x128xf32>
    %c0_164 = arith.constant 0 : index
    %c2_165 = arith.constant 2 : index
    %c0_166 = arith.constant 0 : index
    %c0_167 = arith.constant 0 : index
    %119 = vector.load %arg13[%c0_164, %c2_165, %c0_166, %c0_167] : memref<2x10x8x384xbf16, #tpu.memory_space<vmem>>, vector<2x8x8x384xbf16>
    %120 = vector.shape_cast %119 : vector<2x8x8x384xbf16> to vector<128x384xbf16>
    %c2_168 = arith.constant 2 : index
    %c0_169 = arith.constant 0 : index
    %c0_170 = arith.constant 0 : index
    %121 = vector.load %arg9[%c2_168, %c0_169, %c0_170] : memref<3x384x128xbf16, #tpu.memory_space<vmem>>, vector<1x384x128xbf16>
    %122 = vector.shape_cast %121 : vector<1x384x128xbf16> to vector<384x128xbf16>
    %cst_171 = arith.constant dense<0.000000e+00> : vector<128x128xf32>
    %123 = tpu.matmul %120, %122, %cst_171 {dimension_numbers = #tpu.dot_dimension_numbers<[1], [0], [0], [1], [0, 0, 1, 1], [], []>} : vector<128x384xbf16>, vector<384x128xbf16>, vector<128x128xf32> -> vector<128x128xf32>
    %124 = arith.addf %118, %123 : vector<128x128xf32>
    %c0_172 = arith.constant 0 : index
    %c0_173 = arith.constant 0 : index
    %125 = vector.load %arg10[%c0_172, %c0_173] : memref<1x128xf32, #tpu.memory_space<vmem>>, vector<1x128xf32>
    %126 = vector.broadcast %125 : vector<1x128xf32> to vector<128x128xf32>
    %127 = arith.addf %124, %126 : vector<128x128xf32>
    %128 = arith.addf %127, %69 : vector<128x128xf32>
    %129 = arith.truncf %128 : vector<128x128xf32> to vector<128x128xbf16>
    %130 = vector.shape_cast %129 : vector<128x128xbf16> to vector<2x64x128xbf16>
    %c0_174 = arith.constant 0 : index
    %c0_175 = arith.constant 0 : index
    %131 = vector.load %arg11[%c0_174, %c0_175] : memref<256x64xbf16, #tpu.memory_space<vmem>>, vector<256x64xbf16>
    %132 = vector.extract_strided_slice %130 {offsets = [0, 0, 0], sizes = [1, 64, 128], strides = [1, 1, 1]} : vector<2x64x128xbf16> to vector<1x64x128xbf16>
    %133 = vector.shape_cast %132 : vector<1x64x128xbf16> to vector<64x128xbf16>
    %cst_176 = arith.constant dense<0.000000e+00> : vector<256x128xf32>
    %134 = tpu.matmul %131, %133, %cst_176 {dimension_numbers = #tpu.dot_dimension_numbers<[1], [0], [0], [1], [0, 0, 1, 1], [], []>} : vector<256x64xbf16>, vector<64x128xbf16>, vector<256x128xf32> -> vector<256x128xf32>
    %135 = vector.shape_cast %134 : vector<256x128xf32> to vector<16x16x128xf32>
    %c0_177 = arith.constant 0 : index
    %c0_178 = arith.constant 0 : index
    %c0_179 = arith.constant 0 : index
    %c0_180 = arith.constant 0 : index
    %136 = vector.load %arg12[%c0_177, %c0_178, %c0_179, %c0_180] : memref<2x16x16x128xf32, #tpu.memory_space<vmem>>, vector<1x16x16x128xf32>
    %137 = vector.shape_cast %136 : vector<1x16x16x128xf32> to vector<16x16x128xf32>
    %138 = vector.shape_cast %135 : vector<16x16x128xf32> to vector<1x16x16x128xf32>
    tpu.vector_store %arg12[%c0_177, %c0_178, %c0_179, %c0_180], %138 {strides = array<i32>} : memref<2x16x16x128xf32, #tpu.memory_space<vmem>>, vector<1x16x16x128xf32>,
    %139 = vector.extract_strided_slice %130 {offsets = [1, 0, 0], sizes = [1, 64, 128], strides = [1, 1, 1]} : vector<2x64x128xbf16> to vector<1x64x128xbf16>
    %140 = vector.shape_cast %139 : vector<1x64x128xbf16> to vector<64x128xbf16>
    %cst_181 = arith.constant dense<0.000000e+00> : vector<256x128xf32>
    %141 = tpu.matmul %131, %140, %cst_181 {dimension_numbers = #tpu.dot_dimension_numbers<[1], [0], [0], [1], [0, 0, 1, 1], [], []>} : vector<256x64xbf16>, vector<64x128xbf16>, vector<256x128xf32> -> vector<256x128xf32>
    %142 = vector.shape_cast %141 : vector<256x128xf32> to vector<16x16x128xf32>
    %c1_182 = arith.constant 1 : index
    %c0_183 = arith.constant 0 : index
    %c0_184 = arith.constant 0 : index
    %c0_185 = arith.constant 0 : index
    %143 = vector.load %arg12[%c1_182, %c0_183, %c0_184, %c0_185] : memref<2x16x16x128xf32, #tpu.memory_space<vmem>>, vector<1x16x16x128xf32>
    %144 = vector.shape_cast %143 : vector<1x16x16x128xf32> to vector<16x16x128xf32>
    %145 = vector.shape_cast %142 : vector<16x16x128xf32> to vector<1x16x16x128xf32>
    tpu.vector_store %arg12[%c1_182, %c0_183, %c0_184, %c0_185], %145 {strides = array<i32>} : memref<2x16x16x128xf32, #tpu.memory_space<vmem>>, vector<1x16x16x128xf32>,
    return
  }
  func.func @transform_0(%arg0: i32) -> (i32, i32, i32, i32) {
    %c0_i32 = arith.constant 0 : i32
    %c0_i32_0 = arith.constant 0 : i32
    %c0_i32_1 = arith.constant 0 : i32
    %c0_i32_2 = arith.constant 0 : i32
    return %arg0, %c0_i32, %c0_i32_0, %c0_i32_1 : i32, i32, i32, i32
  }
  func.func @transform_1(%arg0: i32) -> (i32, i32, i32, i32) {
    %c0_i32 = arith.constant 0 : i32
    %c0_i32_0 = arith.constant 0 : i32
    %c0_i32_1 = arith.constant 0 : i32
    %c0_i32_2 = arith.constant 0 : i32
    return %arg0, %c0_i32, %c0_i32_0, %c0_i32_1 : i32, i32, i32, i32
  }
  func.func @transform_2(%arg0: i32) -> (i32, i32, i32) {
    %c0_i32 = arith.constant 0 : i32
    %c0_i32_0 = arith.constant 0 : i32
    %c0_i32_1 = arith.constant 0 : i32
    %c0_i32_2 = arith.constant 0 : i32
    return %c0_i32, %c0_i32_0, %c0_i32_1 : i32, i32, i32
  }
  func.func @transform_3(%arg0: i32) -> (i32, i32) {
    %c0_i32 = arith.constant 0 : i32
    %c0_i32_0 = arith.constant 0 : i32
    %c0_i32_1 = arith.constant 0 : i32
    return %c0_i32, %c0_i32_0 : i32, i32
  }
  func.func @transform_4(%arg0: i32) -> (i32, i32, i32) {
    %c0_i32 = arith.constant 0 : i32
    %c0_i32_0 = arith.constant 0 : i32
    %c0_i32_1 = arith.constant 0 : i32
    %c0_i32_2 = arith.constant 0 : i32
    return %c0_i32, %c0_i32_0, %c0_i32_1 : i32, i32, i32
  }
  func.func @transform_5(%arg0: i32) -> (i32, i32) {
    %c0_i32 = arith.constant 0 : i32
    %c0_i32_0 = arith.constant 0 : i32
    %c0_i32_1 = arith.constant 0 : i32
    return %c0_i32, %c0_i32_0 : i32, i32
  }
  func.func @transform_6(%arg0: i32) -> (i32, i32, i32) {
    %c0_i32 = arith.constant 0 : i32
    %c0_i32_0 = arith.constant 0 : i32
    %c0_i32_1 = arith.constant 0 : i32
    %c0_i32_2 = arith.constant 0 : i32
    return %c0_i32, %c0_i32_0, %c0_i32_1 : i32, i32, i32
  }
  func.func @transform_7(%arg0: i32) -> (i32, i32) {
    %c0_i32 = arith.constant 0 : i32
    %c0_i32_0 = arith.constant 0 : i32
    %c0_i32_1 = arith.constant 0 : i32
    return %c0_i32, %c0_i32_0 : i32, i32
  }
  func.func @transform_8(%arg0: i32) -> (i32, i32, i32) {
    %c0_i32 = arith.constant 0 : i32
    %c0_i32_0 = arith.constant 0 : i32
    %c0_i32_1 = arith.constant 0 : i32
    %c0_i32_2 = arith.constant 0 : i32
    return %c0_i32, %c0_i32_0, %c0_i32_1 : i32, i32, i32
  }
  func.func @transform_9(%arg0: i32) -> (i32, i32) {
    %c0_i32 = arith.constant 0 : i32
    %c0_i32_0 = arith.constant 0 : i32
    %c0_i32_1 = arith.constant 0 : i32
    return %c0_i32, %c0_i32_0 : i32, i32
  }
  func.func @transform_10(%arg0: i32) -> (i32, i32) {
    %c0_i32 = arith.constant 0 : i32
    %c0_i32_0 = arith.constant 0 : i32
    %c0_i32_1 = arith.constant 0 : i32
    return %c0_i32, %c0_i32_0 : i32, i32
  }
  func.func @transform_11(%arg0: i32) -> (i32, i32, i32, i32) {
    %c0_i32 = arith.constant 0 : i32
    %c0_i32_0 = arith.constant 0 : i32
    %c0_i32_1 = arith.constant 0 : i32
    %c0_i32_2 = arith.constant 0 : i32
    return %arg0, %c0_i32, %c0_i32_0, %c0_i32_1 : i32, i32, i32, i32
  }
}

</mosaic_0001>

<bundles_post_ra>
// kernel: tpu_custom_call.1
= control target key start
LH: loop header
LB: loop body
LE: loop exit
PB: predicated region body
PF: predicated region fallthrough
CT: control target
= control target key end

     0   :  { %16 = vsyncpa [#allocation4], 0  ;;  %s14170_s0 = inlined_call_operand.vmem [shape: f32[2,8,8,128], index: 0, kind: input, shape index: {}]   ;;  %s14171_s1 = inlined_call_operand.hbm [shape: f32[2,8,8,128], index: 1, kind: input, shape index: {}]   ;;  %s14172_s2 = inlined_call_operand.hbm [shape: bf16[3,384,128], index: 2, kind: input, shape index: {}]   ;;  %s14173_s3 = inlined_call_operand.vmem [shape: f32[1,128], index: 3, kind: input, shape index: {}]   ;;  %s14174_s4 = inlined_call_operand.hbm [shape: bf16[3,384,128], index: 4, kind: input, shape index: {}]   ;;  %s14175_s5 = inlined_call_operand.vmem [shape: f32[1,128], index: 5, kind: input, shape index: {}]   ;;  %s14176_s6 = inlined_call_operand.hbm [shape: bf16[3,384,128], index: 6, kind: input, shape index: {}]   ;;  %s14177_s7 = inlined_call_operand.vmem [shape: f32[1,128], index: 7, kind: input, shape index: {}]   ;;  %s14178_s8 = inlined_call_operand.hbm [shape: bf16[3,384,128], index: 8, kind: input, shape index: {}]   ;;  %s14179_s9 = inlined_call_operand.vmem [shape: f32[1,128], index: 9, kind: input, shape index: {}]   ;;  %s14180_s10 = inlined_call_operand.vmem [shape: bf16[256,64], index: 10, kind: input, shape index: {}]   ;;  %s14181_s11 = inlined_call_operand.hbm [shape: f32[2,16,16,128], index: 11, kind: output, shape index: {}]  }
   0x1   :  { %17 = vsyncpa [#allocation7], 0 }
   0x2   :  { %18 = vsyncpa [#allocation10], 0 }
   0x3   :  { %19 = vsyncpa [#allocation5], 0  ;;  %s12437_s17 = smov [#allocation6]   ;;  %s12297_s21 = scalar_lea.hbm %s14172_s2, 9216 }
   0x4   :  { %s39_s18 = sshll.u32 %s12437_s17, 4  ;;  %p12298_p0 = scmp.ne.s32.totalorder %s14172_s2, %s12297_s21  ;;  %s40_s18 = int_to_ptr.vmem [resolvable:$true] %s39_s18 }
   0x5   :  { %p12301_p1 = scmp.lt.u32.totalorder %s12297_s21, %s14172_s2 }
   0x7   :  { %p12303_p2 = pnand %p12301_p1, %p12298_p0 }
   0x9   :  { %12306 = shalt.err (!%p12303_p2)
}
   0xa   :  { %s12307_s26 = scalar_lea.vmem %s40_s18, 9216  ;;  %p12312_p4 = scmp.lt.s32.totalorder %s40_s18, %s40_s18 }
   0xb   :  { %p12308_p3 = scmp.ne.s32.totalorder %s40_s18, %s12307_s26  ;;  %p12313_p5 = scmp.lt.s32.totalorder %s12307_s26, %s12307_s26 }
   0xd   :  { %p12314_p6 = por %p12313_p5, %p12312_p4 }
   0xf   :  { %p12315_p7 = pnand %p12314_p6, %p12308_p3 }
  0x11   :  { %12318 = shalt.err (!%p12315_p7)
}
  0x12   :  { %s12438_s27 = smov 64   ;;  %s12439_s28 = smov 4  }
  0x13   :  { %45 = dma.hbm_to_vmem [thread:$0]  %s14172_s2, 9216, %s40_s18, [#allocation7], %s12438_s27, %s12438_s27, %s12439_s28  }
  0x14   :  { %s12440_s12 = smov [#allocation9]   ;;  %s12441_s14 = smov [#allocation3]  }
  0x15   :  { %s67_s13 = sshll.u32 %s12440_s12, 4  ;;  %s27_s15 = sshll.u32 %s12441_s14, 4  ;;  %s68_s13 = int_to_ptr.vmem [resolvable:$true] %s67_s13  ;;  %s28_s15 = int_to_ptr.vmem [resolvable:$true] %s27_s15 }
  0x16   :  { %s12319_s19 = scalar_lea.hbm %s14176_s6, 9216 }
  0x17   :  { %p12320_p8 = scmp.ne.s32.totalorder %s14176_s6, %s12319_s19  ;;  %p12323_p9 = scmp.lt.u32.totalorder %s12319_s19, %s14176_s6 }
  0x19   :  { %p12325_p10 = pnand %p12323_p9, %p12320_p8 }
  0x1b   :  { %12328 = shalt.err (!%p12325_p10)
}
  0x1c   :  { %s12329_s2 = scalar_lea.vmem %s68_s13, 9216  ;;  %p12334_p12 = scmp.lt.s32.totalorder %s68_s13, %s68_s13 }
  0x1d   :  { %p12330_p11 = scmp.ne.s32.totalorder %s68_s13, %s12329_s2  ;;  %p12335_p13 = scmp.lt.s32.totalorder %s12329_s2, %s12329_s2 }
  0x1f   :  { %p12336_p0 = por %p12335_p13, %p12334_p12 }
  0x21   :  { %p12337_p1 = pnand %p12336_p0, %p12330_p11 }
  0x23   :  { %12340 = shalt.err (!%p12337_p1)
}
  0x24   :  { %73 = dma.hbm_to_vmem [thread:$0]  %s14176_s6, 9216, %s68_s13, [#allocation10], %s12438_s27, %s12438_s27, %s12439_s28  }
  0x25   :  { %s12341_s29 = scalar_lea.hbm %s14171_s1, 2048 }
  0x26   :  { %p12342_p2 = scmp.ne.s32.totalorder %s14171_s1, %s12341_s29  ;;  %p12345_p3 = scmp.lt.u32.totalorder %s12341_s29, %s14171_s1 }
  0x28   :  { %p12347_p4 = pnand %p12345_p3, %p12342_p2 }
  0x2a   :  { %12350 = shalt.err (!%p12347_p4)
}
  0x2b   :  { %s12351_s17 = scalar_lea.vmem %s28_s15, 2048  ;;  %p12356_p6 = scmp.lt.s32.totalorder %s28_s15, %s28_s15 }
  0x2c   :  { %p12352_p5 = scmp.ne.s32.totalorder %s28_s15, %s12351_s17  ;;  %p12357_p7 = scmp.lt.s32.totalorder %s12351_s17, %s12351_s17 }
  0x2e   :  { %p12358_p8 = por %p12357_p7, %p12356_p6 }
  0x30   :  { %p12359_p9 = pnand %p12358_p8, %p12352_p5 }
  0x32   :  { %12362 = shalt.err (!%p12359_p9)
}
  0x33   :  { %s12442_s6 = smov 128   ;;  %s12443_s13 = smov 8  }
  0x34   :  { %33 = dma.hbm_to_vmem [thread:$0]  %s14171_s1, 2048, %s28_s15, [#allocation4], %s12442_s6, %s12442_s6, %s12443_s13  }
  0x35   :  { %s12444_s21 = smov [#allocation8]   ;;  %s12445_s23 = smov [#allocation11]  }
  0x36   :  { %s53_s22 = sshll.u32 %s12444_s21, 4  ;;  %s81_s2 = sshll.u32 %s12445_s23, 4  ;;  %s54_s22 = int_to_ptr.vmem [resolvable:$true] %s53_s22  ;;  %s82_s2 = int_to_ptr.vmem [resolvable:$true] %s81_s2 }
  0x37   :  { %s12363_s25 = scalar_lea.hbm %s14174_s4, 9216 }
  0x38   :  { %p12364_p10 = scmp.ne.s32.totalorder %s14174_s4, %s12363_s25  ;;  %p12367_p11 = scmp.lt.u32.totalorder %s12363_s25, %s14174_s4 }
  0x3a   :  { %p12369_p12 = pnand %p12367_p11, %p12364_p10 }
  0x3c   :  { %12372 = shalt.err (!%p12369_p12)
}
  0x3d   :  { %s12373_s1 = scalar_lea.vmem %s54_s22, 9216  ;;  %p12378_p0 = scmp.lt.s32.totalorder %s54_s22, %s54_s22 }
  0x3e   :  { %p12374_p13 = scmp.ne.s32.totalorder %s54_s22, %s12373_s1  ;;  %p12379_p1 = scmp.lt.s32.totalorder %s12373_s1, %s12373_s1 }
  0x40   :  { %p12380_p2 = por %p12379_p1, %p12378_p0 }
  0x42   :  { %p12381_p3 = pnand %p12380_p2, %p12374_p13 }
  0x44   :  { %12384 = shalt.err (!%p12381_p3)
}
  0x45   :  { %59 = dma.hbm_to_vmem [thread:$0]  %s14174_s4, 9216, %s54_s22, [#allocation7], %s12438_s27, %s12438_s27, %s12439_s28  }
  0x46   :  { %s12385_s19 = scalar_lea.hbm %s14178_s8, 9216 }
  0x47   :  { %p12386_p4 = scmp.ne.s32.totalorder %s14178_s8, %s12385_s19  ;;  %p12389_p5 = scmp.lt.u32.totalorder %s12385_s19, %s14178_s8 }
  0x49   :  { %p12391_p6 = pnand %p12389_p5, %p12386_p4 }
  0x4b   :  { %12394 = shalt.err (!%p12391_p6)
}
  0x4c   :  { %s12395_s24 = scalar_lea.vmem %s82_s2, 9216  ;;  %p12400_p8 = scmp.lt.s32.totalorder %s82_s2, %s82_s2 }
  0x4d   :  { %p12396_p7 = scmp.ne.s32.totalorder %s82_s2, %s12395_s24  ;;  %p12401_p9 = scmp.lt.s32.totalorder %s12395_s24, %s12395_s24 }
  0x4f   :  { %p12402_p10 = por %p12401_p9, %p12400_p8 }
  0x51   :  { %p12403_p11 = pnand %p12402_p10, %p12396_p7 }
  0x53   :  { %12406 = shalt.err (!%p12403_p11)
}
  0x54   :  { %87 = dma.hbm_to_vmem [thread:$0]  %s14178_s8, 9216, %s82_s2, [#allocation10], %s12438_s27, %s12438_s27, %s12439_s28  }
  0x55   :  { %12429 = dma.done.wait [#allocation4], 2048  }
  0x56   :  { %12430 = vsyncadd [#allocation4], 4294965248 }
  0x57   :  { %12431 = dma.done.wait [#allocation7], 18432  }
  0x58   :  { %12432 = vsyncadd [#allocation7], 4294948864 }
  0x59   :  { %12433 = dma.done.wait [#allocation10], 18432  }
  0x5a   :  { %12434 = vsyncadd [#allocation10], 4294948864  ;;  %v12446_v0 = vmov 0   ;;  %v11764_v1 = vld [vmem:[#allocation6 + $0x100] sm:$0xff]   ;;  %v11766_v3 = vld [vmem:[#allocation6 + $0x108] sm:$0xff]   ;;  %vm118_vm0 = vcmask 1040384  }
  0x5b   :  { %108 = vst [vmem:[#allocation2] sm:$0xff] %v12446_v0  ;;  %109 = vst [vmem:[#allocation2 + $0x8] sm:$0xf] %v12446_v0  ;;  %v11765_v2 = vld [vmem:[#allocation6 + $0xc0] sm:$0xff]   ;;  %11417 = vmatprep.subr.bf16.mxu1 %v11764_v1  ;;  %9953 = vmatprep.subr.bf16.mxu0 %v11764_v1  ;;  %v11767_v4 = vld [vmem:[#allocation6 + $0xc8] sm:$0xff]   ;;  %vm476_vm4 = vcmask 1043456  }
  0x5c   :  { %111 = vst [vmem:[#allocation2 + $0x80] sm:$0xf] %v12446_v0  ;;  %114 = vst [vmem:[#allocation2 + $0x74] sm:$0xf] %v12446_v0  ;;  %11425 = vmatpush3.bf16.msra.mxu1 %v11765_v2  ;;  %9954 = vmatpush3.bf16.msra.mxu0 %v11765_v2  ;;  %v11768_v5 = vld [vmem:[#allocation6 + $0x110] sm:$0xff]   ;;  %v11770_v7 = vld [vmem:[#allocation6 + $0x118] sm:$0xff]  }
  0x5d   :  { %116 = vst [vmem:[#allocation2 + $0xec] sm:$0xf] %v12446_v0  ;;  %11418 = vmatprep.subr.bf16.mxu1 %v11766_v3  ;;  %9955 = vmatprep.subr.bf16.mxu0 %v11766_v3  ;;  %v11769_v6 = vld [vmem:[#allocation6 + $0xd0] sm:$0xff]   ;;  %vm119_vm1 = vsmask.f32 256  ;;  %v11771_v8 = vld [vmem:[#allocation6 + $0xd8] sm:$0xff]  }
  0x5e   :  { %v11772_v9 = vld [vmem:[#allocation6 + $0x120] sm:$0xff]   ;;  %vm12583_vm2 = vmand %vm118_vm0, %vm119_vm1  ;;  %vm477_vm3 = vsmask.f32 7938  ;;  %v11774_v12 = vld [vmem:[#allocation6 + $0x128] sm:$0xff]   ;;  %vm170_vm6 = vsmask.f32 7950 }
  0x5f   :  { %v11773_v11 = vld [vmem:[#allocation6 + $0xe0] sm:$0xff]   ;;  %v145_v13 = vld [vmem:[#allocation2 + $0x84] sm:$0x1]  ;;  %v245_v18 = vld [vmem:[#allocation3 + $0x48] sm:$0xff]  ;;  %vm169_vm7 = vcmask 1043459   ;;  %vm8742_vm11 = vcmask 523264  }
  0x60   :  { %11426 = vmatpush3.bf16.msra.mxu1 %v11767_v4  ;;  %9956 = vmatpush3.bf16.msra.mxu0 %v11767_v4  ;;  %v148_v14 = vld [vmem:[#allocation2 + $0x90] sm:$0x1]  ;;  %v146_v16 = vsel %vm12583_vm2, 0, %v145_v13  ;;  %v11775_v20 = vld [vmem:[#allocation6 + $0xe8] sm:$0xff]   ;;  %v261_v21 = vmax.f32 %v245_v18, 0.0  ;;  %v11776_v22 = vld [vmem:[#allocation6 + $0x130] sm:$0xff]  }
  0x61   :  { %11419 = vmatprep.subr.bf16.mxu1 %v11768_v5  ;;  %9957 = vmatprep.subr.bf16.mxu0 %v11768_v5  ;;  %v244_v15 = vld [vmem:[#allocation3 + $0x40] sm:$0xff]  ;;  %v149_v17 = vsel %vm12583_vm2, 0, %v148_v14  ;;  %147 = vst [vmem:[#allocation2 + $0x84] sm:$0x1] %v146_v16  ;;  %v151_v24 = vld [vmem:[#allocation2 + $0x9c] sm:$0x1]  ;;  %vm12607_vm5 = vmand %vm476_vm4, %vm477_vm3 }
  0x62   :  { %v260_v19 = vmax.f32 %v244_v15, 0.0  ;;  %150 = vst [vmem:[#allocation2 + $0x90] sm:$0x1] %v149_v17  ;;  %v12593_v25 = vpack.c.bf16 %v261_v21, %v261_v21  ;;  %v152_v26 = vsel %vm12583_vm2, 0, %v151_v24  ;;  %v154_v27 = vld [vmem:[#allocation2 + $0xa8] sm:$0x1]  ;;  %vm12670_vm8 = vmand %vm169_vm7, %vm170_vm6 }
  0x63   :  { %v246_v28 = vld [vmem:[#allocation3 + $0x50] sm:$0xff]  ;;  %v247_v29 = vld [vmem:[#allocation3 + $0x58] sm:$0xff]  ;;  %153 = vst [vmem:[#allocation2 + $0x9c] sm:$0x1] %v152_v26  ;;  %v155_v32 = vsel %vm12583_vm2, 0, %v154_v27  ;;  %v248_v46 = vld [vmem:[#allocation3 + $0x60] sm:$0xff] }
  0x64   :  { %11427 = vmatpush3.bf16.msra.mxu1 %v11769_v6  ;;  %9958 = vmatpush3.bf16.msra.mxu0 %v11769_v6  ;;  %v12591_v23 = vpack.c.bf16 %v260_v19, %v260_v19  ;;  %v262_v33 = vmax.f32 %v246_v28, 0.0  ;;  %v11777_v34 = vld [vmem:[#allocation6 + $0xf0] sm:$0xff]   ;;  %341 = vst [vmem:[#allocation2 + $0x94] sm:$0xf] %v12593_v25  ;;  %v412_v35 = vshrl.u32 %v12593_v25, 16  ;;  %v415_v36 = vshll.u32 %v12593_v25, 16 }
  0x65   :  { %11420 = vmatprep.subr.bf16.mxu1 %v11770_v7  ;;  %9959 = vmatprep.subr.bf16.mxu0 %v11770_v7  ;;  %156 = vst [vmem:[#allocation2 + $0xa8] sm:$0x1] %v155_v32  ;;  %v263_v38 = vmax.f32 %v247_v29, 0.0  ;;  %v11778_v39 = vld [vmem:[#allocation6 + $0x138] sm:$0xff]   ;;  %v157_v44 = vld [vmem:[#allocation2 + $0xb4] sm:$0x1] }
  0x66   :  { %340 = vst [vmem:[#allocation2 + $0x88] sm:$0xf] %v12591_v23  ;;  %v405_v30 = vshrl.u32 %v12591_v23, 16  ;;  %v408_v31 = vshll.u32 %v12591_v23, 16  ;;  %v12613_v41 = vpack.c.bf16 %v262_v33, %v262_v33  ;;  %v414_v42 = vrot.slane %v412_v35, 7  ;;  %v11779_v47 = vld [vmem:[#allocation6 + $0xf8] sm:$0xff]  }
  0x67   :  { %v12617_v43 = vpack.c.bf16 %v263_v38, %v263_v38  ;;  %v160_v45 = vld [vmem:[#allocation2 + $0xc0] sm:$0x1]  ;;  %v158_v56 = vsel %vm12583_vm2, 0, %v157_v44  ;;  %v249_v57 = vld [vmem:[#allocation3 + $0x68] sm:$0xff]  ;;  %v12633_v59 = vld [vmem:[#allocation6 + $0x140] sm:$0xff]   ;;  %v264_v62 = vmax.f32 %v248_v46, 0.0 }
  0x68   :  { %11428 = vmatpush3.bf16.msra.mxu1 %v11771_v8  ;;  %9960 = vmatpush3.bf16.msra.mxu0 %v11771_v8  ;;  %v407_v40 = vrot.slane %v405_v30, 7  ;;  %v503_v49 = vld [vmem:[#allocation2 + $0x84] sm:$0xf]  ;;  %342 = vst [vmem:[#allocation2 + $0xa0] sm:$0xf] %v12613_v41  ;;  %v419_v51 = vshrl.u32 %v12613_v41, 16  ;;  %v417_v53 = vor.u32 %v415_v36, %v414_v42 }
  0x69   :  { %11421 = vmatprep.subr.bf16.mxu1 %v11772_v9  ;;  %9961 = vmatprep.subr.bf16.mxu0 %v11772_v9  ;;  %v506_v50 = vld [vmem:[#allocation2 + $0x90] sm:$0xf]  ;;  %v422_v52 = vshll.u32 %v12613_v41, 16  ;;  %343 = vst [vmem:[#allocation2 + $0xac] sm:$0xf] %v12617_v43  ;;  %v426_v54 = vshrl.u32 %v12617_v43, 16  ;;  %v12645_v5 = vpack.c.bf16 %v264_v62, %v264_v62 }
  0x6a   :  { %v410_v48 = vor.u32 %v408_v31, %v407_v40  ;;  %v429_v55 = vshll.u32 %v12617_v43, 16  ;;  %v421_v60 = vrot.slane %v419_v51, 7  ;;  %159 = vst [vmem:[#allocation2 + $0xb4] sm:$0x1] %v158_v56  ;;  %v161_v61 = vsel %vm12583_vm2, 0, %v160_v45  ;;  %v251_v16 = vld [vmem:[#allocation3 + $0x78] sm:$0xff] }
  0x6b   :  { %v507_v63 = vsel %vm12607_vm5, %v417_v53, %v506_v50  ;;  %v428_v0 = vrot.slane %v426_v54, 7  ;;  %v509_v1 = vld [vmem:[#allocation2 + $0x9c] sm:$0xf]  ;;  %162 = vst [vmem:[#allocation2 + $0xc0] sm:$0x1] %v161_v61  ;;  %v265_v2 = vmax.f32 %v249_v57, 0.0 }
  0x6c   :  { %11429 = vmatpush3.bf16.msra.mxu1 %v11773_v11  ;;  %9962 = vmatpush3.bf16.msra.mxu0 %v11773_v11  ;;  %v504_v58 = vsel %vm12607_vm5, %v410_v48, %v503_v49  ;;  %508 = vst [vmem:[#allocation2 + $0x90] sm:$0xf] %v507_v63  ;;  %v424_v3 = vor.u32 %v422_v52, %v421_v60  ;;  %v512_v4 = vld [vmem:[#allocation2 + $0xa8] sm:$0xf]  ;;  %v163_v8 = vld [vmem:[#allocation2 + $0xcc] sm:$0x1] }
  0x6d   :  { %11422 = vmatprep.subr.bf16.mxu1 %v11774_v12  ;;  %9963 = vmatprep.subr.bf16.mxu0 %v11774_v12  ;;  %505 = vst [vmem:[#allocation2 + $0x84] sm:$0xf] %v504_v58  ;;  %v431_v6 = vor.u32 %v429_v55, %v428_v0  ;;  %v12649_v7 = vpack.c.bf16 %v265_v2, %v265_v2  ;;  %v166_v9 = vld [vmem:[#allocation2 + $0xd8] sm:$0x1]  ;;  %v250_v11 = vld [vmem:[#allocation3 + $0x70] sm:$0xff]  ;;  %v433_v13 = vshrl.u32 %v12645_v5, 16 }
  0x6e   :  { %v510_v12 = vsel %vm12607_vm5, %v424_v3, %v509_v1  ;;  %344 = vst [vmem:[#allocation2 + $0xb8] sm:$0xf] %v12645_v5  ;;  %v436_v14 = vshll.u32 %v12645_v5, 16  ;;  %v164_v15 = vsel %vm12583_vm2, 0, %v163_v8  ;;  %v267_v24 = vmax.f32 %v251_v16, 0.0  ;;  %v236_v29 = vld [vmem:[#allocation3] sm:$0xff] }
  0x6f   :  { %511 = vst [vmem:[#allocation2 + $0x9c] sm:$0xf] %v510_v12  ;;  %v513_v17 = vsel %vm12607_vm5, %v431_v6, %v512_v4  ;;  %345 = vst [vmem:[#allocation2 + $0xc4] sm:$0xf] %v12649_v7  ;;  %v440_v18 = vshrl.u32 %v12649_v7, 16  ;;  %v443_v19 = vshll.u32 %v12649_v7, 16 }
  0x70   :  { %11430 = vmatpush3.bf16.msra.mxu1 %v11775_v20  ;;  %9964 = vmatpush3.bf16.msra.mxu0 %v11775_v20  ;;  %165 = vst [vmem:[#allocation2 + $0xcc] sm:$0x1] %v164_v15  ;;  %v167_v20 = vsel %vm12583_vm2, 0, %v166_v9  ;;  %514 = vst [vmem:[#allocation2 + $0xa8] sm:$0xf] %v513_v17  ;;  %v435_v21 = vrot.slane %v433_v13, 7 }
  0x71   :  { %11423 = vmatprep.subr.bf16.mxu1 %v11776_v22  ;;  %9965 = vmatprep.subr.bf16.mxu0 %v11776_v22  ;;  %168 = vst [vmem:[#allocation2 + $0xd8] sm:$0x1] %v167_v20  ;;  %v266_v22 = vmax.f32 %v250_v11, 0.0  ;;  %v442_v27 = vrot.slane %v440_v18, 7  ;;  %v515_v28 = vld [vmem:[#allocation2 + $0xb4] sm:$0xf] }
  0x72   :  { %v11784_v32 = vld [vmem:[#allocation6 + $0x148] sm:$0xff]   ;;  %v438_v33 = vor.u32 %v436_v14, %v435_v21  ;;  %v172_v40 = vld [vmem:[#allocation2 + $0x14] sm:$0x8]  ;;  %v252_v42 = vmax.f32 %v236_v29, 0.0  ;;  %vm607_vm9 = vsmask.f32 3328 }
  0x73   :  { %v12678_v38 = vpack.c.bf16 %v266_v22, %v266_v22  ;;  %v11780_v44 = vld [vmem:[#allocation2 + $0x88] ss:$12 sps:$4 sm:$0xff]   ;;  %v445_v46 = vor.u32 %v443_v19, %v442_v27  ;;  %v175_v56 = vld [vmem:[#allocation2 + $0x20] sm:$0x8]  ;;  %v237_v57 = vld [vmem:[#allocation3 + $0x8] sm:$0xff] }
  0x74   :  { %11431 = vmatpush3.bf16.msra.mxu1 %v11777_v34  ;;  %9966 = vmatpush3.bf16.msra.mxu0 %v11777_v34  ;;  %v518_v34 = vld [vmem:[#allocation2 + $0xc0] sm:$0xf]  ;;  %v11782_v45 = vld [vmem:[#allocation2 + $0x84] ss:$12 sps:$4 sm:$0xff]   ;;  %v516_v48 = vsel %vm12607_vm5, %v438_v33, %v515_v28  ;;  %v176_v61 = vsel %vm12670_vm8, 0, %v175_v56  ;;  %v253_v62 = vmax.f32 %v237_v57, 0.0  ;;  %v12702_v4 = vpack.c.bf16 %v252_v42, %v252_v42  ;;  %vm12736_vm10 = vmand %vm476_vm4, %vm607_vm9 }
  0x75   :  { %11424 = vmatprep.subr.bf16.mxu1 %v11778_v39  ;;  %9967 = vmatprep.subr.bf16.mxu0 %v11778_v39  ;;  %v12680_v39 = vpack.c.bf16 %v267_v24, %v267_v24  ;;  %346 = vst [vmem:[#allocation2 + $0xd0] sm:$0xf] %v12678_v38  ;;  %v14185_v49 = vshrl.u32 %v12678_v38, 16  ;;  %v14184_v50 = vshll.u32 %v12678_v38, 16  ;;  %517 = vst [vmem:[#allocation2 + $0xb4] sm:$0xf] %v516_v48 }
  0x76   :  { %1154 = vmatprep.mubr.bf16.mxu1 %v11780_v44  ;;  %v519_v58 = vsel %vm12607_vm5, %v445_v46, %v518_v34  ;;  %v178_v63 = vld [vmem:[#allocation2 + $0x2c] sm:$0x8]  ;;  %v238_v0 = vld [vmem:[#allocation3 + $0x10] sm:$0xff]  ;;  %177 = vst [vmem:[#allocation2 + $0x20] sm:$0x8] %v176_v61  ;;  %v12707_v11 = vpack.c.bf16 %v253_v62, %v253_v62  ;;  %v349_v20 = vshrl.u32 %v12702_v4, 16 }
  0x77   :  { %347 = vst [vmem:[#allocation2 + $0xdc] sm:$0xf] %v12680_v39  ;;  %v14183_v53 = vshrl.u32 %v12680_v39, 16  ;;  %v14182_v60 = vshll.u32 %v12680_v39, 16  ;;  %v11788_v1 = vld [vmem:[#allocation6 + $0x150] sm:$0xff]   ;;  %v449_v2 = vrot.slane %v14185_v49, 7 }
  0x78   :  { %11432 = vmatpush3.bf16.msra.mxu1 %v11779_v47  ;;  %9968 = vmatpush3.bf16.msra.mxu0 %v11779_v47  ;;  %v173_v47 = vsel %vm12670_vm8, 0, %v172_v40  ;;  %520 = vst [vmem:[#allocation2 + $0xc0] sm:$0xf] %v519_v58  ;;  %v179_v6 = vsel %vm12670_vm8, 0, %v178_v63  ;;  %v11785_v8 = vld [vmem:[#allocation2 + $0xa0] ss:$12 sps:$4 sm:$0xff]  }
  0x79   :  { %10953 = vmatprep.subr.bf16.mxu1 %v12633_v59  ;;  %174 = vst [vmem:[#allocation2 + $0x14] sm:$0x8] %v173_v47  ;;  %v456_v3 = vrot.slane %v14183_v53, 7  ;;  %v521_v9 = vld [vmem:[#allocation2 + $0xcc] sm:$0xf]  ;;  %v254_v12 = vmax.f32 %v238_v0, 0.0  ;;  %v452_v15 = vor.u32 %v14184_v50, %v449_v2 }
  0x7a   :  { %180 = vst [vmem:[#allocation2 + $0x2c] sm:$0x8] %v179_v6  ;;  %v524_v17 = vld [vmem:[#allocation2 + $0xd8] sm:$0xf]  ;;  %v352_v21 = vshll.u32 %v12702_v4, 16  ;;  %v356_v22 = vshrl.u32 %v12707_v11, 16 }
  0x7b   :  { %1155 = vmatmul.mubr.bf16.vlgmr.msra.gmra.mrb[0].mxu1 %v11782_v45  ;;  %v459_v16 = vor.u32 %v14182_v60, %v456_v3  ;;  %332 = vst [vmem:[#allocation2 + $0x10] sm:$0xf] %v12702_v4  ;;  %v359_v24 = vshll.u32 %v12707_v11, 16  ;;  %333 = vst [vmem:[#allocation2 + $0x1c] sm:$0xf] %v12707_v11  ;;  %v239_v28 = vld [vmem:[#allocation3 + $0x18] sm:$0xff]  ;;  %v12721_v29 = vpack.c.bf16 %v254_v12, %v254_v12 }
  0x7c   :  { %10954 = vmatpush3.bf16.msra.mxu1 %v12633_v59  ;;  %v181_v59 = vld [vmem:[#allocation2 + $0x38] sm:$0x8]  ;;  %1162 = vmatprep.mubr.bf16.mxu1 %v11785_v8  ;;  %v11787_v33 = vld [vmem:[#allocation2 + $0x9c] ss:$12 sps:$4 sm:$0xff]   ;;  %v522_v34 = vsel %vm12607_vm5, %v452_v15, %v521_v9  ;;  %v527_v42 = vrot.slane %v349_v20, 4  ;;  %v351_v45 = vrot.slane %v349_v20, 7 }
  0x7d   :  { %10955 = vmatprep.subr.bf16.mxu1 %v11784_v32  ;;  %v182_v27 = vsel %vm12670_vm8, 0, %v181_v59  ;;  %v525_v40 = vsel %vm12607_vm5, %v459_v16, %v524_v17  ;;  %v11789_v44 = vld [vmem:[#allocation6 + $0x158] sm:$0xff]   ;;  %523 = vst [vmem:[#allocation2 + $0xcc] sm:$0xf] %v522_v34  ;;  %v528_v46 = vrot.slane %v352_v21, 5  ;;  %v531_v47 = vrot.slane %v356_v22, 4 }
  0x7e   :  { %183 = vst [vmem:[#allocation2 + $0x38] sm:$0x8] %v182_v27  ;;  %526 = vst [vmem:[#allocation2 + $0xd8] sm:$0xf] %v525_v40  ;;  %v532_v48 = vrot.slane %v359_v24, 5  ;;  %v255_v56 = vmax.f32 %v239_v28, 0.0 }
  0x7f   :  { %334 = vst [vmem:[#allocation2 + $0x28] sm:$0xf] %v12721_v29  ;;  %v363_v57 = vshrl.u32 %v12721_v29, 16  ;;  %v366_v58 = vshll.u32 %v12721_v29, 16  ;;  %v121_v61 = vld [vmem:[#allocation2 + $0xc] sm:$0x1]  ;;  %v529_v63 = vor.u32 %v528_v46, %v527_v42  ;;  %v354_v46 = vor.u32 %v352_v21, %v351_v45 }
  0x80   :  { %10956 = vmatpush3.bf16.msra.mxu1 %v11784_v32  ;;  %v11790_v62 = vld [vmem:[#allocation2 + $0xb8] ss:$12 sps:$4 sm:$0xff]   ;;  %v358_v32 = vrot.slane %v356_v22, 7  ;;  %v533_v0 = vor.u32 %v532_v48, %v531_v47  ;;  %v122_v2 = vsel %vm12583_vm2, 0, %v121_v61  ;;  %v11793_v3 = vld [vmem:[#allocation6 + $0x160] sm:$0xff]   ;;  %v12740_v9 = vpack.c.bf16 %v255_v56, %v255_v56 }
  0x81   :  { %10957 = vmatprep.subr.bf16.mxu1 %v11788_v1  ;;  %v609_v6 = vld [vmem:[#allocation2 + $0x14] sm:$0xf]  ;;  %v612_v8 = vld [vmem:[#allocation2 + $0x20] sm:$0xf]  ;;  %v535_v12 = vrot.slane %v363_v57, 4  ;;  %v536_v15 = vrot.slane %v366_v58, 5 }
  0x82   :  { %123 = vst [vmem:[#allocation2 + $0xc] sm:$0x1] %v122_v2  ;;  %v530_v16 = vrot.slane %v529_v63, 4  ;;  %v534_v17 = vrot.slane %v533_v0, 4  ;;  %v124_v20 = vld [vmem:[#allocation2 + $0x18] sm:$0x1]  ;;  %v361_v21 = vor.u32 %v359_v24, %v358_v32 }
  0x83   :  { %1163 = vmatmul.mubr.bf16.gmra.mrb[4].mxu1 %v11787_v33  ;;  %v370_v59 = vshrl.u32 %v12740_v9, 16  ;;  %v373_v22 = vshll.u32 %v12740_v9, 16  ;;  %v537_v27 = vor.u32 %v536_v15, %v535_v12  ;;  %335 = vst [vmem:[#allocation2 + $0x34] sm:$0xf] %v12740_v9  ;;  %v125_v28 = vsel %vm12583_vm2, 0, %v124_v20  ;;  %v11806_v33 = vld [vmem:[#allocation6 + $0x1c0] sm:$0xff]  }
  0x84   :  { %10958 = vmatpush3.bf16.msra.mxu1 %v11788_v1  ;;  %1170 = vmatprep.mubr.bf16.mxu1 %v11790_v62  ;;  %v610_v34 = vsel %vm12736_vm10, %v530_v16, %v609_v6  ;;  %v613_v1 = vsel %vm12736_vm10, %v534_v17, %v612_v8  ;;  %v615_v40 = vld [vmem:[#allocation2 + $0x2c] sm:$0xf]  ;;  %126 = vst [vmem:[#allocation2 + $0x18] sm:$0x1] %v125_v28  ;;  %v11792_v42 = vld [vmem:[#allocation2 + $0xb4] ss:$12 sps:$4 sm:$0xff]  }
  0x85   :  { %10959 = vmatprep.subr.bf16.mxu1 %v11789_v44  ;;  %611 = vst [vmem:[#allocation2 + $0x14] sm:$0xf] %v610_v34  ;;  %614 = vst [vmem:[#allocation2 + $0x20] sm:$0xf] %v613_v1  ;;  %v538_v47 = vrot.slane %v537_v27, 4  ;;  %v539_v48 = vrot.slane %v370_v59, 4  ;;  %10113 = vmatprep.subr.bf16.mxu0 %v11806_v33 }
  0x86   :  { %v11794_v56 = vld [vmem:[#allocation6 + $0x168] sm:$0xff]   ;;  %v540_v62 = vrot.slane %v373_v22, 5  ;;  %v12765_v2 = vrot.slane %v405_v30, 4  ;;  %v11798_v8 = vld [vmem:[#allocation6 + $0x170] sm:$0xff]   ;;  %v187_v16 = vld [vmem:[#allocation2 + $0x50] sm:$0x8] }
  0x87   :  { %v11795_v61 = vld [vmem:[#allocation2 + $0xd0] ss:$12 sps:$4 sm:$0xff]   ;;  %v616_v63 = vsel %vm12736_vm10, %v538_v47, %v615_v40  ;;  %v184_v15 = vld [vmem:[#allocation2 + $0x44] sm:$0x8]  ;;  %v11797_v11 = vld [vmem:[#allocation2 + $0xcc] ss:$12 sps:$4 sm:$0xff]  }
  0x88   :  { %10960 = vmatpush3.bf16.msra.mxu1 %v11789_v44  ;;  %v541_v45 = vor.u32 %v540_v62, %v539_v48  ;;  %617 = vst [vmem:[#allocation2 + $0x2c] sm:$0xf] %v616_v63  ;;  %v618_v44 = vld [vmem:[#allocation2 + $0x38] sm:$0xf]  ;;  %v185_v32 = vsel %vm12670_vm8, 0, %v184_v15  ;;  %v240_v30 = vld [vmem:[#allocation3 + $0x20] sm:$0xff] }
  0x89   :  { %10961 = vmatprep.subr.bf16.mxu1 %v11793_v3  ;;  %v479_v0 = vld [vmem:[#allocation2 + $0xc] sm:$0xf]  ;;  %186 = vst [vmem:[#allocation2 + $0x44] sm:$0x8] %v185_v32  ;;  %v188_v28 = vsel %vm12670_vm8, 0, %v187_v16  ;;  %v241_v33 = vld [vmem:[#allocation3 + $0x28] sm:$0xff] }
  0x8a   :  { %v480_v6 = vsel %vm12607_vm5, %v354_v46, %v479_v0  ;;  %v542_v12 = vrot.slane %v541_v45, 4  ;;  %v11799_v27 = vld [vmem:[#allocation6 + $0x178] sm:$0xff]   ;;  %v256_v34 = vmax.f32 %v240_v30, 0.0  ;;  %189 = vst [vmem:[#allocation2 + $0x50] sm:$0x8] %v188_v28  ;;  %v257_v1 = vmax.f32 %v241_v33, 0.0 }
  0x8b   :  { %1171 = vmatmul.mubr.bf16.gmra.mrb[8].mxu1 %v11792_v42  ;;  %481 = vst [vmem:[#allocation2 + $0xc] sm:$0xf] %v480_v6  ;;  %v482_v24 = vld [vmem:[#allocation2 + $0x18] sm:$0xf]  ;;  %v190_v40 = vld [vmem:[#allocation2 + $0x5c] sm:$0x8] }
  0x8c   :  { %10962 = vmatpush3.bf16.msra.mxu1 %v11793_v3  ;;  %1178 = vmatprep.mubr.bf16.mxu1 %v11795_v61  ;;  %v11800_v17 = vld [vmem:[#allocation2 + $0x14] ss:$12 sps:$4 sm:$0xff]   ;;  %v619_v20 = vsel %vm12736_vm10, %v542_v12, %v618_v44  ;;  %v483_v3 = vsel %vm12607_vm5, %v361_v21, %v482_v24  ;;  %v12777_v46 = vpack.c.bf16 %v256_v34, %v256_v34  ;;  %v191_v47 = vsel %vm12670_vm8, 0, %v190_v40  ;;  %v193_v48 = vld [vmem:[#allocation2 + $0x68] sm:$0x8]  ;;  %v11812_v50 = vld [vmem:[#allocation6 + $0x188] sm:$0xff]  }
  0x8d   :  { %10963 = vmatprep.subr.bf16.mxu1 %v11794_v56  ;;  %620 = vst [vmem:[#allocation2 + $0x38] sm:$0xf] %v619_v20  ;;  %484 = vst [vmem:[#allocation2 + $0x18] sm:$0xf] %v483_v3  ;;  %v242_v42 = vld [vmem:[#allocation3 + $0x30] sm:$0xff]  ;;  %v243_v61 = vld [vmem:[#allocation3 + $0x38] sm:$0xff]  ;;  %v12781_v62 = vpack.c.bf16 %v257_v1, %v257_v1 }
  0x8e   :  { %192 = vst [vmem:[#allocation2 + $0x5c] sm:$0x8] %v191_v47  ;;  %v194_v63 = vsel %vm12670_vm8, 0, %v193_v48  ;;  %v258_v21 = vmax.f32 %v242_v42, 0.0  ;;  %v377_v45 = vshrl.u32 %v12777_v46, 16  ;;  %v380_v0 = vshll.u32 %v12777_v46, 16 }
  0x8f   :  { %336 = vst [vmem:[#allocation2 + $0x40] sm:$0xf] %v12777_v46  ;;  %195 = vst [vmem:[#allocation2 + $0x68] sm:$0x8] %v194_v63  ;;  %v365_v44 = vrot.slane %v363_v57, 7  ;;  %v12792_v6 = vrot.slane %v408_v31, 5 }
  0x90   :  { %10964 = vmatpush3.bf16.msra.mxu1 %v11794_v56  ;;  %v259_v56 = vmax.f32 %v243_v61, 0.0  ;;  %v11802_v12 = vld [vmem:[#allocation6 + $0x40] sm:$0xff]   ;;  %v387_v24 = vshll.u32 %v12781_v62, 16  ;;  %337 = vst [vmem:[#allocation2 + $0x4c] sm:$0xf] %v12781_v62  ;;  %v12799_v32 = vpack.c.bf16 %v258_v21, %v258_v21  ;;  %v543_v31 = vrot.slane %v377_v45, 4 }
  0x91   :  { %10965 = vmatprep.subr.bf16.mxu1 %v11798_v8  ;;  %v127_v57 = vld [vmem:[#allocation2 + $0x24] sm:$0x1]  ;;  %v11807_v23 = vld [vmem:[#allocation6 + $0x180] sm:$0xff]   ;;  %v372_v33 = vrot.slane %v370_v59, 7  ;;  %v11810_v47 = vld [vmem:[#allocation6 + $0x1c8] sm:$0xff]   ;;  %v368_v21 = vor.u32 %v366_v58, %v365_v44 }
  0x92   :  { %v12794_v15 = vld [vmem:[#allocation2 + $0xc] sm:$0xff]  ;;  %v12801_v16 = vpack.c.bf16 %v259_v56, %v259_v56  ;;  %v128_v30 = vsel %vm12583_vm2, 0, %v127_v57  ;;  %v621_v28 = vld [vmem:[#allocation2 + $0x44] sm:$0xf]  ;;  %338 = vst [vmem:[#allocation2 + $0x58] sm:$0xf] %v12799_v32 }
  0x93   :  { %1179 = vmatmul.mubr.bf16.gmra.mrb[12].mxu1 %v11797_v11  ;;  %v384_v11 = vshrl.u32 %v12781_v62, 16  ;;  %v11804_v3 = vld [vmem:[#allocation6] sm:$0xff]   ;;  %129 = vst [vmem:[#allocation2 + $0x24] sm:$0x1] %v128_v30  ;;  %v548_v61 = vrot.slane %v387_v24, 5  ;;  %v391_v63 = vshrl.u32 %v12799_v32, 16 }
  0x94   :  { %10966 = vmatpush3.bf16.msra.mxu1 %v11798_v8  ;;  %10969 = vmatprep.mubr.bf16.mxu1 %v11800_v17  ;;  %v544_v8 = vrot.slane %v380_v0, 5  ;;  %v130_v17 = vld [vmem:[#allocation2 + $0x30] sm:$0x1]  ;;  %v12807_v20 = vld [vmem:[#allocation2 + $0x18] sm:$0xff]  ;;  %339 = vst [vmem:[#allocation2 + $0x64] sm:$0xf] %v12801_v16 }
  0x95   :  { %10967 = vmatprep.subr.bf16.mxu1 %v11799_v27  ;;  %v11801_v34 = vld [vmem:[#allocation2 + $0x2c] ss:$12 sps:$4 sm:$0xff]   ;;  %v9214_v1 = vcombine.high %v12794_v15, %v12807_v20  ;;  %v9213_v40 = vcombine.low %v12794_v15, %v12807_v20  ;;  %v547_v48 = vrot.slane %v384_v11, 4  ;;  %v394_v57 = vshll.u32 %v12799_v32, 16  ;;  %v624_v53 = vld [vmem:[#allocation2 + $0x50] sm:$0xf] }
  0x96   :  { %v545_v42 = vor.u32 %v544_v8, %v543_v31  ;;  %v11808_v59 = vld [vmem:[#allocation6 + $0x48] sm:$0xff]   ;;  %v398_v30 = vshrl.u32 %v12801_v16, 16  ;;  %v12825_v8 = vrot.slane %v377_v45, 7  ;;  %v551_v49 = vrot.slane %v391_v63, 4  ;;  %v11846_v32 = vld [vmem:[#allocation6 + $0x1f8] sm:$0xff]  }
  0x97   :  { %1122 = vmatprep.mubr.bf16.mxu0 %v9214_v1  ;;  %v11809_v31 = vld [vmem:[#allocation6 + $0x8] sm:$0xff]   ;;  %v549_v60 = vor.u32 %v548_v61, %v547_v48  ;;  %v131_v29 = vsel %vm12583_vm2, 0, %v130_v17  ;;  %v12829_v58 = vrot.slane %v384_v11, 7  ;;  %v11814_v1 = vld [vmem:[#allocation6 + $0x50] sm:$0xff]   ;;  %v12841_v61 = vrot.slane %v391_v63, 7 }
  0x98   :  { %10968 = vmatpush3.bf16.msra.mxu1 %v11799_v27  ;;  %v546_v56 = vrot.slane %v545_v42, 4  ;;  %v401_v27 = vshll.u32 %v12801_v16, 16  ;;  %1123 = vmatmul.mubr.bf16.vlgmr.msra.gmra.mrb[0].mxu0 %v9213_v40  ;;  %v555_v45 = vrot.slane %v398_v30, 4  ;;  %132 = vst [vmem:[#allocation2 + $0x30] sm:$0x1] %v131_v29  ;;  %v11818_v40 = vld [vmem:[#allocation6 + $0x1d0] sm:$0xff]  }
  0x99   :  { %10033 = vmatprep.subr.bf16.mxu1 %v11802_v12  ;;  %10114 = vmatpush3.bf16.msra.mxu0 %v11807_v23  ;;  %v552_v12 = vrot.slane %v394_v57, 5  ;;  %v550_v42 = vrot.slane %v549_v60, 4  ;;  %v627_v23 = vld [vmem:[#allocation2 + $0x5c] sm:$0xf]  ;;  %v11819_v60 = vld [vmem:[#allocation6 + $0x190] sm:$0xff]   ;;  %v579_v62 = vrot.slane %v440_v18, 4 }
  0x9a   :  { %v622_v44 = vsel %vm12736_vm10, %v546_v56, %v621_v28  ;;  %10115 = vmatprep.subr.bf16.mxu0 %v11810_v47  ;;  %v556_v11 = vrot.slane %v401_v27, 5  ;;  %v630_v28 = vld [vmem:[#allocation2 + $0x68] sm:$0xf]  ;;  %v11816_v47 = vld [vmem:[#allocation6 + $0x10] sm:$0xff]   ;;  %v199_v63 = vld [vmem:[#allocation2 + $0x98] sm:$0x8] }
  0x9b   :  { %10970 = vmatmul.mubr.bf16.vlgmr.msra.gmra.mrb[16].mxu1 %v11801_v34  ;;  %623 = vst [vmem:[#allocation2 + $0x44] sm:$0xf] %v622_v44  ;;  %v553_v17 = vor.u32 %v552_v12, %v551_v49  ;;  %v485_v34 = vld [vmem:[#allocation2 + $0x24] sm:$0xf]  ;;  %v625_v48 = vsel %vm12736_vm10, %v550_v42, %v624_v53  ;;  %v11820_v49 = vld [vmem:[#allocation6 + $0x58] sm:$0xff]   ;;  %v12200_v4 = vld [vmem:[#allocation11 + $0x168] sm:$0xff]  }
  0x9c   :  { %10034 = vmatpush3.bf16.msra.mxu1 %v11804_v3  ;;  %v557_v56 = vor.u32 %v556_v11, %v555_v45  ;;  %v486_v3 = vsel %vm12607_vm5, %v368_v21, %v485_v34  ;;  %626 = vst [vmem:[#allocation2 + $0x50] sm:$0xf] %v625_v48  ;;  %v11822_v44 = vld [vmem:[#allocation6 + $0x1d8] sm:$0xff]   ;;  %v561_v45 = vor.u32 %v12792_v6, %v12765_v2  ;;  %v563_v21 = vrot.slane %v412_v35, 4 }
  0x9d   :  { %10035 = vmatprep.subr.bf16.mxu1 %v11808_v59  ;;  %10116 = vmatpush3.bf16.msra.mxu0 %v11812_v50  ;;  %v554_v29 = vrot.slane %v553_v17, 4  ;;  %v375_v59 = vor.u32 %v373_v22, %v372_v33  ;;  %487 = vst [vmem:[#allocation2 + $0x24] sm:$0xf] %v486_v3  ;;  %v196_v53 = vld [vmem:[#allocation2 + $0x8c] sm:$0x8]  ;;  %v200_v22 = vsel %vm12670_vm8, 0, %v199_v63 }
  0x9e   :  { %v558_v12 = vrot.slane %v557_v56, 4  ;;  %10117 = vmatprep.subr.bf16.mxu0 %v11818_v40  ;;  %v197_v9 = vsel %vm12670_vm8, 0, %v196_v53  ;;  %v564_v33 = vrot.slane %v415_v36, 5  ;;  %v11821_v35 = vld [vmem:[#allocation6 + $0x18] sm:$0xff]   ;;  %201 = vst [vmem:[#allocation2 + $0x98] sm:$0x8] %v200_v22 }
  0x9f   :  { %v628_v50 = vsel %vm12736_vm10, %v554_v29, %v627_v23  ;;  %v488_v6 = vld [vmem:[#allocation2 + $0x30] sm:$0xf]  ;;  %198 = vst [vmem:[#allocation2 + $0x8c] sm:$0x8] %v197_v9  ;;  %v202_v40 = vld [vmem:[#allocation2 + $0xa4] sm:$0x8] }
  0xa0   :  { %10036 = vmatpush3.bf16.msra.mxu1 %v11809_v31  ;;  %v11824_v31 = vld [vmem:[#allocation6 + $0x198] sm:$0xff]   ;;  %629 = vst [vmem:[#allocation2 + $0x5c] sm:$0xf] %v628_v50  ;;  %v631_v2 = vsel %vm12736_vm10, %v558_v12, %v630_v28  ;;  %v565_v42 = vor.u32 %v564_v33, %v563_v21  ;;  %v203_v25 = vsel %vm12670_vm8, 0, %v202_v40  ;;  %v205_v36 = vld [vmem:[#allocation2 + $0xb0] sm:$0x8]  ;;  %v382_v21 = vor.u32 %v380_v0, %v12825_v8 }
  0xa1   :  { %10037 = vmatprep.subr.bf16.mxu1 %v11814_v1  ;;  %632 = vst [vmem:[#allocation2 + $0x68] sm:$0xf] %v631_v2  ;;  %v489_v1 = vsel %vm12607_vm5, %v375_v59, %v488_v6  ;;  %10118 = vmatpush3.bf16.msra.mxu0 %v11819_v60  ;;  %v567_v11 = vrot.slane %v419_v51, 4  ;;  %204 = vst [vmem:[#allocation2 + $0xa4] sm:$0x8] %v203_v25  ;;  %v206_v23 = vsel %vm12670_vm8, 0, %v205_v36 }
  0xa2   :  { %490 = vst [vmem:[#allocation2 + $0x30] sm:$0xf] %v489_v1  ;;  %10119 = vmatprep.subr.bf16.mxu0 %v11822_v44  ;;  %v568_v17 = vrot.slane %v422_v52, 5  ;;  %v571_v28 = vrot.slane %v426_v54, 4  ;;  %v572_v34 = vrot.slane %v429_v55, 5  ;;  %v562_v48 = vrot.slane %v561_v45, 4 }
  0xa3   :  { %207 = vst [vmem:[#allocation2 + $0xb0] sm:$0x8] %v206_v23  ;;  %v11826_v51 = vld [vmem:[#allocation6 + $0x60] sm:$0xff]   ;;  %v133_v56 = vld [vmem:[#allocation2 + $0x3c] sm:$0x1]  ;;  %v575_v33 = vrot.slane %v433_v13, 4  ;;  %v389_v6 = vor.u32 %v387_v24, %v12829_v58 }
  0xa4   :  { %10038 = vmatpush3.bf16.msra.mxu1 %v11816_v47  ;;  %v11811_v3 = vld [vmem:[#allocation2 + $0x44] ss:$12 sps:$4 sm:$0xff]   ;;  %v566_v47 = vrot.slane %v565_v42, 4  ;;  %v569_v60 = vor.u32 %v568_v17, %v567_v11  ;;  %v573_v29 = vor.u32 %v572_v34, %v571_v28  ;;  %v134_v59 = vsel %vm12583_vm2, 0, %v133_v56  ;;  %v136_v52 = vld [vmem:[#allocation2 + $0x48] sm:$0x1] }
  0xa5   :  { %10039 = vmatprep.subr.bf16.mxu1 %v11820_v49  ;;  %v12877_v41 = vld [vmem:[#allocation2 + $0x24] sm:$0xff]  ;;  %10120 = vmatpush3.bf16.msra.mxu0 %v11824_v31  ;;  %135 = vst [vmem:[#allocation2 + $0x3c] sm:$0x1] %v134_v59  ;;  %v137_v55 = vsel %vm12583_vm2, 0, %v136_v52  ;;  %v11828_v49 = vld [vmem:[#allocation6 + $0x20] sm:$0xff]   ;;  %v576_v31 = vrot.slane %v436_v14, 5 }
  0xa6   :  { %10973 = vmatprep.mubr.bf16.mxu1 %v11811_v3  ;;  %v570_v43 = vrot.slane %v569_v60, 4  ;;  %v574_v54 = vrot.slane %v573_v29, 4  ;;  %v633_v44 = vld [vmem:[#allocation2 + $0x8c] sm:$0xf]  ;;  %v636_v12 = vld [vmem:[#allocation2 + $0x98] sm:$0xf] }
  0xa7   :  { %138 = vst [vmem:[#allocation2 + $0x48] sm:$0x1] %v137_v55  ;;  %v634_v63 = vsel %vm12736_vm10, %v562_v48, %v633_v44  ;;  %v637_v45 = vsel %vm12736_vm10, %v566_v47, %v636_v12  ;;  %v11830_v22 = vld [vmem:[#allocation6 + $0x1e0] sm:$0xff]   ;;  %v12905_v13 = vrot.slane %v398_v30, 7  ;;  %v11832_v1 = vld [vmem:[#allocation6 + $0x68] sm:$0xff]   ;;  %v580_v58 = vrot.slane %v443_v19, 5 }
  0xa8   :  { %10040 = vmatpush3.bf16.msra.mxu1 %v11821_v35  ;;  %v11813_v53 = vld [vmem:[#allocation2 + $0x5c] ss:$12 sps:$4 sm:$0xff]   ;;  %635 = vst [vmem:[#allocation2 + $0x8c] sm:$0xf] %v634_v63  ;;  %638 = vst [vmem:[#allocation2 + $0x98] sm:$0xf] %v637_v45  ;;  %10121 = vmatprep.subr.bf16.mxu0 %v11830_v22  ;;  %v577_v35 = vor.u32 %v576_v31, %v575_v33 }
  0xa9   :  { %10041 = vmatprep.subr.bf16.mxu1 %v11826_v51  ;;  %v12888_v50 = vld [vmem:[#allocation2 + $0x30] sm:$0xff]  ;;  %v639_v9 = vld [vmem:[#allocation2 + $0xa4] sm:$0xf]  ;;  %10974 = vmatmul.mubr.bf16.gmra.mrb[20].mxu1 %v11813_v53  ;;  %v11833_v30 = vld [vmem:[#allocation6 + $0x28] sm:$0xff]   ;;  %v581_v19 = vor.u32 %v580_v58, %v579_v62  ;;  %v14194_v48 = vshrl.u32 %v12678_v38, 16  ;;  %v14195_v59 = vshll.u32 %v12678_v38, 16 }
  0xaa   :  { %v9217_v2 = vcombine.high %v12877_v41, %v12888_v50  ;;  %v9216_v46 = vcombine.low %v12877_v41, %v12888_v50  ;;  %v640_v0 = vsel %vm12736_vm10, %v570_v43, %v639_v9  ;;  %v642_v8 = vld [vmem:[#allocation2 + $0xb0] sm:$0xf]  ;;  %v11834_v25 = vld [vmem:[#allocation6 + $0x1e8] sm:$0xff]   ;;  %v578_v36 = vrot.slane %v577_v35, 4  ;;  %v211_v18 = vld [vmem:[#allocation2 + $0xc8] sm:$0x8] }
  0xab   :  { %641 = vst [vmem:[#allocation2 + $0xa4] sm:$0xf] %v640_v0  ;;  %v643_v5 = vsel %vm12736_vm10, %v574_v54, %v642_v8  ;;  %v11831_v14 = vld [vmem:[#allocation6 + $0x1a0] sm:$0xff]   ;;  %v208_v23 = vld [vmem:[#allocation2 + $0xbc] sm:$0x8]  ;;  %v212_v7 = vsel %vm12670_vm8, 0, %v211_v18  ;;  %v396_v35 = vor.u32 %v394_v57, %v12841_v61 }
  0xac   :  { %10042 = vmatpush3.bf16.msra.mxu1 %v11828_v49  ;;  %1130 = vmatprep.mubr.bf16.mxu0 %v9217_v2  ;;  %644 = vst [vmem:[#allocation2 + $0xb0] sm:$0xf] %v643_v5  ;;  %v491_v40 = vld [vmem:[#allocation2 + $0x3c] sm:$0xf]  ;;  %v209_v28 = vsel %vm12670_vm8, 0, %v208_v23  ;;  %v583_v51 = vrot.slane %v14194_v48, 4 }
  0xad   :  { %1131 = vmatmul.mubr.bf16.gmra.mrb[4].mxu0 %v9216_v46  ;;  %v492_v24 = vsel %vm12607_vm5, %v382_v21, %v491_v40  ;;  %10043 = vmatprep.subr.bf16.mxu1 %v11832_v1  ;;  %v11836_v34 = vld [vmem:[#allocation6 + $0x1a8] sm:$0xff]   ;;  %210 = vst [vmem:[#allocation2 + $0xbc] sm:$0x8] %v209_v28  ;;  %213 = vst [vmem:[#allocation2 + $0xc8] sm:$0x8] %v212_v7  ;;  %v584_v52 = vrot.slane %v14195_v59, 5 }
  0xae   :  { %493 = vst [vmem:[#allocation2 + $0x3c] sm:$0xf] %v492_v24  ;;  %v494_v42 = vld [vmem:[#allocation2 + $0x48] sm:$0xf]  ;;  %10122 = vmatpush3.bf16.msra.mxu0 %v11831_v14  ;;  %v214_v56 = vld [vmem:[#allocation2 + $0xd4] sm:$0x8]  ;;  %v403_v24 = vor.u32 %v401_v27, %v12905_v13 }
  0xaf   :  { %v495_v11 = vsel %vm12607_vm5, %v389_v6, %v494_v42  ;;  %v11823_v17 = vld [vmem:[#allocation2 + $0x8c] ss:$12 sps:$4 sm:$0xff]   ;;  %10123 = vmatprep.subr.bf16.mxu0 %v11834_v25  ;;  %v217_v3 = vld [vmem:[#allocation2 + $0xe0] sm:$0x8]  ;;  %v215_v60 = vsel %vm12670_vm8, 0, %v214_v56  ;;  %v14196_v43 = vshrl.u32 %v12680_v39, 16  ;;  %v585_v45 = vor.u32 %v584_v52, %v583_v51 }
  0xb0   :  { %10044 = vmatpush3.bf16.msra.mxu1 %v11833_v30  ;;  %496 = vst [vmem:[#allocation2 + $0x48] sm:$0xf] %v495_v11  ;;  %10977 = vmatprep.mubr.bf16.mxu1 %v11823_v17  ;;  %v218_v29 = vsel %vm12670_vm8, 0, %v217_v3  ;;  %216 = vst [vmem:[#allocation2 + $0xd4] sm:$0x8] %v215_v60  ;;  %v14197_v55 = vshll.u32 %v12680_v39, 16  ;;  %v9309_v56 = vcombine.low %v12807_v20, %v12877_v41 }
  0xb1   :  { %219 = vst [vmem:[#allocation2 + $0xe0] sm:$0x8] %v218_v29  ;;  %v587_v54 = vrot.slane %v14196_v43, 4  ;;  %v11838_v44 = vld [vmem:[#allocation6 + $0x70] sm:$0xff]   ;;  %v582_v53 = vrot.slane %v581_v19, 4  ;;  %v586_v2 = vrot.slane %v585_v45, 4 }
  0xb2   :  { %10124 = vmatpush3.bf16.msra.mxu0 %v11836_v34  ;;  %v588_v49 = vrot.slane %v14197_v55, 5  ;;  %v139_v63 = vld [vmem:[#allocation2 + $0x54] sm:$0x1]  ;;  %10045 = vmatprep.subr.bf16.mxu1 %v11838_v44  ;;  %v142_v38 = vld [vmem:[#allocation2 + $0x60] sm:$0x1]  ;;  %v11844_v62 = vld [vmem:[#allocation6 + $0x78] sm:$0xff]   ;;  %v9310_v34 = vcombine.high %v12807_v20, %v12877_v41 }
  0xb3   :  { %v11825_v47 = vld [vmem:[#allocation2 + $0xa4] ss:$12 sps:$4 sm:$0xff]   ;;  %v140_v21 = vsel %vm12583_vm2, 0, %v139_v63  ;;  %v143_v39 = vsel %vm12583_vm2, 0, %v142_v38  ;;  %v11845_v42 = vld [vmem:[#allocation6 + $0x38] sm:$0xff]   ;;  %v11852_v51 = vld [vmem:[#allocation6 + $0x88] sm:$0xff]  }
  0xb4   :  { %10978 = vmatmul.mubr.bf16.gmra.mrb[24].mxu1 %v11825_v47  ;;  %v589_v26 = vor.u32 %v588_v49, %v587_v54  ;;  %v11840_v9 = vld [vmem:[#allocation6 + $0x30] sm:$0xff]   ;;  %141 = vst [vmem:[#allocation2 + $0x54] sm:$0x1] %v140_v21  ;;  %144 = vst [vmem:[#allocation2 + $0x60] sm:$0x1] %v143_v39  ;;  %v11847_v16 = vld [vmem:[#allocation6 + $0x1b8] sm:$0xff]  }
  0xb5   :  { %v12933_v12 = vld [vmem:[#allocation2 + $0x3c] sm:$0xff]  ;;  %10046 = vmatpush3.bf16.msra.mxu1 %v11840_v9  ;;  %v648_v5 = vld [vmem:[#allocation2 + $0xc8] sm:$0xf]  ;;  %v11848_v13 = vld [vmem:[#allocation6 + $0x80] sm:$0xff]  }
  0xb6   :  { %v590_v46 = vrot.slane %v589_v26, 4  ;;  %v11842_v0 = vld [vmem:[#allocation6 + $0x1f0] sm:$0xff]   ;;  %v645_v6 = vld [vmem:[#allocation2 + $0xbc] sm:$0xf]  ;;  %v649_v10 = vsel %vm12736_vm10, %v582_v53, %v648_v5  ;;  %10047 = vmatprep.subr.bf16.mxu1 %v11844_v62  ;;  %v9313_v47 = vcombine.high %v12888_v50, %v12933_v12  ;;  %v11857_v60 = vld [vmem:[#allocation6 + $0x98] sm:$0xff]  }
  0xb7   :  { %v12937_v22 = vld [vmem:[#allocation2 + $0x48] sm:$0xff]  ;;  %v11843_v8 = vld [vmem:[#allocation6 + $0x1b0] sm:$0xff]   ;;  %v646_v14 = vsel %vm12736_vm10, %v578_v36, %v645_v6  ;;  %10125 = vmatprep.subr.bf16.mxu0 %v11842_v0  ;;  %650 = vst [vmem:[#allocation2 + $0xc8] sm:$0xf] %v649_v10  ;;  %v651_v40 = vld [vmem:[#allocation2 + $0xd4] sm:$0xf] }
  0xb8   :  { %v9220_v33 = vcombine.high %v12933_v12, %v12937_v22  ;;  %v9219_v31 = vcombine.low %v12933_v12, %v12937_v22  ;;  %647 = vst [vmem:[#allocation2 + $0xbc] sm:$0xf] %v646_v14  ;;  %v654_v1 = vld [vmem:[#allocation2 + $0xe0] sm:$0xf]  ;;  %v652_v30 = vsel %vm12736_vm10, %v586_v2, %v651_v40  ;;  %10126 = vmatpush3.bf16.msra.mxu0 %v11843_v8  ;;  %v11858_v29 = vld [vmem:[#allocation6 + $0xa0] sm:$0xff]   ;;  %v11862_v41 = vld [vmem:[#allocation6 + $0xa8] sm:$0xff]  }
  0xb9   :  { %v655_v58 = vsel %vm12736_vm10, %v590_v46, %v654_v1  ;;  %653 = vst [vmem:[#allocation2 + $0xd4] sm:$0xf] %v652_v30  ;;  %10048 = vmatpush3.bf16.msra.mxu1 %v11845_v42  ;;  %10127 = vmatprep.subr.bf16.mxu0 %v11846_v32  ;;  %v12963_v11 = vld [vmem:[#allocation2] sm:$0xff]  ;;  %v11864_v55 = vld [vmem:[#allocation6 + $0xb8] sm:$0xff]   ;;  %v11867_v49 = vld [vmem:[#allocation6 + $0x200] sm:$0xff]  }
  0xba   :  { %1138 = vmatprep.mubr.bf16.mxu0 %v9220_v33  ;;  %656 = vst [vmem:[#allocation2 + $0xe0] sm:$0xf] %v655_v58  ;;  %10985 = vmatprep.subr.bf16.mxu1 %v11848_v13  ;;  %v9262_v23 = vcombine.high %v12963_v11, %v12794_v15  ;;  %v9261_v48 = vcombine.low %v12963_v11, %v12794_v15  ;;  %v11853_v3 = vld [vmem:[#allocation6 + $0x90] sm:$0xff]   ;;  %v11851_v63 = vld [vmem:[#allocation2 + $0x90] ss:$12 sps:$4 sm:$0xff]   ;;  %v11872_v5 = vld [vmem:[#allocation6 + $0x218] sm:$0xff]  }
  0xbb   :  { %1139 = vmatmul.mubr.bf16.gmra.mrb[8].mxu0 %v9219_v31  ;;  %v497_v57 = vld [vmem:[#allocation2 + $0x54] sm:$0xf]  ;;  %v500_v25 = vld [vmem:[#allocation2 + $0x60] sm:$0xf]  ;;  %v9312_v15 = vcombine.low %v12888_v50, %v12933_v12  ;;  %v675_v59 = vld [vmem:[#allocation2 + $0x84] sm:$0xff] }
  0xbc   :  { %v498_v61 = vsel %vm12607_vm5, %v396_v35, %v497_v57  ;;  %v501_v27 = vsel %vm12607_vm5, %v403_v24, %v500_v25  ;;  %10128 = vmatpush3.bf16.msra.mxu0 %v11847_v16  ;;  %v11863_v43 = vld [vmem:[#allocation6 + $0xb0] sm:$0xff]   ;;  %v9274_v50 = vcombine.high %v12963_v11, %v675_v59  ;;  %v9273_v53 = vcombine.low %v12963_v11, %v675_v59  ;;  %v11854_v45 = vld [vmem:[#allocation2 + $0xac] ss:$12 sps:$4 sm:$0xff]   ;;  %v11856_v26 = vld [vmem:[#allocation2 + $0xa8] ss:$12 sps:$4 sm:$0xff]  }
  0xbd   :  { %499 = vst [vmem:[#allocation2 + $0x54] sm:$0xf] %v498_v61  ;;  %502 = vst [vmem:[#allocation2 + $0x60] sm:$0xf] %v501_v27  ;;  %v11849_v44 = vld [vmem:[#allocation2 + $0x94] ss:$12 sps:$4 sm:$0xff]  }
  0xbe   :  { %v11859_v21 = vld [vmem:[#allocation2 + $0xc4] ss:$12 sps:$4 sm:$0xff]   ;;  %v1779_v38 = vld [vmem:[#allocation2 + $0xd8] sm:$0xff]  ;;  %v11861_v9 = vld [vmem:[#allocation2 + $0xc0] ss:$12 sps:$4 sm:$0xff]  }
  0xbf   :  { %v11835_v36 = vld [vmem:[#allocation2 + $0xbc] ss:$12 sps:$4 sm:$0xff]   ;;  %v9330_v33 = vcombine.low %v1779_v38, %v12963_v11  ;;  %v11866_v31 = vld [vmem:[#allocation2 + $0x20] ss:$12 sps:$4 sm:$0xff]   ;;  %v11869_v2 = vld [vmem:[#allocation2 + $0x38] ss:$12 sps:$4 sm:$0xff]  }
  0xc0   :  { %10981 = vmatprep.mubr.bf16.mxu1 %v11835_v36  ;;  %v11865_v39 = vld [vmem:[#allocation2 + $0x8] ss:$12 sps:$4 sm:$0xff]   ;;  %v11868_v46 = vld [vmem:[#allocation6 + $0x208] sm:$0xff]   ;;  %v11871_v0 = vld [vmem:[#allocation6 + $0x210] sm:$0xff]  }
  0xc1   :  { %v11837_v18 = vld [vmem:[#allocation2 + $0xd4] ss:$12 sps:$4 sm:$0xff]   ;;  %v11870_v8 = vld [vmem:[#allocation2 + $0x50] ss:$12 sps:$4 sm:$0xff]   ;;  %v11874_v10 = vld [vmem:[#allocation2 + $0x98] ss:$12 sps:$4 sm:$0xff]  }
  0xc2   :  { %10982 = vmatmul.mubr.bf16.gmra.mrb[28].mxu1 %v11837_v18  ;;  %v11873_v6 = vld [vmem:[#allocation2 + $0x80] ss:$12 sps:$4 sm:$0xff]   ;;  %v11875_v14 = vld [vmem:[#allocation6 + $0x220] sm:$0xff]   ;;  %v11876_v40 = vld [vmem:[#allocation6 + $0x228] sm:$0xff]  }
  0xc3   :  { %1588 = vmatprep.mubr.bf16.mxu1 %v9262_v23  ;;  %v11877_v35 = vld [vmem:[#allocation2 + $0xb0] ss:$12 sps:$4 sm:$0xff]   ;;  %v11879_v1 = vld [vmem:[#allocation6 + $0x230] sm:$0xff]   ;;  %v11878_v62 = vld [vmem:[#allocation2 + $0xc8] ss:$12 sps:$4 sm:$0xff]  }
  0xc4   :  { %v749_v17 = vld [vmem:[#allocation2 + $0x54] sm:$0xff]  ;;  %v751_v28 = vld [vmem:[#allocation2 + $0x60] sm:$0xff]  ;;  %v11880_v30 = vld [vmem:[#allocation6 + $0x238] sm:$0xff]  }
  0xc5   :  { %v9223_v7 = vcombine.high %v749_v17, %v751_v28  ;;  %v9222_v19 = vcombine.low %v749_v17, %v751_v28  ;;  %v9316_v20 = vcombine.high %v12937_v22, %v749_v17  ;;  %v9315_v52 = vcombine.low %v12937_v22, %v749_v17  ;;  %v11881_v24 = vld [vmem:[#allocation2 + $0x20] ss:$12 sps:$4 sm:$0xff]   ;;  %v11882_v58 = vld [vmem:[#allocation2 + $0x38] ss:$12 sps:$4 sm:$0xff]   ;;  %v11883_v42 = vld [vmem:[#allocation2 + $0x50] ss:$12 sps:$4 sm:$0xff]  }
  0xc6   :  { %v9319_v54 = vcombine.high %v751_v28, %v12963_v11  ;;  %v9318_v12 = vcombine.low %v751_v28, %v12963_v11  ;;  %v9331_v22 = vcombine.high %v1779_v38, %v12963_v11  ;;  %v11884_v32 = vld [vmem:[#allocation2 + $0x68] ss:$12 sps:$4 sm:$0xff]   ;;  %v11885_v57 = vld [vmem:[#allocation2 + $0x98] ss:$12 sps:$4 sm:$0xff]   ;;  %v11886_v61 = vld [vmem:[#allocation2 + $0xb0] ss:$12 sps:$4 sm:$0xff]  }
  0xc7   :  { %1146 = vmatprep.mubr.bf16.mxu0 %v9223_v7  ;;  %v11887_v25 = vld [vmem:[#allocation2 + $0xc8] ss:$12 sps:$4 sm:$0xff]   ;;  %v11888_v16 = vld [vmem:[#allocation2 + $0xe0] ss:$12 sps:$4 sm:$0xff]  }
  0xc8   :  { %1147 = vmatmul.mubr.bf16.gmra.mrb[12].mxu0 %v9222_v19 }
  0xc9   :  { %2136 = vmatprep.mubr.bf16.mxu0 %v9310_v34 }
  0xca   :  { %1589 = vmatmul.mubr.bf16.vlgmr.msra.gmra.mrb[32].mxu1 %v9261_v48 }
  0xcb   :  { %1596 = vmatprep.mubr.bf16.mxu1 %v9310_v34  ;;  %10986 = vmatpush3.bf16.msra.mxu1 %v11848_v13 }
  0xcc   :  { %10987 = vmatprep.subr.bf16.mxu1 %v11852_v51 }
  0xcf   :  { %10988 = vmatpush3.bf16.msra.mxu1 %v11852_v51 }
  0xd0   :  { %2137 = vmatmul.mubr.bf16.vlgmr.msra.gmra.mrb[16].mxu0 %v9309_v56  ;;  %10989 = vmatprep.subr.bf16.mxu1 %v11853_v3 }
  0xd1   :  { %2144 = vmatprep.mubr.bf16.mxu0 %v9313_v47 }
  0xd2   :  { %1597 = vmatmul.mubr.bf16.gmra.mrb[36].mxu1 %v9309_v56 }
  0xd3   :  { %1604 = vmatprep.mubr.bf16.mxu1 %v9313_v47  ;;  %10990 = vmatpush3.bf16.msra.mxu1 %v11853_v3 }
  0xd4   :  { %10991 = vmatprep.subr.bf16.mxu1 %v11857_v60 }
  0xd7   :  { %10992 = vmatpush3.bf16.msra.mxu1 %v11857_v60 }
  0xd8   :  { %2145 = vmatmul.mubr.bf16.gmra.mrb[20].mxu0 %v9312_v15  ;;  %10993 = vmatprep.subr.bf16.mxu1 %v11858_v29 }
  0xd9   :  { %2152 = vmatprep.mubr.bf16.mxu0 %v9316_v20 }
  0xda   :  { %1605 = vmatmul.mubr.bf16.gmra.mrb[40].mxu1 %v9312_v15 }
  0xdb   :  { %1612 = vmatprep.mubr.bf16.mxu1 %v9316_v20  ;;  %10994 = vmatpush3.bf16.msra.mxu1 %v11858_v29  ;;  %v11889_v29 = vld [vmem:[#allocation8 + $0x100] sm:$0xff]  }
  0xdc   :  { %10995 = vmatprep.subr.bf16.mxu1 %v11862_v41  ;;  %v11890_v20 = vld [vmem:[#allocation8 + $0xc0] sm:$0xff]   ;;  %10193 = vmatprep.subr.bf16.mxu0 %v11889_v29  ;;  %v11908_v29 = vld [vmem:[#allocation8 + $0xf0] sm:$0xff]  }
  0xdd   :  { %10194 = vmatpush3.bf16.msra.mxu0 %v11890_v20  ;;  %v11909_v20 = vld [vmem:[#allocation8 + $0x170] sm:$0xff]  }
  0xdf   :  { %10996 = vmatpush3.bf16.msra.mxu1 %v11862_v41 }
  0xe0   :  { %2153 = vmatmul.mubr.bf16.gmra.mrb[24].mxu0 %v9315_v52  ;;  %10997 = vmatprep.subr.bf16.mxu1 %v11863_v43 }
  0xe1   :  { %2160 = vmatprep.mubr.bf16.mxu0 %v9319_v54 }
  0xe2   :  { %1613 = vmatmul.mubr.bf16.gmra.mrb[44].mxu1 %v9315_v52 }
  0xe3   :  { %1620 = vmatprep.mubr.bf16.mxu1 %v9274_v50  ;;  %10998 = vmatpush3.bf16.msra.mxu1 %v11863_v43 }
  0xe4   :  { %10999 = vmatprep.subr.bf16.mxu1 %v11864_v55 }
  0xe7   :  { %11000 = vmatpush3.bf16.msra.mxu1 %v11864_v55 }
  0xe8   :  { %2161 = vmatmul.mubr.bf16.gmra.mrb[28].mxu0 %v9318_v12  ;;  %11017 = vmatprep.subr.bf16.mxu1 %v11867_v49 }
  0xe9   :  { %2168 = vmatprep.mubr.bf16.mxu0 %v11849_v44 }
  0xea   :  { %1621 = vmatmul.mubr.bf16.gmra.mrb[48].mxu1 %v9273_v53 }
  0xeb   :  { %1628 = vmatprep.mubr.bf16.mxu1 %v11849_v44 }
  0xf0   :  { %2169 = vmatmul.mubr.bf16.gmra.mrb[32].mxu0 %v11851_v63 }
  0xf1   :  { %2176 = vmatprep.mubr.bf16.mxu0 %v11854_v45 }
  0xf2   :  { %1629 = vmatmul.mubr.bf16.gmra.mrb[52].mxu1 %v11851_v63 }
  0xf3   :  { %1636 = vmatprep.mubr.bf16.mxu1 %v11854_v45 }
  0xf8   :  { %2177 = vmatmul.mubr.bf16.gmra.mrb[36].mxu0 %v11856_v26 }
  0xf9   :  { %2184 = vmatprep.mubr.bf16.mxu0 %v11859_v21 }
  0xfa   :  { %1637 = vmatmul.mubr.bf16.gmra.mrb[56].mxu1 %v11856_v26 }
  0xfb   :  { %1644 = vmatprep.mubr.bf16.mxu1 %v11859_v21 }
 0x100   :  { %2185 = vmatmul.mubr.bf16.gmra.mrb[40].mxu0 %v11861_v9 }
 0x101   :  { %2192 = vmatprep.mubr.bf16.mxu0 %v9331_v22 }
 0x102   :  { %1645 = vmatmul.mubr.bf16.gmra.mrb[60].mxu1 %v11861_v9  ;;  %v11891_v9 = vld [vmem:[#allocation8 + $0x140] sm:$0xff]  }
 0x103   :  { %11001 = vmatprep.mubr.bf16.mxu1 %v11865_v39 }
 0x108   :  { %2193 = vmatmul.mubr.bf16.gmra.mrb[44].mxu0 %v9330_v33  ;;  %v11892_v33 = vld [vmem:[#allocation8 + $0x108] sm:$0xff]  }
 0x109   :  { %10195 = vmatprep.subr.bf16.mxu0 %v11892_v33 }
 0x10a   :  { %11002 = vmatmul.mubr.bf16.vlgmr.msra.gmra.mrb[16].mxu1 %v11866_v31  ;;  %v11893_v31 = vld [vmem:[#allocation8 + $0xc8] sm:$0xff]  }
 0x10b   :  { %11018 = vmatpush3.bf16.msra.mxu1 %v11867_v49  ;;  %11005 = vmatprep.mubr.bf16.mxu1 %v11869_v2  ;;  %v11894_v2 = vld [vmem:[#allocation8 + $0x148] sm:$0xff]  }
 0x10c   :  { %11019 = vmatprep.subr.bf16.mxu1 %v11868_v46  ;;  %10196 = vmatpush3.bf16.msra.mxu0 %v11893_v31 }
 0x10f   :  { %11020 = vmatpush3.bf16.msra.mxu1 %v11868_v46  ;;  %v11895_v46 = vld [vmem:[#allocation8 + $0x110] sm:$0xff]  }
 0x110   :  { %11021 = vmatprep.subr.bf16.mxu1 %v11871_v0  ;;  %10197 = vmatprep.subr.bf16.mxu0 %v11895_v46  ;;  %v11910_v46 = vld [vmem:[#allocation8 + $0x138] sm:$0xff]  }
 0x112   :  { %11006 = vmatmul.mubr.bf16.gmra.mrb[20].mxu1 %v11870_v8  ;;  %v11897_v8 = vld [vmem:[#allocation8 + $0x150] sm:$0xff]  }
 0x113   :  { %11022 = vmatpush3.bf16.msra.mxu1 %v11871_v0  ;;  %11009 = vmatprep.mubr.bf16.mxu1 %v11873_v6  ;;  %v11896_v0 = vld [vmem:[#allocation8 + $0xd0] sm:$0xff]  }
 0x114   :  { %11023 = vmatprep.subr.bf16.mxu1 %v11872_v5  ;;  %10198 = vmatpush3.bf16.msra.mxu0 %v11896_v0 }
 0x117   :  { %11024 = vmatpush3.bf16.msra.mxu1 %v11872_v5 }
 0x118   :  { %11025 = vmatprep.subr.bf16.mxu1 %v11875_v14 }
 0x11a   :  { %11010 = vmatmul.mubr.bf16.gmra.mrb[24].mxu1 %v11874_v10 }
 0x11b   :  { %11026 = vmatpush3.bf16.msra.mxu1 %v11875_v14  ;;  %11013 = vmatprep.mubr.bf16.mxu1 %v11877_v35 }
 0x11c   :  { %11027 = vmatprep.subr.bf16.mxu1 %v11876_v40 }
 0x11f   :  { %11028 = vmatpush3.bf16.msra.mxu1 %v11876_v40 }
 0x120   :  { %11029 = vmatprep.subr.bf16.mxu1 %v11879_v1 }
 0x122   :  { %11014 = vmatmul.mubr.bf16.gmra.mrb[28].mxu1 %v11878_v62  ;;  %v11899_v62 = vld [vmem:[#allocation8 + $0xd8] sm:$0xff]  }
 0x123   :  { %11030 = vmatpush3.bf16.msra.mxu1 %v11879_v1  ;;  %11033 = vmatprep.mubr.bf16.mxu1 %v11881_v24  ;;  %v11898_v1 = vld [vmem:[#allocation8 + $0x118] sm:$0xff]  }
 0x124   :  { %11031 = vmatprep.subr.bf16.mxu1 %v11880_v30  ;;  %10199 = vmatprep.subr.bf16.mxu0 %v11898_v1  ;;  %v11900_v24 = vld [vmem:[#allocation8 + $0x158] sm:$0xff]  }
 0x125   :  { %10200 = vmatpush3.bf16.msra.mxu0 %v11899_v62  ;;  %v11911_v1 = vld [vmem:[#allocation8 + $0xf8] sm:$0xff]  }
 0x126   :  { %v11912_v62 = vld [vmem:[#allocation8 + $0x178] sm:$0xff]  }
 0x127   :  { %11032 = vmatpush3.bf16.msra.mxu1 %v11880_v30  ;;  %v11901_v30 = vld [vmem:[#allocation8 + $0x120] sm:$0xff]  }
 0x128   :  { %11049 = vmatprep.subr.bf16.mxu1 %v11891_v9  ;;  %10201 = vmatprep.subr.bf16.mxu0 %v11901_v30 }
 0x12a   :  { %11034 = vmatmul.mubr.bf16.vlgmr.msra.gmra.mrb[16].mxu1 %v11882_v58  ;;  %v11902_v58 = vld [vmem:[#allocation8 + $0xe0] sm:$0xff]  }
 0x12b   :  { %11037 = vmatprep.mubr.bf16.mxu1 %v11883_v42  ;;  %11050 = vmatpush3.bf16.msra.mxu1 %v11891_v9  ;;  %v11903_v42 = vld [vmem:[#allocation8 + $0x160] sm:$0xff]  }
 0x12c   :  { %11051 = vmatprep.subr.bf16.mxu1 %v11894_v2  ;;  %10202 = vmatpush3.bf16.msra.mxu0 %v11902_v58 }
 0x12f   :  { %11052 = vmatpush3.bf16.msra.mxu1 %v11894_v2 }
 0x130   :  { %11053 = vmatprep.subr.bf16.mxu1 %v11897_v8 }
 0x132   :  { %11038 = vmatmul.mubr.bf16.gmra.mrb[20].mxu1 %v11884_v32 }
 0x133   :  { %11041 = vmatprep.mubr.bf16.mxu1 %v11885_v57  ;;  %11054 = vmatpush3.bf16.msra.mxu1 %v11897_v8 }
 0x134   :  { %11055 = vmatprep.subr.bf16.mxu1 %v11900_v24 }
 0x137   :  { %11056 = vmatpush3.bf16.msra.mxu1 %v11900_v24 }
 0x138   :  { %11057 = vmatprep.subr.bf16.mxu1 %v11903_v42 }
 0x13a   :  { %11042 = vmatmul.mubr.bf16.gmra.mrb[24].mxu1 %v11886_v61  ;;  %v11904_v61 = vld [vmem:[#allocation8 + $0x128] sm:$0xff]  }
 0x13b   :  { %11045 = vmatprep.mubr.bf16.mxu1 %v11887_v25  ;;  %11058 = vmatpush3.bf16.msra.mxu1 %v11903_v42 }
 0x13c   :  { %10203 = vmatprep.subr.bf16.mxu0 %v11904_v61 }
 0x142   :  { %11046 = vmatmul.mubr.bf16.gmra.mrb[28].mxu1 %v11888_v16 }
 0x14e   :  { %v9993_v27 = vpop.f32.mrb[0].mxu1 }
 0x14f   :  { %v9994_v13 = vpop.f32.mrb[1].mxu1 }
 0x150   :  { %v12985_v36 = vadd.f32 %v9994_v13, %v9993_v27  ;;  %v9996_v11 = vpop.f32.mrb[2].mxu1 }
 0x151   :  { %v9997_v23 = vpop.f32.mrb[3].mxu1 }
 0x152   :  { %v12987_v18 = vadd.f32 %v9997_v23, %v9996_v11  ;;  %v11905_v23 = vld [vmem:[#allocation8 + $0xe8] sm:$0xff]  }
 0x153   :  { %10204 = vmatpush3.bf16.msra.mxu0 %v11905_v23 }
 0x156   :  { %v9999_v17 = vpop.f32.mrb[4].mxu1 }
 0x157   :  { %v10000_v28 = vpop.f32.mrb[5].mxu1 }
 0x158   :  { %v12989_v7 = vadd.f32 %v10000_v28, %v9999_v17  ;;  %v10002_v19 = vpop.f32.mrb[6].mxu1  ;;  %v11906_v17 = vld [vmem:[#allocation8 + $0x168] sm:$0xff]  }
 0x159   :  { %v10003_v34 = vpop.f32.mrb[7].mxu1  ;;  %11059 = vmatprep.subr.bf16.mxu1 %v11906_v17 }
 0x15a   :  { %v12991_v48 = vadd.f32 %v10003_v34, %v10002_v19  ;;  %11060 = vmatpush3.bf16.msra.mxu1 %v11906_v17 }
 0x15b   :  { %11061 = vmatprep.subr.bf16.mxu1 %v11909_v20 }
 0x15e   :  { %v10005_v51 = vpop.f32.mrb[8].mxu1  ;;  %11062 = vmatpush3.bf16.msra.mxu1 %v11909_v20 }
 0x15f   :  { %v10006_v56 = vpop.f32.mrb[9].mxu1  ;;  %11063 = vmatprep.subr.bf16.mxu1 %v11912_v62 }
 0x160   :  { %v12993_v3 = vadd.f32 %v10006_v56, %v10005_v51  ;;  %v10008_v47 = vpop.f32.mrb[10].mxu1 }
 0x161   :  { %v10009_v60 = vpop.f32.mrb[11].mxu1 }
 0x162   :  { %v12995_v15 = vadd.f32 %v10009_v60, %v10008_v47  ;;  %v11907_v60 = vld [vmem:[#allocation8 + $0x130] sm:$0xff]   ;;  %11064 = vmatpush3.bf16.msra.mxu1 %v11912_v62 }
 0x163   :  { %10205 = vmatprep.subr.bf16.mxu0 %v11907_v60  ;;  %v13033_v60 = vld [vmem:[#allocation8 + $0x80] sm:$0xff]  }
 0x164   :  { %10206 = vmatpush3.bf16.msra.mxu0 %v11908_v29  ;;  %11081 = vmatprep.subr.bf16.mxu1 %v13033_v60 }
 0x165   :  { %10207 = vmatprep.subr.bf16.mxu0 %v11910_v46 }
 0x166   :  { %v10011_v41 = vpop.f32.mrb[12].mxu1 }
 0x167   :  { %v10012_v59 = vpop.f32.mrb[13].mxu1 }
 0x168   :  { %v12997_v52 = vadd.f32 %v10012_v59, %v10011_v41  ;;  %v10014_v43 = vpop.f32.mrb[14].mxu1  ;;  %10208 = vmatpush3.bf16.msra.mxu0 %v11911_v1 }
 0x169   :  { %v10015_v54 = vpop.f32.mrb[15].mxu1 }
 0x16a   :  { %v12999_v50 = vadd.f32 %v10015_v54, %v10014_v43 }
 0x16b   :  { %v9969_v55 = vpop.f32.mrb[0].mxu0 }
 0x16c   :  { %v9970_v49 = vpop.f32.mrb[1].mxu0 }
 0x16d   :  { %v13001_v44 = vadd.f32 %v9970_v49, %v9969_v55  ;;  %v9972_v12 = vpop.f32.mrb[2].mxu0 }
 0x16e   :  { %v9973_v53 = vpop.f32.mrb[3].mxu0 }
 0x16f   :  { %v13003_v63 = vadd.f32 %v9973_v53, %v9972_v12 }
 0x180   :  { %v9975_v45 = vpop.f32.mrb[4].mxu0 }
 0x181   :  { %v9976_v26 = vpop.f32.mrb[5].mxu0 }
 0x182   :  { %v13005_v21 = vadd.f32 %v9976_v26, %v9975_v45  ;;  %v9978_v38 = vpop.f32.mrb[6].mxu0 }
 0x183   :  { %v9979_v22 = vpop.f32.mrb[7].mxu0 }
 0x184   :  { %v13007_v39 = vadd.f32 %v9979_v22, %v9978_v38 }
 0x18e   :  { %v9981_v6 = vpop.f32.mrb[8].mxu0 }
 0x18f   :  { %v9982_v5 = vpop.f32.mrb[9].mxu0 }
 0x190   :  { %v13009_v14 = vadd.f32 %v9982_v5, %v9981_v6  ;;  %v9984_v10 = vpop.f32.mrb[10].mxu0 }
 0x191   :  { %v9985_v35 = vpop.f32.mrb[11].mxu0 }
 0x192   :  { %v13011_v40 = vadd.f32 %v9985_v35, %v9984_v10 }
 0x19b   :  { %v9987_v32 = vpop.f32.mrb[12].mxu0 }
 0x19c   :  { %v9988_v57 = vpop.f32.mrb[13].mxu0 }
 0x19d   :  { %v13013_v25 = vadd.f32 %v9988_v57, %v9987_v32  ;;  %v9990_v16 = vpop.f32.mrb[14].mxu0  ;;  %v10049_v27 = vpop.f32.mrb[32].mxu1 }
 0x19e   :  { %v9991_v13 = vpop.f32.mrb[15].mxu0  ;;  %v10050_v11 = vpop.f32.mrb[33].mxu1 }
 0x19f   :  { %v13015_v28 = vadd.f32 %v9991_v13, %v9990_v16  ;;  %v10051_v19 = vadd.f32 %v10050_v11, %v10049_v27  ;;  %v10052_v34 = vpop.f32.mrb[34].mxu1 }
 0x1a0   :  { %v10053_v51 = vpop.f32.mrb[35].mxu1 }
 0x1a1   :  { %v11436_v56 = vadd.f32 %v10051_v19, %v13001_v44  ;;  %v10054_v47 = vadd.f32 %v10053_v51, %v10052_v34 }
 0x1a3   :  { %v10129_v41 = vpop.f32.mrb[16].mxu0  ;;  %v11442_v59 = vadd.f32 %v10054_v47, %v13003_v63 }
 0x1a4   :  { %v10130_v43 = vpop.f32.mrb[17].mxu0 }
 0x1a5   :  { %v10131_v54 = vadd.f32 %v10130_v43, %v10129_v41  ;;  %v10132_v55 = vpop.f32.mrb[18].mxu0  ;;  %v10055_v49 = vpop.f32.mrb[36].mxu1 }
 0x1a6   :  { %v10133_v12 = vpop.f32.mrb[19].mxu0  ;;  %v10056_v53 = vpop.f32.mrb[37].mxu1 }
 0x1a7   :  { %v10134_v45 = vadd.f32 %v10133_v12, %v10132_v55  ;;  %v10057_v44 = vadd.f32 %v10056_v53, %v10055_v49  ;;  %v10058_v26 = vpop.f32.mrb[38].mxu1  ;;  %v13019_v38 = vadd.f32 %v11436_v56, %v10131_v54 }
 0x1a8   :  { %v10059_v9 = vpop.f32.mrb[39].mxu1 }
 0x1a9   :  { %v11433_v22 = vadd.f32 %v10057_v44, %v13005_v21  ;;  %v10060_v33 = vadd.f32 %v10059_v9, %v10058_v26  ;;  %v13022_v63 = vadd.f32 %v11442_v59, %v10134_v45 }
 0x1ab   :  { %v10135_v31 = vpop.f32.mrb[20].mxu0  ;;  %v11439_v2 = vadd.f32 %v10060_v33, %v13007_v39 }
 0x1ac   :  { %v10136_v0 = vpop.f32.mrb[21].mxu0 }
 0x1ad   :  { %v10137_v8 = vadd.f32 %v10136_v0, %v10135_v31  ;;  %v10138_v6 = vpop.f32.mrb[22].mxu0  ;;  %v10061_v5 = vpop.f32.mrb[40].mxu1 }
 0x1ae   :  { %v10139_v10 = vpop.f32.mrb[23].mxu0  ;;  %v10062_v35 = vpop.f32.mrb[41].mxu1 }
 0x1af   :  { %v10140_v24 = vadd.f32 %v10139_v10, %v10138_v6  ;;  %v10063_v30 = vadd.f32 %v10062_v35, %v10061_v5  ;;  %v10064_v58 = vpop.f32.mrb[42].mxu1  ;;  %v13025_v21 = vadd.f32 %v11433_v22, %v10137_v8 }
 0x1b0   :  { %v10065_v42 = vpop.f32.mrb[43].mxu1 }
 0x1b1   :  { %v11448_v39 = vadd.f32 %v10063_v30, %v13009_v14  ;;  %v10066_v32 = vadd.f32 %v10065_v42, %v10064_v58  ;;  %v13028_v57 = vadd.f32 %v11439_v2, %v10140_v24 }
 0x1b3   :  { %v10141_v61 = vpop.f32.mrb[24].mxu0  ;;  %v11454_v16 = vadd.f32 %v10066_v32, %v13011_v40 }
 0x1b4   :  { %v10142_v27 = vpop.f32.mrb[25].mxu0 }
 0x1b5   :  { %v10143_v13 = vadd.f32 %v10142_v27, %v10141_v61  ;;  %v10144_v11 = vpop.f32.mrb[26].mxu0  ;;  %v10067_v23 = vpop.f32.mrb[44].mxu1 }
 0x1b6   :  { %v10145_v17 = vpop.f32.mrb[27].mxu0  ;;  %v10068_v19 = vpop.f32.mrb[45].mxu1 }
 0x1b7   :  { %v10146_v34 = vadd.f32 %v10145_v17, %v10144_v11  ;;  %v10069_v51 = vadd.f32 %v10068_v19, %v10067_v23  ;;  %v10070_v56 = vpop.f32.mrb[46].mxu1  ;;  %v13031_v47 = vadd.f32 %v11448_v39, %v10143_v13 }
 0x1b8   :  { %v10071_v14 = vpop.f32.mrb[47].mxu1 }
 0x1b9   :  { %v11445_v29 = vadd.f32 %v10069_v51, %v13013_v25  ;;  %v10072_v20 = vadd.f32 %v10071_v14, %v10070_v56  ;;  %v13036_v41 = vadd.f32 %v11454_v16, %v10146_v34 }
 0x1bb   :  { %v10147_v40 = vpop.f32.mrb[28].mxu0  ;;  %v11451_v59 = vadd.f32 %v10072_v20, %v13015_v28 }
 0x1bc   :  { %v10148_v43 = vpop.f32.mrb[29].mxu0 }
 0x1bd   :  { %v10149_v54 = vadd.f32 %v10148_v43, %v10147_v40  ;;  %v10150_v55 = vpop.f32.mrb[30].mxu0  ;;  %v10073_v49 = vpop.f32.mrb[48].mxu1 }
 0x1be   :  { %v10151_v12 = vpop.f32.mrb[31].mxu0  ;;  %v10074_v53 = vpop.f32.mrb[49].mxu1 }
 0x1bf   :  { %v10152_v45 = vadd.f32 %v10151_v12, %v10150_v55  ;;  %v10075_v44 = vadd.f32 %v10074_v53, %v10073_v49  ;;  %v10076_v26 = vpop.f32.mrb[50].mxu1  ;;  %v13040_v9 = vadd.f32 %v11445_v29, %v10149_v54  ;;  %v11940_v49 = vld [vmem:[#allocation8 + $0x40] sm:$0xff]  }
 0x1c0   :  { %v10077_v25 = vpop.f32.mrb[51].mxu1  ;;  %10273 = vmatprep.subr.bf16.mxu0 %v11940_v49  ;;  %v2567_v49 = vld [vmem:[#allocation2 + $0x24] sm:$0xf] }
 0x1c1   :  { %v11460_v22 = vadd.f32 %v10075_v44, %v12985_v36  ;;  %v10078_v33 = vadd.f32 %v10077_v25, %v10076_v26  ;;  %v13043_v31 = vadd.f32 %v11451_v59, %v10152_v45 }
 0x1c3   :  { %v10153_v2 = vpop.f32.mrb[32].mxu0  ;;  %v11466_v28 = vadd.f32 %v10078_v33, %v12987_v18 }
 0x1c4   :  { %v10154_v46 = vpop.f32.mrb[33].mxu0 }
 0x1c5   :  { %v10155_v0 = vadd.f32 %v10154_v46, %v10153_v2  ;;  %v10156_v8 = vpop.f32.mrb[34].mxu0  ;;  %v10079_v6 = vpop.f32.mrb[52].mxu1 }
 0x1c6   :  { %v10157_v5 = vpop.f32.mrb[35].mxu0  ;;  %v10080_v10 = vpop.f32.mrb[53].mxu1 }
 0x1c7   :  { %v10158_v35 = vadd.f32 %v10157_v5, %v10156_v8  ;;  %v10081_v1 = vadd.f32 %v10080_v10, %v10079_v6  ;;  %v10082_v62 = vpop.f32.mrb[54].mxu1  ;;  %v13046_v24 = vadd.f32 %v11460_v22, %v10155_v0 }
 0x1c8   :  { %v10083_v30 = vpop.f32.mrb[55].mxu1 }
 0x1c9   :  { %v11457_v36 = vadd.f32 %v10081_v1, %v12989_v7  ;;  %v10084_v58 = vadd.f32 %v10083_v30, %v10082_v62  ;;  %v13049_v42 = vadd.f32 %v11466_v28, %v10158_v35 }
 0x1cb   :  { %v10159_v39 = vpop.f32.mrb[36].mxu0  ;;  %v11463_v18 = vadd.f32 %v10084_v58, %v12991_v48 }
 0x1cc   :  { %v10160_v32 = vpop.f32.mrb[37].mxu0 }
 0x1cd   :  { %v10161_v61 = vadd.f32 %v10160_v32, %v10159_v39  ;;  %v10162_v16 = vpop.f32.mrb[38].mxu0  ;;  %v10085_v27 = vpop.f32.mrb[56].mxu1 }
 0x1ce   :  { %v10163_v13 = vpop.f32.mrb[39].mxu0  ;;  %v10086_v11 = vpop.f32.mrb[57].mxu1 }
 0x1cf   :  { %v10164_v23 = vadd.f32 %v10163_v13, %v10162_v16  ;;  %v10087_v17 = vadd.f32 %v10086_v11, %v10085_v27  ;;  %v10088_v19 = vpop.f32.mrb[58].mxu1  ;;  %v13052_v34 = vadd.f32 %v11457_v36, %v10161_v61 }
 0x1d0   :  { %v10089_v51 = vpop.f32.mrb[59].mxu1 }
 0x1d1   :  { %v11472_v7 = vadd.f32 %v10087_v17, %v12993_v3  ;;  %v10090_v56 = vadd.f32 %v10089_v51, %v10088_v19  ;;  %v13055_v14 = vadd.f32 %v11463_v18, %v10164_v23 }
 0x1d3   :  { %v10165_v29 = vpop.f32.mrb[40].mxu0  ;;  %v11478_v48 = vadd.f32 %v10090_v56, %v12995_v15 }
 0x1d4   :  { %v10166_v20 = vpop.f32.mrb[41].mxu0 }
 0x1d5   :  { %v10167_v40 = vadd.f32 %v10166_v20, %v10165_v29  ;;  %v10168_v59 = vpop.f32.mrb[42].mxu0  ;;  %v10091_v43 = vpop.f32.mrb[60].mxu1 }
 0x1d6   :  { %v10169_v54 = vpop.f32.mrb[43].mxu0  ;;  %v10092_v55 = vpop.f32.mrb[61].mxu1 }
 0x1d7   :  { %v10170_v12 = vadd.f32 %v10169_v54, %v10168_v59  ;;  %v10093_v53 = vadd.f32 %v10092_v55, %v10091_v43  ;;  %v10094_v45 = vpop.f32.mrb[62].mxu1  ;;  %v13058_v44 = vadd.f32 %v11472_v7, %v10167_v40 }
 0x1d8   :  { %v10095_v26 = vpop.f32.mrb[63].mxu1 }
 0x1d9   :  { %v11469_v3 = vadd.f32 %v10093_v53, %v12997_v52  ;;  %v10096_v25 = vadd.f32 %v10095_v26, %v10094_v45  ;;  %v13061_v22 = vadd.f32 %v11478_v48, %v10170_v12  ;;  %v13071_v52 = vld [vmem:[%s14173_s3] ss:$0 sm:$0xff] }
 0x1db   :  { %v10171_v15 = vpop.f32.mrb[44].mxu0  ;;  %v11475_v33 = vadd.f32 %v10096_v25, %v12999_v50  ;;  %v2561_v25 = vld [vmem:[#allocation2 + $0xc] sm:$0xf] }
 0x1dc   :  { %v10172_v2 = vpop.f32.mrb[45].mxu0 }
 0x1dd   :  { %v10173_v28 = vadd.f32 %v10172_v2, %v10171_v15  ;;  %v10174_v46 = vpop.f32.mrb[46].mxu0  ;;  %v2695_v2 = vld [vmem:[#allocation2 + $0x2c] sm:$0xf] }
 0x1de   :  { %v10175_v0 = vpop.f32.mrb[47].mxu0 }
 0x1df   :  { %v10176_v8 = vadd.f32 %v10175_v0, %v10174_v46  ;;  %v13064_v6 = vadd.f32 %v11469_v3, %v10173_v28  ;;  %v2570_v46 = vld [vmem:[#allocation2 + $0x30] sm:$0xf] }
 0x1e1   :  { %v13066_v5 = vadd.f32 %v11475_v33, %v10176_v8 }
 0x1fd   :  { %v11035_v10 = vpop.f32.mrb[16].mxu1 }
 0x1fe   :  { %v11435_v35 = vadd.f32 %v13025_v21, %v11035_v10  ;;  %v2235_v1 = vpop.f32.mrb[17].mxu1 }
 0x1ff   :  { %v11438_v50 = vadd.f32 %v13019_v38, %v2235_v1  ;;  %v11036_v62 = vpop.f32.mrb[18].mxu1  ;;  %v2689_v1 = vld [vmem:[#allocation2 + $0x14] sm:$0xf] }
 0x200   :  { %v2323_v30 = vadd.f32 %v11435_v35, %v13071_v52  ;;  %v11441_v36 = vadd.f32 %v13028_v57, %v11036_v62  ;;  %v2238_v58 = vpop.f32.mrb[19].mxu1 }
 0x201   :  { %v2321_v39 = vadd.f32 %v11438_v50, %v13071_v52  ;;  %v11444_v18 = vadd.f32 %v13022_v63, %v2238_v58 }
 0x202   :  { %v2339_v32 = vmax.f32 %v2323_v30, 0.0  ;;  %v2324_v61 = vadd.f32 %v11441_v36, %v13071_v52 }
 0x203   :  { %v2337_v16 = vmax.f32 %v2321_v39, 0.0  ;;  %v2322_v27 = vadd.f32 %v11444_v18, %v13071_v52  ;;  %v2698_v39 = vld [vmem:[#allocation2 + $0x38] sm:$0xf] }
 0x204   :  { %v9907_v21 = vpack.c.bf16 %v2339_v32, %v2339_v32  ;;  %v2340_v13 = vmax.f32 %v2324_v61, 0.0 }
 0x205   :  { %v9905_v11 = vpack.c.bf16 %v2337_v16, %v2337_v16  ;;  %v2338_v38 = vmax.f32 %v2322_v27, 0.0  ;;  %v11039_v23 = vpop.f32.mrb[20].mxu1  ;;  %v2564_v27 = vld [vmem:[#allocation2 + $0x18] sm:$0xf] }
 0x206   :  { %2419 = vst [vmem:[#allocation2 + $0x28] sm:$0xf] %v9907_v21  ;;  %v2448_v17 = vshrl.u32 %v9907_v21, 16  ;;  %v2451_v19 = vshll.u32 %v9907_v21, 16  ;;  %v9908_v57 = vpack.c.bf16 %v2340_v13, %v2340_v13  ;;  %v11447_v51 = vadd.f32 %v13040_v9, %v11039_v23  ;;  %v2251_v7 = vpop.f32.mrb[21].mxu1 }
 0x207   :  { %2417 = vst [vmem:[#allocation2 + $0x10] sm:$0xf] %v9905_v11  ;;  %v2434_v63 = vshrl.u32 %v9905_v11, 16  ;;  %v2437_v56 = vshll.u32 %v9905_v11, 16  ;;  %v9906_v29 = vpack.c.bf16 %v2338_v38, %v2338_v38  ;;  %v11450_v48 = vadd.f32 %v13031_v47, %v2251_v7  ;;  %v11040_v20 = vpop.f32.mrb[22].mxu1 }
 0x208   :  { %v2450_v40 = vrot.slane %v2448_v17, 7  ;;  %v2617_v59 = vrot.slane %v2448_v17, 4  ;;  %v2618_v43 = vrot.slane %v2451_v19, 5  ;;  %2420 = vst [vmem:[#allocation2 + $0x34] sm:$0xf] %v9908_v57  ;;  %v2455_v54 = vshrl.u32 %v9908_v57, 16 }
 0x209   :  { %v2254_v55 = vpop.f32.mrb[23].mxu1  ;;  %v2436_v12 = vrot.slane %v2434_v63, 7  ;;  %v2609_v53 = vrot.slane %v2434_v63, 4  ;;  %v2610_v45 = vrot.slane %v2437_v56, 5  ;;  %v2458_v26 = vshll.u32 %v9908_v57, 16 }
 0x20a   :  { %2418 = vst [vmem:[#allocation2 + $0x1c] sm:$0xf] %v9906_v29  ;;  %v2453_v9 = vor.u32 %v2451_v19, %v2450_v40  ;;  %v2619_v3 = vor.u32 %v2618_v43, %v2617_v59  ;;  %v2457_v15 = vrot.slane %v2455_v54, 7  ;;  %v2621_v33 = vrot.slane %v2455_v54, 4  ;;  %v2692_v54 = vld [vmem:[#allocation2 + $0x20] sm:$0xf] }
 0x20b   :  { %v2439_v47 = vor.u32 %v2437_v56, %v2436_v12  ;;  %v2611_v28 = vor.u32 %v2610_v45, %v2609_v53  ;;  %v2622_v0 = vrot.slane %v2458_v26, 5  ;;  %v2441_v8 = vshrl.u32 %v9906_v29, 16 }
 0x20c   :  { %v2568_v10 = vsel %vm12607_vm5, %v2453_v9, %v2567_v49  ;;  %v2620_v35 = vrot.slane %v2619_v3, 4  ;;  %v2460_v50 = vor.u32 %v2458_v26, %v2457_v15  ;;  %v2444_v62 = vshll.u32 %v9906_v29, 16 }
 0x20d   :  { %2569 = vst [vmem:[#allocation2 + $0x24] sm:$0xf] %v2568_v10  ;;  %v2562_v30 = vsel %vm12607_vm5, %v2439_v47, %v2561_v25  ;;  %v2612_v36 = vrot.slane %v2611_v28, 4  ;;  %v2623_v58 = vor.u32 %v2622_v0, %v2621_v33  ;;  %v2443_v18 = vrot.slane %v2441_v8, 7  ;;  %v11043_v32 = vpop.f32.mrb[24].mxu1 }
 0x20e   :  { %v2696_v61 = vsel %vm12736_vm10, %v2620_v35, %v2695_v2  ;;  %2563 = vst [vmem:[#allocation2 + $0xc] sm:$0xf] %v2562_v30  ;;  %v2571_v16 = vsel %vm12607_vm5, %v2460_v50, %v2570_v46  ;;  %v2613_v21 = vrot.slane %v2441_v8, 4  ;;  %v2614_v13 = vrot.slane %v2444_v62, 5  ;;  %v2267_v11 = vpop.f32.mrb[25].mxu1 }
 0x20f   :  { %2697 = vst [vmem:[#allocation2 + $0x2c] sm:$0xf] %v2696_v61  ;;  %v2690_v38 = vsel %vm12736_vm10, %v2612_v36, %v2689_v1  ;;  %2572 = vst [vmem:[#allocation2 + $0x30] sm:$0xf] %v2571_v16  ;;  %v2624_v23 = vrot.slane %v2623_v58, 4  ;;  %v2446_v17 = vor.u32 %v2444_v62, %v2443_v18  ;;  %v2327_v19 = vadd.f32 %v11447_v51, %v13071_v52  ;;  %v11044_v57 = vpop.f32.mrb[26].mxu1 }
 0x210   :  { %2691 = vst [vmem:[#allocation2 + $0x14] sm:$0xf] %v2690_v38  ;;  %v2615_v7 = vor.u32 %v2614_v13, %v2613_v21  ;;  %v2325_v63 = vadd.f32 %v11450_v48, %v13071_v52  ;;  %v11453_v56 = vadd.f32 %v13043_v31, %v11040_v20  ;;  %v11456_v29 = vadd.f32 %v13036_v41, %v2254_v55  ;;  %v13097_v40 = vpop.f32.mrb[27].mxu1  ;;  %v2573_v50 = vld [vmem:[#allocation2 + $0x3c] sm:$0xf] }
 0x211   :  { %v2699_v59 = vsel %vm12736_vm10, %v2624_v23, %v2698_v39  ;;  %v2565_v43 = vsel %vm12607_vm5, %v2446_v17, %v2564_v27  ;;  %v2343_v49 = vmax.f32 %v2327_v19, 0.0  ;;  %v11459_v51 = vadd.f32 %v13052_v34, %v11043_v32  ;;  %v2707_v36 = vld [vmem:[#allocation2 + $0x5c] sm:$0xf]  ;;  %v2701_v21 = vld [vmem:[#allocation2 + $0x44] sm:$0xf] }
 0x212   :  { %2700 = vst [vmem:[#allocation2 + $0x38] sm:$0xf] %v2699_v59  ;;  %2566 = vst [vmem:[#allocation2 + $0x18] sm:$0xf] %v2565_v43  ;;  %v2616_v12 = vrot.slane %v2615_v7, 4  ;;  %v2341_v48 = vmax.f32 %v2325_v63, 0.0  ;;  %v2328_v31 = vadd.f32 %v11453_v56, %v13071_v52  ;;  %v2326_v41 = vadd.f32 %v11456_v29, %v13071_v52 }
 0x213   :  { %v9911_v20 = vpack.c.bf16 %v2343_v49, %v2343_v49  ;;  %v2331_v55 = vadd.f32 %v11459_v51, %v13071_v52  ;;  %v11462_v53 = vadd.f32 %v13046_v24, %v2267_v11  ;;  %v13109_v45 = vadd.f32 %v13055_v14, %v11044_v57  ;;  %v2579_v24 = vld [vmem:[#allocation2 + $0x54] sm:$0xf]  ;;  %v2582_v19 = vld [vmem:[#allocation2 + $0x60] sm:$0xf]  ;;  %v2576_v59 = vld [vmem:[#allocation2 + $0x48] sm:$0xf] }
 0x214   :  { %v2693_v26 = vsel %vm12736_vm10, %v2616_v12, %v2692_v54  ;;  %v9909_v34 = vpack.c.bf16 %v2341_v48, %v2341_v48  ;;  %v2344_v9 = vmax.f32 %v2328_v31, 0.0  ;;  %v2342_v3 = vmax.f32 %v2326_v41, 0.0  ;;  %v11919_v54 = vld [vmem:[#allocation8 + $0x88] sm:$0xff]  }
 0x215   :  { %2694 = vst [vmem:[#allocation2 + $0x20] sm:$0xf] %v2693_v26  ;;  %2423 = vst [vmem:[#allocation2 + $0x58] sm:$0xf] %v9911_v20  ;;  %v2476_v25 = vshrl.u32 %v9911_v20, 16  ;;  %v2479_v15 = vshll.u32 %v9911_v20, 16  ;;  %v13114_v2 = vadd.f32 %v11462_v53, %v13071_v52 }
 0x216   :  { %v2347_v33 = vmax.f32 %v2331_v55, 0.0  ;;  %v13116_v47 = vpop.f32.mrb[28].mxu1  ;;  %2421 = vst [vmem:[#allocation2 + $0x40] sm:$0xf] %v9909_v34  ;;  %v2462_v14 = vshrl.u32 %v9909_v34, 16  ;;  %v2465_v28 = vshll.u32 %v9909_v34, 16  ;;  %v9912_v46 = vpack.c.bf16 %v2344_v9, %v2344_v9 }
 0x217   :  { %v9910_v0 = vpack.c.bf16 %v2342_v3, %v2342_v3  ;;  %v13118_v8 = vpop.f32.mrb[29].mxu1  ;;  %v2478_v10 = vrot.slane %v2476_v25, 7  ;;  %v2633_v35 = vrot.slane %v2476_v25, 4  ;;  %v2634_v1 = vrot.slane %v2479_v15, 5  ;;  %v2710_v9 = vld [vmem:[#allocation2 + $0x68] sm:$0xf] }
 0x218   :  { %v13120_v62 = vpack.c.bf16 %v2347_v33, %v2347_v33  ;;  %v13122_v30 = vpop.f32.mrb[30].mxu1  ;;  %v2464_v58 = vrot.slane %v2462_v14, 7  ;;  %v2625_v39 = vrot.slane %v2462_v14, 4  ;;  %v2626_v18 = vrot.slane %v2465_v28, 5  ;;  %2424 = vst [vmem:[#allocation2 + $0x64] sm:$0xf] %v9912_v46 }
 0x219   :  { %v2483_v32 = vshrl.u32 %v9912_v46, 16  ;;  %2422 = vst [vmem:[#allocation2 + $0x4c] sm:$0xf] %v9910_v0  ;;  %v13124_v61 = vpop.f32.mrb[31].mxu1  ;;  %v2481_v16 = vor.u32 %v2479_v15, %v2478_v10  ;;  %v2635_v27 = vor.u32 %v2634_v1, %v2633_v35  ;;  %v2486_v13 = vshll.u32 %v9912_v46, 16 }
 0x21a   :  { %v2469_v11 = vshrl.u32 %v9910_v0, 16  ;;  %2427 = vst [vmem:[#allocation2 + $0xa0] sm:$0xf] %v13120_v62  ;;  %v2467_v38 = vor.u32 %v2465_v28, %v2464_v58  ;;  %v2627_v23 = vor.u32 %v2626_v18, %v2625_v39  ;;  %v11917_v43 = vld [vmem:[#allocation2 + $0x2c] ss:$12 sps:$4 sm:$0xff]   ;;  %v2472_v48 = vshll.u32 %v9910_v0, 16 }
 0x21b   :  { %v2485_v17 = vrot.slane %v2483_v32, 7  ;;  %v2637_v57 = vrot.slane %v2483_v32, 4  ;;  %v2580_v7 = vsel %vm12607_vm5, %v2481_v16, %v2579_v24  ;;  %v2636_v63 = vrot.slane %v2635_v27, 4  ;;  %v2591_v14 = vld [vmem:[#allocation2 + $0x9c] sm:$0xf]  ;;  %v11924_v39 = vld [vmem:[#allocation8 + $0x90] sm:$0xff]  }
 0x21c   :  { %v2638_v56 = vrot.slane %v2486_v13, 5  ;;  %v2471_v29 = vrot.slane %v2469_v11, 7  ;;  %2581 = vst [vmem:[#allocation2 + $0x54] sm:$0xf] %v2580_v7  ;;  %v2574_v49 = vsel %vm12607_vm5, %v2467_v38, %v2573_v50  ;;  %v2628_v51 = vrot.slane %v2627_v23, 4 }
 0x21d   :  { %v2488_v12 = vor.u32 %v2486_v13, %v2485_v17  ;;  %v11916_v31 = vld [vmem:[#allocation2 + $0x14] ss:$12 sps:$4 sm:$0xff]   ;;  %v2708_v41 = vsel %vm12736_vm10, %v2636_v63, %v2707_v36  ;;  %2575 = vst [vmem:[#allocation2 + $0x3c] sm:$0xf] %v2574_v49  ;;  %v2629_v55 = vrot.slane %v2469_v11, 4  ;;  %v2504_v53 = vshrl.u32 %v13120_v62, 16 }
 0x21e   :  { %v2639_v20 = vor.u32 %v2638_v56, %v2637_v57  ;;  %2709 = vst [vmem:[#allocation2 + $0x5c] sm:$0xf] %v2708_v41  ;;  %v2702_v26 = vsel %vm12736_vm10, %v2628_v51, %v2701_v21  ;;  %v2474_v3 = vor.u32 %v2472_v48, %v2471_v29  ;;  %v2630_v25 = vrot.slane %v2472_v48, 5  ;;  %11065 = vmatprep.mubr.bf16.mxu1 %v11916_v31  ;;  %v2704_v50 = vld [vmem:[#allocation2 + $0x50] sm:$0xf] }
 0x21f   :  { %v2583_v34 = vsel %vm12607_vm5, %v2488_v12, %v2582_v19  ;;  %2703 = vst [vmem:[#allocation2 + $0x44] sm:$0xf] %v2702_v26  ;;  %v2506_v33 = vrot.slane %v2504_v53, 7  ;;  %v2507_v24 = vshll.u32 %v13120_v62, 16  ;;  %v2649_v28 = vrot.slane %v2504_v53, 4  ;;  %11066 = vmatmul.mubr.bf16.vlgmr.msra.gmra.mrb[64].mxu1 %v11917_v43  ;;  %v11930_v26 = vld [vmem:[#allocation8 + $0xa0] sm:$0xff]  }
 0x220   :  { %2584 = vst [vmem:[#allocation2 + $0x60] sm:$0xf] %v2583_v34  ;;  %v2640_v15 = vrot.slane %v2639_v20, 4  ;;  %v2577_v46 = vsel %vm12607_vm5, %v2474_v3, %v2576_v59  ;;  %v2631_v0 = vor.u32 %v2630_v25, %v2629_v55  ;;  %v2345_v10 = vmax.f32 %v13114_v2, 0.0  ;;  %11082 = vmatpush3.bf16.msra.mxu1 %v13033_v60  ;;  %v2585_v56 = vld [vmem:[#allocation2 + $0x84] sm:$0xf] }
 0x221   :  { %v2332_v35 = vadd.f32 %v13109_v45, %v13071_v52  ;;  %2578 = vst [vmem:[#allocation2 + $0x48] sm:$0xf] %v2577_v46  ;;  %v2509_v62 = vor.u32 %v2507_v24, %v2506_v33  ;;  %v2650_v36 = vrot.slane %v2507_v24, 5  ;;  %v11468_v58 = vadd.f32 %v13049_v42, %v13097_v40  ;;  %11083 = vmatprep.subr.bf16.mxu1 %v11919_v54  ;;  %v2719_v40 = vld [vmem:[#allocation2 + $0xa4] sm:$0xf] }
 0x222   :  { %v2711_v1 = vsel %vm12736_vm10, %v2640_v15, %v2710_v9  ;;  %v2632_v18 = vrot.slane %v2631_v0, 4  ;;  %v9913_v2 = vpack.c.bf16 %v2345_v10, %v2345_v10  ;;  %v11471_v45 = vadd.f32 %v13064_v6, %v13116_v47  ;;  %v11925_v6 = vld [vmem:[#allocation8 + $0x98] sm:$0xff]   ;;  %v2722_v25 = vld [vmem:[#allocation2 + $0xb0] sm:$0xf] }
 0x223   :  { %2712 = vst [vmem:[#allocation2 + $0x68] sm:$0xf] %v2711_v1  ;;  %v2348_v32 = vmax.f32 %v2332_v35, 0.0  ;;  %v2592_v60 = vsel %vm12607_vm5, %v2509_v62, %v2591_v14  ;;  %v2651_v16 = vor.u32 %v2650_v36, %v2649_v28  ;;  %v2330_v27 = vadd.f32 %v11468_v58, %v13071_v52  ;;  %v2713_v51 = vld [vmem:[#allocation2 + $0x8c] sm:$0xf] }
 0x224   :  { %v11474_v21 = vadd.f32 %v13058_v44, %v13118_v8  ;;  %v2705_v42 = vsel %vm12736_vm10, %v2632_v18, %v2704_v50  ;;  %2593 = vst [vmem:[#allocation2 + $0x9c] sm:$0xf] %v2592_v60  ;;  %2425 = vst [vmem:[#allocation2 + $0x88] sm:$0xf] %v9913_v2  ;;  %v2490_v13 = vshrl.u32 %v9913_v2, 16  ;;  %v2493_v11 = vshll.u32 %v9913_v2, 16  ;;  %11084 = vmatpush3.bf16.msra.mxu1 %v11919_v54 }
 0x225   :  { %v9916_v38 = vpack.c.bf16 %v2348_v32, %v2348_v32  ;;  %2706 = vst [vmem:[#allocation2 + $0x50] sm:$0xf] %v2705_v42  ;;  %v2652_v47 = vrot.slane %v2651_v16, 4  ;;  %v2346_v23 = vmax.f32 %v2330_v27, 0.0  ;;  %v2335_v17 = vadd.f32 %v11471_v45, %v13071_v52  ;;  %11085 = vmatprep.subr.bf16.mxu1 %v11924_v39  ;;  %v2594_v48 = vld [vmem:[#allocation2 + $0xa8] sm:$0xf] }
 0x226   :  { %v2333_v19 = vadd.f32 %v11474_v21, %v13071_v52  ;;  %v2492_v44 = vrot.slane %v2490_v13, 7  ;;  %v2641_v8 = vrot.slane %v2490_v13, 4  ;;  %v2642_v57 = vrot.slane %v2493_v11, 5  ;;  %v2588_v14 = vld [vmem:[#allocation2 + $0x90] sm:$0xf]  ;;  %v11931_v32 = vld [vmem:[#allocation8 + $0xa8] sm:$0xff]  }
 0x227   :  { %2428 = vst [vmem:[#allocation2 + $0xac] sm:$0xf] %v9916_v38  ;;  %v2511_v7 = vshrl.u32 %v9916_v38, 16  ;;  %v2720_v63 = vsel %vm12736_vm10, %v2652_v47, %v2719_v40  ;;  %v2514_v29 = vshll.u32 %v9916_v38, 16  ;;  %v9914_v59 = vpack.c.bf16 %v2346_v23, %v2346_v23  ;;  %v2716_v35 = vld [vmem:[#allocation2 + $0x98] sm:$0xf] }
 0x228   :  { %v2351_v43 = vmax.f32 %v2335_v17, 0.0  ;;  %2721 = vst [vmem:[#allocation2 + $0xa4] sm:$0xf] %v2720_v63  ;;  %v2495_v54 = vor.u32 %v2493_v11, %v2492_v44  ;;  %v2643_v49 = vor.u32 %v2642_v57, %v2641_v8  ;;  %11086 = vmatpush3.bf16.msra.mxu1 %v11924_v39  ;;  %v2349_v15 = vmax.f32 %v2333_v19, 0.0  ;;  %v2603_v60 = vld [vmem:[#allocation2 + $0xcc] sm:$0xf] }
 0x229   :  { %v2513_v12 = vrot.slane %v2511_v7, 7  ;;  %v2653_v31 = vrot.slane %v2511_v7, 4  ;;  %v2654_v41 = vrot.slane %v2514_v29, 5  ;;  %2426 = vst [vmem:[#allocation2 + $0x94] sm:$0xf] %v9914_v59  ;;  %v2497_v20 = vshrl.u32 %v9914_v59, 16  ;;  %11087 = vmatprep.subr.bf16.mxu1 %v11925_v6 }
 0x22a   :  { %v2500_v55 = vshll.u32 %v9914_v59, 16  ;;  %v9919_v53 = vpack.c.bf16 %v2351_v43, %v2351_v43  ;;  %v2586_v34 = vsel %vm12607_vm5, %v2495_v54, %v2585_v56  ;;  %v2644_v9 = vrot.slane %v2643_v49, 4  ;;  %v11923_v2 = vld [vmem:[#allocation2 + $0x5c] ss:$12 sps:$4 sm:$0xff]   ;;  %v2731_v11 = vld [vmem:[#allocation2 + $0xd4] sm:$0xf] }
 0x22b   :  { %v2516_v3 = vor.u32 %v2514_v29, %v2513_v12  ;;  %2587 = vst [vmem:[#allocation2 + $0x84] sm:$0xf] %v2586_v34  ;;  %v2655_v33 = vor.u32 %v2654_v41, %v2653_v31  ;;  %v2499_v24 = vrot.slane %v2497_v20, 7  ;;  %v2645_v28 = vrot.slane %v2497_v20, 4  ;;  %v2597_v17 = vld [vmem:[#allocation2 + $0xb4] sm:$0xf] }
 0x22c   :  { %v2646_v46 = vrot.slane %v2500_v55, 5  ;;  %2431 = vst [vmem:[#allocation2 + $0xd0] sm:$0xf] %v9919_v53  ;;  %v2714_v0 = vsel %vm12736_vm10, %v2644_v9, %v2713_v51  ;;  %v2532_v1 = vshrl.u32 %v9919_v53, 16  ;;  %v2535_v50 = vshll.u32 %v9919_v53, 16  ;;  %11088 = vmatpush3.bf16.msra.mxu1 %v11925_v6  ;;  %v11936_v7 = vld [vmem:[#allocation8 + $0xb0] sm:$0xff]  }
 0x22d   :  { %v2595_v10 = vsel %vm12607_vm5, %v2516_v3, %v2594_v48  ;;  %v11922_v62 = vld [vmem:[#allocation2 + $0x44] ss:$12 sps:$4 sm:$0xff]   ;;  %2715 = vst [vmem:[#allocation2 + $0x8c] sm:$0xf] %v2714_v0  ;;  %v2656_v36 = vrot.slane %v2655_v33, 4  ;;  %v2502_v58 = vor.u32 %v2500_v55, %v2499_v24  ;;  %v9917_v18 = vpack.c.bf16 %v2349_v15, %v2349_v15  ;;  %11089 = vmatprep.subr.bf16.mxu1 %v11930_v26  ;;  %v11938_v34 = vld [vmem:[#allocation8 + $0xb8] sm:$0xff]  }
 0x22e   :  { %2596 = vst [vmem:[#allocation2 + $0xa8] sm:$0xf] %v2595_v10  ;;  %v2647_v39 = vor.u32 %v2646_v46, %v2645_v28  ;;  %v2534_v45 = vrot.slane %v2532_v1, 7  ;;  %v2665_v16 = vrot.slane %v2532_v1, 4  ;;  %v2666_v27 = vrot.slane %v2535_v50, 5  ;;  %11069 = vmatprep.mubr.bf16.mxu1 %v11922_v62  ;;  %v13183_v43 = vld [vmem:[#allocation2 + $0xc] sm:$0xff] }
 0x22f   :  { %v11477_v21 = vadd.f32 %v13066_v5, %v13122_v30  ;;  %v2723_v42 = vsel %vm12736_vm10, %v2656_v36, %v2722_v25  ;;  %v2589_v40 = vsel %vm12607_vm5, %v2502_v58, %v2588_v14  ;;  %2429 = vst [vmem:[#allocation2 + $0xb8] sm:$0xf] %v9917_v18  ;;  %v2518_v38 = vshrl.u32 %v9917_v18, 16  ;;  %11070 = vmatmul.mubr.bf16.gmra.mrb[68].mxu1 %v11923_v2  ;;  %v13175_v30 = vld [vmem:[#allocation2 + $0x18] sm:$0xff]  ;;  %v13185_v54 = vld [vmem:[#allocation2 + $0x30] sm:$0xff]  ;;  %v13194_v20 = vld [vmem:[#allocation2 + $0x24] sm:$0xff] }
 0x230   :  { %v2648_v13 = vrot.slane %v2647_v39, 4  ;;  %2724 = vst [vmem:[#allocation2 + $0xb0] sm:$0xf] %v2723_v42  ;;  %2590 = vst [vmem:[#allocation2 + $0x90] sm:$0xf] %v2589_v40  ;;  %v2537_v6 = vor.u32 %v2535_v50, %v2534_v45  ;;  %v2667_v47 = vor.u32 %v2666_v27, %v2665_v16  ;;  %v2521_v23 = vshll.u32 %v9917_v18, 16  ;;  %11090 = vmatpush3.bf16.msra.mxu1 %v11930_v26 }
 0x231   :  { %v2336_v5 = vadd.f32 %v11477_v21, %v13071_v52  ;;  %v2520_v44 = vrot.slane %v2518_v38, 7  ;;  %v2657_v8 = vrot.slane %v2518_v38, 4  ;;  %v11480_v57 = vadd.f32 %v13061_v22, %v13124_v61  ;;  %11091 = vmatprep.subr.bf16.mxu1 %v11931_v32  ;;  %v11942_v12 = vld [vmem:[#allocation8] sm:$0xff]   ;;  %v11947_v9 = vld [vmem:[#allocation8 + $0x48] sm:$0xff]   ;;  %v11952_v1 = vld [vmem:[#allocation8 + $0x50] sm:$0xff]  }
 0x232   :  { %v2717_v19 = vsel %vm12736_vm10, %v2648_v13, %v2716_v35  ;;  %v2604_v63 = vsel %vm12607_vm5, %v2537_v6, %v2603_v60  ;;  %v2668_v56 = vrot.slane %v2667_v47, 4  ;;  %v2658_v29 = vrot.slane %v2521_v23, 5  ;;  %v2606_v33 = vld [vmem:[#allocation2 + $0xd8] sm:$0xf]  ;;  %v11944_v35 = vld [vmem:[#allocation8 + $0x1c0] sm:$0xff]   ;;  %v11954_v21 = vld [vmem:[#allocation8 + $0x10] sm:$0xff]  }
 0x233   :  { %2718 = vst [vmem:[#allocation2 + $0x98] sm:$0xf] %v2717_v19  ;;  %v2352_v59 = vmax.f32 %v2336_v5, 0.0  ;;  %2605 = vst [vmem:[#allocation2 + $0xcc] sm:$0xf] %v2604_v63  ;;  %v2523_v49 = vor.u32 %v2521_v23, %v2520_v44  ;;  %v2334_v51 = vadd.f32 %v11480_v57, %v13071_v52  ;;  %v9375_v22 = vcombine.high %v13183_v43, %v13175_v30  ;;  %v11948_v14 = vld [vmem:[#allocation8 + $0x8] sm:$0xff]  }
 0x234   :  { %v9374_v61 = vcombine.low %v13183_v43, %v13175_v30  ;;  %v2732_v48 = vsel %vm12736_vm10, %v2668_v56, %v2731_v11  ;;  %v2659_v31 = vor.u32 %v2658_v29, %v2657_v8  ;;  %11092 = vmatpush3.bf16.msra.mxu1 %v11931_v32  ;;  %v2725_v52 = vld [vmem:[#allocation2 + $0xbc] sm:$0xf]  ;;  %v9378_v26 = vcombine.high %v13194_v20, %v13185_v54  ;;  %v2734_v50 = vld [vmem:[#allocation2 + $0xe0] sm:$0xf]  ;;  %v13202_v32 = vld [vmem:[#allocation2 + $0x48] sm:$0xff] }
 0x235   :  { %v9920_v41 = vpack.c.bf16 %v2352_v59, %v2352_v59  ;;  %2733 = vst [vmem:[#allocation2 + $0xd4] sm:$0xf] %v2732_v48  ;;  %v2598_v55 = vsel %vm12607_vm5, %v2523_v49, %v2597_v17  ;;  %v2350_v53 = vmax.f32 %v2334_v51, 0.0  ;;  %3202 = vmatprep.mubr.bf16.mxu0 %v9375_v22  ;;  %11093 = vmatprep.subr.bf16.mxu1 %v11936_v7  ;;  %v2600_v2 = vld [vmem:[#allocation2 + $0xc0] sm:$0xf]  ;;  %v11959_v23 = vld [vmem:[#allocation8 + $0x58] sm:$0xff]  }
 0x236   :  { %2599 = vst [vmem:[#allocation2 + $0xb4] sm:$0xf] %v2598_v55  ;;  %v2660_v3 = vrot.slane %v2659_v31, 4  ;;  %3203 = vmatmul.mubr.bf16.vlgmr.msra.gmra.mrb[48].mxu0 %v9374_v61  ;;  %v9377_v13 = vcombine.low %v13194_v20, %v13185_v54  ;;  %v13208_v11 = vld [vmem:[#allocation2 + $0x3c] sm:$0xff]  ;;  %v2728_v5 = vld [vmem:[#allocation2 + $0xc8] sm:$0xf] }
 0x237   :  { %2432 = vst [vmem:[#allocation2 + $0xdc] sm:$0xf] %v9920_v41  ;;  %v2539_v25 = vshrl.u32 %v9920_v41, 16  ;;  %v2542_v15 = vshll.u32 %v9920_v41, 16  ;;  %v9918_v24 = vpack.c.bf16 %v2350_v53, %v2350_v53  ;;  %3210 = vmatprep.mubr.bf16.mxu0 %v9378_v26  ;;  %10274 = vmatpush3.bf16.msra.mxu0 %v11942_v12  ;;  %v11929_v45 = vld [vmem:[#allocation2 + $0xa4] ss:$12 sps:$4 sm:$0xff]   ;;  %v9381_v47 = vcombine.high %v13208_v11, %v13202_v32 }
 0x238   :  { %v2726_v28 = vsel %vm12736_vm10, %v2660_v3, %v2725_v52  ;;  %11094 = vmatpush3.bf16.msra.mxu1 %v11936_v7  ;;  %10275 = vmatprep.subr.bf16.mxu0 %v11947_v9  ;;  %v11960_v8 = vld [vmem:[#allocation8 + $0x18] sm:$0xff]   ;;  %v11964_v7 = vld [vmem:[#allocation8 + $0x60] sm:$0xff]   ;;  %v13218_v63 = vld [vmem:[#allocation2 + $0x60] sm:$0xff]  ;;  %v9380_v56 = vcombine.low %v13208_v11, %v13202_v32 }
 0x239   :  { %v2541_v46 = vrot.slane %v2539_v25, 7  ;;  %v2669_v0 = vrot.slane %v2539_v25, 4  ;;  %v2670_v10 = vrot.slane %v2542_v15, 5  ;;  %2727 = vst [vmem:[#allocation2 + $0xbc] sm:$0xf] %v2726_v28  ;;  %v2525_v62 = vshrl.u32 %v9918_v24, 16  ;;  %11095 = vmatprep.subr.bf16.mxu1 %v11938_v34 }
 0x23a   :  { %2430 = vst [vmem:[#allocation2 + $0xc4] sm:$0xf] %v9918_v24  ;;  %v2528_v36 = vshll.u32 %v9918_v24, 16  ;;  %v11928_v58 = vld [vmem:[#allocation2 + $0x8c] ss:$12 sps:$4 sm:$0xff]   ;;  %v11966_v59 = vld [vmem:[#allocation8 + $0x20] sm:$0xff]  }
 0x23b   :  { %v2544_v39 = vor.u32 %v2542_v15, %v2541_v46  ;;  %v2671_v18 = vor.u32 %v2670_v10, %v2669_v0  ;;  %v2527_v60 = vrot.slane %v2525_v62, 7  ;;  %v2661_v16 = vrot.slane %v2525_v62, 4  ;;  %11073 = vmatprep.mubr.bf16.mxu1 %v11928_v58  ;;  %10276 = vmatpush3.bf16.msra.mxu0 %v11948_v14  ;;  %v13222_v29 = vld [vmem:[#allocation2 + $0x54] sm:$0xff]  ;;  %v11976_v61 = vld [vmem:[#allocation8 + $0x70] sm:$0xff]   ;;  %v11983_v9 = vld [vmem:[#allocation8 + $0x38] sm:$0xff]  }
 0x23c   :  { %v2662_v27 = vrot.slane %v2528_v36, 5  ;;  %11074 = vmatmul.mubr.bf16.gmra.mrb[72].mxu1 %v11929_v45  ;;  %10277 = vmatprep.subr.bf16.mxu0 %v11952_v1  ;;  %v9384_v49 = vcombine.high %v13222_v29, %v13218_v63  ;;  %v11971_v51 = vld [vmem:[#allocation8 + $0x68] sm:$0xff]   ;;  %v13226_v48 = vld [vmem:[#allocation2 + $0x90] sm:$0xff]  ;;  %v9383_v55 = vcombine.low %v13222_v29, %v13218_v63  ;;  %v13230_v52 = vld [vmem:[#allocation2 + $0x84] sm:$0xff] }
 0x23d   :  { %v2607_v42 = vsel %vm12607_vm5, %v2544_v39, %v2606_v33  ;;  %v2672_v40 = vrot.slane %v2671_v18, 4  ;;  %v2530_v38 = vor.u32 %v2528_v36, %v2527_v60  ;;  %11096 = vmatpush3.bf16.msra.mxu1 %v11938_v34  ;;  %v11972_v22 = vld [vmem:[#allocation8 + $0x28] sm:$0xff]   ;;  %v11937_v41 = vld [vmem:[#allocation2 + $0x8] ss:$12 sps:$4 sm:$0xff]   ;;  %v11977_v53 = vld [vmem:[#allocation8 + $0x30] sm:$0xff]   ;;  %v9387_v26 = vcombine.high %v13230_v52, %v13226_v48 }
 0x23e   :  { %2608 = vst [vmem:[#allocation2 + $0xd8] sm:$0xf] %v2607_v42  ;;  %v2663_v6 = vor.u32 %v2662_v27, %v2661_v16  ;;  %3211 = vmatmul.mubr.bf16.gmra.mrb[52].mxu0 %v9377_v13  ;;  %10353 = vmatprep.subr.bf16.mxu1 %v11944_v35  ;;  %v11982_v34 = vld [vmem:[#allocation8 + $0x78] sm:$0xff]   ;;  %v11946_v3 = vld [vmem:[#allocation8 + $0x180] sm:$0xff]   ;;  %v11949_v33 = vld [vmem:[#allocation8 + $0x1c8] sm:$0xff]   ;;  %v9386_v14 = vcombine.low %v13230_v52, %v13226_v48 }
 0x23f   :  { %v2735_v17 = vsel %vm12736_vm10, %v2672_v40, %v2734_v50  ;;  %v2601_v19 = vsel %vm12607_vm5, %v2530_v38, %v2600_v2  ;;  %3218 = vmatprep.mubr.bf16.mxu0 %v9381_v47  ;;  %10278 = vmatpush3.bf16.msra.mxu0 %v11954_v21  ;;  %v13234_v25 = vld [vmem:[#allocation2 + $0xa8] sm:$0xff]  ;;  %v11945_v24 = vld [vmem:[#allocation2 + $0x38] ss:$12 sps:$4 sm:$0xff]   ;;  %v13238_v28 = vld [vmem:[#allocation2 + $0x9c] sm:$0xff] }
 0x240   :  { %2736 = vst [vmem:[#allocation2 + $0xe0] sm:$0xf] %v2735_v17  ;;  %v2664_v44 = vrot.slane %v2663_v6, 4  ;;  %2602 = vst [vmem:[#allocation2 + $0xc0] sm:$0xf] %v2601_v19  ;;  %10279 = vmatprep.subr.bf16.mxu0 %v11959_v23  ;;  %v9390_v46 = vcombine.high %v13238_v28, %v13234_v25  ;;  %v11950_v0 = vld [vmem:[#allocation8 + $0x188] sm:$0xff]   ;;  %v9389_v58 = vcombine.low %v13238_v28, %v13234_v25 }
 0x241   :  { %v11943_v15 = vld [vmem:[#allocation2 + $0x20] ss:$12 sps:$4 sm:$0xff]   ;;  %v11955_v50 = vld [vmem:[#allocation2 + $0x50] ss:$12 sps:$4 sm:$0xff]   ;;  %v13246_v39 = vld [vmem:[#allocation2 + $0xb4] sm:$0xff]  ;;  %v9471_v19 = vcombine.high %v13175_v30, %v13194_v20 }
 0x242   :  { %v2729_v57 = vsel %vm12736_vm10, %v2664_v44, %v2728_v5  ;;  %v11956_v10 = vld [vmem:[#allocation8 + $0x1d0] sm:$0xff]   ;;  %v11961_v62 = vld [vmem:[#allocation8 + $0x1d8] sm:$0xff]   ;;  %v11968_v45 = vld [vmem:[#allocation8 + $0x1e0] sm:$0xff]  }
 0x243   :  { %2730 = vst [vmem:[#allocation2 + $0xc8] sm:$0xf] %v2729_v57  ;;  %10280 = vmatpush3.bf16.msra.mxu0 %v11960_v8  ;;  %v11958_v35 = vld [vmem:[#allocation8 + $0x190] sm:$0xff]   ;;  %v11962_v2 = vld [vmem:[#allocation8 + $0x198] sm:$0xff]   ;;  %v11970_v60 = vld [vmem:[#allocation8 + $0x1a0] sm:$0xff]  }
 0x244   :  { %10281 = vmatprep.subr.bf16.mxu0 %v11964_v7  ;;  %v11957_v36 = vld [vmem:[#allocation2 + $0x80] ss:$12 sps:$4 sm:$0xff]   ;;  %v11967_v27 = vld [vmem:[#allocation2 + $0x98] ss:$12 sps:$4 sm:$0xff]   ;;  %v11969_v42 = vld [vmem:[#allocation2 + $0xb0] ss:$12 sps:$4 sm:$0xff]  }
 0x245   :  { %v13250_v16 = vld [vmem:[#allocation2 + $0xd8] sm:$0xff]  ;;  %v13254_v13 = vld [vmem:[#allocation2 + $0xcc] sm:$0xff]  ;;  %v11979_v47 = vld [vmem:[#allocation8 + $0x1f0] sm:$0xff]  }
 0x246   :  { %3219 = vmatmul.mubr.bf16.gmra.mrb[56].mxu0 %v9380_v56  ;;  %v11973_v21 = vld [vmem:[#allocation8 + $0x1e8] sm:$0xff]   ;;  %v9396_v38 = vcombine.high %v13254_v13, %v13250_v16  ;;  %v11980_v23 = vld [vmem:[#allocation8 + $0x1b0] sm:$0xff]   ;;  %v11984_v5 = vld [vmem:[#allocation8 + $0x1f8] sm:$0xff]   ;;  %v9395_v44 = vcombine.low %v13254_v13, %v13250_v16 }
 0x247   :  { %3226 = vmatprep.mubr.bf16.mxu0 %v9384_v49  ;;  %10282 = vmatpush3.bf16.msra.mxu0 %v11966_v59  ;;  %v11935_v31 = vld [vmem:[#allocation2 + $0xd4] ss:$12 sps:$4 sm:$0xff]   ;;  %v11974_v6 = vld [vmem:[#allocation8 + $0x1a8] sm:$0xff]   ;;  %v11985_v7 = vld [vmem:[#allocation8 + $0x1b8] sm:$0xff]   ;;  %v9470_v59 = vcombine.low %v13175_v30, %v13194_v20  ;;  %v9477_v20 = vcombine.high %v13202_v32, %v13222_v29 }
 0x248   :  { %10283 = vmatprep.subr.bf16.mxu0 %v11971_v51  ;;  %v13242_v1 = vld [vmem:[#allocation2 + $0xc0] sm:$0xff]  ;;  %v11993_v56 = vld [vmem:[#allocation8 + $0x200] sm:$0xff]   ;;  %v11995_v49 = vld [vmem:[#allocation8 + $0x208] sm:$0xff]   ;;  %v9474_v51 = vcombine.high %v13185_v54, %v13208_v11 }
 0x249   :  { %v9393_v18 = vcombine.high %v13246_v39, %v13242_v1  ;;  %v9392_v40 = vcombine.low %v13246_v39, %v13242_v1  ;;  %v13262_v8 = vld [vmem:[#allocation2] sm:$0xff]  ;;  %v11999_v30 = vld [vmem:[#allocation8 + $0x218] sm:$0xff]  }
 0x24a   :  { %v11934_v12 = vld [vmem:[#allocation2 + $0xbc] ss:$12 sps:$4 sm:$0xff]   ;;  %v9423_v57 = vcombine.high %v13262_v8, %v13183_v43 }
 0x24b   :  { %11077 = vmatprep.mubr.bf16.mxu1 %v11934_v12  ;;  %10284 = vmatpush3.bf16.msra.mxu0 %v11972_v22  ;;  %v11978_v17 = vld [vmem:[#allocation2 + $0xc8] ss:$12 sps:$4 sm:$0xff]   ;;  %v9422_v22 = vcombine.low %v13262_v8, %v13183_v43  ;;  %v9473_v12 = vcombine.low %v13185_v54, %v13208_v11  ;;  %v9480_v54 = vcombine.high %v13218_v63, %v13262_v8  ;;  %v12003_v11 = vld [vmem:[#allocation8 + $0x230] sm:$0xff]  }
 0x24c   :  { %11078 = vmatmul.mubr.bf16.gmra.mrb[76].mxu1 %v11935_v31  ;;  %10285 = vmatprep.subr.bf16.mxu0 %v11976_v61  ;;  %v11997_v61 = vld [vmem:[#allocation8 + $0x210] sm:$0xff]   ;;  %v12001_v43 = vld [vmem:[#allocation8 + $0x220] sm:$0xff]   ;;  %v9476_v31 = vcombine.low %v13202_v32, %v13222_v29  ;;  %v9483_v32 = vcombine.high %v13226_v48, %v13238_v28  ;;  %v9435_v29 = vcombine.high %v13262_v8, %v13230_v52 }
 0x24d   :  { %11097 = vmatprep.mubr.bf16.mxu1 %v11937_v41  ;;  %v12002_v41 = vld [vmem:[#allocation8 + $0x228] sm:$0xff]  }
 0x24e   :  { %3227 = vmatmul.mubr.bf16.gmra.mrb[60].mxu0 %v9383_v55  ;;  %v9479_v55 = vcombine.low %v13218_v63, %v13262_v8  ;;  %v9486_v63 = vcombine.high %v13234_v25, %v13246_v39 }
 0x24f   :  { %3234 = vmatprep.mubr.bf16.mxu0 %v9387_v26  ;;  %10286 = vmatpush3.bf16.msra.mxu0 %v11977_v53  ;;  %v12005_v53 = vld [vmem:[#allocation8 + $0x238] sm:$0xff]   ;;  %v9482_v26 = vcombine.low %v13226_v48, %v13238_v28  ;;  %v9488_v48 = vcombine.low %v13242_v1, %v13254_v13  ;;  %v12009_v28 = vld [vmem:[#allocation2 + $0x98] ss:$12 sps:$4 sm:$0xff]  }
 0x250   :  { %10287 = vmatprep.subr.bf16.mxu0 %v11982_v34  ;;  %v9434_v34 = vcombine.low %v13262_v8, %v13230_v52  ;;  %v9492_v52 = vcombine.high %v13250_v16, %v13262_v8 }
 0x253   :  { %10288 = vmatpush3.bf16.msra.mxu0 %v11983_v9  ;;  %v9485_v9 = vcombine.low %v13234_v25, %v13246_v39  ;;  %v9491_v25 = vcombine.low %v13250_v16, %v13262_v8  ;;  %v12014_v16 = vld [vmem:[#allocation9] sm:$0xff]   ;;  %v12022_v8 = vld [vmem:[#allocation9 + $0x10] sm:$0xff]  }
 0x254   :  { %11098 = vmatmul.mubr.bf16.vlgmr.msra.gmra.mrb[64].mxu1 %v11943_v15  ;;  %v12004_v15 = vld [vmem:[#allocation2 + $0x20] ss:$12 sps:$4 sm:$0xff]  }
 0x255   :  { %11101 = vmatprep.mubr.bf16.mxu1 %v11945_v24  ;;  %10354 = vmatpush3.bf16.msra.mxu1 %v11946_v3  ;;  %v9489_v3 = vcombine.high %v13242_v1, %v13254_v13  ;;  %v12007_v24 = vld [vmem:[#allocation2 + $0x50] ss:$12 sps:$4 sm:$0xff]  }
 0x256   :  { %3235 = vmatmul.mubr.bf16.gmra.mrb[64].mxu0 %v9386_v14  ;;  %10355 = vmatprep.subr.bf16.mxu1 %v11949_v33  ;;  %v12006_v33 = vld [vmem:[#allocation2 + $0x38] ss:$12 sps:$4 sm:$0xff]   ;;  %v12008_v14 = vld [vmem:[#allocation2 + $0x68] ss:$12 sps:$4 sm:$0xff]  }
 0x257   :  { %3242 = vmatprep.mubr.bf16.mxu0 %v9390_v46  ;;  %v12010_v46 = vld [vmem:[#allocation2 + $0xb0] ss:$12 sps:$4 sm:$0xff]  }
 0x258   :  { %v12017_v13 = vld [vmem:[#allocation9 + $0x48] sm:$0xff]  }
 0x259   :  { %10356 = vmatpush3.bf16.msra.mxu1 %v11950_v0  ;;  %v12011_v0 = vld [vmem:[#allocation2 + $0xc8] ss:$12 sps:$4 sm:$0xff]  }
 0x25a   :  { %10357 = vmatprep.subr.bf16.mxu1 %v11956_v10  ;;  %v12012_v10 = vld [vmem:[#allocation2 + $0xe0] ss:$12 sps:$4 sm:$0xff]  }
 0x25c   :  { %11102 = vmatmul.mubr.bf16.gmra.mrb[68].mxu1 %v11955_v50 }
 0x25d   :  { %11105 = vmatprep.mubr.bf16.mxu1 %v11957_v36  ;;  %10358 = vmatpush3.bf16.msra.mxu1 %v11958_v35 }
 0x25e   :  { %3243 = vmatmul.mubr.bf16.gmra.mrb[68].mxu0 %v9389_v58  ;;  %10359 = vmatprep.subr.bf16.mxu1 %v11961_v62 }
 0x25f   :  { %3250 = vmatprep.mubr.bf16.mxu0 %v9393_v18 }
 0x261   :  { %10360 = vmatpush3.bf16.msra.mxu1 %v11962_v2  ;;  %v12013_v2 = vld [vmem:[#allocation9 + $0x40] sm:$0xff]  }
 0x262   :  { %10361 = vmatprep.subr.bf16.mxu1 %v11968_v45 }
 0x264   :  { %11106 = vmatmul.mubr.bf16.gmra.mrb[72].mxu1 %v11967_v27 }
 0x265   :  { %11109 = vmatprep.mubr.bf16.mxu1 %v11969_v42  ;;  %10362 = vmatpush3.bf16.msra.mxu1 %v11970_v60 }
 0x266   :  { %3251 = vmatmul.mubr.bf16.gmra.mrb[72].mxu0 %v9392_v40  ;;  %10363 = vmatprep.subr.bf16.mxu1 %v11973_v21  ;;  %v12015_v21 = vld [vmem:[#allocation9 + $0x100] sm:$0xff]  }
 0x267   :  { %3258 = vmatprep.mubr.bf16.mxu0 %v9396_v38  ;;  %v12016_v40 = vld [vmem:[#allocation9 + $0xc0] sm:$0xff]   ;;  %10433 = vmatprep.subr.bf16.mxu0 %v12015_v21  ;;  %v12018_v38 = vld [vmem:[#allocation9 + $0x8] sm:$0xff]  }
 0x269   :  { %10364 = vmatpush3.bf16.msra.mxu1 %v11974_v6  ;;  %v12019_v6 = vld [vmem:[#allocation9 + $0x108] sm:$0xff]  }
 0x26a   :  { %10365 = vmatprep.subr.bf16.mxu1 %v11979_v47 }
 0x26c   :  { %11110 = vmatmul.mubr.bf16.gmra.mrb[76].mxu1 %v11978_v17 }
 0x26d   :  { %10366 = vmatpush3.bf16.msra.mxu1 %v11980_v23  ;;  %4215 = vmatprep.mubr.bf16.mxu1 %v9471_v19  ;;  %v12020_v23 = vld [vmem:[#allocation9 + $0xc8] sm:$0xff]  }
 0x26e   :  { %3259 = vmatmul.mubr.bf16.gmra.mrb[76].mxu0 %v9395_v44  ;;  %10367 = vmatprep.subr.bf16.mxu1 %v11984_v5  ;;  %v12021_v5 = vld [vmem:[#allocation9 + $0x50] sm:$0xff]  }
 0x26f   :  { %3668 = vmatprep.mubr.bf16.mxu0 %v9423_v57 }
 0x271   :  { %10368 = vmatpush3.bf16.msra.mxu1 %v11985_v7  ;;  %v12023_v7 = vld [vmem:[#allocation9 + $0x110] sm:$0xff]  }
 0x272   :  { %11113 = vmatprep.subr.bf16.mxu1 %v11993_v56 }
 0x274   :  { %4216 = vmatmul.mubr.bf16.vlgmr.msra.gmra.mrb[80].mxu1 %v9470_v59 }
 0x275   :  { %4223 = vmatprep.mubr.bf16.mxu1 %v9474_v51  ;;  %11114 = vmatpush3.bf16.msra.mxu1 %v11993_v56 }
 0x276   :  { %3669 = vmatmul.mubr.bf16.vlgmr.msra.gmra.mrb[80].mxu0 %v9422_v22  ;;  %11115 = vmatprep.subr.bf16.mxu1 %v11995_v49  ;;  %v12027_v22 = vld [vmem:[#allocation9 + $0x118] sm:$0xff]  }
 0x277   :  { %3676 = vmatprep.mubr.bf16.mxu0 %v9471_v19  ;;  %10434 = vmatpush3.bf16.msra.mxu0 %v12016_v40  ;;  %v12042_v40 = vld [vmem:[#allocation9 + $0x38] sm:$0xff]  }
 0x278   :  { %10435 = vmatprep.subr.bf16.mxu0 %v12019_v6  ;;  %v12043_v6 = vld [vmem:[#allocation9 + $0x138] sm:$0xff]  }
 0x279   :  { %11116 = vmatpush3.bf16.msra.mxu1 %v11995_v49  ;;  %v12025_v49 = vld [vmem:[#allocation9 + $0x58] sm:$0xff]  }
 0x27a   :  { %11117 = vmatprep.subr.bf16.mxu1 %v11997_v61 }
 0x27b   :  { %10436 = vmatpush3.bf16.msra.mxu0 %v12020_v23  ;;  %v12044_v23 = vld [vmem:[#allocation9 + $0xf8] sm:$0xff]  }
 0x27c   :  { %4224 = vmatmul.mubr.bf16.gmra.mrb[84].mxu1 %v9473_v12  ;;  %10437 = vmatprep.subr.bf16.mxu0 %v12023_v7 }
 0x27d   :  { %4231 = vmatprep.mubr.bf16.mxu1 %v9477_v20  ;;  %11118 = vmatpush3.bf16.msra.mxu1 %v11997_v61 }
 0x27e   :  { %3677 = vmatmul.mubr.bf16.gmra.mrb[84].mxu0 %v9470_v59  ;;  %11119 = vmatprep.subr.bf16.mxu1 %v11999_v30  ;;  %v12024_v59 = vld [vmem:[#allocation9 + $0xd0] sm:$0xff]  }
 0x27f   :  { %3684 = vmatprep.mubr.bf16.mxu0 %v9474_v51  ;;  %10438 = vmatpush3.bf16.msra.mxu0 %v12024_v59  ;;  %v12026_v51 = vld [vmem:[#allocation9 + $0x18] sm:$0xff]  }
 0x280   :  { %10439 = vmatprep.subr.bf16.mxu0 %v12027_v22 }
 0x281   :  { %11120 = vmatpush3.bf16.msra.mxu1 %v11999_v30 }
 0x282   :  { %11121 = vmatprep.subr.bf16.mxu1 %v12001_v43 }
 0x284   :  { %4232 = vmatmul.mubr.bf16.gmra.mrb[88].mxu1 %v9476_v31 }
 0x285   :  { %4239 = vmatprep.mubr.bf16.mxu1 %v9480_v54  ;;  %11122 = vmatpush3.bf16.msra.mxu1 %v12001_v43 }
 0x286   :  { %3685 = vmatmul.mubr.bf16.gmra.mrb[88].mxu0 %v9473_v12  ;;  %11123 = vmatprep.subr.bf16.mxu1 %v12002_v41  ;;  %v12028_v12 = vld [vmem:[#allocation9 + $0xd8] sm:$0xff]  }
 0x287   :  { %3692 = vmatprep.mubr.bf16.mxu0 %v9477_v20  ;;  %v12029_v20 = vld [vmem:[#allocation9 + $0x60] sm:$0xff]   ;;  %10440 = vmatpush3.bf16.msra.mxu0 %v12028_v12 }
 0x289   :  { %11124 = vmatpush3.bf16.msra.mxu1 %v12002_v41 }
 0x28a   :  { %11125 = vmatprep.subr.bf16.mxu1 %v12003_v11 }
 0x28c   :  { %4240 = vmatmul.mubr.bf16.gmra.mrb[92].mxu1 %v9479_v55 }
 0x28d   :  { %4247 = vmatprep.mubr.bf16.mxu1 %v9483_v32  ;;  %11126 = vmatpush3.bf16.msra.mxu1 %v12003_v11  ;;  %v12030_v11 = vld [vmem:[#allocation9 + $0x20] sm:$0xff]  }
 0x28e   :  { %3693 = vmatmul.mubr.bf16.gmra.mrb[92].mxu0 %v9476_v31  ;;  %11127 = vmatprep.subr.bf16.mxu1 %v12005_v53 }
 0x28f   :  { %3700 = vmatprep.mubr.bf16.mxu0 %v9435_v29 }
 0x291   :  { %11128 = vmatpush3.bf16.msra.mxu1 %v12005_v53  ;;  %v12031_v53 = vld [vmem:[#allocation9 + $0x120] sm:$0xff]  }
 0x292   :  { %10513 = vmatprep.subr.bf16.mxu1 %v12013_v2  ;;  %10441 = vmatprep.subr.bf16.mxu0 %v12031_v53 }
 0x294   :  { %4248 = vmatmul.mubr.bf16.gmra.mrb[96].mxu1 %v9482_v26 }
 0x295   :  { %4255 = vmatprep.mubr.bf16.mxu1 %v9486_v63 }
 0x296   :  { %3701 = vmatmul.mubr.bf16.gmra.mrb[96].mxu0 %v9434_v34 }
 0x297   :  { %3708 = vmatprep.mubr.bf16.mxu0 %v9483_v32 }
 0x29c   :  { %4256 = vmatmul.mubr.bf16.gmra.mrb[100].mxu1 %v9485_v9 }
 0x29d   :  { %4263 = vmatprep.mubr.bf16.mxu1 %v9489_v3 }
 0x29e   :  { %3709 = vmatmul.mubr.bf16.gmra.mrb[100].mxu0 %v9482_v26 }
 0x29f   :  { %3716 = vmatprep.mubr.bf16.mxu0 %v9486_v63 }
 0x2a4   :  { %4264 = vmatmul.mubr.bf16.gmra.mrb[104].mxu1 %v9488_v48 }
 0x2a5   :  { %4271 = vmatprep.mubr.bf16.mxu1 %v9492_v52  ;;  %v12034_v52 = vld [vmem:[#allocation9 + $0x28] sm:$0xff]  }
 0x2a6   :  { %3717 = vmatmul.mubr.bf16.gmra.mrb[104].mxu0 %v9485_v9  ;;  %v12032_v9 = vld [vmem:[#allocation9 + $0xe0] sm:$0xff]  }
 0x2a7   :  { %3724 = vmatprep.mubr.bf16.mxu0 %v9489_v3  ;;  %v12033_v3 = vld [vmem:[#allocation9 + $0x68] sm:$0xff]   ;;  %10442 = vmatpush3.bf16.msra.mxu0 %v12032_v9 }
 0x2ac   :  { %4272 = vmatmul.mubr.bf16.gmra.mrb[108].mxu1 %v9491_v25 }
 0x2ad   :  { %11129 = vmatprep.mubr.bf16.mxu1 %v12004_v15  ;;  %v12035_v15 = vld [vmem:[#allocation9 + $0x128] sm:$0xff]  }
 0x2ae   :  { %3725 = vmatmul.mubr.bf16.gmra.mrb[108].mxu0 %v9488_v48  ;;  %10443 = vmatprep.subr.bf16.mxu0 %v12035_v15 }
 0x2b4   :  { %11130 = vmatmul.mubr.bf16.vlgmr.msra.gmra.mrb[64].mxu1 %v12006_v33 }
 0x2b5   :  { %11133 = vmatprep.mubr.bf16.mxu1 %v12007_v24  ;;  %10514 = vmatpush3.bf16.msra.mxu1 %v12014_v16 }
 0x2b6   :  { %10515 = vmatprep.subr.bf16.mxu1 %v12017_v13 }
 0x2b9   :  { %10516 = vmatpush3.bf16.msra.mxu1 %v12018_v38 }
 0x2ba   :  { %10517 = vmatprep.subr.bf16.mxu1 %v12021_v5 }
 0x2bc   :  { %11134 = vmatmul.mubr.bf16.gmra.mrb[68].mxu1 %v12008_v14  ;;  %v12036_v14 = vld [vmem:[#allocation9 + $0xe8] sm:$0xff]  }
 0x2bd   :  { %11137 = vmatprep.mubr.bf16.mxu1 %v12009_v28  ;;  %10518 = vmatpush3.bf16.msra.mxu1 %v12022_v8 }
 0x2be   :  { %10519 = vmatprep.subr.bf16.mxu1 %v12025_v49  ;;  %10444 = vmatpush3.bf16.msra.mxu0 %v12036_v14 }
 0x2c1   :  { %10520 = vmatpush3.bf16.msra.mxu1 %v12026_v51 }
 0x2c2   :  { %10521 = vmatprep.subr.bf16.mxu1 %v12029_v20 }
 0x2c4   :  { %11138 = vmatmul.mubr.bf16.gmra.mrb[72].mxu1 %v12010_v46  ;;  %v12037_v46 = vld [vmem:[#allocation9 + $0x70] sm:$0xff]  }
 0x2c5   :  { %11141 = vmatprep.mubr.bf16.mxu1 %v12011_v0  ;;  %10522 = vmatpush3.bf16.msra.mxu1 %v12030_v11 }
 0x2c6   :  { %10523 = vmatprep.subr.bf16.mxu1 %v12033_v3 }
 0x2c9   :  { %10524 = vmatpush3.bf16.msra.mxu1 %v12034_v52 }
 0x2ca   :  { %10525 = vmatprep.subr.bf16.mxu1 %v12037_v46 }
 0x2cc   :  { %11142 = vmatmul.mubr.bf16.gmra.mrb[76].mxu1 %v12012_v10  ;;  %v12038_v10 = vld [vmem:[#allocation9 + $0x30] sm:$0xff]  }
 0x2cd   :  { %10526 = vmatpush3.bf16.msra.mxu1 %v12038_v10 }
 0x309   :  { %v10209_v35 = vpop.f32.mrb[48].mxu0 }
 0x30a   :  { %v10210_v1 = vpop.f32.mrb[49].mxu0 }
 0x30b   :  { %v13302_v50 = vadd.f32 %v10210_v1, %v10209_v35  ;;  %v10212_v62 = vpop.f32.mrb[50].mxu0  ;;  %v12039_v35 = vld [vmem:[#allocation9 + $0x130] sm:$0xff]  }
 0x30c   :  { %v10213_v36 = vpop.f32.mrb[51].mxu0  ;;  %10445 = vmatprep.subr.bf16.mxu0 %v12039_v35 }
 0x30d   :  { %v13304_v58 = vadd.f32 %v10213_v36, %v10212_v62 }
 0x311   :  { %v10215_v39 = vpop.f32.mrb[52].mxu0 }
 0x312   :  { %v10216_v18 = vpop.f32.mrb[53].mxu0 }
 0x313   :  { %v13306_v45 = vadd.f32 %v10216_v18, %v10215_v39  ;;  %v10218_v60 = vpop.f32.mrb[54].mxu0 }
 0x314   :  { %v10219_v27 = vpop.f32.mrb[55].mxu0 }
 0x315   :  { %v13308_v42 = vadd.f32 %v10219_v27, %v10218_v60  ;;  %v12040_v60 = vld [vmem:[#allocation9 + $0xf0] sm:$0xff]   ;;  %v12041_v27 = vld [vmem:[#allocation9 + $0x78] sm:$0xff]  }
 0x316   :  { %10446 = vmatpush3.bf16.msra.mxu0 %v12040_v60  ;;  %10527 = vmatprep.subr.bf16.mxu1 %v12041_v27 }
 0x317   :  { %10528 = vmatpush3.bf16.msra.mxu1 %v12042_v40  ;;  %10447 = vmatprep.subr.bf16.mxu0 %v12043_v6 }
 0x319   :  { %v10221_v47 = vpop.f32.mrb[56].mxu0 }
 0x31a   :  { %v10222_v17 = vpop.f32.mrb[57].mxu0  ;;  %10448 = vmatpush3.bf16.msra.mxu0 %v12044_v23 }
 0x31b   :  { %v13310_v19 = vadd.f32 %v10222_v17, %v10221_v47  ;;  %v10224_v44 = vpop.f32.mrb[58].mxu0 }
 0x31c   :  { %v10225_v57 = vpop.f32.mrb[59].mxu0 }
 0x31d   :  { %v13312_v56 = vadd.f32 %v10225_v57, %v10224_v44 }
 0x321   :  { %v10227_v61 = vpop.f32.mrb[60].mxu0 }
 0x322   :  { %v10228_v30 = vpop.f32.mrb[61].mxu0 }
 0x323   :  { %v13314_v43 = vadd.f32 %v10228_v30, %v10227_v61  ;;  %v10230_v31 = vpop.f32.mrb[62].mxu0 }
 0x324   :  { %v10231_v41 = vpop.f32.mrb[63].mxu0 }
 0x325   :  { %v13316_v54 = vadd.f32 %v10231_v41, %v10230_v31 }
 0x329   :  { %v10233_v55 = vpop.f32.mrb[64].mxu0 }
 0x32a   :  { %v10234_v32 = vpop.f32.mrb[65].mxu0 }
 0x32b   :  { %v13318_v29 = vadd.f32 %v10234_v32, %v10233_v55  ;;  %v10236_v26 = vpop.f32.mrb[66].mxu0 }
 0x32c   :  { %v10237_v63 = vpop.f32.mrb[67].mxu0 }
 0x32d   :  { %v13320_v34 = vadd.f32 %v10237_v63, %v10236_v26 }
 0x331   :  { %v10239_v48 = vpop.f32.mrb[68].mxu0 }
 0x332   :  { %v10240_v25 = vpop.f32.mrb[69].mxu0 }
 0x333   :  { %v13322_v33 = vadd.f32 %v10240_v25, %v10239_v48  ;;  %v10242_v24 = vpop.f32.mrb[70].mxu0 }
 0x334   :  { %v10243_v28 = vpop.f32.mrb[71].mxu0 }
 0x335   :  { %v13324_v0 = vadd.f32 %v10243_v28, %v10242_v24 }
 0x339   :  { %v10245_v1 = vpop.f32.mrb[72].mxu0 }
 0x33a   :  { %v10246_v62 = vpop.f32.mrb[73].mxu0 }
 0x33b   :  { %v13326_v36 = vadd.f32 %v10246_v62, %v10245_v1  ;;  %v10248_v39 = vpop.f32.mrb[74].mxu0 }
 0x33c   :  { %v10249_v18 = vpop.f32.mrb[75].mxu0 }
 0x33d   :  { %v13328_v2 = vadd.f32 %v10249_v18, %v10248_v39 }
 0x341   :  { %v10251_v16 = vpop.f32.mrb[76].mxu0 }
 0x342   :  { %v10252_v21 = vpop.f32.mrb[77].mxu0 }
 0x343   :  { %v13330_v13 = vadd.f32 %v10252_v21, %v10251_v16  ;;  %v10254_v38 = vpop.f32.mrb[78].mxu0 }
 0x344   :  { %v10255_v47 = vpop.f32.mrb[79].mxu0 }
 0x345   :  { %v13332_v17 = vadd.f32 %v10255_v47, %v10254_v38 }
 0x347   :  { %v10369_v5 = vpop.f32.mrb[80].mxu1 }
 0x348   :  { %v10370_v44 = vpop.f32.mrb[81].mxu1 }
 0x349   :  { %v10289_v8 = vpop.f32.mrb[80].mxu0  ;;  %v10371_v57 = vadd.f32 %v10370_v44, %v10369_v5  ;;  %v10372_v7 = vpop.f32.mrb[82].mxu1 }
 0x34a   :  { %v10290_v59 = vpop.f32.mrb[81].mxu0  ;;  %v10373_v49 = vpop.f32.mrb[83].mxu1 }
 0x34b   :  { %v10291_v51 = vadd.f32 %v10290_v59, %v10289_v8  ;;  %v10292_v22 = vpop.f32.mrb[82].mxu0  ;;  %v10374_v61 = vadd.f32 %v10373_v49, %v10372_v7 }
 0x34c   :  { %v10293_v12 = vpop.f32.mrb[83].mxu0 }
 0x34d   :  { %v11484_v30 = vadd.f32 %v10291_v51, %v13302_v50  ;;  %v10294_v20 = vadd.f32 %v10293_v12, %v10292_v22 }
 0x34f   :  { %v11490_v31 = vadd.f32 %v10294_v20, %v13304_v58  ;;  %v10375_v41 = vpop.f32.mrb[84].mxu1  ;;  %v13336_v11 = vadd.f32 %v11484_v30, %v10371_v57 }
 0x350   :  { %v10376_v55 = vpop.f32.mrb[85].mxu1 }
 0x351   :  { %v10295_v53 = vpop.f32.mrb[84].mxu0  ;;  %v10377_v32 = vadd.f32 %v10376_v55, %v10375_v41  ;;  %v10378_v26 = vpop.f32.mrb[86].mxu1  ;;  %v13338_v63 = vadd.f32 %v11490_v31, %v10374_v61 }
 0x352   :  { %v10296_v9 = vpop.f32.mrb[85].mxu0  ;;  %v10379_v3 = vpop.f32.mrb[87].mxu1 }
 0x353   :  { %v10297_v48 = vadd.f32 %v10296_v9, %v10295_v53  ;;  %v10298_v52 = vpop.f32.mrb[86].mxu0  ;;  %v10380_v25 = vadd.f32 %v10379_v3, %v10378_v26 }
 0x354   :  { %v10299_v15 = vpop.f32.mrb[87].mxu0 }
 0x355   :  { %v11481_v50 = vadd.f32 %v10297_v48, %v13306_v45  ;;  %v10300_v24 = vadd.f32 %v10299_v15, %v10298_v52 }
 0x357   :  { %v11487_v58 = vadd.f32 %v10300_v24, %v13308_v42  ;;  %v10381_v14 = vpop.f32.mrb[88].mxu1  ;;  %v13342_v28 = vadd.f32 %v11481_v50, %v10377_v32 }
 0x358   :  { %v10382_v46 = vpop.f32.mrb[89].mxu1 }
 0x359   :  { %v10301_v10 = vpop.f32.mrb[88].mxu0  ;;  %v10383_v35 = vadd.f32 %v10382_v46, %v10381_v14  ;;  %v10384_v1 = vpop.f32.mrb[90].mxu1  ;;  %v13344_v62 = vadd.f32 %v11487_v58, %v10380_v25  ;;  %v13358_v25 = vld [vmem:[#allocation9 + $0x140] sm:$0xff]  }
 0x35a   :  { %v10302_v39 = vpop.f32.mrb[89].mxu0  ;;  %v10385_v18 = vpop.f32.mrb[91].mxu1  ;;  %11145 = vmatprep.subr.bf16.mxu0 %v13358_v25 }
 0x35b   :  { %v10303_v60 = vadd.f32 %v10302_v39, %v10301_v10  ;;  %v10304_v16 = vpop.f32.mrb[90].mxu0  ;;  %v10386_v27 = vadd.f32 %v10385_v18, %v10384_v1 }
 0x35c   :  { %v10305_v21 = vpop.f32.mrb[91].mxu0 }
 0x35d   :  { %v11496_v45 = vadd.f32 %v10303_v60, %v13310_v19  ;;  %v10306_v40 = vadd.f32 %v10305_v21, %v10304_v16 }
 0x35f   :  { %v11502_v42 = vadd.f32 %v10306_v40, %v13312_v56  ;;  %v10387_v38 = vpop.f32.mrb[92].mxu1  ;;  %v13348_v6 = vadd.f32 %v11496_v45, %v10383_v35 }
 0x360   :  { %v10388_v47 = vpop.f32.mrb[93].mxu1 }
 0x361   :  { %v10307_v23 = vpop.f32.mrb[92].mxu0  ;;  %v10389_v5 = vadd.f32 %v10388_v47, %v10387_v38  ;;  %v10390_v44 = vpop.f32.mrb[94].mxu1  ;;  %v13350_v8 = vadd.f32 %v11502_v42, %v10386_v27 }
 0x362   :  { %v10308_v57 = vpop.f32.mrb[93].mxu0  ;;  %v10391_v7 = vpop.f32.mrb[95].mxu1 }
 0x363   :  { %v10309_v59 = vadd.f32 %v10308_v57, %v10307_v23  ;;  %v10310_v49 = vpop.f32.mrb[94].mxu0  ;;  %v10392_v51 = vadd.f32 %v10391_v7, %v10390_v44 }
 0x364   :  { %v10311_v22 = vpop.f32.mrb[95].mxu0 }
 0x365   :  { %v11493_v19 = vadd.f32 %v10309_v59, %v13314_v43  ;;  %v10312_v61 = vadd.f32 %v10311_v22, %v10310_v49 }
 0x367   :  { %v11499_v56 = vadd.f32 %v10312_v61, %v13316_v54  ;;  %v10393_v12 = vpop.f32.mrb[96].mxu1  ;;  %v13354_v30 = vadd.f32 %v11493_v19, %v10389_v5 }
 0x368   :  { %v10394_v20 = vpop.f32.mrb[97].mxu1 }
 0x369   :  { %v10313_v31 = vpop.f32.mrb[96].mxu0  ;;  %v10395_v41 = vadd.f32 %v10394_v20, %v10393_v12  ;;  %v10396_v55 = vpop.f32.mrb[98].mxu1  ;;  %v13356_v53 = vadd.f32 %v11499_v56, %v10392_v51 }
 0x36a   :  { %v10314_v32 = vpop.f32.mrb[97].mxu0  ;;  %v10397_v26 = vpop.f32.mrb[99].mxu1 }
 0x36b   :  { %v10315_v9 = vadd.f32 %v10314_v32, %v10313_v31  ;;  %v10316_v3 = vpop.f32.mrb[98].mxu0  ;;  %v10398_v48 = vadd.f32 %v10397_v26, %v10396_v55 }
 0x36c   :  { %v10317_v52 = vpop.f32.mrb[99].mxu0 }
 0x36d   :  { %v11508_v43 = vadd.f32 %v10315_v9, %v13318_v29  ;;  %v10318_v54 = vadd.f32 %v10317_v52, %v10316_v3 }
 0x36f   :  { %v11514_v15 = vadd.f32 %v10318_v54, %v13320_v34  ;;  %v10399_v50 = vpop.f32.mrb[100].mxu1  ;;  %v13363_v24 = vadd.f32 %v11508_v43, %v10395_v41  ;;  %v13384_v54 = vld [vmem:[%s14175_s5] ss:$0 sm:$0xff] }
 0x370   :  { %v10400_v58 = vpop.f32.mrb[101].mxu1 }
 0x371   :  { %v10319_v14 = vpop.f32.mrb[100].mxu0  ;;  %v10401_v46 = vadd.f32 %v10400_v58, %v10399_v50  ;;  %v10402_v10 = vpop.f32.mrb[102].mxu1  ;;  %v13365_v35 = vadd.f32 %v11514_v15, %v10398_v48 }
 0x372   :  { %v10320_v1 = vpop.f32.mrb[101].mxu0  ;;  %v10403_v39 = vpop.f32.mrb[103].mxu1 }
 0x373   :  { %v10321_v18 = vadd.f32 %v10320_v1, %v10319_v14  ;;  %v10322_v60 = vpop.f32.mrb[102].mxu0  ;;  %v10404_v16 = vadd.f32 %v10403_v39, %v10402_v10  ;;  %v222_v39 = vld [vmem:[%s14170_s0 + $0x10] sm:$0xff] }
 0x374   :  { %v10323_v29 = vpop.f32.mrb[103].mxu0 }
 0x375   :  { %v11505_v27 = vadd.f32 %v10321_v18, %v13322_v33  ;;  %v10324_v21 = vadd.f32 %v10323_v29, %v10322_v60 }
 0x377   :  { %v11511_v34 = vadd.f32 %v10324_v21, %v13324_v0  ;;  %v10405_v45 = vpop.f32.mrb[104].mxu1  ;;  %v13369_v40 = vadd.f32 %v11505_v27, %v10401_v46  ;;  %v12280_v27 = vld [vmem:[#allocation3] sm:$0xff] }
 0x378   :  { %v10406_v42 = vpop.f32.mrb[105].mxu1 }
 0x379   :  { %v10325_v38 = vpop.f32.mrb[104].mxu0  ;;  %v10407_v47 = vadd.f32 %v10406_v42, %v10405_v45  ;;  %v10408_v23 = vpop.f32.mrb[106].mxu1  ;;  %v13371_v5 = vadd.f32 %v11511_v34, %v10404_v16  ;;  %v12281_v42 = vld [vmem:[#allocation3 + $0x18] sm:$0xff] }
 0x37a   :  { %v10326_v44 = vpop.f32.mrb[105].mxu0  ;;  %v10409_v57 = vpop.f32.mrb[107].mxu1 }
 0x37b   :  { %v10327_v7 = vadd.f32 %v10326_v44, %v10325_v38  ;;  %v10328_v59 = vpop.f32.mrb[106].mxu0  ;;  %v10410_v49 = vadd.f32 %v10409_v57, %v10408_v23  ;;  %v221_v38 = vld [vmem:[%s14170_s0 + $0x8] sm:$0xff]  ;;  %v12282_v23 = vld [vmem:[#allocation3 + $0x8] sm:$0xff] }
 0x37c   :  { %v10329_v51 = vpop.f32.mrb[107].mxu0 }
 0x37d   :  { %v11520_v33 = vadd.f32 %v10327_v7, %v13326_v36  ;;  %v10330_v22 = vadd.f32 %v10329_v51, %v10328_v59 }
 0x37f   :  { %v11526_v0 = vadd.f32 %v10330_v22, %v13328_v2  ;;  %v10411_v19 = vpop.f32.mrb[108].mxu1  ;;  %v13375_v61 = vadd.f32 %v11520_v33, %v10407_v47 }
 0x380   :  { %v10412_v56 = vpop.f32.mrb[109].mxu1 }
 0x381   :  { %v10331_v12 = vpop.f32.mrb[108].mxu0  ;;  %v10413_v20 = vadd.f32 %v10412_v56, %v10411_v19  ;;  %v10414_v31 = vpop.f32.mrb[110].mxu1  ;;  %v13377_v41 = vadd.f32 %v11526_v0, %v10410_v49 }
 0x382   :  { %v10332_v55 = vpop.f32.mrb[109].mxu0  ;;  %v10415_v32 = vpop.f32.mrb[111].mxu1 }
 0x383   :  { %v10333_v26 = vadd.f32 %v10332_v55, %v10331_v12  ;;  %v10334_v9 = vpop.f32.mrb[110].mxu0  ;;  %v10416_v3 = vadd.f32 %v10415_v32, %v10414_v31 }
 0x384   :  { %v10335_v48 = vpop.f32.mrb[111].mxu0 }
 0x385   :  { %v11517_v36 = vadd.f32 %v10333_v26, %v13330_v13  ;;  %v10336_v52 = vadd.f32 %v10335_v48, %v10334_v9 }
 0x387   :  { %v11523_v2 = vadd.f32 %v10336_v52, %v13332_v17  ;;  %v11131_v43 = vpop.f32.mrb[64].mxu1  ;;  %v13386_v15 = vadd.f32 %v11517_v36, %v10413_v20  ;;  %v12283_v36 = vld [vmem:[#allocation3 + $0x30] sm:$0xff] }
 0x388   :  { %v11483_v50 = vadd.f32 %v13342_v28, %v11131_v43  ;;  %v4314_v58 = vpop.f32.mrb[65].mxu1  ;;  %v12279_v28 = vld [vmem:[#allocation3 + $0x10] sm:$0xff] }
 0x389   :  { %v11486_v14 = vadd.f32 %v13336_v11, %v4314_v58  ;;  %v11132_v46 = vpop.f32.mrb[66].mxu1  ;;  %v13390_v10 = vadd.f32 %v11523_v2, %v10416_v3  ;;  %v220_v11 = vld [vmem:[%s14170_s0] sm:$0xff] }
 0x38a   :  { %v4402_v13 = vadd.f32 %v11483_v50, %v13384_v54  ;;  %v11489_v17 = vadd.f32 %v13344_v62, %v11132_v46  ;;  %v4317_v1 = vpop.f32.mrb[67].mxu1  ;;  %v223_v62 = vld [vmem:[%s14170_s0 + $0x18] sm:$0xff]  ;;  %v12284_v50 = vld [vmem:[#allocation3 + $0x20] sm:$0xff] }
 0x38b   :  { %v4400_v18 = vadd.f32 %v11486_v14, %v13384_v54  ;;  %v11492_v60 = vadd.f32 %v13338_v63, %v4317_v1 }
 0x38c   :  { %v4418_v16 = vadd.f32 %v12279_v28, %v4402_v13  ;;  %v4403_v29 = vadd.f32 %v11489_v17, %v13384_v54 }
 0x38d   :  { %v4416_v21 = vadd.f32 %v12280_v27, %v4400_v18  ;;  %v4401_v34 = vadd.f32 %v11492_v60, %v13384_v54 }
 0x38e   :  { %v13407_v45 = vadd.f32 %v4418_v16, %v222_v39  ;;  %v4419_v63 = vadd.f32 %v12281_v42, %v4403_v29  ;;  %v4678_v16 = vld [vmem:[#allocation2 + $0x24] sm:$0xf] }
 0x38f   :  { %v13412_v47 = vadd.f32 %v4416_v21, %v220_v11  ;;  %v4417_v44 = vadd.f32 %v12282_v23, %v4401_v34  ;;  %v11135_v57 = vpop.f32.mrb[68].mxu1 }
 0x390   :  { %v4450_v7 = vmax.f32 %v13407_v45, 0.0  ;;  %v13415_v59 = vadd.f32 %v4419_v63, %v223_v62  ;;  %v11495_v49 = vadd.f32 %v13354_v30, %v11135_v57  ;;  %v4330_v51 = vpop.f32.mrb[69].mxu1  ;;  %v4806_v62 = vld [vmem:[#allocation2 + $0x2c] sm:$0xf] }
 0x391   :  { %v4448_v33 = vmax.f32 %v13412_v47, 0.0  ;;  %v13419_v22 = vadd.f32 %v4417_v44, %v221_v38  ;;  %v11498_v0 = vadd.f32 %v13348_v6, %v4330_v51  ;;  %v11136_v19 = vpop.f32.mrb[70].mxu1 }
 0x392   :  { %v9923_v56 = vpack.c.bf16 %v4450_v7, %v4450_v7  ;;  %v4451_v12 = vmax.f32 %v13415_v59, 0.0  ;;  %v4406_v20 = vadd.f32 %v11495_v49, %v13384_v54  ;;  %v13425_v31 = vadd.f32 %v13356_v53, %v11136_v19  ;;  %v4333_v55 = vpop.f32.mrb[71].mxu1  ;;  %v4672_v7 = vld [vmem:[#allocation2 + $0xc] sm:$0xf] }
 0x393   :  { %v9921_v32 = vpack.c.bf16 %v4448_v33, %v4448_v33  ;;  %v4449_v30 = vmax.f32 %v13419_v22, 0.0  ;;  %v4404_v26 = vadd.f32 %v11498_v0, %v13384_v54  ;;  %v13430_v9 = vadd.f32 %v13350_v8, %v4333_v55  ;;  %v226_v33 = vld [vmem:[%s14170_s0 + $0x30] sm:$0xff] }
 0x394   :  { %v4559_v3 = vshrl.u32 %v9923_v56, 16  ;;  %v4562_v6 = vshll.u32 %v9923_v56, 16  ;;  %4530 = vst [vmem:[#allocation2 + $0x28] sm:$0xf] %v9923_v56  ;;  %v9924_v48 = vpack.c.bf16 %v4451_v12, %v4451_v12  ;;  %v4422_v52 = vadd.f32 %v12283_v36, %v4406_v20  ;;  %v4681_v12 = vld [vmem:[#allocation2 + $0x30] sm:$0xf] }
 0x395   :  { %4528 = vst [vmem:[#allocation2 + $0x10] sm:$0xf] %v9921_v32  ;;  %v4545_v2 = vshrl.u32 %v9921_v32, 16  ;;  %v4548_v43 = vshll.u32 %v9921_v32, 16  ;;  %v9922_v53 = vpack.c.bf16 %v4449_v30, %v4449_v30  ;;  %v4420_v58 = vadd.f32 %v12284_v50, %v4404_v26  ;;  %v224_v32 = vld [vmem:[%s14170_s0 + $0x20] sm:$0xff] }
 0x396   :  { %v4561_v14 = vrot.slane %v4559_v3, 7  ;;  %v4728_v46 = vrot.slane %v4559_v3, 4  ;;  %v4729_v13 = vrot.slane %v4562_v6, 5  ;;  %v4566_v17 = vshrl.u32 %v9924_v48, 16  ;;  %4531 = vst [vmem:[#allocation2 + $0x34] sm:$0xf] %v9924_v48 }
 0x397   :  { %v4547_v1 = vrot.slane %v4545_v2, 7  ;;  %v4720_v8 = vrot.slane %v4545_v2, 4  ;;  %v4721_v39 = vrot.slane %v4548_v43, 5  ;;  %v4569_v18 = vshll.u32 %v9924_v48, 16  ;;  %4529 = vst [vmem:[#allocation2 + $0x1c] sm:$0xf] %v9922_v53 }
 0x398   :  { %v11139_v60 = vpop.f32.mrb[72].mxu1  ;;  %v4564_v28 = vor.u32 %v4562_v6, %v4561_v14  ;;  %v4730_v11 = vor.u32 %v4729_v13, %v4728_v46  ;;  %v4568_v29 = vrot.slane %v4566_v17, 7  ;;  %v4732_v27 = vrot.slane %v4566_v17, 4  ;;  %v4800_v26 = vld [vmem:[#allocation2 + $0x14] sm:$0xf] }
 0x399   :  { %v4346_v21 = vpop.f32.mrb[73].mxu1  ;;  %v4550_v34 = vor.u32 %v4548_v43, %v4547_v1  ;;  %v4722_v42 = vor.u32 %v4721_v39, %v4720_v8  ;;  %v4733_v63 = vrot.slane %v4569_v18, 5  ;;  %v4552_v38 = vshrl.u32 %v9922_v53, 16  ;;  %v4809_v50 = vld [vmem:[#allocation2 + $0x38] sm:$0xf] }
 0x39a   :  { %v11140_v23 = vpop.f32.mrb[74].mxu1  ;;  %v4679_v44 = vsel %vm12607_vm5, %v4564_v28, %v4678_v16  ;;  %v4731_v57 = vrot.slane %v4730_v11, 4  ;;  %v4571_v49 = vor.u32 %v4569_v18, %v4568_v29  ;;  %v4555_v51 = vshll.u32 %v9922_v53, 16  ;;  %v4675_v14 = vld [vmem:[#allocation2 + $0x18] sm:$0xf]  ;;  %v12285_v11 = vld [vmem:[#allocation3 + $0x38] sm:$0xff] }
 0x39b   :  { %v13437_v0 = vpop.f32.mrb[75].mxu1  ;;  %4680 = vst [vmem:[#allocation2 + $0x24] sm:$0xf] %v4679_v44  ;;  %v4673_v19 = vsel %vm12607_vm5, %v4550_v34, %v4672_v7  ;;  %v4723_v56 = vrot.slane %v4722_v42, 4  ;;  %v4734_v20 = vor.u32 %v4733_v63, %v4732_v27  ;;  %v4554_v55 = vrot.slane %v4552_v38, 7  ;;  %v227_v18 = vld [vmem:[%s14170_s0 + $0x38] sm:$0xff] }
 0x39c   :  { %v4807_v30 = vsel %vm12736_vm10, %v4731_v57, %v4806_v62  ;;  %4674 = vst [vmem:[#allocation2 + $0xc] sm:$0xf] %v4673_v19  ;;  %v4682_v3 = vsel %vm12607_vm5, %v4571_v49, %v4681_v12  ;;  %v4724_v6 = vrot.slane %v4552_v38, 4  ;;  %v4725_v48 = vrot.slane %v4555_v51, 5  ;;  %v12286_v27 = vld [vmem:[#allocation3 + $0x28] sm:$0xff] }
 0x39d   :  { %4808 = vst [vmem:[#allocation2 + $0x2c] sm:$0xf] %v4807_v30  ;;  %v4801_v36 = vsel %vm12736_vm10, %v4723_v56, %v4800_v26  ;;  %v4735_v2 = vrot.slane %v4734_v20, 4  ;;  %4683 = vst [vmem:[#allocation2 + $0x30] sm:$0xf] %v4682_v3  ;;  %v4557_v43 = vor.u32 %v4555_v51, %v4554_v55  ;;  %v13450_v53 = vadd.f32 %v4422_v52, %v226_v33  ;;  %v230_v33 = vld [vmem:[%s14170_s0 + $0x50] sm:$0xff] }
 0x39e   :  { %4802 = vst [vmem:[#allocation2 + $0x14] sm:$0xf] %v4801_v36  ;;  %v4726_v46 = vor.u32 %v4725_v48, %v4724_v6  ;;  %v13452_v13 = vadd.f32 %v4420_v58, %v224_v32  ;;  %v4407_v17 = vadd.f32 %v13425_v31, %v13384_v54  ;;  %v4405_v1 = vadd.f32 %v13430_v9, %v13384_v54  ;;  %v225_v58 = vld [vmem:[%s14170_s0 + $0x28] sm:$0xff]  ;;  %v4803_v42 = vld [vmem:[#allocation2 + $0x20] sm:$0xf] }
 0x39f   :  { %v4810_v8 = vsel %vm12736_vm10, %v4735_v2, %v4809_v50  ;;  %v4676_v39 = vsel %vm12607_vm5, %v4557_v43, %v4675_v14  ;;  %v4454_v52 = vmax.f32 %v13450_v53, 0.0  ;;  %v11507_v31 = vadd.f32 %v13369_v40, %v11139_v60  ;;  %v13470_v28 = vpop.f32.mrb[76].mxu1  ;;  %v4690_v14 = vld [vmem:[#allocation2 + $0x54] sm:$0xf] }
 0x3a0   :  { %4811 = vst [vmem:[#allocation2 + $0x38] sm:$0xf] %v4810_v8  ;;  %v4727_v9 = vrot.slane %v4726_v46, 4  ;;  %4677 = vst [vmem:[#allocation2 + $0x18] sm:$0xf] %v4676_v39  ;;  %v4452_v16 = vmax.f32 %v13452_v13, 0.0  ;;  %v4423_v29 = vadd.f32 %v12285_v11, %v4407_v17  ;;  %v4421_v62 = vadd.f32 %v12286_v27, %v4405_v1 }
 0x3a1   :  { %v13473_v34 = vpop.f32.mrb[77].mxu1  ;;  %v9927_v63 = vpack.c.bf16 %v4454_v52, %v4454_v52  ;;  %v4410_v38 = vadd.f32 %v11507_v31, %v13384_v54  ;;  %v11510_v44 = vadd.f32 %v13363_v24, %v4346_v21  ;;  %v13478_v40 = vadd.f32 %v13371_v5, %v11140_v23  ;;  %v12287_v21 = vld [vmem:[#allocation3 + $0x50] sm:$0xff]  ;;  %v4818_v8 = vld [vmem:[#allocation2 + $0x5c] sm:$0xf] }
 0x3a2   :  { %v13480_v60 = vpop.f32.mrb[78].mxu1  ;;  %v4804_v57 = vsel %vm12736_vm10, %v4727_v9, %v4803_v42  ;;  %v9925_v7 = vpack.c.bf16 %v4452_v16, %v4452_v16  ;;  %v13484_v49 = vadd.f32 %v4423_v29, %v227_v18  ;;  %v13486_v51 = vadd.f32 %v4421_v62, %v225_v58  ;;  %v4684_v52 = vld [vmem:[#allocation2 + $0x3c] sm:$0xf] }
 0x3a3   :  { %v13491_v19 = vpop.f32.mrb[79].mxu1  ;;  %4805 = vst [vmem:[#allocation2 + $0x20] sm:$0xf] %v4804_v57  ;;  %v4587_v24 = vshrl.u32 %v9927_v63, 16  ;;  %v4590_v5 = vshll.u32 %v9927_v63, 16  ;;  %v4426_v23 = vadd.f32 %v12287_v21, %v4410_v38  ;;  %v4408_v56 = vadd.f32 %v11510_v44, %v13384_v54 }
 0x3a4   :  { %4534 = vst [vmem:[#allocation2 + $0x58] sm:$0xf] %v9927_v63  ;;  %v4573_v12 = vshrl.u32 %v9925_v7, 16  ;;  %v4576_v20 = vshll.u32 %v9925_v7, 16  ;;  %4532 = vst [vmem:[#allocation2 + $0x40] sm:$0xf] %v9925_v7 }
 0x3a5   :  { %v4455_v55 = vmax.f32 %v13484_v49, 0.0  ;;  %v4453_v32 = vmax.f32 %v13486_v51, 0.0  ;;  %v4589_v30 = vrot.slane %v4587_v24, 7  ;;  %v4744_v26 = vrot.slane %v4587_v24, 4  ;;  %v4812_v44 = vld [vmem:[#allocation2 + $0x44] sm:$0xf] }
 0x3a6   :  { %v4745_v3 = vrot.slane %v4590_v5, 5  ;;  %v13496_v6 = vadd.f32 %v4426_v23, %v230_v33  ;;  %v4575_v48 = vrot.slane %v4573_v12, 7  ;;  %v4736_v36 = vrot.slane %v4573_v12, 4  ;;  %v228_v12 = vld [vmem:[%s14170_s0 + $0x40] sm:$0xff] }
 0x3a7   :  { %v4737_v2 = vrot.slane %v4576_v20, 5  ;;  %v9928_v43 = vpack.c.bf16 %v4455_v55, %v4455_v55  ;;  %v4592_v50 = vor.u32 %v4590_v5, %v4589_v30  ;;  %v9926_v17 = vpack.c.bf16 %v4453_v32, %v4453_v32  ;;  %v4687_v30 = vld [vmem:[#allocation2 + $0x48] sm:$0xf] }
 0x3a8   :  { %v4746_v46 = vor.u32 %v4745_v3, %v4744_v26  ;;  %v4458_v1 = vmax.f32 %v13496_v6, 0.0  ;;  %v4578_v39 = vor.u32 %v4576_v20, %v4575_v48  ;;  %v4693_v20 = vld [vmem:[#allocation2 + $0x60] sm:$0xf]  ;;  %v12288_v26 = vld [vmem:[#allocation3 + $0x40] sm:$0xff]  ;;  %v4411_v48 = vadd.f32 %v13478_v40, %v13384_v54  ;;  %v12289_v40 = vld [vmem:[#allocation3 + $0x58] sm:$0xff] }
 0x3a9   :  { %v4738_v18 = vor.u32 %v4737_v2, %v4736_v36  ;;  %4535 = vst [vmem:[#allocation2 + $0x64] sm:$0xf] %v9928_v43  ;;  %v4594_v58 = vshrl.u32 %v9928_v43, 16  ;;  %v4597_v31 = vshll.u32 %v9928_v43, 16  ;;  %v4691_v9 = vsel %vm12607_vm5, %v4592_v50, %v4690_v14  ;;  %4533 = vst [vmem:[#allocation2 + $0x4c] sm:$0xf] %v9926_v17 }
 0x3aa   :  { %v4747_v16 = vrot.slane %v4746_v46, 4  ;;  %v4580_v11 = vshrl.u32 %v9926_v17, 16  ;;  %v4583_v29 = vshll.u32 %v9926_v17, 16  ;;  %4692 = vst [vmem:[#allocation2 + $0x54] sm:$0xf] %v4691_v9  ;;  %v4685_v27 = vsel %vm12607_vm5, %v4578_v39, %v4684_v52  ;;  %v231_v14 = vld [vmem:[%s14170_s0 + $0x58] sm:$0xff] }
 0x3ab   :  { %v4739_v62 = vrot.slane %v4738_v18, 4  ;;  %v4596_v42 = vrot.slane %v4594_v58, 7  ;;  %v4748_v63 = vrot.slane %v4594_v58, 4  ;;  %4686 = vst [vmem:[#allocation2 + $0x3c] sm:$0xf] %v4685_v27  ;;  %v4749_v57 = vrot.slane %v4597_v31, 5 }
 0x3ac   :  { %v4819_v38 = vsel %vm12736_vm10, %v4747_v16, %v4818_v8  ;;  %v4582_v7 = vrot.slane %v4580_v11, 7  ;;  %v4740_v33 = vrot.slane %v4580_v11, 4  ;;  %v4741_v21 = vrot.slane %v4583_v29, 5  ;;  %v4821_v17 = vld [vmem:[#allocation2 + $0x68] sm:$0xf] }
 0x3ad   :  { %4820 = vst [vmem:[#allocation2 + $0x5c] sm:$0xf] %v4819_v38  ;;  %v4813_v24 = vsel %vm12736_vm10, %v4739_v62, %v4812_v44  ;;  %v4599_v5 = vor.u32 %v4597_v31, %v4596_v42  ;;  %v9931_v23 = vpack.c.bf16 %v4458_v1, %v4458_v1  ;;  %v4750_v55 = vor.u32 %v4749_v57, %v4748_v63  ;;  %v4815_v9 = vld [vmem:[#allocation2 + $0x50] sm:$0xf]  ;;  %v4702_v42 = vld [vmem:[#allocation2 + $0x9c] sm:$0xf] }
 0x3ae   :  { %4814 = vst [vmem:[#allocation2 + $0x44] sm:$0xf] %v4813_v24  ;;  %v4585_v32 = vor.u32 %v4583_v29, %v4582_v7  ;;  %v4424_v3 = vadd.f32 %v12288_v26, %v4408_v56  ;;  %v4742_v2 = vor.u32 %v4741_v21, %v4740_v33  ;;  %v4427_v8 = vadd.f32 %v12289_v40, %v4411_v48  ;;  %v4830_v21 = vld [vmem:[#allocation2 + $0xa4] sm:$0xf] }
 0x3af   :  { %v4694_v36 = vsel %vm12607_vm5, %v4599_v5, %v4693_v20  ;;  %v4615_v43 = vshrl.u32 %v9931_v23, 16  ;;  %v4618_v50 = vshll.u32 %v9931_v23, 16  ;;  %4538 = vst [vmem:[#allocation2 + $0xa0] sm:$0xf] %v9931_v23  ;;  %v4751_v46 = vrot.slane %v4750_v55, 4  ;;  %v234_v20 = vld [vmem:[%s14170_s0 + $0x70] sm:$0xff] }
 0x3b0   :  { %4695 = vst [vmem:[#allocation2 + $0x60] sm:$0xf] %v4694_v36  ;;  %v4688_v56 = vsel %vm12607_vm5, %v4585_v32, %v4687_v30  ;;  %v13519_v1 = vadd.f32 %v4424_v3, %v228_v12  ;;  %v4743_v39 = vrot.slane %v4742_v2, 4  ;;  %v13524_v11 = vadd.f32 %v4427_v8, %v231_v14  ;;  %v229_v12 = vld [vmem:[%s14170_s0 + $0x48] sm:$0xff]  ;;  %v232_v2 = vld [vmem:[%s14170_s0 + $0x60] sm:$0xff] }
 0x3b1   :  { %4689 = vst [vmem:[#allocation2 + $0x48] sm:$0xf] %v4688_v56  ;;  %v4617_v52 = vrot.slane %v4615_v43, 7  ;;  %v4760_v18 = vrot.slane %v4615_v43, 4  ;;  %v4761_v58 = vrot.slane %v4618_v50, 5  ;;  %v4822_v31 = vsel %vm12736_vm10, %v4751_v46, %v4821_v17  ;;  %v12292_v46 = vld [vmem:[#allocation3 + $0x60] sm:$0xff] }
 0x3b2   :  { %v4456_v16 = vmax.f32 %v13519_v1, 0.0  ;;  %v11516_v29 = vadd.f32 %v13365_v35, %v13437_v0  ;;  %4823 = vst [vmem:[#allocation2 + $0x68] sm:$0xf] %v4822_v31  ;;  %v4816_v27 = vsel %vm12736_vm10, %v4743_v39, %v4815_v9  ;;  %v11519_v38 = vadd.f32 %v13386_v15, %v13470_v28  ;;  %v4696_v40 = vld [vmem:[#allocation2 + $0x84] sm:$0xf] }
 0x3b3   :  { %v4620_v62 = vor.u32 %v4618_v50, %v4617_v52  ;;  %v4762_v63 = vor.u32 %v4761_v58, %v4760_v18  ;;  %4817 = vst [vmem:[#allocation2 + $0x50] sm:$0xf] %v4816_v27  ;;  %v4459_v57 = vmax.f32 %v13524_v11, 0.0  ;;  %v11522_v33 = vadd.f32 %v13375_v61, %v13473_v34  ;;  %v12290_v61 = vld [vmem:[#allocation3 + $0x48] sm:$0xff] }
 0x3b4   :  { %v9929_v44 = vpack.c.bf16 %v4456_v16, %v4456_v16  ;;  %v4409_v7 = vadd.f32 %v11516_v29, %v13384_v54  ;;  %v4414_v24 = vadd.f32 %v11519_v38, %v13384_v54  ;;  %v11525_v5 = vadd.f32 %v13390_v10, %v13480_v60  ;;  %v12291_v10 = vld [vmem:[#allocation3 + $0x70] sm:$0xff]  ;;  %v235_v16 = vld [vmem:[%s14170_s0 + $0x78] sm:$0xff]  ;;  %v4824_v38 = vld [vmem:[#allocation2 + $0x8c] sm:$0xf] }
 0x3b5   :  { %v4703_v35 = vsel %vm12607_vm5, %v4620_v62, %v4702_v42  ;;  %v4763_v0 = vrot.slane %v4762_v63, 4  ;;  %v9932_v23 = vpack.c.bf16 %v4459_v57, %v4459_v57  ;;  %v4412_v32 = vadd.f32 %v11522_v33, %v13384_v54  ;;  %v12293_v42 = vld [vmem:[#allocation3 + $0x78] sm:$0xff] }
 0x3b6   :  { %4704 = vst [vmem:[#allocation2 + $0x9c] sm:$0xf] %v4703_v35  ;;  %4536 = vst [vmem:[#allocation2 + $0x88] sm:$0xf] %v9929_v44  ;;  %v4601_v15 = vshrl.u32 %v9929_v44, 16  ;;  %v4604_v28 = vshll.u32 %v9929_v44, 16  ;;  %v4425_v34 = vadd.f32 %v12290_v61, %v4409_v7  ;;  %v4430_v60 = vadd.f32 %v12291_v10, %v4414_v24 }
 0x3b7   :  { %v4831_v55 = vsel %vm12736_vm10, %v4763_v0, %v4830_v21  ;;  %v4415_v30 = vadd.f32 %v11525_v5, %v13384_v54  ;;  %v4622_v36 = vshrl.u32 %v9932_v23, 16  ;;  %4539 = vst [vmem:[#allocation2 + $0xac] sm:$0xf] %v9932_v23  ;;  %v4625_v43 = vshll.u32 %v9932_v23, 16  ;;  %v4705_v44 = vld [vmem:[#allocation2 + $0xa8] sm:$0xf] }
 0x3b8   :  { %4832 = vst [vmem:[#allocation2 + $0xa4] sm:$0xf] %v4831_v55  ;;  %v4603_v26 = vrot.slane %v4601_v15, 7  ;;  %v4752_v3 = vrot.slane %v4601_v15, 4  ;;  %v4753_v48 = vrot.slane %v4604_v28, 5  ;;  %v13554_v50 = vadd.f32 %v4425_v34, %v229_v12 }
 0x3b9   :  { %v13556_v14 = vadd.f32 %v4430_v60, %v234_v20  ;;  %v4428_v17 = vadd.f32 %v12292_v46, %v4412_v32  ;;  %v4624_v39 = vrot.slane %v4622_v36, 7  ;;  %v4764_v52 = vrot.slane %v4622_v36, 4  ;;  %v4833_v61 = vld [vmem:[#allocation2 + $0xb0] sm:$0xf] }
 0x3ba   :  { %v4606_v56 = vor.u32 %v4604_v28, %v4603_v26  ;;  %v4754_v8 = vor.u32 %v4753_v48, %v4752_v3  ;;  %v4765_v18 = vrot.slane %v4625_v43, 5  ;;  %v4457_v58 = vmax.f32 %v13554_v50, 0.0 }
 0x3bb   :  { %v4462_v31 = vmax.f32 %v13556_v14, 0.0  ;;  %v13560_v9 = vadd.f32 %v4428_v17, %v232_v2  ;;  %v4627_v62 = vor.u32 %v4625_v43, %v4624_v39  ;;  %v4431_v63 = vadd.f32 %v12293_v42, %v4415_v30  ;;  %v4699_v2 = vld [vmem:[#allocation2 + $0x90] sm:$0xf] }
 0x3bc   :  { %v4697_v29 = vsel %vm12607_vm5, %v4606_v56, %v4696_v40  ;;  %v4755_v27 = vrot.slane %v4754_v8, 4  ;;  %v4766_v57 = vor.u32 %v4765_v18, %v4764_v52  ;;  %v9930_v7 = vpack.c.bf16 %v4457_v58, %v4457_v58  ;;  %v4827_v56 = vld [vmem:[#allocation2 + $0x98] sm:$0xf] }
 0x3bd   :  { %4698 = vst [vmem:[#allocation2 + $0x84] sm:$0xf] %v4697_v29  ;;  %v9935_v33 = vpack.c.bf16 %v4462_v31, %v4462_v31  ;;  %v4460_v35 = vmax.f32 %v13560_v9, 0.0  ;;  %v4706_v24 = vsel %vm12607_vm5, %v4627_v62, %v4705_v44  ;;  %v13572_v5 = vadd.f32 %v4431_v63, %v235_v16  ;;  %v4842_v31 = vld [vmem:[#allocation2 + $0xd4] sm:$0xf]  ;;  %v4850_v44 = vld [vmem:[#allocation2 + $0xc] sm:$0xff] }
 0x3be   :  { %v4825_v0 = vsel %vm12736_vm10, %v4755_v27, %v4824_v38  ;;  %v11528_v21 = vadd.f32 %v13377_v41, %v13491_v19  ;;  %v4767_v15 = vrot.slane %v4766_v57, 4  ;;  %4707 = vst [vmem:[#allocation2 + $0xa8] sm:$0xf] %v4706_v24  ;;  %v4608_v28 = vshrl.u32 %v9930_v7, 16  ;;  %4537 = vst [vmem:[#allocation2 + $0x94] sm:$0xf] %v9930_v7 }
 0x3bf   :  { %4826 = vst [vmem:[#allocation2 + $0x8c] sm:$0xf] %v4825_v0  ;;  %v4611_v23 = vshll.u32 %v9930_v7, 16  ;;  %v4643_v12 = vshrl.u32 %v9935_v33, 16  ;;  %4542 = vst [vmem:[#allocation2 + $0xd0] sm:$0xf] %v9935_v33  ;;  %v9933_v20 = vpack.c.bf16 %v4460_v35, %v4460_v35 }
 0x3c0   :  { %v4646_v34 = vshll.u32 %v9935_v33, 16  ;;  %v4463_v55 = vmax.f32 %v13572_v5, 0.0  ;;  %v4413_v10 = vadd.f32 %v11528_v21, %v13384_v54  ;;  %v4834_v60 = vsel %vm12736_vm10, %v4767_v15, %v4833_v61  ;;  %v4714_v54 = vld [vmem:[#allocation2 + $0xcc] sm:$0xf]  ;;  %v4708_v16 = vld [vmem:[#allocation2 + $0xb4] sm:$0xf] }
 0x3c1   :  { %v4610_v32 = vrot.slane %v4608_v28, 7  ;;  %v4756_v41 = vrot.slane %v4608_v28, 4  ;;  %v4757_v19 = vrot.slane %v4611_v23, 5  ;;  %4835 = vst [vmem:[#allocation2 + $0xb0] sm:$0xf] %v4834_v60  ;;  %v4645_v30 = vrot.slane %v4643_v12, 7 }
 0x3c2   :  { %v4776_v26 = vrot.slane %v4643_v12, 4  ;;  %v4777_v3 = vrot.slane %v4646_v34, 5  ;;  %v4629_v48 = vshrl.u32 %v9933_v20, 16  ;;  %4540 = vst [vmem:[#allocation2 + $0xb8] sm:$0xf] %v9933_v20  ;;  %v4632_v46 = vshll.u32 %v9933_v20, 16 }
 0x3c3   :  { %v4613_v36 = vor.u32 %v4611_v23, %v4610_v32  ;;  %v4758_v43 = vor.u32 %v4757_v19, %v4756_v41  ;;  %v9936_v17 = vpack.c.bf16 %v4463_v55, %v4463_v55  ;;  %v4648_v40 = vor.u32 %v4646_v34, %v4645_v30  ;;  %v233_v0 = vld [vmem:[%s14170_s0 + $0x68] sm:$0xff]  ;;  %v4930_v24 = vld [vmem:[#allocation2 + $0x18] sm:$0xff]  ;;  %v13593_v55 = vld [vmem:[#allocation2] sm:$0xff] }
 0x3c4   :  { %v4778_v8 = vor.u32 %v4777_v3, %v4776_v26  ;;  %v4631_v39 = vrot.slane %v4629_v48, 7  ;;  %v4768_v52 = vrot.slane %v4629_v48, 4  ;;  %v4769_v29 = vrot.slane %v4632_v46, 5  ;;  %v4836_v28 = vld [vmem:[#allocation2 + $0xbc] sm:$0xf]  ;;  %v4854_v41 = vld [vmem:[#allocation2 + $0x24] sm:$0xff] }
 0x3c5   :  { %v4700_v18 = vsel %vm12607_vm5, %v4613_v36, %v4699_v2  ;;  %v4759_v58 = vrot.slane %v4758_v43, 4  ;;  %4543 = vst [vmem:[#allocation2 + $0xdc] sm:$0xf] %v9936_v17  ;;  %v4650_v27 = vshrl.u32 %v9936_v17, 16  ;;  %v4715_v62 = vsel %vm12607_vm5, %v4648_v40, %v4714_v54  ;;  %v12294_v12 = vld [vmem:[#allocation3 + $0x68] sm:$0xff]  ;;  %v4934_v19 = vld [vmem:[#allocation2 + $0x30] sm:$0xff] }
 0x3c6   :  { %4701 = vst [vmem:[#allocation2 + $0x90] sm:$0xf] %v4700_v18  ;;  %v4779_v42 = vrot.slane %v4778_v8, 4  ;;  %v4634_v63 = vor.u32 %v4632_v46, %v4631_v39  ;;  %v4653_v38 = vshll.u32 %v9936_v17, 16  ;;  %4716 = vst [vmem:[#allocation2 + $0xcc] sm:$0xf] %v4715_v62  ;;  %v4770_v7 = vor.u32 %v4769_v29, %v4768_v52 }
 0x3c7   :  { %v4828_v57 = vsel %vm12736_vm10, %v4759_v58, %v4827_v56  ;;  %v4652_v33 = vrot.slane %v4650_v27, 7  ;;  %v4780_v35 = vrot.slane %v4650_v27, 4  ;;  %v4429_v61 = vadd.f32 %v12294_v12, %v4413_v10  ;;  %v4717_v30 = vld [vmem:[#allocation2 + $0xd8] sm:$0xf]  ;;  %v4845_v54 = vld [vmem:[#allocation2 + $0xe0] sm:$0xf] }
 0x3c8   :  { %4829 = vst [vmem:[#allocation2 + $0x98] sm:$0xf] %v4828_v57  ;;  %v4843_v21 = vsel %vm12736_vm10, %v4779_v42, %v4842_v31  ;;  %v4709_v15 = vsel %vm12607_vm5, %v4634_v63, %v4708_v16  ;;  %v4781_v23 = vrot.slane %v4653_v38, 5  ;;  %v4771_v34 = vrot.slane %v4770_v7, 4  ;;  %v12064_v40 = vld [vmem:[#allocation9 + $0x148] sm:$0xff]   ;;  %v12068_v31 = vld [vmem:[#allocation9 + $0x150] sm:$0xff]  }
 0x3c9   :  { %4844 = vst [vmem:[#allocation2 + $0xd4] sm:$0xf] %v4843_v21  ;;  %4710 = vst [vmem:[#allocation2 + $0xb4] sm:$0xf] %v4709_v15  ;;  %v4655_v20 = vor.u32 %v4653_v38, %v4652_v33  ;;  %v9583_v60 = vcombine.low %v13593_v55, %v4850_v44  ;;  %v9584_v32 = vcombine.high %v13593_v55, %v4850_v44  ;;  %v4858_v58 = vld [vmem:[#allocation2 + $0x3c] sm:$0xff]  ;;  %v4938_v16 = vld [vmem:[#allocation2 + $0x48] sm:$0xff] }
 0x3ca   :  { %v4782_v26 = vor.u32 %v4781_v23, %v4780_v35  ;;  %v13597_v3 = vadd.f32 %v4429_v61, %v233_v0  ;;  %v9536_v48 = vcombine.high %v4850_v44, %v4930_v24  ;;  %v13599_v36 = vcombine.high %v4930_v24, %v4854_v41  ;;  %v12070_v7 = vld [vmem:[#allocation9 + $0x158] sm:$0xff]   ;;  %v4711_v33 = vld [vmem:[#allocation2 + $0xc0] sm:$0xf]  ;;  %v12074_v15 = vld [vmem:[#allocation9 + $0x160] sm:$0xff]  }
 0x3cb   :  { %v4837_v10 = vsel %vm12736_vm10, %v4771_v34, %v4836_v28  ;;  %v4718_v2 = vsel %vm12607_vm5, %v4655_v20, %v4717_v30  ;;  %5779 = vmatprep.mubr.bf16.mxu1 %v9584_v32  ;;  %v9535_v43 = vcombine.low %v4850_v44, %v4930_v24  ;;  %v9539_v56 = vcombine.high %v4854_v41, %v4934_v19  ;;  %v13620_v28 = vld [vmem:[#allocation2 + $0x60] sm:$0xff]  ;;  %v4862_v12 = vld [vmem:[#allocation2 + $0x54] sm:$0xff] }
 0x3cc   :  { %4838 = vst [vmem:[#allocation2 + $0xbc] sm:$0xf] %v4837_v10  ;;  %v4783_v46 = vrot.slane %v4782_v26, 4  ;;  %4719 = vst [vmem:[#allocation2 + $0xd8] sm:$0xf] %v4718_v2  ;;  %v4461_v17 = vmax.f32 %v13597_v3, 0.0  ;;  %5780 = vmatmul.mubr.bf16.vlgmr.msra.gmra.mrb[112].mxu1 %v9583_v60  ;;  %5313 = vmatprep.mubr.bf16.mxu0 %v9536_v48  ;;  %v13610_v42 = vcombine.low %v4930_v24, %v4854_v41 }
 0x3cd   :  { %5787 = vmatprep.mubr.bf16.mxu1 %v13599_v36  ;;  %5314 = vmatmul.mubr.bf16.vlgmr.msra.gmra.mrb[112].mxu0 %v9535_v43  ;;  %v13612_v63 = vcombine.high %v4934_v19, %v4858_v58  ;;  %v9538_v38 = vcombine.low %v4854_v41, %v4934_v19  ;;  %v4839_v24 = vld [vmem:[#allocation2 + $0xc8] sm:$0xf]  ;;  %v13622_v23 = vcombine.low %v4934_v19, %v4858_v58  ;;  %v12076_v60 = vld [vmem:[#allocation9 + $0x168] sm:$0xff]   ;;  %v12079_v32 = vld [vmem:[#allocation9 + $0x170] sm:$0xff]  }
 0x3ce   :  { %v4846_v8 = vsel %vm12736_vm10, %v4783_v46, %v4845_v54  ;;  %v9934_v39 = vpack.c.bf16 %v4461_v17, %v4461_v17  ;;  %5321 = vmatprep.mubr.bf16.mxu0 %v9539_v56  ;;  %11146 = vmatpush3.bf16.msra.mxu0 %v13358_v25  ;;  %v9542_v25 = vcombine.high %v4858_v58, %v4938_v16  ;;  %v4866_v41 = vld [vmem:[#allocation2 + $0x84] sm:$0xff]  ;;  %v4946_v19 = vld [vmem:[#allocation2 + $0x90] sm:$0xff]  ;;  %v4870_v56 = vld [vmem:[#allocation2 + $0x9c] sm:$0xff] }
 0x3cf   :  { %4847 = vst [vmem:[#allocation2 + $0xe0] sm:$0xf] %v4846_v8  ;;  %11147 = vmatprep.subr.bf16.mxu0 %v12064_v40  ;;  %v13624_v61 = vcombine.high %v4938_v16, %v4862_v12  ;;  %v9541_v34 = vcombine.low %v4858_v58, %v4938_v16  ;;  %v9545_v20 = vcombine.high %v4862_v12, %v13620_v28  ;;  %v12081_v2 = vld [vmem:[#allocation9 + $0x178] sm:$0xff]   ;;  %v12083_v43 = vld [vmem:[#allocation9 + $0x80] sm:$0xff]  }
 0x3d0   :  { %v4636_v52 = vshrl.u32 %v9934_v39, 16  ;;  %v4639_v18 = vshll.u32 %v9934_v39, 16  ;;  %4541 = vst [vmem:[#allocation2 + $0xc4] sm:$0xf] %v9934_v39  ;;  %v13629_v30 = vcombine.low %v4938_v16, %v4862_v12  ;;  %v9596_v26 = vcombine.high %v13593_v55, %v4866_v41  ;;  %v4950_v46 = vld [vmem:[#allocation2 + $0xa8] sm:$0xff]  ;;  %v4874_v39 = vld [vmem:[#allocation2 + $0xb4] sm:$0xff] }
 0x3d1   :  { %v9544_v48 = vcombine.low %v4862_v12, %v13620_v28  ;;  %v9548_v10 = vcombine.high %v4866_v41, %v4946_v19  ;;  %v9595_v17 = vcombine.low %v13593_v55, %v4866_v41  ;;  %v9547_v54 = vcombine.low %v4866_v41, %v4946_v19  ;;  %v12089_v12 = vld [vmem:[#allocation9 + $0x98] sm:$0xff]  }
 0x3d2   :  { %v4638_v29 = vrot.slane %v4636_v52, 7  ;;  %v4772_v27 = vrot.slane %v4636_v52, 4  ;;  %v4773_v62 = vrot.slane %v4639_v18, 5  ;;  %11148 = vmatpush3.bf16.msra.mxu0 %v12064_v40  ;;  %v13635_v40 = vcombine.high %v4946_v19, %v4870_v56 }
 0x3d3   :  { %11149 = vmatprep.subr.bf16.mxu0 %v12068_v31  ;;  %v9551_v8 = vcombine.high %v4870_v56, %v4950_v46  ;;  %v13640_v58 = vcombine.high %v4950_v46, %v4874_v39 }
 0x3d4   :  { %v4641_v44 = vor.u32 %v4639_v18, %v4638_v29  ;;  %v4774_v57 = vor.u32 %v4773_v62, %v4772_v27  ;;  %5788 = vmatmul.mubr.bf16.gmra.mrb[116].mxu1 %v13610_v42  ;;  %v13638_v18 = vcombine.low %v4946_v19, %v4870_v56  ;;  %v13644_v29 = vld [vmem:[#allocation2 + $0xd8] sm:$0xff]  ;;  %v13646_v27 = vcombine.low %v4950_v46, %v4874_v39  ;;  %v4878_v62 = vld [vmem:[#allocation2 + $0xcc] sm:$0xff]  ;;  %v12095_v19 = vld [vmem:[#allocation9 + $0xb0] sm:$0xff]  }
 0x3d5   :  { %5795 = vmatprep.mubr.bf16.mxu1 %v13612_v63  ;;  %5322 = vmatmul.mubr.bf16.gmra.mrb[116].mxu0 %v9538_v38 }
 0x3d6   :  { %v4712_v35 = vsel %vm12607_vm5, %v4641_v44, %v4711_v33  ;;  %v4775_v0 = vrot.slane %v4774_v57, 4  ;;  %5329 = vmatprep.mubr.bf16.mxu0 %v9542_v25  ;;  %11150 = vmatpush3.bf16.msra.mxu0 %v12068_v31  ;;  %v9550_v31 = vcombine.low %v4870_v56, %v4950_v46  ;;  %v9557_v57 = vcombine.high %v4878_v62, %v13644_v29  ;;  %v12080_v33 = vld [vmem:[#allocation2 + $0x14] ss:$12 sps:$4 sm:$0xff]   ;;  %v12100_v56 = vld [vmem:[#allocation2 + $0x38] ss:$12 sps:$4 sm:$0xff]  }
 0x3d7   :  { %4713 = vst [vmem:[#allocation2 + $0xc0] sm:$0xf] %v4712_v35  ;;  %11151 = vmatprep.subr.bf16.mxu0 %v12070_v7  ;;  %v12082_v35 = vld [vmem:[#allocation2 + $0x2c] ss:$12 sps:$4 sm:$0xff]  }
 0x3d8   :  { %v4840_v21 = vsel %vm12736_vm10, %v4775_v0, %v4839_v24  ;;  %v12085_v0 = vld [vmem:[#allocation9 + $0x88] sm:$0xff]   ;;  %v12084_v24 = vld [vmem:[#allocation2 + $0x44] ss:$12 sps:$4 sm:$0xff]   ;;  %v12098_v46 = vld [vmem:[#allocation2 + $0x20] ss:$12 sps:$4 sm:$0xff]  }
 0x3d9   :  { %4841 = vst [vmem:[#allocation2 + $0xc8] sm:$0xf] %v4840_v21  ;;  %v12087_v21 = vld [vmem:[#allocation9 + $0x90] sm:$0xff]  }
 0x3da   :  { %11152 = vmatpush3.bf16.msra.mxu0 %v12070_v7  ;;  %v9556_v7 = vcombine.low %v4878_v62, %v13644_v29 }
 0x3db   :  { %11153 = vmatprep.subr.bf16.mxu0 %v12074_v15 }
 0x3dc   :  { %5796 = vmatmul.mubr.bf16.gmra.mrb[120].mxu1 %v13622_v23 }
 0x3dd   :  { %5803 = vmatprep.mubr.bf16.mxu1 %v13624_v61  ;;  %5330 = vmatmul.mubr.bf16.gmra.mrb[120].mxu0 %v9541_v34  ;;  %v12088_v34 = vld [vmem:[#allocation2 + $0x8c] ss:$12 sps:$4 sm:$0xff]  }
 0x3de   :  { %5337 = vmatprep.mubr.bf16.mxu0 %v9545_v20  ;;  %11154 = vmatpush3.bf16.msra.mxu0 %v12074_v15  ;;  %v4954_v52 = vld [vmem:[#allocation2 + $0xc0] sm:$0xff]  ;;  %v12086_v15 = vld [vmem:[#allocation2 + $0x5c] ss:$12 sps:$4 sm:$0xff]   ;;  %v12091_v20 = vld [vmem:[#allocation9 + $0xa0] sm:$0xff]  }
 0x3df   :  { %11155 = vmatprep.subr.bf16.mxu0 %v12076_v60  ;;  %v9554_v16 = vcombine.high %v4874_v39, %v4954_v52  ;;  %v13648_v38 = vcombine.high %v4954_v52, %v4878_v62  ;;  %v9553_v44 = vcombine.low %v4874_v39, %v4954_v52  ;;  %v13653_v25 = vcombine.low %v4954_v52, %v4878_v62  ;;  %v12107_v39 = vld [vmem:[#allocation9 + $0x190] sm:$0xff]   ;;  %v12104_v52 = vld [vmem:[#allocation2 + $0x50] ss:$12 sps:$4 sm:$0xff]   ;;  %v12109_v62 = vld [vmem:[#allocation9 + $0x198] sm:$0xff]  }
 0x3e0   :  { %v12092_v41 = vld [vmem:[#allocation2 + $0xbc] ss:$12 sps:$4 sm:$0xff]  }
 0x3e2   :  { %11156 = vmatpush3.bf16.msra.mxu0 %v12076_v60  ;;  %v12090_v60 = vld [vmem:[#allocation2 + $0xa4] ss:$12 sps:$4 sm:$0xff]  }
 0x3e3   :  { %11157 = vmatprep.subr.bf16.mxu0 %v12079_v32 }
 0x3e4   :  { %5804 = vmatmul.mubr.bf16.gmra.mrb[124].mxu1 %v13629_v30 }
 0x3e5   :  { %5811 = vmatprep.mubr.bf16.mxu1 %v9596_v26  ;;  %5338 = vmatmul.mubr.bf16.gmra.mrb[124].mxu0 %v9544_v48  ;;  %v12094_v26 = vld [vmem:[#allocation2 + $0xd4] ss:$12 sps:$4 sm:$0xff]   ;;  %v12097_v48 = vld [vmem:[#allocation9 + $0xb8] sm:$0xff]  }
 0x3e6   :  { %5345 = vmatprep.mubr.bf16.mxu0 %v9548_v10  ;;  %11158 = vmatpush3.bf16.msra.mxu0 %v12079_v32  ;;  %v12093_v32 = vld [vmem:[#allocation9 + $0xa8] sm:$0xff]   ;;  %v12096_v10 = vld [vmem:[#allocation2 + $0x8] ss:$12 sps:$4 sm:$0xff]  }
 0x3e7   :  { %11159 = vmatprep.subr.bf16.mxu0 %v12081_v2 }
 0x3ea   :  { %11160 = vmatpush3.bf16.msra.mxu0 %v12081_v2  ;;  %v12099_v2 = vld [vmem:[#allocation9 + $0x1c0] sm:$0xff]  }
 0x3eb   :  { %11177 = vmatprep.subr.bf16.mxu0 %v12083_v43 }
 0x3ec   :  { %5812 = vmatmul.mubr.bf16.gmra.mrb[128].mxu1 %v9595_v17  ;;  %v12102_v17 = vld [vmem:[#allocation9 + $0x1c8] sm:$0xff]  }
 0x3ed   :  { %5819 = vmatprep.mubr.bf16.mxu1 %v13635_v40  ;;  %5346 = vmatmul.mubr.bf16.gmra.mrb[128].mxu0 %v9547_v54  ;;  %v12103_v54 = vld [vmem:[#allocation9 + $0x188] sm:$0xff]  }
 0x3ee   :  { %5353 = vmatprep.mubr.bf16.mxu0 %v9551_v8  ;;  %v12105_v8 = vld [vmem:[#allocation9 + $0x1d0] sm:$0xff]  }
 0x3f4   :  { %5820 = vmatmul.mubr.bf16.gmra.mrb[132].mxu1 %v13638_v18 }
 0x3f5   :  { %5827 = vmatprep.mubr.bf16.mxu1 %v13640_v58  ;;  %5354 = vmatmul.mubr.bf16.gmra.mrb[132].mxu0 %v9550_v31  ;;  %v12108_v31 = vld [vmem:[#allocation9 + $0x1d8] sm:$0xff]  }
 0x3f6   :  { %5361 = vmatprep.mubr.bf16.mxu0 %v9554_v16  ;;  %v12106_v16 = vld [vmem:[#allocation2 + $0x80] ss:$12 sps:$4 sm:$0xff]  }
 0x3fc   :  { %5828 = vmatmul.mubr.bf16.gmra.mrb[136].mxu1 %v13646_v27 }
 0x3fd   :  { %5835 = vmatprep.mubr.bf16.mxu1 %v13648_v38  ;;  %5362 = vmatmul.mubr.bf16.gmra.mrb[136].mxu0 %v9553_v44  ;;  %v12111_v44 = vld [vmem:[#allocation9 + $0x1e0] sm:$0xff]  }
 0x3fe   :  { %5369 = vmatprep.mubr.bf16.mxu0 %v9557_v57  ;;  %v12113_v57 = vld [vmem:[#allocation9 + $0x1a0] sm:$0xff]  }
 0x404   :  { %5836 = vmatmul.mubr.bf16.gmra.mrb[140].mxu1 %v13653_v25 }
 0x405   :  { %5370 = vmatmul.mubr.bf16.gmra.mrb[140].mxu0 %v9556_v7  ;;  %v12110_v7 = vld [vmem:[#allocation2 + $0x98] ss:$12 sps:$4 sm:$0xff]  }
 0x406   :  { %11161 = vmatprep.mubr.bf16.mxu0 %v12080_v33  ;;  %v12114_v33 = vld [vmem:[#allocation9 + $0x1e8] sm:$0xff]  }
 0x40d   :  { %11162 = vmatmul.mubr.bf16.vlgmr.msra.gmra.mrb[144].mxu0 %v12082_v35  ;;  %v12112_v35 = vld [vmem:[#allocation2 + $0xb0] ss:$12 sps:$4 sm:$0xff]  }
 0x40e   :  { %11165 = vmatprep.mubr.bf16.mxu0 %v12084_v24  ;;  %11178 = vmatpush3.bf16.msra.mxu0 %v12083_v43  ;;  %v12101_v43 = vld [vmem:[#allocation9 + $0x180] sm:$0xff]   ;;  %v12117_v24 = vld [vmem:[#allocation9 + $0x1f0] sm:$0xff]  }
 0x40f   :  { %11179 = vmatprep.subr.bf16.mxu0 %v12085_v0 }
 0x412   :  { %11180 = vmatpush3.bf16.msra.mxu0 %v12085_v0  ;;  %v12115_v0 = vld [vmem:[#allocation9 + $0x1a8] sm:$0xff]  }
 0x413   :  { %11181 = vmatprep.subr.bf16.mxu0 %v12087_v21 }
 0x415   :  { %11166 = vmatmul.mubr.bf16.gmra.mrb[148].mxu0 %v12086_v15  ;;  %v12116_v15 = vld [vmem:[#allocation2 + $0xc8] ss:$12 sps:$4 sm:$0xff]  }
 0x416   :  { %11169 = vmatprep.mubr.bf16.mxu0 %v12088_v34  ;;  %11182 = vmatpush3.bf16.msra.mxu0 %v12087_v21  ;;  %v12118_v21 = vld [vmem:[#allocation9 + $0x1b0] sm:$0xff]   ;;  %v12120_v34 = vld [vmem:[#allocation9 + $0x1b8] sm:$0xff]  }
 0x417   :  { %11183 = vmatprep.subr.bf16.mxu0 %v12089_v12 }
 0x41a   :  { %11184 = vmatpush3.bf16.msra.mxu0 %v12089_v12  ;;  %v12119_v12 = vld [vmem:[#allocation9 + $0x1f8] sm:$0xff]  }
 0x41b   :  { %11185 = vmatprep.subr.bf16.mxu0 %v12091_v20 }
 0x41d   :  { %11170 = vmatmul.mubr.bf16.gmra.mrb[152].mxu0 %v12090_v60  ;;  %v12122_v60 = vld [vmem:[#allocation9 + $0x208] sm:$0xff]  }
 0x41e   :  { %11173 = vmatprep.mubr.bf16.mxu0 %v12092_v41  ;;  %11186 = vmatpush3.bf16.msra.mxu0 %v12091_v20  ;;  %v12121_v20 = vld [vmem:[#allocation9 + $0x200] sm:$0xff]   ;;  %v12124_v41 = vld [vmem:[#allocation9 + $0x218] sm:$0xff]  }
 0x41f   :  { %11187 = vmatprep.subr.bf16.mxu0 %v12093_v32 }
 0x422   :  { %11188 = vmatpush3.bf16.msra.mxu0 %v12093_v32  ;;  %v12123_v32 = vld [vmem:[#allocation9 + $0x210] sm:$0xff]  }
 0x423   :  { %11189 = vmatprep.subr.bf16.mxu0 %v12095_v19 }
 0x425   :  { %11174 = vmatmul.mubr.bf16.gmra.mrb[156].mxu0 %v12094_v26  ;;  %v12130_v26 = vld [vmem:[#allocation2 + $0x38] ss:$12 sps:$4 sm:$0xff]  }
 0x426   :  { %11190 = vmatpush3.bf16.msra.mxu0 %v12095_v19  ;;  %11193 = vmatprep.mubr.bf16.mxu0 %v12096_v10  ;;  %v12126_v19 = vld [vmem:[#allocation9 + $0x228] sm:$0xff]  }
 0x427   :  { %11191 = vmatprep.subr.bf16.mxu0 %v12097_v48 }
 0x42a   :  { %11192 = vmatpush3.bf16.msra.mxu0 %v12097_v48  ;;  %v12135_v48 = vld [vmem:[#allocation2 + $0xc8] ss:$12 sps:$4 sm:$0xff]  }
 0x42b   :  { %10593 = vmatprep.subr.bf16.mxu0 %v12099_v2 }
 0x42d   :  { %11194 = vmatmul.mubr.bf16.vlgmr.msra.gmra.mrb[144].mxu0 %v12098_v46 }
 0x42e   :  { %11197 = vmatprep.mubr.bf16.mxu0 %v12100_v56  ;;  %10594 = vmatpush3.bf16.msra.mxu0 %v12101_v43 }
 0x42f   :  { %10595 = vmatprep.subr.bf16.mxu0 %v12102_v17 }
 0x432   :  { %10596 = vmatpush3.bf16.msra.mxu0 %v12103_v54 }
 0x433   :  { %10597 = vmatprep.subr.bf16.mxu0 %v12105_v8 }
 0x435   :  { %11198 = vmatmul.mubr.bf16.gmra.mrb[148].mxu0 %v12104_v52 }
 0x436   :  { %11201 = vmatprep.mubr.bf16.mxu0 %v12106_v16  ;;  %10598 = vmatpush3.bf16.msra.mxu0 %v12107_v39  ;;  %v12136_v39 = vld [vmem:[#allocation2 + $0xe0] ss:$12 sps:$4 sm:$0xff]  }
 0x437   :  { %10599 = vmatprep.subr.bf16.mxu0 %v12108_v31 }
 0x43a   :  { %10600 = vmatpush3.bf16.msra.mxu0 %v12109_v62 }
 0x43b   :  { %10601 = vmatprep.subr.bf16.mxu0 %v12111_v44 }
 0x43d   :  { %11202 = vmatmul.mubr.bf16.gmra.mrb[152].mxu0 %v12110_v7 }
 0x43e   :  { %11205 = vmatprep.mubr.bf16.mxu0 %v12112_v35  ;;  %10602 = vmatpush3.bf16.msra.mxu0 %v12113_v57 }
 0x43f   :  { %10603 = vmatprep.subr.bf16.mxu0 %v12114_v33 }
 0x442   :  { %10604 = vmatpush3.bf16.msra.mxu0 %v12115_v0 }
 0x443   :  { %10605 = vmatprep.subr.bf16.mxu0 %v12117_v24 }
 0x445   :  { %11206 = vmatmul.mubr.bf16.gmra.mrb[156].mxu0 %v12116_v15 }
 0x446   :  { %10606 = vmatpush3.bf16.msra.mxu0 %v12118_v21  ;;  %6326 = vmatprep.mubr.bf16.mxu0 %v13599_v36  ;;  %v12125_v36 = vld [vmem:[#allocation9 + $0x220] sm:$0xff]  }
 0x447   :  { %10607 = vmatprep.subr.bf16.mxu0 %v12119_v12 }
 0x44a   :  { %10608 = vmatpush3.bf16.msra.mxu0 %v12120_v34 }
 0x44b   :  { %11209 = vmatprep.subr.bf16.mxu0 %v12121_v20 }
 0x44d   :  { %6327 = vmatmul.mubr.bf16.vlgmr.msra.gmra.mrb[160].mxu0 %v13610_v42  ;;  %v9641_v42 = vcombine.high %v13620_v28, %v13593_v55 }
 0x44e   :  { %6334 = vmatprep.mubr.bf16.mxu0 %v13612_v63  ;;  %11210 = vmatpush3.bf16.msra.mxu0 %v12121_v20  ;;  %v12127_v63 = vld [vmem:[#allocation9 + $0x230] sm:$0xff]  }
 0x44f   :  { %11211 = vmatprep.subr.bf16.mxu0 %v12122_v60 }
 0x452   :  { %11212 = vmatpush3.bf16.msra.mxu0 %v12122_v60 }
 0x453   :  { %11213 = vmatprep.subr.bf16.mxu0 %v12123_v32 }
 0x455   :  { %6335 = vmatmul.mubr.bf16.gmra.mrb[164].mxu0 %v13622_v23  ;;  %v9640_v23 = vcombine.low %v13620_v28, %v13593_v55  ;;  %v9652_v28 = vcombine.low %v13644_v29, %v13593_v55 }
 0x456   :  { %6342 = vmatprep.mubr.bf16.mxu0 %v13624_v61  ;;  %11214 = vmatpush3.bf16.msra.mxu0 %v12123_v32  ;;  %v12129_v61 = vld [vmem:[#allocation9 + $0x238] sm:$0xff]  }
 0x457   :  { %11215 = vmatprep.subr.bf16.mxu0 %v12124_v41 }
 0x45a   :  { %11216 = vmatpush3.bf16.msra.mxu0 %v12124_v41 }
 0x45b   :  { %11217 = vmatprep.subr.bf16.mxu0 %v12125_v36 }
 0x45d   :  { %6343 = vmatmul.mubr.bf16.gmra.mrb[168].mxu0 %v13629_v30  ;;  %v9653_v30 = vcombine.high %v13644_v29, %v13593_v55 }
 0x45e   :  { %6350 = vmatprep.mubr.bf16.mxu0 %v9641_v42  ;;  %11218 = vmatpush3.bf16.msra.mxu0 %v12125_v36 }
 0x45f   :  { %11219 = vmatprep.subr.bf16.mxu0 %v12126_v19 }
 0x462   :  { %11220 = vmatpush3.bf16.msra.mxu0 %v12126_v19 }
 0x463   :  { %11221 = vmatprep.subr.bf16.mxu0 %v12127_v63 }
 0x465   :  { %6351 = vmatmul.mubr.bf16.gmra.mrb[172].mxu0 %v9640_v23 }
 0x466   :  { %6358 = vmatprep.mubr.bf16.mxu0 %v13635_v40  ;;  %11222 = vmatpush3.bf16.msra.mxu0 %v12127_v63  ;;  %v12128_v40 = vld [vmem:[#allocation2 + $0x20] ss:$12 sps:$4 sm:$0xff]  }
 0x467   :  { %11223 = vmatprep.subr.bf16.mxu0 %v12129_v61 }
 0x46a   :  { %11224 = vmatpush3.bf16.msra.mxu0 %v12129_v61 }
 0x46d   :  { %6359 = vmatmul.mubr.bf16.gmra.mrb[176].mxu0 %v13638_v18  ;;  %v12131_v18 = vld [vmem:[#allocation2 + $0x50] ss:$12 sps:$4 sm:$0xff]  }
 0x46e   :  { %6366 = vmatprep.mubr.bf16.mxu0 %v13640_v58  ;;  %v12132_v58 = vld [vmem:[#allocation2 + $0x68] ss:$12 sps:$4 sm:$0xff]  }
 0x475   :  { %6367 = vmatmul.mubr.bf16.gmra.mrb[180].mxu0 %v13646_v27  ;;  %v12133_v27 = vld [vmem:[#allocation2 + $0x98] ss:$12 sps:$4 sm:$0xff]  }
 0x476   :  { %6374 = vmatprep.mubr.bf16.mxu0 %v13648_v38  ;;  %v12134_v38 = vld [vmem:[#allocation2 + $0xb0] ss:$12 sps:$4 sm:$0xff]  }
 0x47d   :  { %6375 = vmatmul.mubr.bf16.gmra.mrb[184].mxu0 %v13653_v25 }
 0x47e   :  { %6382 = vmatprep.mubr.bf16.mxu0 %v9653_v30 }
 0x485   :  { %6383 = vmatmul.mubr.bf16.gmra.mrb[188].mxu0 %v9652_v28 }
 0x486   :  { %11225 = vmatprep.mubr.bf16.mxu0 %v12128_v40 }
 0x48d   :  { %11226 = vmatmul.mubr.bf16.vlgmr.msra.gmra.mrb[144].mxu0 %v12130_v26 }
 0x48e   :  { %11229 = vmatprep.mubr.bf16.mxu0 %v12131_v18 }
 0x495   :  { %11230 = vmatmul.mubr.bf16.gmra.mrb[148].mxu0 %v12132_v58 }
 0x496   :  { %11233 = vmatprep.mubr.bf16.mxu0 %v12133_v27 }
 0x49d   :  { %11234 = vmatmul.mubr.bf16.gmra.mrb[152].mxu0 %v12134_v38 }
 0x49e   :  { %11237 = vmatprep.mubr.bf16.mxu0 %v12135_v48 }
 0x49f   :  { %v10529_v25 = vpop.f32.mrb[112].mxu1 }
 0x4a0   :  { %v10530_v10 = vpop.f32.mrb[113].mxu1  ;;  %v10449_v2 = vpop.f32.mrb[112].mxu0 }
 0x4a1   :  { %v10531_v43 = vadd.f32 %v10530_v10, %v10529_v25  ;;  %v10532_v55 = vpop.f32.mrb[114].mxu1  ;;  %v10450_v29 = vpop.f32.mrb[113].mxu0 }
 0x4a2   :  { %v10451_v46 = vadd.f32 %v10450_v29, %v10449_v2  ;;  %v10533_v17 = vpop.f32.mrb[115].mxu1  ;;  %v10452_v56 = vpop.f32.mrb[114].mxu0 }
 0x4a3   :  { %v10534_v54 = vadd.f32 %v10533_v17, %v10532_v55  ;;  %v10453_v8 = vpop.f32.mrb[115].mxu0 }
 0x4a4   :  { %v13677_v52 = vadd.f32 %v10531_v43, %v10451_v46  ;;  %v10454_v31 = vadd.f32 %v10453_v8, %v10452_v56 }
 0x4a5   :  { %11238 = vmatmul.mubr.bf16.gmra.mrb[156].mxu0 %v12136_v39 }
 0x4a6   :  { %v13679_v16 = vadd.f32 %v10534_v54, %v10454_v31 }
 0x4a7   :  { %v10535_v62 = vpop.f32.mrb[116].mxu1 }
 0x4a8   :  { %v10536_v44 = vpop.f32.mrb[117].mxu1  ;;  %v10455_v57 = vpop.f32.mrb[116].mxu0 }
 0x4a9   :  { %v10537_v7 = vadd.f32 %v10536_v44, %v10535_v62  ;;  %v10538_v33 = vpop.f32.mrb[118].mxu1  ;;  %v10456_v35 = vpop.f32.mrb[117].mxu0 }
 0x4aa   :  { %v10457_v0 = vadd.f32 %v10456_v35, %v10455_v57  ;;  %v10539_v24 = vpop.f32.mrb[119].mxu1  ;;  %v10458_v21 = vpop.f32.mrb[118].mxu0 }
 0x4ab   :  { %v10540_v15 = vadd.f32 %v10539_v24, %v10538_v33  ;;  %v10459_v12 = vpop.f32.mrb[119].mxu0 }
 0x4ac   :  { %v13681_v34 = vadd.f32 %v10537_v7, %v10457_v0  ;;  %v10460_v20 = vadd.f32 %v10459_v12, %v10458_v21 }
 0x4ae   :  { %v13683_v60 = vadd.f32 %v10540_v15, %v10460_v20 }
 0x4af   :  { %v10541_v32 = vpop.f32.mrb[120].mxu1 }
 0x4b0   :  { %v10542_v41 = vpop.f32.mrb[121].mxu1  ;;  %v10461_v36 = vpop.f32.mrb[120].mxu0 }
 0x4b1   :  { %v10543_v19 = vadd.f32 %v10542_v41, %v10541_v32  ;;  %v10544_v42 = vpop.f32.mrb[122].mxu1  ;;  %v10462_v63 = vpop.f32.mrb[121].mxu0 }
 0x4b2   :  { %v10463_v23 = vadd.f32 %v10462_v63, %v10461_v36  ;;  %v10545_v61 = vpop.f32.mrb[123].mxu1  ;;  %v10464_v30 = vpop.f32.mrb[122].mxu0 }
 0x4b3   :  { %v10546_v28 = vadd.f32 %v10545_v61, %v10544_v42  ;;  %v10465_v40 = vpop.f32.mrb[123].mxu0 }
 0x4b4   :  { %v13685_v26 = vadd.f32 %v10543_v19, %v10463_v23  ;;  %v10466_v18 = vadd.f32 %v10465_v40, %v10464_v30 }
 0x4b6   :  { %v13687_v58 = vadd.f32 %v10546_v28, %v10466_v18 }
 0x4b7   :  { %v10547_v27 = vpop.f32.mrb[124].mxu1 }
 0x4b8   :  { %v10548_v38 = vpop.f32.mrb[125].mxu1  ;;  %v10467_v48 = vpop.f32.mrb[124].mxu0 }
 0x4b9   :  { %v10549_v25 = vadd.f32 %v10548_v38, %v10547_v27  ;;  %v10550_v10 = vpop.f32.mrb[126].mxu1  ;;  %v10468_v2 = vpop.f32.mrb[125].mxu0 }
 0x4ba   :  { %v10469_v43 = vadd.f32 %v10468_v2, %v10467_v48  ;;  %v10551_v55 = vpop.f32.mrb[127].mxu1  ;;  %v10470_v29 = vpop.f32.mrb[126].mxu0 }
 0x4bb   :  { %v10552_v46 = vadd.f32 %v10551_v55, %v10550_v10  ;;  %v10471_v17 = vpop.f32.mrb[127].mxu0 }
 0x4bc   :  { %v13689_v56 = vadd.f32 %v10549_v25, %v10469_v43  ;;  %v10472_v54 = vadd.f32 %v10471_v17, %v10470_v29 }
 0x4be   :  { %v13691_v8 = vadd.f32 %v10552_v46, %v10472_v54 }
 0x4bf   :  { %v10553_v39 = vpop.f32.mrb[128].mxu1 }
 0x4c0   :  { %v10554_v31 = vpop.f32.mrb[129].mxu1  ;;  %v10473_v62 = vpop.f32.mrb[128].mxu0 }
 0x4c1   :  { %v10555_v44 = vadd.f32 %v10554_v31, %v10553_v39  ;;  %v10556_v57 = vpop.f32.mrb[130].mxu1  ;;  %v10474_v7 = vpop.f32.mrb[129].mxu0 }
 0x4c2   :  { %v10475_v33 = vadd.f32 %v10474_v7, %v10473_v62  ;;  %v10557_v35 = vpop.f32.mrb[131].mxu1  ;;  %v10476_v0 = vpop.f32.mrb[130].mxu0 }
 0x4c3   :  { %v10558_v24 = vadd.f32 %v10557_v35, %v10556_v57  ;;  %v10477_v21 = vpop.f32.mrb[131].mxu0 }
 0x4c4   :  { %v13693_v15 = vadd.f32 %v10555_v44, %v10475_v33  ;;  %v10478_v12 = vadd.f32 %v10477_v21, %v10476_v0 }
 0x4c6   :  { %v13695_v20 = vadd.f32 %v10558_v24, %v10478_v12 }
 0x4c7   :  { %v10559_v32 = vpop.f32.mrb[132].mxu1 }
 0x4c8   :  { %v10560_v41 = vpop.f32.mrb[133].mxu1  ;;  %v10479_v36 = vpop.f32.mrb[132].mxu0 }
 0x4c9   :  { %v10561_v19 = vadd.f32 %v10560_v41, %v10559_v32  ;;  %v10562_v42 = vpop.f32.mrb[134].mxu1  ;;  %v10480_v63 = vpop.f32.mrb[133].mxu0 }
 0x4ca   :  { %v10481_v23 = vadd.f32 %v10480_v63, %v10479_v36  ;;  %v10563_v61 = vpop.f32.mrb[135].mxu1  ;;  %v10482_v30 = vpop.f32.mrb[134].mxu0  ;;  %v12137_v63 = vld [vmem:[#allocation11 + $0x40] sm:$0xff]  }
 0x4cb   :  { %v10564_v28 = vadd.f32 %v10563_v61, %v10562_v42  ;;  %v10483_v40 = vpop.f32.mrb[135].mxu0  ;;  %v12139_v61 = vld [vmem:[#allocation11 + $0x100] sm:$0xff]   ;;  %10753 = vmatprep.subr.bf16.mxu0 %v12137_v63  ;;  %v12167_v63 = vld [vmem:[#allocation11 + $0x138] sm:$0xff]  }
 0x4cc   :  { %v13697_v18 = vadd.f32 %v10561_v19, %v10481_v23  ;;  %v10484_v27 = vadd.f32 %v10483_v40, %v10482_v30  ;;  %v12138_v23 = vld [vmem:[#allocation11] sm:$0xff]   ;;  %10673 = vmatprep.subr.bf16.mxu1 %v12139_v61  ;;  %v12141_v40 = vld [vmem:[#allocation11 + $0x48] sm:$0xff]  }
 0x4cd   :  { %v12140_v30 = vld [vmem:[#allocation11 + $0xc0] sm:$0xff]   ;;  %10754 = vmatpush3.bf16.msra.mxu0 %v12138_v23  ;;  %v12168_v23 = vld [vmem:[#allocation11 + $0xf8] sm:$0xff]  }
 0x4ce   :  { %v13699_v38 = vadd.f32 %v10564_v28, %v10484_v27  ;;  %10674 = vmatpush3.bf16.msra.mxu1 %v12140_v30  ;;  %v12142_v27 = vld [vmem:[#allocation11 + $0x8] sm:$0xff]   ;;  %10755 = vmatprep.subr.bf16.mxu0 %v12141_v40 }
 0x4cf   :  { %v10565_v48 = vpop.f32.mrb[136].mxu1 }
 0x4d0   :  { %v10566_v25 = vpop.f32.mrb[137].mxu1  ;;  %v10485_v10 = vpop.f32.mrb[136].mxu0 }
 0x4d1   :  { %v10567_v2 = vadd.f32 %v10566_v25, %v10565_v48  ;;  %v10568_v43 = vpop.f32.mrb[138].mxu1  ;;  %v10486_v55 = vpop.f32.mrb[137].mxu0  ;;  %v12143_v48 = vld [vmem:[#allocation11 + $0x108] sm:$0xff]   ;;  %10756 = vmatpush3.bf16.msra.mxu0 %v12142_v27 }
 0x4d2   :  { %v10487_v29 = vadd.f32 %v10486_v55, %v10485_v10  ;;  %v10569_v46 = vpop.f32.mrb[139].mxu1  ;;  %v10488_v17 = vpop.f32.mrb[138].mxu0  ;;  %v12144_v25 = vld [vmem:[#allocation11 + $0xc8] sm:$0xff]   ;;  %10675 = vmatprep.subr.bf16.mxu1 %v12143_v48  ;;  %v12145_v10 = vld [vmem:[#allocation11 + $0x50] sm:$0xff]  }
 0x4d3   :  { %v10570_v54 = vadd.f32 %v10569_v46, %v10568_v43  ;;  %v10489_v39 = vpop.f32.mrb[139].mxu0  ;;  %10676 = vmatpush3.bf16.msra.mxu1 %v12144_v25  ;;  %10757 = vmatprep.subr.bf16.mxu0 %v12145_v10  ;;  %v12147_v43 = vld [vmem:[#allocation11 + $0x110] sm:$0xff]   ;;  %v12150_v46 = vld [vmem:[#allocation11 + $0x18] sm:$0xff]  }
 0x4d4   :  { %v13701_v31 = vadd.f32 %v10567_v2, %v10487_v29  ;;  %v10490_v62 = vadd.f32 %v10489_v39, %v10488_v17  ;;  %v12146_v2 = vld [vmem:[#allocation11 + $0x10] sm:$0xff]   ;;  %10677 = vmatprep.subr.bf16.mxu1 %v12147_v43  ;;  %v12149_v29 = vld [vmem:[#allocation11 + $0x58] sm:$0xff]   ;;  %v12153_v39 = vld [vmem:[#allocation11 + $0x60] sm:$0xff]  }
 0x4d5   :  { %10758 = vmatpush3.bf16.msra.mxu0 %v12146_v2  ;;  %v12148_v55 = vld [vmem:[#allocation11 + $0xd0] sm:$0xff]   ;;  %v12151_v17 = vld [vmem:[#allocation11 + $0x118] sm:$0xff]  }
 0x4d6   :  { %v13703_v44 = vadd.f32 %v10570_v54, %v10490_v62  ;;  %10759 = vmatprep.subr.bf16.mxu0 %v12149_v29  ;;  %v12152_v54 = vld [vmem:[#allocation11 + $0xd8] sm:$0xff]   ;;  %v12154_v62 = vld [vmem:[#allocation11 + $0x20] sm:$0xff]  }
 0x4d7   :  { %v10571_v57 = vpop.f32.mrb[140].mxu1  ;;  %10678 = vmatpush3.bf16.msra.mxu1 %v12148_v55 }
 0x4d8   :  { %v10572_v7 = vpop.f32.mrb[141].mxu1  ;;  %v10491_v33 = vpop.f32.mrb[140].mxu0  ;;  %10679 = vmatprep.subr.bf16.mxu1 %v12151_v17 }
 0x4d9   :  { %v10573_v35 = vadd.f32 %v10572_v7, %v10571_v57  ;;  %v10574_v0 = vpop.f32.mrb[142].mxu1  ;;  %v10492_v24 = vpop.f32.mrb[141].mxu0  ;;  %10760 = vmatpush3.bf16.msra.mxu0 %v12150_v46  ;;  %v12155_v57 = vld [vmem:[#allocation11 + $0x120] sm:$0xff]  }
 0x4da   :  { %v10493_v21 = vadd.f32 %v10492_v24, %v10491_v33  ;;  %v10575_v12 = vpop.f32.mrb[143].mxu1  ;;  %v10494_v32 = vpop.f32.mrb[142].mxu0  ;;  %10761 = vmatprep.subr.bf16.mxu0 %v12153_v39  ;;  %v12156_v7 = vld [vmem:[#allocation11 + $0xe0] sm:$0xff]   ;;  %v12157_v33 = vld [vmem:[#allocation11 + $0x68] sm:$0xff]  }
 0x4db   :  { %v10576_v41 = vadd.f32 %v10575_v12, %v10574_v0  ;;  %v10495_v36 = vpop.f32.mrb[143].mxu0  ;;  %10680 = vmatpush3.bf16.msra.mxu1 %v12152_v54  ;;  %v12159_v0 = vld [vmem:[#allocation11 + $0x128] sm:$0xff]   ;;  %v12162_v12 = vld [vmem:[#allocation11 + $0x30] sm:$0xff]  }
 0x4dc   :  { %v13705_v19 = vadd.f32 %v10573_v35, %v10493_v21  ;;  %v10496_v42 = vadd.f32 %v10495_v36, %v10494_v32  ;;  %10681 = vmatprep.subr.bf16.mxu1 %v12155_v57  ;;  %v12158_v35 = vld [vmem:[#allocation11 + $0x28] sm:$0xff]   ;;  %v12161_v21 = vld [vmem:[#allocation11 + $0x70] sm:$0xff]   ;;  %v12165_v36 = vld [vmem:[#allocation11 + $0x78] sm:$0xff]  }
 0x4dd   :  { %10762 = vmatpush3.bf16.msra.mxu0 %v12154_v62  ;;  %v12160_v24 = vld [vmem:[#allocation11 + $0xe8] sm:$0xff]   ;;  %v12163_v32 = vld [vmem:[#allocation11 + $0x130] sm:$0xff]  }
 0x4de   :  { %v13707_v28 = vadd.f32 %v10576_v41, %v10496_v42  ;;  %10763 = vmatprep.subr.bf16.mxu0 %v12157_v33  ;;  %v12164_v41 = vld [vmem:[#allocation11 + $0xf0] sm:$0xff]   ;;  %v12166_v42 = vld [vmem:[#allocation11 + $0x38] sm:$0xff]  }
 0x4df   :  { %10682 = vmatpush3.bf16.msra.mxu1 %v12156_v7 }
 0x4e0   :  { %10683 = vmatprep.subr.bf16.mxu1 %v12159_v0 }
 0x4e1   :  { %10764 = vmatpush3.bf16.msra.mxu0 %v12158_v35 }
 0x4e2   :  { %10765 = vmatprep.subr.bf16.mxu0 %v12161_v21 }
 0x4e3   :  { %10684 = vmatpush3.bf16.msra.mxu1 %v12160_v24 }
 0x4e4   :  { %10685 = vmatprep.subr.bf16.mxu1 %v12163_v32 }
 0x4e5   :  { %10766 = vmatpush3.bf16.msra.mxu0 %v12162_v12 }
 0x4e6   :  { %10767 = vmatprep.subr.bf16.mxu0 %v12165_v36 }
 0x4e7   :  { %10686 = vmatpush3.bf16.msra.mxu1 %v12164_v41 }
 0x4e8   :  { %10687 = vmatprep.subr.bf16.mxu1 %v12167_v63 }
 0x4e9   :  { %10768 = vmatpush3.bf16.msra.mxu0 %v12166_v42 }
 0x4eb   :  { %10688 = vmatpush3.bf16.msra.mxu1 %v12168_v23 }
 0x520   :  { %v10609_v61 = vpop.f32.mrb[160].mxu0 }
 0x521   :  { %v10610_v30 = vpop.f32.mrb[161].mxu0 }
 0x522   :  { %v10611_v40 = vadd.f32 %v10610_v30, %v10609_v61  ;;  %v10612_v27 = vpop.f32.mrb[162].mxu0 }
 0x523   :  { %v10613_v48 = vpop.f32.mrb[163].mxu0 }
 0x524   :  { %v10614_v25 = vadd.f32 %v10613_v48, %v10612_v27  ;;  %v13710_v10 = vadd.f32 %v13677_v52, %v10611_v40 }
 0x526   :  { %v13713_v2 = vadd.f32 %v13679_v16, %v10614_v25 }
 0x528   :  { %v10615_v43 = vpop.f32.mrb[164].mxu0 }
 0x529   :  { %v10616_v55 = vpop.f32.mrb[165].mxu0 }
 0x52a   :  { %v10617_v29 = vadd.f32 %v10616_v55, %v10615_v43  ;;  %v10618_v46 = vpop.f32.mrb[166].mxu0 }
 0x52b   :  { %v10619_v17 = vpop.f32.mrb[167].mxu0 }
 0x52c   :  { %v10620_v54 = vadd.f32 %v10619_v17, %v10618_v46  ;;  %v11530_v39 = vadd.f32 %v13681_v34, %v10617_v29  ;;  %v13723_v34 = vld [vmem:[#allocation11 + $0x140] sm:$0xff]  }
 0x52d   :  { %11241 = vmatprep.subr.bf16.mxu1 %v13723_v34 }
 0x52e   :  { %v11536_v62 = vadd.f32 %v13683_v60, %v10620_v54 }
 0x530   :  { %v10621_v57 = vpop.f32.mrb[168].mxu0 }
 0x531   :  { %v10622_v7 = vpop.f32.mrb[169].mxu0 }
 0x532   :  { %v10623_v33 = vadd.f32 %v10622_v7, %v10621_v57  ;;  %v10624_v35 = vpop.f32.mrb[170].mxu0 }
 0x533   :  { %v10625_v0 = vpop.f32.mrb[171].mxu0 }
 0x534   :  { %v10626_v52 = vadd.f32 %v10625_v0, %v10624_v35  ;;  %v13718_v24 = vadd.f32 %v13685_v26, %v10623_v33 }
 0x536   :  { %v13721_v16 = vadd.f32 %v13687_v58, %v10626_v52 }
 0x538   :  { %v10627_v21 = vpop.f32.mrb[172].mxu0 }
 0x539   :  { %v10628_v12 = vpop.f32.mrb[173].mxu0 }
 0x53a   :  { %v10629_v32 = vadd.f32 %v10628_v12, %v10627_v21  ;;  %v10630_v41 = vpop.f32.mrb[174].mxu0 }
 0x53b   :  { %v10631_v36 = vpop.f32.mrb[175].mxu0 }
 0x53c   :  { %v10632_v60 = vadd.f32 %v10631_v36, %v10630_v41  ;;  %v11542_v42 = vadd.f32 %v13689_v56, %v10629_v32 }
 0x53e   :  { %v13728_v63 = vadd.f32 %v13691_v8, %v10632_v60 }
 0x540   :  { %v10633_v26 = vpop.f32.mrb[176].mxu0 }
 0x541   :  { %v10634_v23 = vpop.f32.mrb[177].mxu0 }
 0x542   :  { %v10635_v61 = vadd.f32 %v10634_v23, %v10633_v26  ;;  %v10636_v58 = vpop.f32.mrb[178].mxu0 }
 0x543   :  { %v10637_v30 = vpop.f32.mrb[179].mxu0 }
 0x544   :  { %v10638_v40 = vadd.f32 %v10637_v30, %v10636_v58  ;;  %v13731_v27 = vadd.f32 %v13693_v15, %v10635_v61 }
 0x546   :  { %v13734_v48 = vadd.f32 %v13695_v20, %v10638_v40 }
 0x548   :  { %v10639_v25 = vpop.f32.mrb[180].mxu0 }
 0x549   :  { %v10640_v43 = vpop.f32.mrb[181].mxu0 }
 0x54a   :  { %v10641_v56 = vadd.f32 %v10640_v43, %v10639_v25  ;;  %v10642_v55 = vpop.f32.mrb[182].mxu0 }
 0x54b   :  { %v10643_v29 = vpop.f32.mrb[183].mxu0 }
 0x54c   :  { %v10644_v46 = vadd.f32 %v10643_v29, %v10642_v55  ;;  %v13737_v8 = vadd.f32 %v13697_v18, %v10641_v56 }
 0x54e   :  { %v13740_v17 = vadd.f32 %v13699_v38, %v10644_v46 }
 0x550   :  { %v10645_v54 = vpop.f32.mrb[184].mxu0 }
 0x551   :  { %v10646_v57 = vpop.f32.mrb[185].mxu0 }
 0x552   :  { %v10647_v7 = vadd.f32 %v10646_v57, %v10645_v54  ;;  %v10648_v15 = vpop.f32.mrb[186].mxu0 }
 0x553   :  { %v10649_v33 = vpop.f32.mrb[187].mxu0 }
 0x554   :  { %v10650_v35 = vadd.f32 %v10649_v33, %v10648_v15  ;;  %v13743_v20 = vadd.f32 %v13701_v31, %v10647_v7  ;;  %v13757_v31 = vld [vmem:[%s14177_s7] ss:$0 sm:$0xff] }
 0x556   :  { %v13746_v0 = vadd.f32 %v13703_v44, %v10650_v35 }
 0x558   :  { %v10651_v52 = vpop.f32.mrb[188].mxu0 }
 0x559   :  { %v10652_v21 = vpop.f32.mrb[189].mxu0 }
 0x55a   :  { %v10653_v12 = vadd.f32 %v10652_v21, %v10651_v52  ;;  %v10654_v18 = vpop.f32.mrb[190].mxu0 }
 0x55b   :  { %v10655_v32 = vpop.f32.mrb[191].mxu0 }
 0x55c   :  { %v10656_v41 = vadd.f32 %v10655_v32, %v10654_v18  ;;  %v13749_v38 = vadd.f32 %v13705_v19, %v10653_v12 }
 0x55e   :  { %v13752_v36 = vadd.f32 %v13707_v28, %v10656_v41 }
 0x560   :  { %v11227_v60 = vpop.f32.mrb[144].mxu0 }
 0x561   :  { %v11531_v44 = vadd.f32 %v11530_v39, %v11227_v60  ;;  %v6425_v26 = vpop.f32.mrb[145].mxu0 }
 0x562   :  { %v11534_v23 = vadd.f32 %v13710_v10, %v6425_v26  ;;  %v11228_v61 = vpop.f32.mrb[146].mxu0 }
 0x563   :  { %v6513_v58 = vadd.f32 %v11531_v44, %v13757_v31  ;;  %v11537_v30 = vadd.f32 %v11536_v62, %v11228_v61  ;;  %v6428_v40 = vpop.f32.mrb[147].mxu0 }
 0x564   :  { %v6511_v19 = vadd.f32 %v11534_v23, %v13757_v31  ;;  %v11540_v28 = vadd.f32 %v13713_v2, %v6428_v40 }
 0x565   :  { %v6529_v25 = vmax.f32 %v6513_v58, 0.0  ;;  %v6514_v43 = vadd.f32 %v11537_v30, %v13757_v31 }
 0x566   :  { %v6527_v56 = vmax.f32 %v6511_v19, 0.0  ;;  %v6512_v55 = vadd.f32 %v11540_v28, %v13757_v31  ;;  %v6757_v28 = vld [vmem:[#allocation2 + $0x24] sm:$0xf] }
 0x567   :  { %v9939_v29 = vpack.c.bf16 %v6529_v25, %v6529_v25  ;;  %v6530_v39 = vmax.f32 %v6514_v43, 0.0 }
 0x568   :  { %v9937_v46 = vpack.c.bf16 %v6527_v56, %v6527_v56  ;;  %v6528_v54 = vmax.f32 %v6512_v55, 0.0  ;;  %v11231_v10 = vpop.f32.mrb[148].mxu0 }
 0x569   :  { %v6638_v57 = vshrl.u32 %v9939_v29, 16  ;;  %v6641_v7 = vshll.u32 %v9939_v29, 16  ;;  %6609 = vst [vmem:[#allocation2 + $0x28] sm:$0xf] %v9939_v29  ;;  %v9940_v62 = vpack.c.bf16 %v6530_v39, %v6530_v39  ;;  %v11543_v15 = vadd.f32 %v11542_v42, %v11231_v10  ;;  %v6441_v33 = vpop.f32.mrb[149].mxu0 }
 0x56a   :  { %v6624_v35 = vshrl.u32 %v9937_v46, 16  ;;  %v6627_v52 = vshll.u32 %v9937_v46, 16  ;;  %6607 = vst [vmem:[#allocation2 + $0x10] sm:$0xf] %v9937_v46  ;;  %v9938_v2 = vpack.c.bf16 %v6528_v54, %v6528_v54  ;;  %v11546_v21 = vadd.f32 %v13718_v24, %v6441_v33  ;;  %v11232_v12 = vpop.f32.mrb[150].mxu0 }
 0x56b   :  { %v6640_v18 = vrot.slane %v6638_v57, 7  ;;  %v6807_v32 = vrot.slane %v6638_v57, 4  ;;  %v6808_v41 = vrot.slane %v6641_v7, 5  ;;  %v6645_v60 = vshrl.u32 %v9940_v62, 16  ;;  %6610 = vst [vmem:[#allocation2 + $0x34] sm:$0xf] %v9940_v62 }
 0x56c   :  { %v6444_v44 = vpop.f32.mrb[151].mxu0  ;;  %v6626_v26 = vrot.slane %v6624_v35, 7  ;;  %v6799_v23 = vrot.slane %v6624_v35, 4  ;;  %v6800_v61 = vrot.slane %v6627_v52, 5  ;;  %v6648_v58 = vshll.u32 %v9940_v62, 16 }
 0x56d   :  { %6608 = vst [vmem:[#allocation2 + $0x1c] sm:$0xf] %v9938_v2  ;;  %v6643_v42 = vor.u32 %v6641_v7, %v6640_v18  ;;  %v6809_v30 = vor.u32 %v6808_v41, %v6807_v32  ;;  %v6647_v40 = vrot.slane %v6645_v60, 7  ;;  %v6811_v19 = vrot.slane %v6645_v60, 4  ;;  %v6885_v39 = vld [vmem:[#allocation2 + $0x2c] sm:$0xf] }
 0x56e   :  { %v6629_v25 = vor.u32 %v6627_v52, %v6626_v26  ;;  %v6801_v43 = vor.u32 %v6800_v61, %v6799_v23  ;;  %v6812_v24 = vrot.slane %v6648_v58, 5  ;;  %v6631_v56 = vshrl.u32 %v9938_v2, 16  ;;  %v6751_v46 = vld [vmem:[#allocation2 + $0xc] sm:$0xf]  ;;  %v6760_v62 = vld [vmem:[#allocation2 + $0x30] sm:$0xf] }
 0x56f   :  { %v6758_v55 = vsel %vm12607_vm5, %v6643_v42, %v6757_v28  ;;  %v6810_v29 = vrot.slane %v6809_v30, 4  ;;  %v6650_v54 = vor.u32 %v6648_v58, %v6647_v40  ;;  %v6634_v10 = vshll.u32 %v9938_v2, 16  ;;  %v6879_v32 = vld [vmem:[#allocation2 + $0x14] sm:$0xf]  ;;  %v6888_v40 = vld [vmem:[#allocation2 + $0x38] sm:$0xf] }
 0x570   :  { %6759 = vst [vmem:[#allocation2 + $0x24] sm:$0xf] %v6758_v55  ;;  %v6752_v57 = vsel %vm12607_vm5, %v6629_v25, %v6751_v46  ;;  %v6802_v7 = vrot.slane %v6801_v43, 4  ;;  %v6813_v33 = vor.u32 %v6812_v24, %v6811_v19  ;;  %v6633_v35 = vrot.slane %v6631_v56, 7  ;;  %v11235_v52 = vpop.f32.mrb[152].mxu0 }
 0x571   :  { %v6886_v18 = vsel %vm12736_vm10, %v6810_v29, %v6885_v39  ;;  %6753 = vst [vmem:[#allocation2 + $0xc] sm:$0xf] %v6752_v57  ;;  %v6761_v41 = vsel %vm12607_vm5, %v6650_v54, %v6760_v62  ;;  %v6803_v60 = vrot.slane %v6631_v56, 4  ;;  %v6804_v26 = vrot.slane %v6634_v10, 5  ;;  %v6457_v2 = vpop.f32.mrb[153].mxu0 }
 0x572   :  { %6887 = vst [vmem:[#allocation2 + $0x2c] sm:$0xf] %v6886_v18  ;;  %v6880_v23 = vsel %vm12736_vm10, %v6802_v7, %v6879_v32  ;;  %v6814_v61 = vrot.slane %v6813_v33, 4  ;;  %6762 = vst [vmem:[#allocation2 + $0x30] sm:$0xf] %v6761_v41  ;;  %v6636_v58 = vor.u32 %v6634_v10, %v6633_v35  ;;  %v6517_v42 = vadd.f32 %v11543_v15, %v13757_v31  ;;  %v11236_v30 = vpop.f32.mrb[154].mxu0 }
 0x573   :  { %6881 = vst [vmem:[#allocation2 + $0x14] sm:$0xf] %v6880_v23  ;;  %v6754_v19 = vld [vmem:[#allocation2 + $0x18] sm:$0xf]  ;;  %v6805_v28 = vor.u32 %v6804_v26, %v6803_v60  ;;  %v6515_v25 = vadd.f32 %v11546_v21, %v13757_v31  ;;  %v11549_v43 = vadd.f32 %v13728_v63, %v11232_v12  ;;  %v11552_v24 = vadd.f32 %v13721_v16, %v6444_v44  ;;  %v13780_v56 = vpop.f32.mrb[155].mxu0 }
 0x574   :  { %v6889_v55 = vsel %vm12736_vm10, %v6814_v61, %v6888_v40  ;;  %v6755_v29 = vsel %vm12607_vm5, %v6636_v58, %v6754_v19  ;;  %v6533_v15 = vmax.f32 %v6517_v42, 0.0  ;;  %v11555_v39 = vadd.f32 %v13737_v8, %v11235_v52  ;;  %v6882_v16 = vld [vmem:[#allocation2 + $0x20] sm:$0xf] }
 0x575   :  { %6890 = vst [vmem:[#allocation2 + $0x38] sm:$0xf] %v6889_v55  ;;  %v6806_v46 = vrot.slane %v6805_v28, 4  ;;  %6756 = vst [vmem:[#allocation2 + $0x18] sm:$0xf] %v6755_v29  ;;  %v6531_v54 = vmax.f32 %v6515_v25, 0.0  ;;  %v6518_v21 = vadd.f32 %v11549_v43, %v13757_v31  ;;  %v6516_v63 = vadd.f32 %v11552_v24, %v13757_v31 }
 0x576   :  { %v9943_v12 = vpack.c.bf16 %v6533_v15, %v6533_v15  ;;  %v6521_v44 = vadd.f32 %v11555_v39, %v13757_v31  ;;  %v11558_v10 = vadd.f32 %v13731_v27, %v6457_v2  ;;  %v13792_v57 = vadd.f32 %v13740_v17, %v11236_v30  ;;  %v6769_v55 = vld [vmem:[#allocation2 + $0x54] sm:$0xf] }
 0x577   :  { %v6883_v8 = vsel %vm12736_vm10, %v6806_v46, %v6882_v16  ;;  %v9941_v7 = vpack.c.bf16 %v6531_v54, %v6531_v54  ;;  %v6534_v62 = vmax.f32 %v6518_v21, 0.0  ;;  %v6532_v33 = vmax.f32 %v6516_v63, 0.0  ;;  %v6897_v46 = vld [vmem:[#allocation2 + $0x5c] sm:$0xf] }
 0x578   :  { %6884 = vst [vmem:[#allocation2 + $0x20] sm:$0xf] %v6883_v8  ;;  %v6666_v35 = vshrl.u32 %v9943_v12, 16  ;;  %v6669_v52 = vshll.u32 %v9943_v12, 16  ;;  %6613 = vst [vmem:[#allocation2 + $0x58] sm:$0xf] %v9943_v12  ;;  %v13797_v32 = vadd.f32 %v11558_v10, %v13757_v31 }
 0x579   :  { %v6537_v18 = vmax.f32 %v6521_v44, 0.0  ;;  %v13799_v41 = vpop.f32.mrb[156].mxu0  ;;  %v6652_v27 = vshrl.u32 %v9941_v7, 16  ;;  %v6655_v60 = vshll.u32 %v9941_v7, 16  ;;  %6611 = vst [vmem:[#allocation2 + $0x40] sm:$0xf] %v9941_v7  ;;  %v9944_v17 = vpack.c.bf16 %v6534_v62, %v6534_v62 }
 0x57a   :  { %v9942_v26 = vpack.c.bf16 %v6532_v33, %v6532_v33  ;;  %v13801_v2 = vpop.f32.mrb[157].mxu0  ;;  %v6668_v23 = vrot.slane %v6666_v35, 7  ;;  %v6823_v61 = vrot.slane %v6666_v35, 4  ;;  %v6824_v58 = vrot.slane %v6669_v52, 5  ;;  %v6763_v21 = vld [vmem:[#allocation2 + $0x3c] sm:$0xf] }
 0x57b   :  { %v9947_v42 = vpack.c.bf16 %v6537_v18, %v6537_v18  ;;  %v13803_v30 = vpop.f32.mrb[158].mxu0  ;;  %v6654_v40 = vrot.slane %v6652_v27, 7  ;;  %v6815_v19 = vrot.slane %v6652_v27, 4  ;;  %v6816_v28 = vrot.slane %v6655_v60, 5  ;;  %6614 = vst [vmem:[#allocation2 + $0x64] sm:$0xf] %v9944_v17 }
 0x57c   :  { %v6673_v25 = vshrl.u32 %v9944_v17, 16  ;;  %6612 = vst [vmem:[#allocation2 + $0x4c] sm:$0xf] %v9942_v26  ;;  %v13805_v43 = vpop.f32.mrb[159].mxu0  ;;  %v6671_v24 = vor.u32 %v6669_v52, %v6668_v23  ;;  %v6825_v29 = vor.u32 %v6824_v58, %v6823_v61  ;;  %v6676_v15 = vshll.u32 %v9944_v17, 16 }
 0x57d   :  { %v6659_v39 = vshrl.u32 %v9942_v26, 16  ;;  %6617 = vst [vmem:[#allocation2 + $0xa0] sm:$0xf] %v9947_v42  ;;  %v6657_v54 = vor.u32 %v6655_v60, %v6654_v40  ;;  %v6817_v63 = vor.u32 %v6816_v28, %v6815_v19  ;;  %v6891_v8 = vld [vmem:[#allocation2 + $0x44] sm:$0xf]  ;;  %v6662_v27 = vshll.u32 %v9942_v26, 16 }
 0x57e   :  { %v6675_v16 = vrot.slane %v6673_v25, 7  ;;  %v6827_v12 = vrot.slane %v6673_v25, 4  ;;  %v6770_v44 = vsel %vm12607_vm5, %v6671_v24, %v6769_v55  ;;  %v6826_v10 = vrot.slane %v6825_v29, 4  ;;  %v6772_v18 = vld [vmem:[#allocation2 + $0x60] sm:$0xf] }
 0x57f   :  { %v6828_v7 = vrot.slane %v6676_v15, 5  ;;  %v6661_v62 = vrot.slane %v6659_v39, 7  ;;  %6771 = vst [vmem:[#allocation2 + $0x54] sm:$0xf] %v6770_v44  ;;  %v6764_v33 = vsel %vm12607_vm5, %v6657_v54, %v6763_v21  ;;  %v6818_v35 = vrot.slane %v6817_v63, 4 }
 0x580   :  { %v6678_v52 = vor.u32 %v6676_v15, %v6675_v16  ;;  %v6898_v60 = vsel %vm12736_vm10, %v6826_v10, %v6897_v46  ;;  %6765 = vst [vmem:[#allocation2 + $0x3c] sm:$0xf] %v6764_v33  ;;  %v6819_v23 = vrot.slane %v6659_v39, 4  ;;  %v6694_v61 = vshrl.u32 %v9947_v42, 16  ;;  %v6766_v28 = vld [vmem:[#allocation2 + $0x48] sm:$0xf] }
 0x581   :  { %v6829_v17 = vor.u32 %v6828_v7, %v6827_v12  ;;  %6899 = vst [vmem:[#allocation2 + $0x5c] sm:$0xf] %v6898_v60  ;;  %v6892_v58 = vsel %vm12736_vm10, %v6818_v35, %v6891_v8  ;;  %v6664_v19 = vor.u32 %v6662_v27, %v6661_v62  ;;  %v6820_v25 = vrot.slane %v6662_v27, 5  ;;  %v6900_v15 = vld [vmem:[#allocation2 + $0x68] sm:$0xf] }
 0x582   :  { %v6773_v40 = vsel %vm12607_vm5, %v6678_v52, %v6772_v18  ;;  %6893 = vst [vmem:[#allocation2 + $0x44] sm:$0xf] %v6892_v58  ;;  %v6696_v26 = vrot.slane %v6694_v61, 7  ;;  %v6697_v55 = vshll.u32 %v9947_v42, 16  ;;  %v6839_v29 = vrot.slane %v6694_v61, 4 }
 0x583   :  { %v6830_v24 = vrot.slane %v6829_v17, 4  ;;  %6774 = vst [vmem:[#allocation2 + $0x60] sm:$0xf] %v6773_v40  ;;  %v6767_v39 = vsel %vm12607_vm5, %v6664_v19, %v6766_v28  ;;  %v6821_v46 = vor.u32 %v6820_v25, %v6819_v23  ;;  %v6535_v54 = vmax.f32 %v13797_v32, 0.0  ;;  %v6781_v10 = vld [vmem:[#allocation2 + $0x9c] sm:$0xf] }
 0x584   :  { %v6522_v21 = vadd.f32 %v13792_v57, %v13757_v31  ;;  %6768 = vst [vmem:[#allocation2 + $0x48] sm:$0xf] %v6767_v39  ;;  %v6699_v16 = vor.u32 %v6697_v55, %v6696_v26  ;;  %v6840_v12 = vrot.slane %v6697_v55, 5  ;;  %v11564_v42 = vadd.f32 %v13734_v48, %v13780_v56  ;;  %v6894_v62 = vld [vmem:[#allocation2 + $0x50] sm:$0xf] }
 0x585   :  { %v6901_v63 = vsel %vm12736_vm10, %v6830_v24, %v6900_v15  ;;  %v6822_v44 = vrot.slane %v6821_v46, 4  ;;  %v9945_v8 = vpack.c.bf16 %v6535_v54, %v6535_v54  ;;  %v11567_v32 = vadd.f32 %v13749_v38, %v13799_v41  ;;  %v6909_v23 = vld [vmem:[#allocation2 + $0xa4] sm:$0xf] }
 0x586   :  { %6902 = vst [vmem:[#allocation2 + $0x68] sm:$0xf] %v6901_v63  ;;  %v6538_v7 = vmax.f32 %v6522_v21, 0.0  ;;  %v6782_v57 = vsel %vm12607_vm5, %v6699_v16, %v6781_v10  ;;  %v6841_v33 = vor.u32 %v6840_v12, %v6839_v29  ;;  %v6520_v35 = vadd.f32 %v11564_v42, %v13757_v31  ;;  %v6775_v26 = vld [vmem:[#allocation2 + $0x84] sm:$0xf]  ;;  %v6941_v37 = vld [vmem:[#allocation2 + $0x54] sm:$0xff] }
 0x587   :  { %v11570_v52 = vadd.f32 %v13743_v20, %v13801_v2  ;;  %v6895_v48 = vsel %vm12736_vm10, %v6822_v44, %v6894_v62  ;;  %6783 = vst [vmem:[#allocation2 + $0x9c] sm:$0xf] %v6782_v57  ;;  %v6680_v56 = vshrl.u32 %v9945_v8, 16  ;;  %v6683_v18 = vshll.u32 %v9945_v8, 16  ;;  %6615 = vst [vmem:[#allocation2 + $0x88] sm:$0xf] %v9945_v8 }
 0x588   :  { %v9948_v27 = vpack.c.bf16 %v6538_v7, %v6538_v7  ;;  %6896 = vst [vmem:[#allocation2 + $0x50] sm:$0xf] %v6895_v48  ;;  %v6842_v38 = vrot.slane %v6841_v33, 4  ;;  %v6536_v41 = vmax.f32 %v6520_v35, 0.0  ;;  %v6525_v60 = vadd.f32 %v11567_v32, %v13757_v31  ;;  %v6903_v12 = vld [vmem:[#allocation2 + $0x8c] sm:$0xf] }
 0x589   :  { %v6523_v17 = vadd.f32 %v11570_v52, %v13757_v31  ;;  %v6682_v61 = vrot.slane %v6680_v56, 7  ;;  %v6831_v58 = vrot.slane %v6680_v56, 4  ;;  %v6832_v40 = vrot.slane %v6683_v18, 5  ;;  %v6784_v44 = vld [vmem:[#allocation2 + $0xa8] sm:$0xf] }
 0x58a   :  { %v6701_v20 = vshrl.u32 %v9948_v27, 16  ;;  %6618 = vst [vmem:[#allocation2 + $0xac] sm:$0xf] %v9948_v27  ;;  %v6910_v2 = vsel %vm12736_vm10, %v6842_v38, %v6909_v23  ;;  %v6704_v19 = vshll.u32 %v9948_v27, 16  ;;  %v9946_v28 = vpack.c.bf16 %v6536_v41, %v6536_v41  ;;  %v6912_v35 = vld [vmem:[#allocation2 + $0xb0] sm:$0xf] }
 0x58b   :  { %v6541_v25 = vmax.f32 %v6525_v60, 0.0  ;;  %6911 = vst [vmem:[#allocation2 + $0xa4] sm:$0xf] %v6910_v2  ;;  %v6685_v24 = vor.u32 %v6683_v18, %v6682_v61  ;;  %v6833_v55 = vor.u32 %v6832_v40, %v6831_v58  ;;  %v6539_v10 = vmax.f32 %v6523_v17, 0.0  ;;  %v6778_v27 = vld [vmem:[#allocation2 + $0x90] sm:$0xf] }
 0x58c   :  { %v6703_v29 = vrot.slane %v6701_v20, 7  ;;  %v6843_v15 = vrot.slane %v6701_v20, 4  ;;  %v6844_v39 = vrot.slane %v6704_v19, 5  ;;  %v6687_v46 = vshrl.u32 %v9946_v28, 16  ;;  %6616 = vst [vmem:[#allocation2 + $0x94] sm:$0xf] %v9946_v28 }
 0x58d   :  { %v6690_v54 = vshll.u32 %v9946_v28, 16  ;;  %v9951_v21 = vpack.c.bf16 %v6541_v25, %v6541_v25  ;;  %v6776_v63 = vsel %vm12607_vm5, %v6685_v24, %v6775_v26  ;;  %v6834_v16 = vrot.slane %v6833_v55, 4  ;;  %v6906_v60 = vld [vmem:[#allocation2 + $0x98] sm:$0xf]  ;;  %v6793_v25 = vld [vmem:[#allocation2 + $0xcc] sm:$0xf] }
 0x58e   :  { %v6706_v42 = vor.u32 %v6704_v19, %v6703_v29  ;;  %6777 = vst [vmem:[#allocation2 + $0x84] sm:$0xf] %v6776_v63  ;;  %v6845_v8 = vor.u32 %v6844_v39, %v6843_v15  ;;  %v6689_v7 = vrot.slane %v6687_v46, 7  ;;  %v6835_v32 = vrot.slane %v6687_v46, 4  ;;  %v6929_v29 = vld [vmem:[#allocation2 + $0xc] sm:$0xff]  ;;  %v7009_v46 = vld [vmem:[#allocation2 + $0x18] sm:$0xff] }
 0x58f   :  { %v6836_v62 = vrot.slane %v6690_v54, 5  ;;  %6621 = vst [vmem:[#allocation2 + $0xd0] sm:$0xf] %v9951_v21  ;;  %v6904_v57 = vsel %vm12736_vm10, %v6834_v16, %v6903_v12  ;;  %v6722_v52 = vshrl.u32 %v9951_v21, 16  ;;  %v6725_v48 = vshll.u32 %v9951_v21, 16 }
 0x590   :  { %v6785_v33 = vsel %vm12607_vm5, %v6706_v42, %v6784_v44  ;;  %6905 = vst [vmem:[#allocation2 + $0x8c] sm:$0xf] %v6904_v57  ;;  %v6846_v56 = vrot.slane %v6845_v8, 4  ;;  %v6692_v18 = vor.u32 %v6690_v54, %v6689_v7  ;;  %v9949_v41 = vpack.c.bf16 %v6539_v10, %v6539_v10  ;;  %v6921_v63 = vld [vmem:[#allocation2 + $0xd4] sm:$0xf]  ;;  %v13859_v8 = vld [vmem:[#allocation2] sm:$0xff] }
 0x591   :  { %6786 = vst [vmem:[#allocation2 + $0xa8] sm:$0xf] %v6785_v33  ;;  %v6837_v38 = vor.u32 %v6836_v62, %v6835_v32  ;;  %v6724_v17 = vrot.slane %v6722_v52, 7  ;;  %v6855_v23 = vrot.slane %v6722_v52, 4  ;;  %v6856_v61 = vrot.slane %v6725_v48, 5 }
 0x592   :  { %v11573_v58 = vadd.f32 %v13752_v36, %v13803_v30  ;;  %v6913_v40 = vsel %vm12736_vm10, %v6846_v56, %v6912_v35  ;;  %v6779_v20 = vsel %vm12607_vm5, %v6692_v18, %v6778_v27  ;;  %v6708_v19 = vshrl.u32 %v9949_v41, 16  ;;  %6619 = vst [vmem:[#allocation2 + $0xb8] sm:$0xf] %v9949_v41  ;;  %v6787_v44 = vld [vmem:[#allocation2 + $0xb4] sm:$0xf] }
 0x593   :  { %v6838_v2 = vrot.slane %v6837_v38, 4  ;;  %6914 = vst [vmem:[#allocation2 + $0xb0] sm:$0xf] %v6913_v40  ;;  %6780 = vst [vmem:[#allocation2 + $0x90] sm:$0xf] %v6779_v20  ;;  %v6727_v28 = vor.u32 %v6725_v48, %v6724_v17  ;;  %v6857_v24 = vor.u32 %v6856_v61, %v6855_v23  ;;  %v6711_v26 = vshll.u32 %v9949_v41, 16 }
 0x594   :  { %v6526_v55 = vadd.f32 %v11573_v58, %v13757_v31  ;;  %v6710_v30 = vrot.slane %v6708_v19, 7  ;;  %v6847_v15 = vrot.slane %v6708_v19, 4  ;;  %v11576_v39 = vadd.f32 %v13746_v0, %v13805_v43  ;;  %v13863_v43 = vld [vmem:[#allocation2 + $0x24] sm:$0xff]  ;;  %v13867_v35 = vld [vmem:[#allocation2 + $0x30] sm:$0xff]  ;;  %v12188_v41 = vld [vmem:[#allocation11 + $0x148] sm:$0xff]  }
 0x595   :  { %v6907_v36 = vsel %vm12736_vm10, %v6838_v2, %v6906_v60  ;;  %v6794_v54 = vsel %vm12607_vm5, %v6727_v28, %v6793_v25  ;;  %v6858_v21 = vrot.slane %v6857_v24, 4  ;;  %v6848_v16 = vrot.slane %v6711_v26, 5  ;;  %v6915_v60 = vld [vmem:[#allocation2 + $0xbc] sm:$0xf]  ;;  %v6796_v25 = vld [vmem:[#allocation2 + $0xd8] sm:$0xf] }
 0x596   :  { %6908 = vst [vmem:[#allocation2 + $0x98] sm:$0xf] %v6907_v36  ;;  %v6542_v12 = vmax.f32 %v6526_v55, 0.0  ;;  %6795 = vst [vmem:[#allocation2 + $0xcc] sm:$0xf] %v6794_v54  ;;  %v6713_v42 = vor.u32 %v6711_v26, %v6710_v30  ;;  %v6524_v10 = vadd.f32 %v11576_v39, %v13757_v31  ;;  %v9744_v7 = vcombine.low %v13859_v8, %v6929_v29  ;;  %v6937_v26 = vld [vmem:[#allocation2 + $0x3c] sm:$0xff] }
 0x597   :  { %v9745_v0 = vcombine.high %v13859_v8, %v6929_v29  ;;  %v6922_v32 = vsel %vm12736_vm10, %v6858_v21, %v6921_v63  ;;  %v6849_v62 = vor.u32 %v6848_v16, %v6847_v15  ;;  %v9696_v33 = vcombine.low %v6929_v29, %v7009_v46  ;;  %v12192_v30 = vld [vmem:[#allocation11 + $0x150] sm:$0xff]   ;;  %v7017_v21 = vld [vmem:[#allocation2 + $0x48] sm:$0xff] }
 0x598   :  { %v9952_v57 = vpack.c.bf16 %v6542_v12, %v6542_v12  ;;  %6923 = vst [vmem:[#allocation2 + $0xd4] sm:$0xf] %v6922_v32  ;;  %v6788_v31 = vsel %vm12607_vm5, %v6713_v42, %v6787_v44  ;;  %v6540_v52 = vmax.f32 %v6524_v10, 0.0  ;;  %v9697_v48 = vcombine.high %v6929_v29, %v7009_v46  ;;  %v6924_v63 = vld [vmem:[#allocation2 + $0xe0] sm:$0xf] }
 0x599   :  { %7858 = vmatprep.mubr.bf16.mxu0 %v9745_v0  ;;  %v13872_v56 = vcombine.high %v7009_v46, %v13863_v43  ;;  %v6850_v18 = vrot.slane %v6849_v62, 4  ;;  %6789 = vst [vmem:[#allocation2 + $0xb4] sm:$0xf] %v6788_v31  ;;  %v9700_v23 = vcombine.high %v13863_v43, %v13867_v35  ;;  %v13883_v54 = vcombine.low %v7009_v46, %v13863_v43  ;;  %v6790_v44 = vld [vmem:[#allocation2 + $0xc0] sm:$0xf]  ;;  %v12194_v46 = vld [vmem:[#allocation11 + $0x158] sm:$0xff]  }
 0x59a   :  { %v6729_v27 = vshrl.u32 %v9952_v57, 16  ;;  %v6732_v38 = vshll.u32 %v9952_v57, 16  ;;  %6622 = vst [vmem:[#allocation2 + $0xdc] sm:$0xf] %v9952_v57  ;;  %7859 = vmatmul.mubr.bf16.vlgmr.msra.gmra.mrb[192].mxu0 %v9744_v7  ;;  %v9950_v17 = vpack.c.bf16 %v6540_v52, %v6540_v52  ;;  %7392 = vmatprep.mubr.bf16.mxu1 %v9697_v48  ;;  %v13886_v12 = vcombine.high %v13867_v35, %v6937_v26  ;;  %v6918_v62 = vld [vmem:[#allocation2 + $0xc8] sm:$0xf] }
 0x59b   :  { %7866 = vmatprep.mubr.bf16.mxu0 %v13872_v56  ;;  %v6916_v61 = vsel %vm12736_vm10, %v6850_v18, %v6915_v60  ;;  %7393 = vmatmul.mubr.bf16.vlgmr.msra.gmra.mrb[144].mxu1 %v9696_v33  ;;  %v9699_v10 = vcombine.low %v13863_v43, %v13867_v35  ;;  %v9703_v32 = vcombine.high %v6937_v26, %v7017_v21  ;;  %v12198_v43 = vld [vmem:[#allocation11 + $0x160] sm:$0xff]   ;;  %v13901_v31 = vld [vmem:[#allocation2 + $0x60] sm:$0xff] }
 0x59c   :  { %v6731_v58 = vrot.slane %v6729_v27, 7  ;;  %v6859_v40 = vrot.slane %v6729_v27, 4  ;;  %v6860_v20 = vrot.slane %v6732_v38, 5  ;;  %6917 = vst [vmem:[#allocation2 + $0xbc] sm:$0xf] %v6916_v61  ;;  %v6715_v2 = vshrl.u32 %v9950_v17, 16  ;;  %7400 = vmatprep.mubr.bf16.mxu1 %v9700_v23  ;;  %11242 = vmatpush3.bf16.msra.mxu1 %v13723_v34 }
 0x59d   :  { %v6718_v19 = vshll.u32 %v9950_v17, 16  ;;  %6620 = vst [vmem:[#allocation2 + $0xc4] sm:$0xf] %v9950_v17  ;;  %11243 = vmatprep.subr.bf16.mxu1 %v12188_v41  ;;  %v13899_v33 = vcombine.low %v13867_v35, %v6937_v26  ;;  %v13903_v52 = vcombine.high %v7017_v21, %v6941_v37  ;;  %v9702_v48 = vcombine.low %v6937_v26, %v7017_v21  ;;  %v6945_v35 = vld [vmem:[#allocation2 + $0x84] sm:$0xff] }
 0x59e   :  { %v6734_v28 = vor.u32 %v6732_v38, %v6731_v58  ;;  %v6861_v24 = vor.u32 %v6860_v20, %v6859_v40  ;;  %v6717_v55 = vrot.slane %v6715_v2, 7  ;;  %v6851_v29 = vrot.slane %v6715_v2, 4  ;;  %v12203_v27 = vld [vmem:[#allocation11 + $0x170] sm:$0xff]   ;;  %v12205_v23 = vld [vmem:[#allocation11 + $0x178] sm:$0xff]   ;;  %v12207_v58 = vld [vmem:[#allocation11 + $0x80] sm:$0xff]  }
 0x59f   :  { %v6852_v36 = vrot.slane %v6718_v19, 5  ;;  %v9706_v18 = vcombine.high %v6941_v37, %v13901_v31  ;;  %v13908_v38 = vcombine.low %v7017_v21, %v6941_v37  ;;  %v9757_v60 = vcombine.high %v13859_v8, %v6945_v35  ;;  %v6949_v20 = vld [vmem:[#allocation2 + $0x9c] sm:$0xff]  ;;  %v7029_v2 = vld [vmem:[#allocation2 + $0xa8] sm:$0xff] }
 0x5a0   :  { %v6797_v15 = vsel %vm12607_vm5, %v6734_v28, %v6796_v25  ;;  %v6862_v39 = vrot.slane %v6861_v24, 4  ;;  %v6720_v34 = vor.u32 %v6718_v19, %v6717_v55  ;;  %11244 = vmatpush3.bf16.msra.mxu1 %v12188_v41  ;;  %v7025_v41 = vld [vmem:[#allocation2 + $0x90] sm:$0xff]  ;;  %v9705_v17 = vcombine.low %v6941_v37, %v13901_v31 }
 0x5a1   :  { %6798 = vst [vmem:[#allocation2 + $0xd8] sm:$0xf] %v6797_v15  ;;  %v6853_v16 = vor.u32 %v6852_v36, %v6851_v29  ;;  %11245 = vmatprep.subr.bf16.mxu1 %v12192_v30  ;;  %v9709_v61 = vcombine.high %v6945_v35, %v7025_v41  ;;  %v9756_v40 = vcombine.low %v13859_v8, %v6945_v35  ;;  %v6953_v24 = vld [vmem:[#allocation2 + $0xb4] sm:$0xff] }
 0x5a2   :  { %v6925_v42 = vsel %vm12736_vm10, %v6862_v39, %v6924_v63  ;;  %7867 = vmatmul.mubr.bf16.gmra.mrb[196].mxu0 %v13883_v54  ;;  %v6791_v7 = vsel %vm12607_vm5, %v6720_v34, %v6790_v44  ;;  %v13914_v19 = vcombine.high %v7025_v41, %v6949_v20  ;;  %v9708_v28 = vcombine.low %v6945_v35, %v7025_v41  ;;  %v6957_v39 = vld [vmem:[#allocation2 + $0xcc] sm:$0xff]  ;;  %v12219_v35 = vld [vmem:[#allocation11 + $0xb0] sm:$0xff]  }
 0x5a3   :  { %6926 = vst [vmem:[#allocation2 + $0xe0] sm:$0xf] %v6925_v42  ;;  %v6854_v0 = vrot.slane %v6853_v16, 4  ;;  %7874 = vmatprep.mubr.bf16.mxu0 %v13886_v12  ;;  %6792 = vst [vmem:[#allocation2 + $0xc0] sm:$0xf] %v6791_v7  ;;  %7401 = vmatmul.mubr.bf16.gmra.mrb[148].mxu1 %v9699_v10  ;;  %v9712_v25 = vcombine.high %v6949_v20, %v7029_v2  ;;  %v13917_v26 = vcombine.low %v7025_v41, %v6949_v20  ;;  %v12209_v7 = vld [vmem:[#allocation11 + $0x88] sm:$0xff]  }
 0x5a4   :  { %7408 = vmatprep.mubr.bf16.mxu1 %v9703_v32  ;;  %11246 = vmatpush3.bf16.msra.mxu1 %v12192_v30  ;;  %v13919_v29 = vcombine.high %v7029_v2, %v6953_v24  ;;  %v9711_v36 = vcombine.low %v6949_v20, %v7029_v2  ;;  %v13923_v15 = vcombine.low %v7029_v2, %v6953_v24  ;;  %v12204_v10 = vld [vmem:[#allocation2 + $0x14] ss:$12 sps:$4 sm:$0xff]   ;;  %v12221_v41 = vld [vmem:[#allocation11 + $0xb8] sm:$0xff]   ;;  %v12227_v20 = vld [vmem:[#allocation11 + $0x188] sm:$0xff]  }
 0x5a5   :  { %v6919_v57 = vsel %vm12736_vm10, %v6854_v0, %v6918_v62  ;;  %11247 = vmatprep.subr.bf16.mxu1 %v12194_v46  ;;  %v12208_v0 = vld [vmem:[#allocation2 + $0x44] ss:$12 sps:$4 sm:$0xff]   ;;  %v12210_v62 = vld [vmem:[#allocation2 + $0x5c] ss:$12 sps:$4 sm:$0xff]  }
 0x5a6   :  { %6920 = vst [vmem:[#allocation2 + $0xc8] sm:$0xf] %v6919_v57  ;;  %v12211_v32 = vld [vmem:[#allocation11 + $0x90] sm:$0xff]   ;;  %v12213_v57 = vld [vmem:[#allocation11 + $0x98] sm:$0xff]   ;;  %v12215_v37 = vld [vmem:[#allocation11 + $0xa0] sm:$0xff]  }
 0x5a7   :  { %v12229_v2 = vld [vmem:[#allocation11 + $0x1d0] sm:$0xff]  }
 0x5a8   :  { %11248 = vmatpush3.bf16.msra.mxu1 %v12194_v46  ;;  %v13925_v21 = vld [vmem:[#allocation2 + $0xd8] sm:$0xff] }
 0x5a9   :  { %11249 = vmatprep.subr.bf16.mxu1 %v12198_v43  ;;  %v9718_v16 = vcombine.high %v6957_v39, %v13925_v21  ;;  %v9717_v44 = vcombine.low %v6957_v39, %v13925_v21  ;;  %v12206_v46 = vld [vmem:[#allocation2 + $0x2c] ss:$12 sps:$4 sm:$0xff]  }
 0x5aa   :  { %7875 = vmatmul.mubr.bf16.gmra.mrb[200].mxu0 %v13899_v33  ;;  %v7033_v55 = vld [vmem:[#allocation2 + $0xc0] sm:$0xff] }
 0x5ab   :  { %7882 = vmatprep.mubr.bf16.mxu0 %v13903_v52  ;;  %7409 = vmatmul.mubr.bf16.gmra.mrb[152].mxu1 %v9702_v48  ;;  %v9715_v30 = vcombine.high %v6953_v24, %v7033_v55  ;;  %v13927_v63 = vcombine.high %v7033_v55, %v6957_v39  ;;  %v9714_v34 = vcombine.low %v6953_v24, %v7033_v55  ;;  %v12214_v48 = vld [vmem:[#allocation2 + $0xa4] ss:$12 sps:$4 sm:$0xff]   ;;  %v12232_v24 = vld [vmem:[#allocation11 + $0x1d8] sm:$0xff]  }
 0x5ac   :  { %7416 = vmatprep.mubr.bf16.mxu1 %v9706_v18  ;;  %11250 = vmatpush3.bf16.msra.mxu1 %v12198_v43  ;;  %v13932_v42 = vcombine.low %v7033_v55, %v6957_v39  ;;  %v12212_v43 = vld [vmem:[#allocation2 + $0x8c] ss:$12 sps:$4 sm:$0xff]   ;;  %v12237_v39 = vld [vmem:[#allocation11 + $0x1a0] sm:$0xff]  }
 0x5ad   :  { %11251 = vmatprep.subr.bf16.mxu1 %v12200_v4  ;;  %v12216_v18 = vld [vmem:[#allocation2 + $0xbc] ss:$12 sps:$4 sm:$0xff]   ;;  %v12230_v55 = vld [vmem:[#allocation2 + $0x80] ss:$12 sps:$4 sm:$0xff]  }
 0x5b0   :  { %11252 = vmatpush3.bf16.msra.mxu1 %v12200_v4  ;;  %v12217_v4 = vld [vmem:[#allocation11 + $0xa8] sm:$0xff]  }
 0x5b1   :  { %11253 = vmatprep.subr.bf16.mxu1 %v12203_v27 }
 0x5b2   :  { %7883 = vmatmul.mubr.bf16.gmra.mrb[204].mxu0 %v13908_v38 }
 0x5b3   :  { %7890 = vmatprep.mubr.bf16.mxu0 %v9757_v60  ;;  %7417 = vmatmul.mubr.bf16.gmra.mrb[156].mxu1 %v9705_v17  ;;  %v12220_v60 = vld [vmem:[#allocation2 + $0x8] ss:$12 sps:$4 sm:$0xff]  }
 0x5b4   :  { %7424 = vmatprep.mubr.bf16.mxu1 %v9709_v61  ;;  %11254 = vmatpush3.bf16.msra.mxu1 %v12203_v27  ;;  %v12218_v27 = vld [vmem:[#allocation2 + $0xd4] ss:$12 sps:$4 sm:$0xff]  }
 0x5b5   :  { %11255 = vmatprep.subr.bf16.mxu1 %v12205_v23  ;;  %v12223_v17 = vld [vmem:[#allocation11 + $0x1c0] sm:$0xff]   ;;  %v12222_v61 = vld [vmem:[#allocation2 + $0x20] ss:$12 sps:$4 sm:$0xff]  }
 0x5b8   :  { %11256 = vmatpush3.bf16.msra.mxu1 %v12205_v23  ;;  %v12225_v23 = vld [vmem:[#allocation11 + $0x180] sm:$0xff]  }
 0x5b9   :  { %11273 = vmatprep.subr.bf16.mxu1 %v12207_v58 }
 0x5ba   :  { %7891 = vmatmul.mubr.bf16.gmra.mrb[208].mxu0 %v9756_v40  ;;  %v12224_v40 = vld [vmem:[#allocation2 + $0x38] ss:$12 sps:$4 sm:$0xff]  }
 0x5bb   :  { %7898 = vmatprep.mubr.bf16.mxu0 %v13914_v19  ;;  %7425 = vmatmul.mubr.bf16.gmra.mrb[160].mxu1 %v9708_v28  ;;  %v12231_v28 = vld [vmem:[#allocation11 + $0x190] sm:$0xff]  }
 0x5bc   :  { %7432 = vmatprep.mubr.bf16.mxu1 %v9712_v25  ;;  %v12228_v25 = vld [vmem:[#allocation2 + $0x50] ss:$12 sps:$4 sm:$0xff]  }
 0x5c2   :  { %7899 = vmatmul.mubr.bf16.gmra.mrb[212].mxu0 %v13917_v26 }
 0x5c3   :  { %7906 = vmatprep.mubr.bf16.mxu0 %v13919_v29  ;;  %7433 = vmatmul.mubr.bf16.gmra.mrb[164].mxu1 %v9711_v36  ;;  %v12233_v36 = vld [vmem:[#allocation11 + $0x198] sm:$0xff]  }
 0x5c4   :  { %7440 = vmatprep.mubr.bf16.mxu1 %v9715_v30  ;;  %v12235_v30 = vld [vmem:[#allocation11 + $0x1e0] sm:$0xff]  }
 0x5ca   :  { %7907 = vmatmul.mubr.bf16.gmra.mrb[216].mxu0 %v13923_v15 }
 0x5cb   :  { %7914 = vmatprep.mubr.bf16.mxu0 %v13927_v63  ;;  %7441 = vmatmul.mubr.bf16.gmra.mrb[168].mxu1 %v9714_v34  ;;  %v12234_v34 = vld [vmem:[#allocation2 + $0x98] ss:$12 sps:$4 sm:$0xff]  }
 0x5cc   :  { %7448 = vmatprep.mubr.bf16.mxu1 %v9718_v16  ;;  %v12238_v16 = vld [vmem:[#allocation11 + $0x1e8] sm:$0xff]  }
 0x5d2   :  { %7915 = vmatmul.mubr.bf16.gmra.mrb[220].mxu0 %v13932_v42 }
 0x5d3   :  { %7449 = vmatmul.mubr.bf16.gmra.mrb[172].mxu1 %v9717_v44  ;;  %v12236_v44 = vld [vmem:[#allocation2 + $0xb0] ss:$12 sps:$4 sm:$0xff]  }
 0x5d4   :  { %11257 = vmatprep.mubr.bf16.mxu1 %v12204_v10  ;;  %v12239_v10 = vld [vmem:[#allocation11 + $0x1a8] sm:$0xff]  }
 0x5db   :  { %11258 = vmatmul.mubr.bf16.vlgmr.msra.gmra.mrb[176].mxu1 %v12206_v46  ;;  %v12241_v46 = vld [vmem:[#allocation11 + $0x1f0] sm:$0xff]  }
 0x5dc   :  { %11261 = vmatprep.mubr.bf16.mxu1 %v12208_v0  ;;  %11274 = vmatpush3.bf16.msra.mxu1 %v12207_v58  ;;  %v12226_v58 = vld [vmem:[#allocation11 + $0x1c8] sm:$0xff]   ;;  %v12240_v0 = vld [vmem:[#allocation2 + $0xc8] ss:$12 sps:$4 sm:$0xff]  }
 0x5dd   :  { %11275 = vmatprep.subr.bf16.mxu1 %v12209_v7 }
 0x5e0   :  { %11276 = vmatpush3.bf16.msra.mxu1 %v12209_v7  ;;  %v12242_v7 = vld [vmem:[#allocation11 + $0x1b0] sm:$0xff]  }
 0x5e1   :  { %11277 = vmatprep.subr.bf16.mxu1 %v12211_v32 }
 0x5e3   :  { %11262 = vmatmul.mubr.bf16.gmra.mrb[180].mxu1 %v12210_v62  ;;  %v12244_v62 = vld [vmem:[#allocation11 + $0x1b8] sm:$0xff]  }
 0x5e4   :  { %11265 = vmatprep.mubr.bf16.mxu1 %v12212_v43  ;;  %11278 = vmatpush3.bf16.msra.mxu1 %v12211_v32  ;;  %v12243_v32 = vld [vmem:[#allocation11 + $0x1f8] sm:$0xff]   ;;  %v12246_v43 = vld [vmem:[#allocation11 + $0x208] sm:$0xff]  }
 0x5e5   :  { %11279 = vmatprep.subr.bf16.mxu1 %v12213_v57 }
 0x5e8   :  { %11280 = vmatpush3.bf16.msra.mxu1 %v12213_v57  ;;  %v12245_v57 = vld [vmem:[#allocation11 + $0x200] sm:$0xff]  }
 0x5e9   :  { %11281 = vmatprep.subr.bf16.mxu1 %v12215_v37 }
 0x5eb   :  { %11266 = vmatmul.mubr.bf16.gmra.mrb[184].mxu1 %v12214_v48  ;;  %v12248_v48 = vld [vmem:[#allocation11 + $0x218] sm:$0xff]  }
 0x5ec   :  { %11269 = vmatprep.mubr.bf16.mxu1 %v12216_v18  ;;  %11282 = vmatpush3.bf16.msra.mxu1 %v12215_v37  ;;  %v12247_v37 = vld [vmem:[#allocation11 + $0x210] sm:$0xff]  }
 0x5ed   :  { %11283 = vmatprep.subr.bf16.mxu1 %v12217_v4  ;;  %v12254_v18 = vld [vmem:[#allocation2 + $0x38] ss:$12 sps:$4 sm:$0xff]  }
 0x5f0   :  { %11284 = vmatpush3.bf16.msra.mxu1 %v12217_v4  ;;  %v12250_v4 = vld [vmem:[#allocation11 + $0x228] sm:$0xff]  }
 0x5f1   :  { %11285 = vmatprep.subr.bf16.mxu1 %v12219_v35 }
 0x5f3   :  { %11270 = vmatmul.mubr.bf16.gmra.mrb[188].mxu1 %v12218_v27 }
 0x5f4   :  { %11286 = vmatpush3.bf16.msra.mxu1 %v12219_v35  ;;  %11289 = vmatprep.mubr.bf16.mxu1 %v12220_v60  ;;  %v12259_v35 = vld [vmem:[#allocation2 + $0xc8] ss:$12 sps:$4 sm:$0xff]  }
 0x5f5   :  { %11287 = vmatprep.subr.bf16.mxu1 %v12221_v41 }
 0x5f8   :  { %11288 = vmatpush3.bf16.msra.mxu1 %v12221_v41 }
 0x5f9   :  { %10833 = vmatprep.subr.bf16.mxu1 %v12223_v17 }
 0x5fb   :  { %11290 = vmatmul.mubr.bf16.vlgmr.msra.gmra.mrb[176].mxu1 %v12222_v61 }
 0x5fc   :  { %11293 = vmatprep.mubr.bf16.mxu1 %v12224_v40  ;;  %10834 = vmatpush3.bf16.msra.mxu1 %v12225_v23 }
 0x5fd   :  { %10835 = vmatprep.subr.bf16.mxu1 %v12226_v58 }
 0x600   :  { %10836 = vmatpush3.bf16.msra.mxu1 %v12227_v20  ;;  %v12260_v20 = vld [vmem:[#allocation2 + $0xe0] ss:$12 sps:$4 sm:$0xff]  }
 0x601   :  { %10837 = vmatprep.subr.bf16.mxu1 %v12229_v2 }
 0x603   :  { %11294 = vmatmul.mubr.bf16.gmra.mrb[180].mxu1 %v12228_v25 }
 0x604   :  { %11297 = vmatprep.mubr.bf16.mxu1 %v12230_v55  ;;  %10838 = vmatpush3.bf16.msra.mxu1 %v12231_v28 }
 0x605   :  { %10839 = vmatprep.subr.bf16.mxu1 %v12232_v24 }
 0x608   :  { %10840 = vmatpush3.bf16.msra.mxu1 %v12233_v36 }
 0x609   :  { %10841 = vmatprep.subr.bf16.mxu1 %v12235_v30 }
 0x60b   :  { %11298 = vmatmul.mubr.bf16.gmra.mrb[184].mxu1 %v12234_v34 }
 0x60c   :  { %11301 = vmatprep.mubr.bf16.mxu1 %v12236_v44  ;;  %10842 = vmatpush3.bf16.msra.mxu1 %v12237_v39 }
 0x60d   :  { %10843 = vmatprep.subr.bf16.mxu1 %v12238_v16 }
 0x610   :  { %10844 = vmatpush3.bf16.msra.mxu1 %v12239_v10 }
 0x611   :  { %10845 = vmatprep.subr.bf16.mxu1 %v12241_v46 }
 0x613   :  { %11302 = vmatmul.mubr.bf16.gmra.mrb[188].mxu1 %v12240_v0 }
 0x614   :  { %10846 = vmatpush3.bf16.msra.mxu1 %v12242_v7  ;;  %8405 = vmatprep.mubr.bf16.mxu1 %v13872_v56  ;;  %v12249_v56 = vld [vmem:[#allocation11 + $0x220] sm:$0xff]  }
 0x615   :  { %10847 = vmatprep.subr.bf16.mxu1 %v12243_v32 }
 0x618   :  { %10848 = vmatpush3.bf16.msra.mxu1 %v12244_v62 }
 0x619   :  { %11305 = vmatprep.subr.bf16.mxu1 %v12245_v57 }
 0x61b   :  { %8406 = vmatmul.mubr.bf16.vlgmr.msra.gmra.mrb[192].mxu1 %v13883_v54  ;;  %v9802_v54 = vcombine.high %v13901_v31, %v13859_v8 }
 0x61c   :  { %8413 = vmatprep.mubr.bf16.mxu1 %v13886_v12  ;;  %11306 = vmatpush3.bf16.msra.mxu1 %v12245_v57  ;;  %v12251_v12 = vld [vmem:[#allocation11 + $0x230] sm:$0xff]  }
 0x61d   :  { %11307 = vmatprep.subr.bf16.mxu1 %v12246_v43 }
 0x620   :  { %11308 = vmatpush3.bf16.msra.mxu1 %v12246_v43 }
 0x621   :  { %11309 = vmatprep.subr.bf16.mxu1 %v12247_v37 }
 0x623   :  { %8414 = vmatmul.mubr.bf16.gmra.mrb[196].mxu1 %v13899_v33  ;;  %v9801_v33 = vcombine.low %v13901_v31, %v13859_v8  ;;  %v9813_v31 = vcombine.low %v13925_v21, %v13859_v8 }
 0x624   :  { %8421 = vmatprep.mubr.bf16.mxu1 %v13903_v52  ;;  %11310 = vmatpush3.bf16.msra.mxu1 %v12247_v37  ;;  %v12253_v52 = vld [vmem:[#allocation11 + $0x238] sm:$0xff]  }
 0x625   :  { %11311 = vmatprep.subr.bf16.mxu1 %v12248_v48 }
 0x628   :  { %11312 = vmatpush3.bf16.msra.mxu1 %v12248_v48 }
 0x629   :  { %11313 = vmatprep.subr.bf16.mxu1 %v12249_v56 }
 0x62b   :  { %8422 = vmatmul.mubr.bf16.gmra.mrb[200].mxu1 %v13908_v38  ;;  %v9814_v38 = vcombine.high %v13925_v21, %v13859_v8 }
 0x62c   :  { %8429 = vmatprep.mubr.bf16.mxu1 %v9802_v54  ;;  %11314 = vmatpush3.bf16.msra.mxu1 %v12249_v56 }
 0x62d   :  { %11315 = vmatprep.subr.bf16.mxu1 %v12250_v4 }
 0x630   :  { %11316 = vmatpush3.bf16.msra.mxu1 %v12250_v4 }
 0x631   :  { %11317 = vmatprep.subr.bf16.mxu1 %v12251_v12 }
 0x633   :  { %8430 = vmatmul.mubr.bf16.gmra.mrb[204].mxu1 %v9801_v33 }
 0x634   :  { %8437 = vmatprep.mubr.bf16.mxu1 %v13914_v19  ;;  %11318 = vmatpush3.bf16.msra.mxu1 %v12251_v12  ;;  %v12252_v19 = vld [vmem:[#allocation2 + $0x20] ss:$12 sps:$4 sm:$0xff]  }
 0x635   :  { %11319 = vmatprep.subr.bf16.mxu1 %v12253_v52 }
 0x638   :  { %11320 = vmatpush3.bf16.msra.mxu1 %v12253_v52 }
 0x63b   :  { %8438 = vmatmul.mubr.bf16.gmra.mrb[208].mxu1 %v13917_v26  ;;  %v12255_v26 = vld [vmem:[#allocation2 + $0x50] ss:$12 sps:$4 sm:$0xff]  }
 0x63c   :  { %8445 = vmatprep.mubr.bf16.mxu1 %v13919_v29  ;;  %v12256_v29 = vld [vmem:[#allocation2 + $0x68] ss:$12 sps:$4 sm:$0xff]  }
 0x643   :  { %8446 = vmatmul.mubr.bf16.gmra.mrb[212].mxu1 %v13923_v15  ;;  %v12257_v15 = vld [vmem:[#allocation2 + $0x98] ss:$12 sps:$4 sm:$0xff]  }
 0x644   :  { %8453 = vmatprep.mubr.bf16.mxu1 %v13927_v63  ;;  %v12258_v63 = vld [vmem:[#allocation2 + $0xb0] ss:$12 sps:$4 sm:$0xff]  }
 0x64b   :  { %8454 = vmatmul.mubr.bf16.gmra.mrb[216].mxu1 %v13932_v42 }
 0x64c   :  { %8461 = vmatprep.mubr.bf16.mxu1 %v9814_v38 }
 0x653   :  { %8462 = vmatmul.mubr.bf16.gmra.mrb[220].mxu1 %v9813_v31 }
 0x654   :  { %11321 = vmatprep.mubr.bf16.mxu1 %v12252_v19 }
 0x65b   :  { %11322 = vmatmul.mubr.bf16.vlgmr.msra.gmra.mrb[176].mxu1 %v12254_v18 }
 0x65c   :  { %11325 = vmatprep.mubr.bf16.mxu1 %v12255_v26 }
 0x663   :  { %11326 = vmatmul.mubr.bf16.gmra.mrb[180].mxu1 %v12256_v29 }
 0x664   :  { %11329 = vmatprep.mubr.bf16.mxu1 %v12257_v15 }
 0x66b   :  { %11330 = vmatmul.mubr.bf16.gmra.mrb[184].mxu1 %v12258_v63 }
 0x66c   :  { %11333 = vmatprep.mubr.bf16.mxu1 %v12259_v35 }
 0x66d   :  { %v10769_v27 = vpop.f32.mrb[192].mxu0 }
 0x66e   :  { %v10770_v42 = vpop.f32.mrb[193].mxu0  ;;  %v10689_v60 = vpop.f32.mrb[144].mxu1 }
 0x66f   :  { %v10771_v41 = vadd.f32 %v10770_v42, %v10769_v27  ;;  %v10772_v8 = vpop.f32.mrb[194].mxu0  ;;  %v10690_v21 = vpop.f32.mrb[145].mxu1 }
 0x670   :  { %v10773_v17 = vpop.f32.mrb[195].mxu0  ;;  %v10691_v23 = vadd.f32 %v10690_v21, %v10689_v60  ;;  %v10692_v58 = vpop.f32.mrb[146].mxu1 }
 0x671   :  { %v10774_v61 = vadd.f32 %v10773_v17, %v10772_v8  ;;  %v10693_v40 = vpop.f32.mrb[147].mxu1 }
 0x672   :  { %v13956_v2 = vadd.f32 %v10771_v41, %v10691_v23  ;;  %v10694_v28 = vadd.f32 %v10693_v40, %v10692_v58 }
 0x673   :  { %11334 = vmatmul.mubr.bf16.gmra.mrb[188].mxu1 %v12260_v20 }
 0x674   :  { %v13958_v25 = vadd.f32 %v10774_v61, %v10694_v28 }
 0x675   :  { %v10775_v24 = vpop.f32.mrb[196].mxu0 }
 0x676   :  { %v10776_v55 = vpop.f32.mrb[197].mxu0  ;;  %v10695_v30 = vpop.f32.mrb[148].mxu1 }
 0x677   :  { %v10777_v36 = vadd.f32 %v10776_v55, %v10775_v24  ;;  %v10778_v39 = vpop.f32.mrb[198].mxu0  ;;  %v10696_v34 = vpop.f32.mrb[149].mxu1 }
 0x678   :  { %v10779_v16 = vpop.f32.mrb[199].mxu0  ;;  %v10697_v44 = vadd.f32 %v10696_v34, %v10695_v30  ;;  %v10698_v46 = vpop.f32.mrb[150].mxu1 }
 0x679   :  { %v10780_v10 = vadd.f32 %v10779_v16, %v10778_v39  ;;  %v10699_v7 = vpop.f32.mrb[151].mxu1 }
 0x67a   :  { %v13960_v0 = vadd.f32 %v10777_v36, %v10697_v44  ;;  %v10700_v32 = vadd.f32 %v10699_v7, %v10698_v46 }
 0x67c   :  { %v13962_v62 = vadd.f32 %v10780_v10, %v10700_v32 }
 0x67d   :  { %v10781_v57 = vpop.f32.mrb[200].mxu0 }
 0x67e   :  { %v10782_v43 = vpop.f32.mrb[201].mxu0  ;;  %v10701_v48 = vpop.f32.mrb[152].mxu1 }
 0x67f   :  { %v10783_v37 = vadd.f32 %v10782_v43, %v10781_v57  ;;  %v10784_v56 = vpop.f32.mrb[202].mxu0  ;;  %v10702_v4 = vpop.f32.mrb[153].mxu1 }
 0x680   :  { %v10785_v54 = vpop.f32.mrb[203].mxu0  ;;  %v10703_v12 = vadd.f32 %v10702_v4, %v10701_v48  ;;  %v10704_v52 = vpop.f32.mrb[154].mxu1 }
 0x681   :  { %v10786_v33 = vadd.f32 %v10785_v54, %v10784_v56  ;;  %v10705_v38 = vpop.f32.mrb[155].mxu1 }
 0x682   :  { %v13964_v31 = vadd.f32 %v10783_v37, %v10703_v12  ;;  %v10706_v19 = vadd.f32 %v10705_v38, %v10704_v52 }
 0x684   :  { %v13966_v18 = vadd.f32 %v10786_v33, %v10706_v19 }
 0x685   :  { %v10787_v26 = vpop.f32.mrb[204].mxu0 }
 0x686   :  { %v10788_v29 = vpop.f32.mrb[205].mxu0  ;;  %v10707_v63 = vpop.f32.mrb[156].mxu1 }
 0x687   :  { %v10789_v15 = vadd.f32 %v10788_v29, %v10787_v26  ;;  %v10790_v35 = vpop.f32.mrb[206].mxu0  ;;  %v10708_v27 = vpop.f32.mrb[157].mxu1 }
 0x688   :  { %v10791_v42 = vpop.f32.mrb[207].mxu0  ;;  %v10709_v41 = vadd.f32 %v10708_v27, %v10707_v63  ;;  %v10710_v8 = vpop.f32.mrb[158].mxu1 }
 0x689   :  { %v10792_v60 = vadd.f32 %v10791_v42, %v10790_v35  ;;  %v10711_v21 = vpop.f32.mrb[159].mxu1 }
 0x68a   :  { %v13968_v17 = vadd.f32 %v10789_v15, %v10709_v41  ;;  %v10712_v23 = vadd.f32 %v10711_v21, %v10710_v8 }
 0x68c   :  { %v13970_v61 = vadd.f32 %v10792_v60, %v10712_v23 }
 0x68d   :  { %v10793_v58 = vpop.f32.mrb[208].mxu0 }
 0x68e   :  { %v10794_v40 = vpop.f32.mrb[209].mxu0  ;;  %v10713_v28 = vpop.f32.mrb[160].mxu1 }
 0x68f   :  { %v10795_v20 = vadd.f32 %v10794_v40, %v10793_v58  ;;  %v10796_v24 = vpop.f32.mrb[210].mxu0  ;;  %v10714_v55 = vpop.f32.mrb[161].mxu1 }
 0x690   :  { %v10797_v36 = vpop.f32.mrb[211].mxu0  ;;  %v10715_v30 = vadd.f32 %v10714_v55, %v10713_v28  ;;  %v10716_v34 = vpop.f32.mrb[162].mxu1 }
 0x691   :  { %v10798_v39 = vadd.f32 %v10797_v36, %v10796_v24  ;;  %v10717_v16 = vpop.f32.mrb[163].mxu1 }
 0x692   :  { %v13972_v44 = vadd.f32 %v10795_v20, %v10715_v30  ;;  %v10718_v10 = vadd.f32 %v10717_v16, %v10716_v34 }
 0x694   :  { %v13974_v46 = vadd.f32 %v10798_v39, %v10718_v10 }
 0x695   :  { %v10799_v7 = vpop.f32.mrb[212].mxu0 }
 0x696   :  { %v10800_v32 = vpop.f32.mrb[213].mxu0  ;;  %v10719_v43 = vpop.f32.mrb[164].mxu1 }
 0x697   :  { %v10801_v57 = vadd.f32 %v10800_v32, %v10799_v7  ;;  %v10802_v37 = vpop.f32.mrb[214].mxu0  ;;  %v10720_v48 = vpop.f32.mrb[165].mxu1 }
 0x698   :  { %v10803_v56 = vpop.f32.mrb[215].mxu0  ;;  %v10721_v4 = vadd.f32 %v10720_v48, %v10719_v43  ;;  %v10722_v12 = vpop.f32.mrb[166].mxu1 }
 0x699   :  { %v10804_v54 = vadd.f32 %v10803_v56, %v10802_v37  ;;  %v10723_v33 = vpop.f32.mrb[167].mxu1  ;;  %v13991_v37 = vld [vmem:[%s14180_s10] sm:$0xff]  }
 0x69a   :  { %v13976_v52 = vadd.f32 %v10801_v57, %v10721_v4  ;;  %v10724_v38 = vadd.f32 %v10723_v33, %v10722_v12  ;;  %11345 = vmatprep.mubr.msk.bf16.mxu0 %vm8742_vm11, %v13991_v37 }
 0x69c   :  { %v13978_v19 = vadd.f32 %v10804_v54, %v10724_v38 }
 0x69d   :  { %v10805_v26 = vpop.f32.mrb[216].mxu0 }
 0x69e   :  { %v10806_v29 = vpop.f32.mrb[217].mxu0  ;;  %v10725_v63 = vpop.f32.mrb[168].mxu1 }
 0x69f   :  { %v10807_v15 = vadd.f32 %v10806_v29, %v10805_v26  ;;  %v10808_v35 = vpop.f32.mrb[218].mxu0  ;;  %v10726_v27 = vpop.f32.mrb[169].mxu1 }
 0x6a0   :  { %v10809_v42 = vpop.f32.mrb[219].mxu0  ;;  %v10727_v41 = vadd.f32 %v10726_v27, %v10725_v63  ;;  %v10728_v8 = vpop.f32.mrb[170].mxu1 }
 0x6a1   :  { %v10810_v60 = vadd.f32 %v10809_v42, %v10808_v35  ;;  %v10729_v21 = vpop.f32.mrb[171].mxu1 }
 0x6a2   :  { %v13980_v23 = vadd.f32 %v10807_v15, %v10727_v41  ;;  %v10730_v58 = vadd.f32 %v10729_v21, %v10728_v8 }
 0x6a4   :  { %v13982_v40 = vadd.f32 %v10810_v60, %v10730_v58 }
 0x6a5   :  { %v10811_v20 = vpop.f32.mrb[220].mxu0 }
 0x6a6   :  { %v10812_v28 = vpop.f32.mrb[221].mxu0  ;;  %v10731_v55 = vpop.f32.mrb[172].mxu1 }
 0x6a7   :  { %v10813_v24 = vadd.f32 %v10812_v28, %v10811_v20  ;;  %v10814_v36 = vpop.f32.mrb[222].mxu0  ;;  %v10732_v30 = vpop.f32.mrb[173].mxu1 }
 0x6a8   :  { %v10815_v39 = vpop.f32.mrb[223].mxu0  ;;  %v10733_v34 = vadd.f32 %v10732_v30, %v10731_v55  ;;  %v10734_v10 = vpop.f32.mrb[174].mxu1 }
 0x6a9   :  { %v10816_v16 = vadd.f32 %v10815_v39, %v10814_v36  ;;  %v10735_v7 = vpop.f32.mrb[175].mxu1 }
 0x6aa   :  { %v13984_v32 = vadd.f32 %v10813_v24, %v10733_v34  ;;  %v10736_v57 = vadd.f32 %v10735_v7, %v10734_v10 }
 0x6ac   :  { %v13986_v43 = vadd.f32 %v10816_v16, %v10736_v57 }
 0x6ee   :  { %v10849_v48 = vpop.f32.mrb[192].mxu1 }
 0x6ef   :  { %v10850_v56 = vpop.f32.mrb[193].mxu1 }
 0x6f0   :  { %v10851_v4 = vadd.f32 %v10850_v56, %v10849_v48  ;;  %v10852_v54 = vpop.f32.mrb[194].mxu1 }
 0x6f1   :  { %v10853_v12 = vpop.f32.mrb[195].mxu1 }
 0x6f2   :  { %v10854_v33 = vadd.f32 %v10853_v12, %v10852_v54  ;;  %v11581_v38 = vadd.f32 %v13956_v2, %v10851_v4 }
 0x6f4   :  { %v13997_v26 = vadd.f32 %v13958_v25, %v10854_v33 }
 0x6f6   :  { %v10855_v29 = vpop.f32.mrb[196].mxu1 }
 0x6f7   :  { %v10856_v15 = vpop.f32.mrb[197].mxu1 }
 0x6f8   :  { %v10857_v63 = vadd.f32 %v10856_v15, %v10855_v29  ;;  %v10858_v35 = vpop.f32.mrb[198].mxu1 }
 0x6f9   :  { %v10859_v27 = vpop.f32.mrb[199].mxu1 }
 0x6fa   :  { %v10860_v42 = vadd.f32 %v10859_v27, %v10858_v35  ;;  %v11578_v41 = vadd.f32 %v13960_v0, %v10857_v63 }
 0x6fc   :  { %v11584_v60 = vadd.f32 %v13962_v62, %v10860_v42 }
 0x6fe   :  { %v10861_v8 = vpop.f32.mrb[200].mxu1 }
 0x6ff   :  { %v10862_v21 = vpop.f32.mrb[201].mxu1 }
 0x700   :  { %v10863_v58 = vadd.f32 %v10862_v21, %v10861_v8  ;;  %v10864_v20 = vpop.f32.mrb[202].mxu1 }
 0x701   :  { %v10865_v28 = vpop.f32.mrb[203].mxu1 }
 0x702   :  { %v10866_v24 = vadd.f32 %v10865_v28, %v10864_v20  ;;  %v14002_v2 = vadd.f32 %v13964_v31, %v10863_v58 }
 0x704   :  { %v14005_v25 = vadd.f32 %v13966_v18, %v10866_v24 }
 0x706   :  { %v10867_v55 = vpop.f32.mrb[204].mxu1 }
 0x707   :  { %v10868_v36 = vpop.f32.mrb[205].mxu1 }
 0x708   :  { %v10869_v30 = vadd.f32 %v10868_v36, %v10867_v55  ;;  %v10870_v39 = vpop.f32.mrb[206].mxu1 }
 0x709   :  { %v10871_v34 = vpop.f32.mrb[207].mxu1 }
 0x70a   :  { %v10872_v0 = vadd.f32 %v10871_v34, %v10870_v39  ;;  %v11590_v62 = vadd.f32 %v13968_v17, %v10869_v30 }
 0x70c   :  { %v11596_v16 = vadd.f32 %v13970_v61, %v10872_v0 }
 0x70e   :  { %v10873_v10 = vpop.f32.mrb[208].mxu1 }
 0x70f   :  { %v10874_v7 = vpop.f32.mrb[209].mxu1 }
 0x710   :  { %v10875_v57 = vadd.f32 %v10874_v7, %v10873_v10  ;;  %v10876_v48 = vpop.f32.mrb[210].mxu1 }
 0x711   :  { %v10877_v56 = vpop.f32.mrb[211].mxu1 }
 0x712   :  { %v10878_v31 = vadd.f32 %v10877_v56, %v10876_v48  ;;  %v14010_v4 = vadd.f32 %v13972_v44, %v10875_v57 }
 0x714   :  { %v14013_v18 = vadd.f32 %v13974_v46, %v10878_v31 }
 0x716   :  { %v10879_v54 = vpop.f32.mrb[212].mxu1 }
 0x717   :  { %v10880_v12 = vpop.f32.mrb[213].mxu1 }
 0x718   :  { %v10881_v33 = vadd.f32 %v10880_v12, %v10879_v54  ;;  %v10882_v29 = vpop.f32.mrb[214].mxu1 }
 0x719   :  { %v10883_v15 = vpop.f32.mrb[215].mxu1 }
 0x71a   :  { %v10884_v17 = vadd.f32 %v10883_v15, %v10882_v29  ;;  %v11602_v61 = vadd.f32 %v13976_v52, %v10881_v33 }
 0x71c   :  { %v14017_v63 = vadd.f32 %v13978_v19, %v10884_v17 }
 0x71e   :  { %v10885_v35 = vpop.f32.mrb[216].mxu1 }
 0x71f   :  { %v10886_v27 = vpop.f32.mrb[217].mxu1 }
 0x720   :  { %v10887_v42 = vadd.f32 %v10886_v27, %v10885_v35  ;;  %v10888_v8 = vpop.f32.mrb[218].mxu1 }
 0x721   :  { %v10889_v44 = vpop.f32.mrb[219].mxu1 }
 0x722   :  { %v10890_v21 = vadd.f32 %v10889_v44, %v10888_v8  ;;  %v14020_v46 = vadd.f32 %v13980_v23, %v10887_v42  ;;  %v14034_v23 = vld [vmem:[%s14179_s9] ss:$0 sm:$0xff] }
 0x724   :  { %v14023_v58 = vadd.f32 %v13982_v40, %v10890_v21 }
 0x726   :  { %v10891_v20 = vpop.f32.mrb[220].mxu1 }
 0x727   :  { %v10892_v28 = vpop.f32.mrb[221].mxu1 }
 0x728   :  { %v10893_v24 = vadd.f32 %v10892_v28, %v10891_v20  ;;  %v10894_v55 = vpop.f32.mrb[222].mxu1 }
 0x729   :  { %v10895_v52 = vpop.f32.mrb[223].mxu1 }
 0x72a   :  { %v10896_v36 = vadd.f32 %v10895_v52, %v10894_v55  ;;  %v14026_v19 = vadd.f32 %v13984_v32, %v10893_v24 }
 0x72c   :  { %v14029_v30 = vadd.f32 %v13986_v43, %v10896_v36 }
 0x72e   :  { %v11323_v39 = vpop.f32.mrb[176].mxu1 }
 0x72f   :  { %v11579_v40 = vadd.f32 %v11578_v41, %v11323_v39  ;;  %v8504_v34 = vpop.f32.mrb[177].mxu1 }
 0x730   :  { %v11582_v0 = vadd.f32 %v11581_v38, %v8504_v34  ;;  %v11324_v10 = vpop.f32.mrb[178].mxu1 }
 0x731   :  { %v8592_v7 = vadd.f32 %v11579_v40, %v14034_v23  ;;  %v11585_v57 = vadd.f32 %v11584_v60, %v11324_v10  ;;  %v8507_v48 = vpop.f32.mrb[179].mxu1 }
 0x732   :  { %v8590_v32 = vadd.f32 %v11582_v0, %v14034_v23  ;;  %v11588_v56 = vadd.f32 %v13997_v26, %v8507_v48 }
 0x733   :  { %v8593_v43 = vadd.f32 %v11585_v57, %v14034_v23  ;;  %v8608_v54 = vadd.f32 %v8592_v7, %v13407_v45 }
 0x734   :  { %v8591_v31 = vadd.f32 %v11588_v56, %v14034_v23  ;;  %v8606_v41 = vadd.f32 %v8590_v32, %v13412_v47 }
 0x735   :  { %v8609_v12 = vadd.f32 %v8593_v43, %v13415_v59 }
 0x736   :  { %v8607_v38 = vadd.f32 %v8591_v31, %v13419_v22  ;;  %v11327_v33 = vpop.f32.mrb[180].mxu1 }
 0x737   :  { %v11591_v29 = vadd.f32 %v11590_v62, %v11327_v33  ;;  %v8520_v60 = vpop.f32.mrb[181].mxu1  ;;  %v8623_v15 = vpack.c.bf16 %v8609_v12, %v8608_v54  ;;  %v12265_v33 = vld [vmem:[%s14180_s10 + $0x20] sm:$0xff]  }
 0x738   :  { %v11594_v17 = vadd.f32 %v14002_v2, %v8520_v60  ;;  %v11328_v35 = vpop.f32.mrb[182].mxu1  ;;  %v8622_v26 = vpack.c.bf16 %v8607_v38, %v8606_v41  ;;  %v12271_v60 = vld [vmem:[%s14180_s10 + $0x50] sm:$0xff]  }
 0x739   :  { %v8596_v27 = vadd.f32 %v11591_v29, %v14034_v23  ;;  %v11597_v42 = vadd.f32 %v11596_v16, %v11328_v35  ;;  %v8523_v8 = vpop.f32.mrb[183].mxu1  ;;  %v12270_v29 = vld [vmem:[%s14180_s10 + $0x48] sm:$0xff]  }
 0x73a   :  { %v8594_v45 = vadd.f32 %v11594_v17, %v14034_v23  ;;  %v11600_v59 = vadd.f32 %v14005_v25, %v8523_v8  ;;  %11337 = vmatprep.subr.bf16.mxu0 %v8622_v26  ;;  %v12273_v17 = vld [vmem:[%s14180_s10 + $0x60] sm:$0xff]   ;;  %v12274_v35 = vld [vmem:[%s14180_s10 + $0x68] sm:$0xff]  }
 0x73b   :  { %v8597_v47 = vadd.f32 %v11597_v42, %v14034_v23  ;;  %11338 = vmatpush3.bf16.msra.mxu0 %v8622_v26  ;;  %v8612_v62 = vadd.f32 %v8596_v27, %v13450_v53  ;;  %v12275_v26 = vld [vmem:[%s14180_s10 + $0x70] sm:$0xff]   ;;  %v12276_v27 = vld [vmem:[%s14180_s10 + $0x78] sm:$0xff]  }
 0x73c   :  { %v8595_v22 = vadd.f32 %v11600_v59, %v14034_v23  ;;  %11339 = vmatprep.subr.bf16.mxu0 %v8623_v15  ;;  %v8610_v44 = vadd.f32 %v8594_v45, %v13452_v13 }
 0x73d   :  { %v8613_v2 = vadd.f32 %v8597_v47, %v13484_v49 }
 0x73e   :  { %v8611_v16 = vadd.f32 %v8595_v22, %v13486_v51  ;;  %v11331_v21 = vpop.f32.mrb[184].mxu1 }
 0x73f   :  { %v11603_v20 = vadd.f32 %v11602_v61, %v11331_v21  ;;  %v8536_v28 = vpop.f32.mrb[185].mxu1  ;;  %11340 = vmatpush3.bf16.msra.mxu0 %v8623_v15  ;;  %v8625_v25 = vpack.c.bf16 %v8613_v2, %v8612_v62  ;;  %v12272_v15 = vld [vmem:[%s14180_s10 + $0x58] sm:$0xff]  }
 0x740   :  { %v11606_v24 = vadd.f32 %v14010_v4, %v8536_v28  ;;  %v11332_v55 = vpop.f32.mrb[186].mxu1  ;;  %v8624_v52 = vpack.c.bf16 %v8611_v16, %v8610_v44 }
 0x741   :  { %v8600_v36 = vadd.f32 %v11603_v20, %v14034_v23  ;;  %v11609_v39 = vadd.f32 %v14017_v63, %v11332_v55  ;;  %v8539_v53 = vpop.f32.mrb[187].mxu1 }
 0x742   :  { %v8598_v49 = vadd.f32 %v11606_v24, %v14034_v23  ;;  %v11612_v13 = vadd.f32 %v14013_v18, %v8539_v53  ;;  %11341 = vmatprep.subr.bf16.mxu0 %v8624_v52  ;;  %v12262_v18 = vld [vmem:[%s14180_s10 + $0x8] sm:$0xff]  }
 0x743   :  { %v8601_v51 = vadd.f32 %v11609_v39, %v14034_v23  ;;  %11342 = vmatpush3.bf16.msra.mxu0 %v8624_v52  ;;  %v8616_v4 = vadd.f32 %v8600_v36, %v13496_v6  ;;  %v12263_v6 = vld [vmem:[%s14180_s10 + $0x10] sm:$0xff]  }
 0x744   :  { %v8599_v61 = vadd.f32 %v11612_v13, %v14034_v23  ;;  %11343 = vmatprep.subr.bf16.mxu0 %v8625_v25  ;;  %v8614_v34 = vadd.f32 %v8598_v49, %v13519_v1 }
 0x745   :  { %v8617_v40 = vadd.f32 %v8601_v51, %v13524_v11 }
 0x746   :  { %v8615_v63 = vadd.f32 %v8599_v61, %v13554_v50  ;;  %v11335_v0 = vpop.f32.mrb[188].mxu1 }
 0x747   :  { %v11615_v10 = vadd.f32 %v14026_v19, %v11335_v0  ;;  %v8552_v7 = vpop.f32.mrb[189].mxu1  ;;  %11344 = vmatpush3.bf16.msra.mxu0 %v8625_v25  ;;  %v8627_v57 = vpack.c.bf16 %v8617_v40, %v8616_v4 }
 0x748   :  { %v11618_v11 = vadd.f32 %v14020_v46, %v8552_v7  ;;  %v11336_v48 = vpop.f32.mrb[190].mxu1  ;;  %v8626_v1 = vpack.c.bf16 %v8615_v63, %v8614_v34 }
 0x749   :  { %v8604_v50 = vadd.f32 %v11615_v10, %v14034_v23  ;;  %v11621_v32 = vadd.f32 %v14029_v30, %v11336_v48  ;;  %v8555_v56 = vpop.f32.mrb[191].mxu1 }
 0x74a   :  { %v8602_v43 = vadd.f32 %v11618_v11, %v14034_v23  ;;  %v11624_v19 = vadd.f32 %v14023_v58, %v8555_v56  ;;  %11377 = vmatprep.subr.bf16.mxu0 %v8626_v1  ;;  %11346 = vmatmul.mubr.msk.bf16.vlgmr.msra.gmra.mrb[224].mxu0 %vm8742_vm11, %v12262_v18  ;;  %v12264_v58 = vld [vmem:[%s14180_s10 + $0x18] sm:$0xff]  }
 0x74b   :  { %v8605_v31 = vadd.f32 %v11621_v32, %v14034_v23  ;;  %11378 = vmatpush3.bf16.msra.mxu0 %v8626_v1  ;;  %11349 = vmatprep.mubr.msk.bf16.mxu0 %vm8742_vm11, %v12263_v6  ;;  %v8620_v54 = vadd.f32 %v8604_v50, %v13556_v14  ;;  %v12266_v14 = vld [vmem:[%s14180_s10 + $0x28] sm:$0xff]  }
 0x74c   :  { %v8603_v46 = vadd.f32 %v11624_v19, %v14034_v23  ;;  %11379 = vmatprep.subr.bf16.mxu0 %v8627_v57  ;;  %v8618_v12 = vadd.f32 %v8602_v43, %v13560_v9  ;;  %v12267_v9 = vld [vmem:[%s14180_s10 + $0x30] sm:$0xff]  }
 0x74d   :  { %v8621_v30 = vadd.f32 %v8605_v31, %v13572_v5  ;;  %v12268_v5 = vld [vmem:[%s14180_s10 + $0x38] sm:$0xff]  }
 0x74e   :  { %v8619_v41 = vadd.f32 %v8603_v46, %v13597_v3  ;;  %v12269_v3 = vld [vmem:[%s14180_s10 + $0x40] sm:$0xff]   ;;  %s12447_s10 = smov [#allocation12]  }
 0x74f   :  { %11380 = vmatpush3.bf16.msra.mxu0 %v8627_v57  ;;  %v8629_v38 = vpack.c.bf16 %v8621_v30, %v8620_v54  ;;  %s9183_s21 = sshll.u32 %s12447_s10, 4  ;;  %s9184_s21 = int_to_ptr.vmem [resolvable:$true] %s9183_s21 }
 0x750   :  { %v8628_v23 = vpack.c.bf16 %v8619_v41, %v8618_v12  ;;  %s12407_s23 = scalar_lea.vmem %s9184_s21, 8192  ;;  %p12412_p13 = scmp.lt.s32.totalorder %s9184_s21, %s9184_s21 }
 0x751   :  { %p12408_p12 = scmp.ne.s32.totalorder %s9184_s21, %s12407_s23  ;;  %p12413_p0 = scmp.lt.s32.totalorder %s12407_s23, %s12407_s23 }
 0x752   :  { %11381 = vmatprep.subr.bf16.mxu0 %v8628_v23  ;;  %11350 = vmatmul.mubr.msk.bf16.gmra.mrb[228].mxu0 %vm8742_vm11, %v12264_v58 }
 0x753   :  { %11382 = vmatpush3.bf16.msra.mxu0 %v8628_v23  ;;  %11353 = vmatprep.mubr.msk.bf16.mxu0 %vm8742_vm11, %v12265_v33  ;;  %p12414_p1 = por %p12413_p0, %p12412_p13 }
 0x754   :  { %11383 = vmatprep.subr.bf16.mxu0 %v8629_v38 }
 0x755   :  { %p12415_p2 = pnand %p12414_p1, %p12408_p12 }
 0x757   :  { %11384 = vmatpush3.bf16.msra.mxu0 %v8629_v38 }
 0x75a   :  { %11354 = vmatmul.mubr.msk.bf16.gmra.mrb[232].mxu0 %vm8742_vm11, %v12266_v14 }
 0x75b   :  { %11357 = vmatprep.mubr.msk.bf16.mxu0 %vm8742_vm11, %v12267_v9 }
 0x762   :  { %11358 = vmatmul.mubr.msk.bf16.gmra.mrb[236].mxu0 %vm8742_vm11, %v12268_v5 }
 0x763   :  { %11361 = vmatprep.mubr.msk.bf16.mxu0 %vm8742_vm11, %v12269_v3 }
 0x76a   :  { %11362 = vmatmul.mubr.msk.bf16.gmra.mrb[240].mxu0 %vm8742_vm11, %v12270_v29 }
 0x76b   :  { %11365 = vmatprep.mubr.msk.bf16.mxu0 %vm8742_vm11, %v12271_v60 }
 0x772   :  { %11366 = vmatmul.mubr.msk.bf16.gmra.mrb[244].mxu0 %vm8742_vm11, %v12272_v15 }
 0x773   :  { %11369 = vmatprep.mubr.msk.bf16.mxu0 %vm8742_vm11, %v12273_v17 }
 0x77a   :  { %11370 = vmatmul.mubr.msk.bf16.gmra.mrb[248].mxu0 %vm8742_vm11, %v12274_v35 }
 0x77b   :  { %11373 = vmatprep.mubr.msk.bf16.mxu0 %vm8742_vm11, %v12275_v26 }
 0x782   :  { %11374 = vmatmul.mubr.msk.bf16.gmra.mrb[252].mxu0 %vm8742_vm11, %v12276_v27 }
 0x783   :  { %11385 = vmatprep.mubr.msk.bf16.mxu0 %vm8742_vm11, %v13991_v37 }
 0x78a   :  { %11386 = vmatmul.mubr.msk.bf16.vlgmr.msra.gmra.mrb[0].mxu0 %vm8742_vm11, %v12262_v18 }
 0x78b   :  { %11389 = vmatprep.mubr.msk.bf16.mxu0 %vm8742_vm11, %v12263_v6 }
 0x792   :  { %11390 = vmatmul.mubr.msk.bf16.gmra.mrb[4].mxu0 %vm8742_vm11, %v12264_v58 }
 0x793   :  { %11393 = vmatprep.mubr.msk.bf16.mxu0 %vm8742_vm11, %v12265_v33 }
 0x79a   :  { %11394 = vmatmul.mubr.msk.bf16.gmra.mrb[8].mxu0 %vm8742_vm11, %v12266_v14 }
 0x79b   :  { %11397 = vmatprep.mubr.msk.bf16.mxu0 %vm8742_vm11, %v12267_v9 }
 0x7a2   :  { %11398 = vmatmul.mubr.msk.bf16.gmra.mrb[12].mxu0 %vm8742_vm11, %v12268_v5 }
 0x7a3   :  { %11401 = vmatprep.mubr.msk.bf16.mxu0 %vm8742_vm11, %v12269_v3 }
 0x7aa   :  { %11402 = vmatmul.mubr.msk.bf16.gmra.mrb[16].mxu0 %vm8742_vm11, %v12270_v29 }
 0x7ab   :  { %11405 = vmatprep.mubr.msk.bf16.mxu0 %vm8742_vm11, %v12271_v60 }
 0x7b2   :  { %11406 = vmatmul.mubr.msk.bf16.gmra.mrb[20].mxu0 %vm8742_vm11, %v12272_v15 }
 0x7b3   :  { %11409 = vmatprep.mubr.msk.bf16.mxu0 %vm8742_vm11, %v12273_v17 }
 0x7ba   :  { %11410 = vmatmul.mubr.msk.bf16.gmra.mrb[24].mxu0 %vm8742_vm11, %v12274_v35 }
 0x7bb   :  { %11413 = vmatprep.mubr.msk.bf16.mxu0 %vm8742_vm11, %v12275_v26 }
 0x7c2   :  { %11414 = vmatmul.mubr.msk.bf16.gmra.mrb[28].mxu0 %vm8742_vm11, %v12276_v27 }
 0x81d   :  { %v11347_v37 = vpop.f32.mrb[224].mxu0 }
 0x81e   :  { %8954 = vst [vmem:[#allocation12 + $0x10] sm:$0xff] %v11347_v37  ;;  %v8825_v42 = vpop.f32.mrb[225].mxu0 }
 0x81f   :  { %8952 = vst [vmem:[#allocation12] sm:$0xff] %v8825_v42  ;;  %v11348_v8 = vpop.f32.mrb[226].mxu0 }
 0x820   :  { %8955 = vst [vmem:[#allocation12 + $0x18] sm:$0xff] %v11348_v8  ;;  %v8828_v45 = vpop.f32.mrb[227].mxu0 }
 0x821   :  { %8953 = vst [vmem:[#allocation12 + $0x8] sm:$0xff] %v8828_v45 }
 0x825   :  { %v11351_v59 = vpop.f32.mrb[228].mxu0 }
 0x826   :  { %8958 = vst [vmem:[#allocation12 + $0x30] sm:$0xff] %v11351_v59  ;;  %v8841_v47 = vpop.f32.mrb[229].mxu0 }
 0x827   :  { %8956 = vst [vmem:[#allocation12 + $0x20] sm:$0xff] %v8841_v47  ;;  %v11352_v22 = vpop.f32.mrb[230].mxu0 }
 0x828   :  { %8959 = vst [vmem:[#allocation12 + $0x38] sm:$0xff] %v11352_v22  ;;  %v8844_v62 = vpop.f32.mrb[231].mxu0 }
 0x829   :  { %8957 = vst [vmem:[#allocation12 + $0x28] sm:$0xff] %v8844_v62 }
 0x82d   :  { %v11355_v2 = vpop.f32.mrb[232].mxu0 }
 0x82e   :  { %8962 = vst [vmem:[#allocation12 + $0x50] sm:$0xff] %v11355_v2  ;;  %v8857_v44 = vpop.f32.mrb[233].mxu0 }
 0x82f   :  { %8960 = vst [vmem:[#allocation12 + $0x40] sm:$0xff] %v8857_v44  ;;  %v11356_v16 = vpop.f32.mrb[234].mxu0 }
 0x830   :  { %8963 = vst [vmem:[#allocation12 + $0x58] sm:$0xff] %v11356_v16  ;;  %v8860_v21 = vpop.f32.mrb[235].mxu0 }
 0x831   :  { %8961 = vst [vmem:[#allocation12 + $0x48] sm:$0xff] %v8860_v21 }
 0x835   :  { %v11359_v20 = vpop.f32.mrb[236].mxu0 }
 0x836   :  { %8966 = vst [vmem:[#allocation12 + $0x70] sm:$0xff] %v11359_v20  ;;  %v8873_v28 = vpop.f32.mrb[237].mxu0 }
 0x837   :  { %8964 = vst [vmem:[#allocation12 + $0x60] sm:$0xff] %v8873_v28  ;;  %v11360_v25 = vpop.f32.mrb[238].mxu0 }
 0x838   :  { %8967 = vst [vmem:[#allocation12 + $0x78] sm:$0xff] %v11360_v25  ;;  %v8876_v24 = vpop.f32.mrb[239].mxu0 }
 0x839   :  { %8965 = vst [vmem:[#allocation12 + $0x68] sm:$0xff] %v8876_v24 }
 0x83d   :  { %v11363_v55 = vpop.f32.mrb[240].mxu0 }
 0x83e   :  { %8970 = vst [vmem:[#allocation12 + $0x90] sm:$0xff] %v11363_v55  ;;  %v8889_v52 = vpop.f32.mrb[241].mxu0 }
 0x83f   :  { %8968 = vst [vmem:[#allocation12 + $0x80] sm:$0xff] %v8889_v52  ;;  %v11364_v36 = vpop.f32.mrb[242].mxu0 }
 0x840   :  { %8971 = vst [vmem:[#allocation12 + $0x98] sm:$0xff] %v11364_v36  ;;  %v8892_v39 = vpop.f32.mrb[243].mxu0 }
 0x841   :  { %8969 = vst [vmem:[#allocation12 + $0x88] sm:$0xff] %v8892_v39 }
 0x845   :  { %v11367_v53 = vpop.f32.mrb[244].mxu0 }
 0x846   :  { %8974 = vst [vmem:[#allocation12 + $0xb0] sm:$0xff] %v11367_v53  ;;  %v8905_v49 = vpop.f32.mrb[245].mxu0 }
 0x847   :  { %8972 = vst [vmem:[#allocation12 + $0xa0] sm:$0xff] %v8905_v49  ;;  %v11368_v13 = vpop.f32.mrb[246].mxu0 }
 0x848   :  { %8975 = vst [vmem:[#allocation12 + $0xb8] sm:$0xff] %v11368_v13  ;;  %v8908_v51 = vpop.f32.mrb[247].mxu0 }
 0x849   :  { %8973 = vst [vmem:[#allocation12 + $0xa8] sm:$0xff] %v8908_v51 }
 0x84d   :  { %v11371_v61 = vpop.f32.mrb[248].mxu0 }
 0x84e   :  { %8978 = vst [vmem:[#allocation12 + $0xd0] sm:$0xff] %v11371_v61  ;;  %v8921_v4 = vpop.f32.mrb[249].mxu0 }
 0x84f   :  { %8976 = vst [vmem:[#allocation12 + $0xc0] sm:$0xff] %v8921_v4  ;;  %v11372_v40 = vpop.f32.mrb[250].mxu0 }
 0x850   :  { %8979 = vst [vmem:[#allocation12 + $0xd8] sm:$0xff] %v11372_v40  ;;  %v8924_v34 = vpop.f32.mrb[251].mxu0 }
 0x851   :  { %8977 = vst [vmem:[#allocation12 + $0xc8] sm:$0xff] %v8924_v34 }
 0x855   :  { %v11375_v63 = vpop.f32.mrb[252].mxu0 }
 0x856   :  { %8982 = vst [vmem:[#allocation12 + $0xf0] sm:$0xff] %v11375_v63  ;;  %v8937_v0 = vpop.f32.mrb[253].mxu0 }
 0x857   :  { %8980 = vst [vmem:[#allocation12 + $0xe0] sm:$0xff] %v8937_v0  ;;  %v11376_v18 = vpop.f32.mrb[254].mxu0 }
 0x858   :  { %8983 = vst [vmem:[#allocation12 + $0xf8] sm:$0xff] %v11376_v18  ;;  %v8940_v10 = vpop.f32.mrb[255].mxu0 }
 0x859   :  { %8981 = vst [vmem:[#allocation12 + $0xe8] sm:$0xff] %v8940_v10 }
 0x85d   :  { %v11387_v7 = vpop.f32.mrb[0].mxu0 }
 0x85e   :  { %9148 = vst [vmem:[#allocation12 + $0x110] sm:$0xff] %v11387_v7  ;;  %v9018_v57 = vpop.f32.mrb[1].mxu0 }
 0x85f   :  { %9146 = vst [vmem:[#allocation12 + $0x100] sm:$0xff] %v9018_v57  ;;  %v11388_v6 = vpop.f32.mrb[2].mxu0 }
 0x860   :  { %9149 = vst [vmem:[#allocation12 + $0x118] sm:$0xff] %v11388_v6  ;;  %v9021_v11 = vpop.f32.mrb[3].mxu0 }
 0x861   :  { %9147 = vst [vmem:[#allocation12 + $0x108] sm:$0xff] %v9021_v11 }
 0x865   :  { %v11391_v48 = vpop.f32.mrb[4].mxu0 }
 0x866   :  { %9152 = vst [vmem:[#allocation12 + $0x130] sm:$0xff] %v11391_v48  ;;  %v9034_v1 = vpop.f32.mrb[5].mxu0 }
 0x867   :  { %9150 = vst [vmem:[#allocation12 + $0x120] sm:$0xff] %v9034_v1  ;;  %v11392_v50 = vpop.f32.mrb[6].mxu0 }
 0x868   :  { %9153 = vst [vmem:[#allocation12 + $0x138] sm:$0xff] %v11392_v50  ;;  %v9037_v32 = vpop.f32.mrb[7].mxu0 }
 0x869   :  { %9151 = vst [vmem:[#allocation12 + $0x128] sm:$0xff] %v9037_v32 }
 0x86d   :  { %v11395_v56 = vpop.f32.mrb[8].mxu0 }
 0x86e   :  { %9156 = vst [vmem:[#allocation12 + $0x150] sm:$0xff] %v11395_v56  ;;  %v9050_v43 = vpop.f32.mrb[9].mxu0 }
 0x86f   :  { %9154 = vst [vmem:[#allocation12 + $0x140] sm:$0xff] %v9050_v43  ;;  %v11396_v19 = vpop.f32.mrb[10].mxu0 }
 0x870   :  { %9157 = vst [vmem:[#allocation12 + $0x158] sm:$0xff] %v11396_v19  ;;  %v9053_v31 = vpop.f32.mrb[11].mxu0 }
 0x871   :  { %9155 = vst [vmem:[#allocation12 + $0x148] sm:$0xff] %v9053_v31 }
 0x875   :  { %v11399_v46 = vpop.f32.mrb[12].mxu0 }
 0x876   :  { %9160 = vst [vmem:[#allocation12 + $0x170] sm:$0xff] %v11399_v46  ;;  %v9066_v54 = vpop.f32.mrb[13].mxu0 }
 0x877   :  { %9158 = vst [vmem:[#allocation12 + $0x160] sm:$0xff] %v9066_v54  ;;  %v11400_v30 = vpop.f32.mrb[14].mxu0 }
 0x878   :  { %9161 = vst [vmem:[#allocation12 + $0x178] sm:$0xff] %v11400_v30  ;;  %v9069_v12 = vpop.f32.mrb[15].mxu0 }
 0x879   :  { %9159 = vst [vmem:[#allocation12 + $0x168] sm:$0xff] %v9069_v12 }
 0x87d   :  { %v11403_v41 = vpop.f32.mrb[16].mxu0 }
 0x87e   :  { %9164 = vst [vmem:[#allocation12 + $0x190] sm:$0xff] %v11403_v41  ;;  %v9082_v58 = vpop.f32.mrb[17].mxu0 }
 0x87f   :  { %9162 = vst [vmem:[#allocation12 + $0x180] sm:$0xff] %v9082_v58  ;;  %v11404_v38 = vpop.f32.mrb[18].mxu0 }
 0x880   :  { %9165 = vst [vmem:[#allocation12 + $0x198] sm:$0xff] %v11404_v38  ;;  %v9085_v33 = vpop.f32.mrb[19].mxu0 }
 0x881   :  { %9163 = vst [vmem:[#allocation12 + $0x188] sm:$0xff] %v9085_v33 }
 0x885   :  { %v11407_v23 = vpop.f32.mrb[20].mxu0 }
 0x886   :  { %9168 = vst [vmem:[#allocation12 + $0x1b0] sm:$0xff] %v11407_v23  ;;  %v9098_v14 = vpop.f32.mrb[21].mxu0 }
 0x887   :  { %9166 = vst [vmem:[#allocation12 + $0x1a0] sm:$0xff] %v9098_v14  ;;  %v11408_v9 = vpop.f32.mrb[22].mxu0 }
 0x888   :  { %9169 = vst [vmem:[#allocation12 + $0x1b8] sm:$0xff] %v11408_v9  ;;  %v9101_v5 = vpop.f32.mrb[23].mxu0 }
 0x889   :  { %9167 = vst [vmem:[#allocation12 + $0x1a8] sm:$0xff] %v9101_v5 }
 0x88d   :  { %v11411_v3 = vpop.f32.mrb[24].mxu0 }
 0x88e   :  { %9172 = vst [vmem:[#allocation12 + $0x1d0] sm:$0xff] %v11411_v3  ;;  %v9114_v29 = vpop.f32.mrb[25].mxu0 }
 0x88f   :  { %9170 = vst [vmem:[#allocation12 + $0x1c0] sm:$0xff] %v9114_v29  ;;  %v11412_v60 = vpop.f32.mrb[26].mxu0 }
 0x890   :  { %9173 = vst [vmem:[#allocation12 + $0x1d8] sm:$0xff] %v11412_v60  ;;  %v9117_v15 = vpop.f32.mrb[27].mxu0 }
 0x891   :  { %9171 = vst [vmem:[#allocation12 + $0x1c8] sm:$0xff] %v9117_v15 }
 0x895   :  { %v11415_v17 = vpop.f32.mrb[28].mxu0 }
 0x896   :  { %9176 = vst [vmem:[#allocation12 + $0x1f0] sm:$0xff] %v11415_v17  ;;  %v9130_v35 = vpop.f32.mrb[29].mxu0 }
 0x897   :  { %9174 = vst [vmem:[#allocation12 + $0x1e0] sm:$0xff] %v9130_v35  ;;  %v11416_v26 = vpop.f32.mrb[30].mxu0 }
 0x898   :  { %9177 = vst [vmem:[#allocation12 + $0x1f8] sm:$0xff] %v11416_v26  ;;  %v9133_v27 = vpop.f32.mrb[31].mxu0 }
 0x899   :  { %9175 = vst [vmem:[#allocation12 + $0x1e8] sm:$0xff] %v9133_v27 }
 0x89a   :  { %12418 = shalt.err (!%p12415_p2)
}
 0x89b   :  { %s12419_s4 = scalar_lea.hbm %s14181_s11, 8192 }
 0x89c   :  { %p12420_p3 = scmp.ne.s32.totalorder %s14181_s11, %s12419_s4  ;;  %p12423_p4 = scmp.lt.u32.totalorder %s12419_s4, %s14181_s11 }
 0x89e   :  { %p12425_p5 = pnand %p12423_p4, %p12420_p3 }
 0x8a0   :  { %12428 = shalt.err (!%p12425_p5)
}
 0x8a1   :  { %9189 = dma.vmem_to_hbm [thread:$0]  %s9184_s21, 8192, %s14181_s11, [#allocation5], %s12442_s6, %s12442_s6, %s12443_s13  }
 0x8a2   :  { %12435 = dma.done.wait [#allocation5], 8192  }
 0x8a3   :  { %12436 = vsyncadd [#allocation5], 4294959104 }
 0x8a4   :  { %9193 = vsyncpa [#allocation4], 1 }
 0x8a5   :  { %9194 = vsyncpa [#allocation7], 1 }
 0x8a6   :  { %9195 = vsyncpa [#allocation10], 1 }
 0x8a7   :  { %9196 = vsyncpa [#allocation5], 1 }

</bundles_post_ra>
